<compile_context>
chip_gen: v7x
topology: tpu7x:2x2x1
jax: 0.10.0
libtpu: 0.0.40
codegen_flags: <defaults>
</compile_context>

<pallas_src>
import functools

import jax
import jax.numpy as jnp
from jax import lax
from jax.experimental import pallas as pl
from jax.experimental.pallas import tpu as pltpu


# =============================================================================
# Helpers
# =============================================================================
@functools.lru_cache(maxsize=None)
def _vmem_limit_bytes():
    # ~3/4 of physical VMEM, capped at 96 MiB (v5e/v6e: 128 MiB, v7x: 64 MiB).
    try:
        cap = getattr(pltpu.get_tpu_info(), "vmem_capacity_bytes", None)
        if cap:
            return int(max(32 * 2**20, min(96 * 2**20, (cap * 3) // 4)))
    except Exception:
        pass
    return 48 * 2**20


def _rms_silu(v, gamma, dim):
    # F.normalize(x, dim=channel) * sqrt(dim) * gamma, then SiLU (f32 math).
    ss = jnp.sum(v * v, axis=-1, keepdims=True)
    y = v * (float(dim) ** 0.5 * lax.rsqrt(jnp.maximum(ss, 1e-24))) * gamma
    return y * pl.reciprocal(1.0 + jnp.exp(-y), approx=True)


def _gather_spatial_taps(pad_ref, col_ref, H, W, c):
    # im2col for a 3x3 spatial window: the 9 shifted taps of the zero-bordered
    # frame (sliced from the scratch Ref, never loaded whole) are written into
    # the (HW, 9*c) slab, grouped so each store is ~128 lanes wide.
    hw = H * W
    pieces = [pad_ref[dh:dh + H, dw:dw + W, :].reshape(hw, c)
              for dh in range(3) for dw in range(3)]
    group = max(1, 128 // c)
    k = 0
    while k < 9:
        n = min(group, 9 - k)
        chunk = pieces[k] if n == 1 else jnp.concatenate(pieces[k:k + n], axis=-1)
        col_ref[:, k * c:(k + n) * c] = chunk
        k += n


# =============================================================================
# Kernel 1: fully fused ResidualBlock (per batch, per frame grid step)
#
# Causal temporal conv via partial sums: the merged weight gives, per frame,
#   r = [f0(x_t) | f1(x_t) | f2(x_t)]    (one K=9*C matmul, N=3*Cout)
# where f_kt is the spatial 3x3 conv with temporal tap kt.  Then
#   out[t]   = f2(x_t) + accA            (accA = f1(x_{t-1}) + f0(x_{t-2}))
#   accA'    = accB + f1(x_t)            (pending for out[t+1])
#   accB'    = f0(x_t)                   (pending for out[t+2])
# which reproduces CausalConv3d's (2, 0) temporal zero padding exactly.
# =============================================================================
def _res_block_kernel(*refs, H, W, has_shortcut):
    if has_shortcut:
        (x_ref, g1_ref, w1_ref, b1_ref, g2_ref, w2_ref, b2_ref, ws_ref, bs_ref,
         o_ref, pad_a, pad_b, col_a, col_b, acc1, acc2) = refs
    else:
        (x_ref, g1_ref, w1_ref, b1_ref, g2_ref, w2_ref, b2_ref,
         o_ref, pad_a, pad_b, col_a, col_b, acc1, acc2) = refs
        ws_ref = bs_ref = None

    cin = x_ref.shape[-1]
    cout = o_ref.shape[-1]
    t = pl.program_id(1)

    @pl.when(t == 0)
    def _():
        # Zero the spatial borders (the interior is fully overwritten every
        # step, so the border stays zero) and the causal partial-sum carries.
        pad_a[...] = jnp.zeros_like(pad_a)
        pad_b[...] = jnp.zeros_like(pad_b)
        acc1[...] = jnp.zeros_like(acc1)
        acc2[...] = jnp.zeros_like(acc2)

    x_bf = x_ref[0, 0]                                   # (HW, Cin) bf16

    # --- RMS_norm + SiLU #1 ----------------------------------------------------
    a = _rms_silu(x_bf.astype(jnp.float32), g1_ref[...], cin)
    pad_a[1:H + 1, 1:W + 1, :] = a.astype(jnp.bfloat16).reshape(H, W, cin)

    # --- CausalConv3d #1 (spatial im2col + merged temporal matmul) --------------
    _gather_spatial_taps(pad_a, col_a, H, W, cin)
    r1 = jnp.dot(col_a[...], w1_ref[...],
                 preferred_element_type=jnp.float32)     # (HW, 3*Cout)
    c1 = r1[:, 2 * cout:] + acc1[0] + b1_ref[...]
    acc1[0] = acc1[1] + r1[:, cout:2 * cout]
    acc1[1] = r1[:, :cout]

    # --- RMS_norm + SiLU #2  (Dropout(p=0.0) == identity) -----------------------
    bn = _rms_silu(c1, g2_ref[...], cout)
    pad_b[1:H + 1, 1:W + 1, :] = bn.astype(jnp.bfloat16).reshape(H, W, cout)

    # --- CausalConv3d #2 --------------------------------------------------------
    _gather_spatial_taps(pad_b, col_b, H, W, cout)
    r2 = jnp.dot(col_b[...], w2_ref[...],
                 preferred_element_type=jnp.float32)
    c2 = r2[:, 2 * cout:] + acc2[0] + b2_ref[...]
    acc2[0] = acc2[1] + r2[:, cout:2 * cout]
    acc2[1] = r2[:, :cout]

    # --- shortcut (1x1x1 CausalConv3d or true identity) + residual add ----------
    if has_shortcut:
        sc = jnp.dot(x_bf, ws_ref[...],
                     preferred_element_type=jnp.float32) + bs_ref[...]
    else:
        sc = x_bf.astype(jnp.float32)
    o_ref[0, 0] = (c2 + sc).astype(o_ref.dtype)


def _residual_block_call(x, p, H, W):
    B, T, HW, cin = x.shape
    cout = p["w2"].shape[-1] // 3
    has_shortcut = "ws" in p
    kernel = functools.partial(_res_block_kernel, H=H, W=W,
                               has_shortcut=has_shortcut)

    in_specs = [
        pl.BlockSpec((1, 1, HW, cin), lambda b, t: (b, t, 0, 0)),
        pl.BlockSpec((1, cin), lambda b, t: (0, 0)),
        pl.BlockSpec((9 * cin, 3 * cout), lambda b, t: (0, 0)),
        pl.BlockSpec((1, cout), lambda b, t: (0, 0)),
        pl.BlockSpec((1, cout), lambda b, t: (0, 0)),
        pl.BlockSpec((9 * cout, 3 * cout), lambda b, t: (0, 0)),
        pl.BlockSpec((1, cout), lambda b, t: (0, 0)),
    ]
    args = [x, p["g1"], p["w1"], p["b1"], p["g2"], p["w2"], p["b2"]]
    if has_shortcut:
        in_specs += [pl.BlockSpec((cin, cout), lambda b, t: (0, 0)),
                     pl.BlockSpec((1, cout), lambda b, t: (0, 0))]
        args += [p["ws"], p["bs"]]

    grid_spec = pltpu.PrefetchScalarGridSpec(
        num_scalar_prefetch=0,
        grid=(B, T),
        in_specs=in_specs,
        out_specs=pl.BlockSpec((1, 1, HW, cout), lambda b, t: (b, t, 0, 0)),
        scratch_shapes=[
            pltpu.VMEM((H + 2, W + 2, cin), jnp.bfloat16),   # bordered frame (in)
            pltpu.VMEM((H + 2, W + 2, cout), jnp.bfloat16),  # bordered frame (hid)
            pltpu.VMEM((HW, 9 * cin), jnp.bfloat16),         # im2col slab conv1
            pltpu.VMEM((HW, 9 * cout), jnp.bfloat16),        # im2col slab conv2
            pltpu.VMEM((2, HW, cout), jnp.float32),          # causal carry conv1
            pltpu.VMEM((2, HW, cout), jnp.float32),          # causal carry conv2
        ],
    )
    return pl.pallas_call(
        kernel,
        out_shape=jax.ShapeDtypeStruct((B, T, HW, cout), jnp.bfloat16),
        grid_spec=grid_spec,
        compiler_params=pltpu.CompilerParams(
            dimension_semantics=("parallel", "arbitrary"),
            vmem_limit_bytes=_vmem_limit_bytes()),
    )(*args)


# =============================================================================
# Kernel 2: Resample38('upsample2d') (nearest-exact 2x + Conv2d 3x3) fused with
#           the DupUp3D shortcut and the final residual add.
#
# out[2h+p, 2w+q, :] = res[h*W+w, (2p+q)*C:(2p+q+1)*C]  where
#   res = im2col9(ypad) @ W_merged  (single (HW,9C)x(9C,4C=128) matmul),
# W_merged folds the nearest-exact parity decomposition and zero padding.
# shortcut[2h+p, 2w+q, co] = x[h, w, co // (Cout/Cin)]   (DupUp3D, ft=1, fs=2),
# parity-independent, added in-kernel via a tiny 0/1 duplication matmul.
# =============================================================================
def _upsample_kernel(y_ref, x0_ref, w_ref, b_ref, dup_ref, o_ref,
                     pad_y, col_y, *, H, W):
    C = y_ref.shape[-1]

    # Zero only the 1-px border strips; the interior is overwritten every step.
    zrow = jnp.zeros((1, W + 2, C), pad_y.dtype)
    zcol = jnp.zeros((H, 1, C), pad_y.dtype)
    pad_y[0:1, :, :] = zrow
    pad_y[H + 1:H + 2, :, :] = zrow
    pad_y[1:H + 1, 0:1, :] = zcol
    pad_y[1:H + 1, W + 1:W + 2, :] = zcol
    pad_y[1:H + 1, 1:W + 1, :] = y_ref[0, 0].reshape(H, W, C)

    _gather_spatial_taps(pad_y, col_y, H, W, C)
    res = jnp.dot(col_y[...], w_ref[...],
                  preferred_element_type=jnp.float32)          # (HW, 4C)
    sc = jnp.dot(x0_ref[0, 0], dup_ref[...],
                 preferred_element_type=jnp.float32) + b_ref[...]
    sc4 = jnp.concatenate([sc, sc, sc, sc], axis=-1)           # same for 4 parities
    o_ref[0, 0] = (res + sc4).astype(o_ref.dtype)              # lane-dense store


def _upsample_call(y, x0, w_up, b_up, dup, H, W):
    B, T, HW, C = y.shape
    cin0 = x0.shape[-1]
    kernel = functools.partial(_upsample_kernel, H=H, W=W)
    grid_spec = pltpu.PrefetchScalarGridSpec(
        num_scalar_prefetch=0,
        grid=(B, T),
        in_specs=[
            pl.BlockSpec((1, 1, HW, C), lambda b, t: (b, t, 0, 0)),
            pl.BlockSpec((1, 1, HW, cin0), lambda b, t: (b, t, 0, 0)),
            pl.BlockSpec((9 * C, 4 * C), lambda b, t: (0, 0)),
            pl.BlockSpec((1, C), lambda b, t: (0, 0)),
            pl.BlockSpec((cin0, C), lambda b, t: (0, 0)),
        ],
        out_specs=pl.BlockSpec((1, 1, HW, 4 * C), lambda b, t: (b, t, 0, 0)),
        scratch_shapes=[
            pltpu.VMEM((H + 2, W + 2, C), jnp.bfloat16),       # bordered frame
            pltpu.VMEM((HW, 9 * C), jnp.bfloat16),             # im2col slab
        ],
    )
    return pl.pallas_call(
        kernel,
        out_shape=jax.ShapeDtypeStruct((B, T, HW, 4 * C), jnp.bfloat16),
        grid_spec=grid_spec,
        compiler_params=pltpu.CompilerParams(
            dimension_semantics=("parallel", "parallel"),
            vmem_limit_bytes=_vmem_limit_bytes()),
    )(y, x0, w_up, b_up, dup)


# =============================================================================
# Host-side parameter preparation
# =============================================================================
def _merge_causal_conv_weight(w):
    # w: (kt, kh, kw, cin, cout) -> (9*cin, 3*cout); rows (kh,kw,cin), cols (kt,cout).
    kt, kh, kw, cin, cout = w.shape
    return jnp.transpose(w, (1, 2, 3, 0, 4)).reshape(kh * kw * cin, kt * cout)


def _merged_upsample_weight(w):
    # w: (3, 3, C, Co) Conv2d weight applied after nearest-exact 2x upsampling.
    # Fold the upsample into 4 parity sub-convs over the un-upsampled frame and
    # concatenate them column-wise -> (9*C, 4*Co) (4*Co = 128: lane-dense).
    C, Co = w.shape[2], w.shape[3]
    zrow = jnp.zeros((3, C, Co), w.dtype)
    rows = [jnp.stack([w[0], w[1] + w[2], zrow], axis=0),        # parity p = 0
            jnp.stack([zrow, w[0] + w[1], w[2]], axis=0)]        # parity p = 1
    zcol = jnp.zeros((3, C, Co), w.dtype)
    blocks = []
    for p in range(2):
        r = rows[p]                                              # (3[dh], 3[kw], C, Co)
        for q in range(2):
            if q == 0:
                e = jnp.stack([r[:, 0], r[:, 1] + r[:, 2], zcol], axis=1)
            else:
                e = jnp.stack([zcol, r[:, 0] + r[:, 1], r[:, 2]], axis=1)
            blocks.append(e.reshape(9 * C, Co))                  # rows (dh, dw, ci)
    return jnp.concatenate(blocks, axis=-1)                      # cols (2p+q, co)


def _make_res_block_params(key, cin, cout):
    ks = jax.random.split(key, 6)
    w1 = jax.random.normal(ks[0], (3, 3, 3, cin, cout), jnp.float32) / (27.0 * cin) ** 0.5
    w2 = jax.random.normal(ks[1], (3, 3, 3, cout, cout), jnp.float32) / (27.0 * cout) ** 0.5
    p = {
        "g1": jnp.ones((1, cin), jnp.float32),
        "w1": _merge_causal_conv_weight(w1).astype(jnp.bfloat16),
        "b1": 0.01 * jax.random.normal(ks[2], (1, cout), jnp.float32),
        "g2": jnp.ones((1, cout), jnp.float32),
        "w2": _merge_causal_conv_weight(w2).astype(jnp.bfloat16),
        "b2": 0.01 * jax.random.normal(ks[3], (1, cout), jnp.float32),
    }
    if cin != cout:   # 1x1x1 CausalConv3d shortcut; identity blocks carry no weight
        p["ws"] = (jax.random.normal(ks[4], (cin, cout), jnp.float32)
                   / cin ** 0.5).astype(jnp.bfloat16)
        p["bs"] = 0.01 * jax.random.normal(ks[5], (1, cout), jnp.float32)
    return p


# =============================================================================
# Public wrapper: PyTorch NCDHW in / NCDHW (bf16) out
# =============================================================================
def up_residual_block(x_ncthw, params):
    B, Cin, T, H, W = x_ncthw.shape
    x = jnp.transpose(x_ncthw, (0, 2, 3, 4, 1)).reshape(B, T, H * W, Cin)
    x = x.astype(jnp.bfloat16)                                   # pixels-flat

    # upsamples = [ResidualBlock] * mult  (each is ONE fused pallas_call)
    h = x
    for p in params["blocks"]:
        h = _residual_block_call(h, p, H, W)

    # Resample38('upsample2d') + DupUp3D shortcut + final add (ONE pallas_call).
    C = h.shape[-1]
    o = _upsample_call(h, x, params["up_w"], params["up_b"], params["dup"], H, W)

    # (B, T, HW, 4C) -> NCDHW with the single mandatory transpose (no extra
    # parity-interleave round trip: parities are reshaped as (p, q, c) dims).
    o = o.reshape(B, T, H, W, 2, 2, C)
    o = jnp.transpose(o, (0, 6, 1, 2, 4, 3, 5))                  # (B,C,T,H,2,W,2)
    return o.reshape(B, C, T, 2 * H, 2 * W)


# =============================================================================
# Deterministic synthetic parameters + driver
# =============================================================================
if __name__ == "__main__":
    B, CIN, COUT, T, H, W = 2, 16, 32, 4, 8, 8
    MULT = 2

    key = jax.random.PRNGKey(0)
    keys = jax.random.split(key, 8)

    blocks = []
    cin = CIN
    for i in range(MULT):
        blocks.append(_make_res_block_params(keys[i], cin, COUT))
        cin = COUT

    w_up = jax.random.normal(keys[4], (3, 3, COUT, COUT), jnp.float32) / (9.0 * COUT) ** 0.5
    dup = (jnp.arange(COUT)[None, :] // (COUT // CIN)
           == jnp.arange(CIN)[:, None]).astype(jnp.bfloat16)     # DupUp3D map

    params = {
        "blocks": blocks,
        "up_w": _merged_upsample_weight(w_up).astype(jnp.bfloat16),
        "up_b": 0.01 * jax.random.normal(keys[5], (1, COUT), jnp.float32),
        "dup": dup,
    }

    x = jax.random.normal(keys[6], (B, CIN, T, H, W), jnp.float32)

    fwd = jax.jit(up_residual_block)
    out = jax.block_until_ready(fwd(x, params))

    assert out.shape == (B, COUT, T, 2 * H, 2 * W), out.shape
    assert bool(jnp.all(jnp.isfinite(out.astype(jnp.float32))))
    print("KERNEL_OK")
</pallas_src>

<mosaic_0001>
module attributes {stable_mosaic.version = 11 : i64} {
  func.func @_upsample_kernel(%arg0: i32, %arg1: i32, %arg2: memref<1x1x64x32xbf16, #tpu.memory_space<vmem>>, %arg3: memref<1x1x64x16xbf16, #tpu.memory_space<vmem>>, %arg4: memref<288x128xbf16, #tpu.memory_space<vmem>>, %arg5: memref<1x32xf32, #tpu.memory_space<vmem>>, %arg6: memref<16x32xbf16, #tpu.memory_space<vmem>>, %arg7: memref<1x1x64x128xbf16, #tpu.memory_space<vmem>>, %arg8: memref<10x10x32xbf16, #tpu.memory_space<vmem>>, %arg9: memref<64x288xbf16, #tpu.memory_space<vmem>>) attributes {dimension_semantics = [#tpu.dimension_semantics<parallel>, #tpu.dimension_semantics<parallel>], iteration_bounds = array<i64: 2, 4>, scalar_prefetch = 0 : i64, scratch_operands = 2 : i64, tpu.core_type = #tpu.core_type<tc>, window_params = [{transform_indices = @transform_0, window_bounds = array<i64: 1, 1, 64, 32>}, {transform_indices = @transform_1, window_bounds = array<i64: 1, 1, 64, 16>}, {pipeline_mode = #tpu.pipeline_mode<synchronous>, transform_indices = @transform_2, window_bounds = array<i64: 288, 128>}, {pipeline_mode = #tpu.pipeline_mode<synchronous>, transform_indices = @transform_3, window_bounds = array<i64: 1, 32>}, {pipeline_mode = #tpu.pipeline_mode<synchronous>, transform_indices = @transform_4, window_bounds = array<i64: 16, 32>}, {transform_indices = @transform_5, window_bounds = array<i64: 1, 1, 64, 128>}]} {
    %cst = arith.constant 0.000000e+00 : bf16
    %0 = vector.broadcast %cst : bf16 to vector<1x10x32xbf16>
    %cst_0 = arith.constant 0.000000e+00 : bf16
    %1 = vector.broadcast %cst_0 : bf16 to vector<8x1x32xbf16>
    %c0 = arith.constant 0 : index
    %c0_1 = arith.constant 0 : index
    %c0_2 = arith.constant 0 : index
    %2 = vector.load %arg8[%c0, %c0_1, %c0_2] : memref<10x10x32xbf16, #tpu.memory_space<vmem>>, vector<1x10x32xbf16>
    tpu.vector_store %arg8[%c0, %c0_1, %c0_2], %0 {strides = array<i32>} : memref<10x10x32xbf16, #tpu.memory_space<vmem>>, vector<1x10x32xbf16>,
    %c9 = arith.constant 9 : index
    %c0_3 = arith.constant 0 : index
    %c0_4 = arith.constant 0 : index
    %3 = vector.load %arg8[%c9, %c0_3, %c0_4] : memref<10x10x32xbf16, #tpu.memory_space<vmem>>, vector<1x10x32xbf16>
    tpu.vector_store %arg8[%c9, %c0_3, %c0_4], %0 {strides = array<i32>} : memref<10x10x32xbf16, #tpu.memory_space<vmem>>, vector<1x10x32xbf16>,
    %c1 = arith.constant 1 : index
    %c0_5 = arith.constant 0 : index
    %c0_6 = arith.constant 0 : index
    %4 = vector.load %arg8[%c1, %c0_5, %c0_6] : memref<10x10x32xbf16, #tpu.memory_space<vmem>>, vector<8x1x32xbf16>
    tpu.vector_store %arg8[%c1, %c0_5, %c0_6], %1 {strides = array<i32>} : memref<10x10x32xbf16, #tpu.memory_space<vmem>>, vector<8x1x32xbf16>,
    %c1_7 = arith.constant 1 : index
    %c9_8 = arith.constant 9 : index
    %c0_9 = arith.constant 0 : index
    %5 = vector.load %arg8[%c1_7, %c9_8, %c0_9] : memref<10x10x32xbf16, #tpu.memory_space<vmem>>, vector<8x1x32xbf16>
    tpu.vector_store %arg8[%c1_7, %c9_8, %c0_9], %1 {strides = array<i32>} : memref<10x10x32xbf16, #tpu.memory_space<vmem>>, vector<8x1x32xbf16>,
    %c0_10 = arith.constant 0 : index
    %c0_11 = arith.constant 0 : index
    %c0_12 = arith.constant 0 : index
    %c0_13 = arith.constant 0 : index
    %6 = vector.load %arg2[%c0_10, %c0_11, %c0_12, %c0_13] : memref<1x1x64x32xbf16, #tpu.memory_space<vmem>>, vector<1x1x64x32xbf16>
    %7 = vector.shape_cast %6 : vector<1x1x64x32xbf16> to vector<64x32xbf16>
    %8 = vector.shape_cast %7 : vector<64x32xbf16> to vector<8x8x32xbf16>
    %c1_14 = arith.constant 1 : index
    %c1_15 = arith.constant 1 : index
    %c0_16 = arith.constant 0 : index
    %9 = vector.load %arg8[%c1_14, %c1_15, %c0_16] : memref<10x10x32xbf16, #tpu.memory_space<vmem>>, vector<8x8x32xbf16>
    tpu.vector_store %arg8[%c1_14, %c1_15, %c0_16], %8 {strides = array<i32>} : memref<10x10x32xbf16, #tpu.memory_space<vmem>>, vector<8x8x32xbf16>,
    %c0_17 = arith.constant 0 : index
    %c0_18 = arith.constant 0 : index
    %c0_19 = arith.constant 0 : index
    %10 = vector.load %arg8[%c0_17, %c0_18, %c0_19] : memref<10x10x32xbf16, #tpu.memory_space<vmem>>, vector<8x8x32xbf16>
    %11 = vector.shape_cast %10 : vector<8x8x32xbf16> to vector<64x32xbf16>
    %c0_20 = arith.constant 0 : index
    %c1_21 = arith.constant 1 : index
    %c0_22 = arith.constant 0 : index
    %12 = vector.load %arg8[%c0_20, %c1_21, %c0_22] : memref<10x10x32xbf16, #tpu.memory_space<vmem>>, vector<8x8x32xbf16>
    %13 = vector.shape_cast %12 : vector<8x8x32xbf16> to vector<64x32xbf16>
    %c0_23 = arith.constant 0 : index
    %c2 = arith.constant 2 : index
    %c0_24 = arith.constant 0 : index
    %14 = vector.load %arg8[%c0_23, %c2, %c0_24] : memref<10x10x32xbf16, #tpu.memory_space<vmem>>, vector<8x8x32xbf16>
    %15 = vector.shape_cast %14 : vector<8x8x32xbf16> to vector<64x32xbf16>
    %c1_25 = arith.constant 1 : index
    %c0_26 = arith.constant 0 : index
    %c0_27 = arith.constant 0 : index
    %16 = vector.load %arg8[%c1_25, %c0_26, %c0_27] : memref<10x10x32xbf16, #tpu.memory_space<vmem>>, vector<8x8x32xbf16>
    %17 = vector.shape_cast %16 : vector<8x8x32xbf16> to vector<64x32xbf16>
    %c1_28 = arith.constant 1 : index
    %c1_29 = arith.constant 1 : index
    %c0_30 = arith.constant 0 : index
    %18 = vector.load %arg8[%c1_28, %c1_29, %c0_30] : memref<10x10x32xbf16, #tpu.memory_space<vmem>>, vector<8x8x32xbf16>
    %19 = vector.shape_cast %18 : vector<8x8x32xbf16> to vector<64x32xbf16>
    %c1_31 = arith.constant 1 : index
    %c2_32 = arith.constant 2 : index
    %c0_33 = arith.constant 0 : index
    %20 = vector.load %arg8[%c1_31, %c2_32, %c0_33] : memref<10x10x32xbf16, #tpu.memory_space<vmem>>, vector<8x8x32xbf16>
    %21 = vector.shape_cast %20 : vector<8x8x32xbf16> to vector<64x32xbf16>
    %c2_34 = arith.constant 2 : index
    %c0_35 = arith.constant 0 : index
    %c0_36 = arith.constant 0 : index
    %22 = vector.load %arg8[%c2_34, %c0_35, %c0_36] : memref<10x10x32xbf16, #tpu.memory_space<vmem>>, vector<8x8x32xbf16>
    %23 = vector.shape_cast %22 : vector<8x8x32xbf16> to vector<64x32xbf16>
    %c2_37 = arith.constant 2 : index
    %c1_38 = arith.constant 1 : index
    %c0_39 = arith.constant 0 : index
    %24 = vector.load %arg8[%c2_37, %c1_38, %c0_39] : memref<10x10x32xbf16, #tpu.memory_space<vmem>>, vector<8x8x32xbf16>
    %25 = vector.shape_cast %24 : vector<8x8x32xbf16> to vector<64x32xbf16>
    %c2_40 = arith.constant 2 : index
    %c2_41 = arith.constant 2 : index
    %c0_42 = arith.constant 0 : index
    %26 = vector.load %arg8[%c2_40, %c2_41, %c0_42] : memref<10x10x32xbf16, #tpu.memory_space<vmem>>, vector<8x8x32xbf16>
    %27 = vector.shape_cast %26 : vector<8x8x32xbf16> to vector<64x32xbf16>
    %28 = tpu.concatenate %11, %13, %15, %17 in 1 : vector<64x32xbf16>, vector<64x32xbf16>, vector<64x32xbf16>, vector<64x32xbf16> -> vector<64x128xbf16>
    %c0_43 = arith.constant 0 : index
    %c0_44 = arith.constant 0 : index
    %29 = vector.load %arg9[%c0_43, %c0_44] : memref<64x288xbf16, #tpu.memory_space<vmem>>, vector<64x128xbf16>
    tpu.vector_store %arg9[%c0_43, %c0_44], %28 {strides = array<i32>} : memref<64x288xbf16, #tpu.memory_space<vmem>>, vector<64x128xbf16>,
    %30 = tpu.concatenate %19, %21, %23, %25 in 1 : vector<64x32xbf16>, vector<64x32xbf16>, vector<64x32xbf16>, vector<64x32xbf16> -> vector<64x128xbf16>
    %c0_45 = arith.constant 0 : index
    %c128 = arith.constant 128 : index
    %31 = vector.load %arg9[%c0_45, %c128] : memref<64x288xbf16, #tpu.memory_space<vmem>>, vector<64x128xbf16>
    tpu.vector_store %arg9[%c0_45, %c128], %30 {strides = array<i32>} : memref<64x288xbf16, #tpu.memory_space<vmem>>, vector<64x128xbf16>,
    %c0_46 = arith.constant 0 : index
    %c256 = arith.constant 256 : index
    %32 = vector.load %arg9[%c0_46, %c256] : memref<64x288xbf16, #tpu.memory_space<vmem>>, vector<64x32xbf16>
    tpu.vector_store %arg9[%c0_46, %c256], %27 {strides = array<i32>} : memref<64x288xbf16, #tpu.memory_space<vmem>>, vector<64x32xbf16>,
    %c0_47 = arith.constant 0 : index
    %c0_48 = arith.constant 0 : index
    %33 = vector.load %arg9[%c0_47, %c0_48] : memref<64x288xbf16, #tpu.memory_space<vmem>>, vector<64x288xbf16>
    %c0_49 = arith.constant 0 : index
    %c0_50 = arith.constant 0 : index
    %34 = vector.load %arg4[%c0_49, %c0_50] : memref<288x128xbf16, #tpu.memory_space<vmem>>, vector<288x128xbf16>
    %cst_51 = arith.constant dense<0.000000e+00> : vector<64x128xf32>
    %35 = tpu.matmul %33, %34, %cst_51 {dimension_numbers = #tpu.dot_dimension_numbers<[1], [0], [0], [1], [0, 0, 1, 1], [], []>} : vector<64x288xbf16>, vector<288x128xbf16>, vector<64x128xf32> -> vector<64x128xf32>
    %c0_52 = arith.constant 0 : index
    %c0_53 = arith.constant 0 : index
    %c0_54 = arith.constant 0 : index
    %c0_55 = arith.constant 0 : index
    %36 = vector.load %arg3[%c0_52, %c0_53, %c0_54, %c0_55] : memref<1x1x64x16xbf16, #tpu.memory_space<vmem>>, vector<1x1x64x16xbf16>
    %37 = vector.shape_cast %36 : vector<1x1x64x16xbf16> to vector<64x16xbf16>
    %c0_56 = arith.constant 0 : index
    %c0_57 = arith.constant 0 : index
    %38 = vector.load %arg6[%c0_56, %c0_57] : memref<16x32xbf16, #tpu.memory_space<vmem>>, vector<16x32xbf16>
    %cst_58 = arith.constant dense<0.000000e+00> : vector<64x32xf32>
    %39 = tpu.matmul %37, %38, %cst_58 {dimension_numbers = #tpu.dot_dimension_numbers<[1], [0], [0], [1], [0, 0, 1, 1], [], []>} : vector<64x16xbf16>, vector<16x32xbf16>, vector<64x32xf32> -> vector<64x32xf32>
    %c0_59 = arith.constant 0 : index
    %c0_60 = arith.constant 0 : index
    %40 = vector.load %arg5[%c0_59, %c0_60] : memref<1x32xf32, #tpu.memory_space<vmem>>, vector<1x32xf32>
    %41 = vector.broadcast %40 : vector<1x32xf32> to vector<64x32xf32>
    %42 = arith.addf %39, %41 : vector<64x32xf32>
    %43 = tpu.concatenate %42, %42, %42, %42 in 1 : vector<64x32xf32>, vector<64x32xf32>, vector<64x32xf32>, vector<64x32xf32> -> vector<64x128xf32>
    %44 = arith.addf %35, %43 : vector<64x128xf32>
    %45 = arith.truncf %44 : vector<64x128xf32> to vector<64x128xbf16>
    %c0_61 = arith.constant 0 : index
    %c0_62 = arith.constant 0 : index
    %c0_63 = arith.constant 0 : index
    %c0_64 = arith.constant 0 : index
    %46 = vector.load %arg7[%c0_61, %c0_62, %c0_63, %c0_64] : memref<1x1x64x128xbf16, #tpu.memory_space<vmem>>, vector<1x1x64x128xbf16>
    %47 = vector.shape_cast %46 : vector<1x1x64x128xbf16> to vector<64x128xbf16>
    %48 = vector.shape_cast %45 : vector<64x128xbf16> to vector<1x1x64x128xbf16>
    tpu.vector_store %arg7[%c0_61, %c0_62, %c0_63, %c0_64], %48 {strides = array<i32>} : memref<1x1x64x128xbf16, #tpu.memory_space<vmem>>, vector<1x1x64x128xbf16>,
    return
  }
  func.func @transform_0(%arg0: i32, %arg1: i32) -> (i32, i32, i32, i32) {
    %c0_i32 = arith.constant 0 : i32
    %c0_i32_0 = arith.constant 0 : i32
    %c0_i32_1 = arith.constant 0 : i32
    return %arg0, %arg1, %c0_i32, %c0_i32_0 : i32, i32, i32, i32
  }
  func.func @transform_1(%arg0: i32, %arg1: i32) -> (i32, i32, i32, i32) {
    %c0_i32 = arith.constant 0 : i32
    %c0_i32_0 = arith.constant 0 : i32
    %c0_i32_1 = arith.constant 0 : i32
    return %arg0, %arg1, %c0_i32, %c0_i32_0 : i32, i32, i32, i32
  }
  func.func @transform_2(%arg0: i32, %arg1: i32) -> (i32, i32) {
    %c0_i32 = arith.constant 0 : i32
    %c0_i32_0 = arith.constant 0 : i32
    %c0_i32_1 = arith.constant 0 : i32
    return %c0_i32, %c0_i32_0 : i32, i32
  }
  func.func @transform_3(%arg0: i32, %arg1: i32) -> (i32, i32) {
    %c0_i32 = arith.constant 0 : i32
    %c0_i32_0 = arith.constant 0 : i32
    %c0_i32_1 = arith.constant 0 : i32
    return %c0_i32, %c0_i32_0 : i32, i32
  }
  func.func @transform_4(%arg0: i32, %arg1: i32) -> (i32, i32) {
    %c0_i32 = arith.constant 0 : i32
    %c0_i32_0 = arith.constant 0 : i32
    %c0_i32_1 = arith.constant 0 : i32
    return %c0_i32, %c0_i32_0 : i32, i32
  }
  func.func @transform_5(%arg0: i32, %arg1: i32) -> (i32, i32, i32, i32) {
    %c0_i32 = arith.constant 0 : i32
    %c0_i32_0 = arith.constant 0 : i32
    %c0_i32_1 = arith.constant 0 : i32
    return %arg0, %arg1, %c0_i32, %c0_i32_0 : i32, i32, i32, i32
  }
}

module attributes {stable_mosaic.version = 11 : i64} {
  func.func @_res_block_kernel(%arg0: i32, %arg1: i32, %arg2: memref<1x1x64x32xbf16, #tpu.memory_space<vmem>>, %arg3: memref<1x32xf32, #tpu.memory_space<vmem>>, %arg4: memref<288x96xbf16, #tpu.memory_space<vmem>>, %arg5: memref<1x32xf32, #tpu.memory_space<vmem>>, %arg6: memref<1x32xf32, #tpu.memory_space<vmem>>, %arg7: memref<288x96xbf16, #tpu.memory_space<vmem>>, %arg8: memref<1x32xf32, #tpu.memory_space<vmem>>, %arg9: memref<1x1x64x32xbf16, #tpu.memory_space<vmem>>, %arg10: memref<10x10x32xbf16, #tpu.memory_space<vmem>>, %arg11: memref<10x10x32xbf16, #tpu.memory_space<vmem>>, %arg12: memref<64x288xbf16, #tpu.memory_space<vmem>>, %arg13: memref<64x288xbf16, #tpu.memory_space<vmem>>, %arg14: memref<2x64x32xf32, #tpu.memory_space<vmem>>, %arg15: memref<2x64x32xf32, #tpu.memory_space<vmem>>) attributes {dimension_semantics = [#tpu.dimension_semantics<parallel>, #tpu.dimension_semantics<arbitrary>], iteration_bounds = array<i64: 2, 4>, scalar_prefetch = 0 : i64, scratch_operands = 6 : i64, tpu.core_type = #tpu.core_type<tc>, window_params = [{transform_indices = @transform_0, window_bounds = array<i64: 1, 1, 64, 32>}, {pipeline_mode = #tpu.pipeline_mode<synchronous>, transform_indices = @transform_1, window_bounds = array<i64: 1, 32>}, {pipeline_mode = #tpu.pipeline_mode<synchronous>, transform_indices = @transform_2, window_bounds = array<i64: 288, 96>}, {pipeline_mode = #tpu.pipeline_mode<synchronous>, transform_indices = @transform_3, window_bounds = array<i64: 1, 32>}, {pipeline_mode = #tpu.pipeline_mode<synchronous>, transform_indices = @transform_4, window_bounds = array<i64: 1, 32>}, {pipeline_mode = #tpu.pipeline_mode<synchronous>, transform_indices = @transform_5, window_bounds = array<i64: 288, 96>}, {pipeline_mode = #tpu.pipeline_mode<synchronous>, transform_indices = @transform_6, window_bounds = array<i64: 1, 32>}, {transform_indices = @transform_7, window_bounds = array<i64: 1, 1, 64, 32>}]} {
    %c0_i32 = arith.constant 0 : i32
    %0 = arith.cmpi eq, %arg1, %c0_i32 : i32
    %1 = arith.extui %0 : i1 to i32
    %c0_i32_0 = arith.constant 0 : i32
    %2 = arith.cmpi ne, %1, %c0_i32_0 : i32
    scf.if %2 {
      %cst_127 = arith.constant 0.000000e+00 : bf16
      %146 = vector.broadcast %cst_127 : bf16 to vector<10x10x32xbf16>
      %c0_128 = arith.constant 0 : index
      %c0_129 = arith.constant 0 : index
      %c0_130 = arith.constant 0 : index
      %147 = vector.load %arg10[%c0_128, %c0_129, %c0_130] : memref<10x10x32xbf16, #tpu.memory_space<vmem>>, vector<10x10x32xbf16>
      tpu.vector_store %arg10[%c0_128, %c0_129, %c0_130], %146 {strides = array<i32>} : memref<10x10x32xbf16, #tpu.memory_space<vmem>>, vector<10x10x32xbf16>,
      %cst_131 = arith.constant 0.000000e+00 : bf16
      %148 = vector.broadcast %cst_131 : bf16 to vector<10x10x32xbf16>
      %c0_132 = arith.constant 0 : index
      %c0_133 = arith.constant 0 : index
      %c0_134 = arith.constant 0 : index
      %149 = vector.load %arg11[%c0_132, %c0_133, %c0_134] : memref<10x10x32xbf16, #tpu.memory_space<vmem>>, vector<10x10x32xbf16>
      tpu.vector_store %arg11[%c0_132, %c0_133, %c0_134], %148 {strides = array<i32>} : memref<10x10x32xbf16, #tpu.memory_space<vmem>>, vector<10x10x32xbf16>,
      %cst_135 = arith.constant 0.000000e+00 : f32
      %150 = vector.broadcast %cst_135 : f32 to vector<2x64x32xf32>
      %c0_136 = arith.constant 0 : index
      %c0_137 = arith.constant 0 : index
      %c0_138 = arith.constant 0 : index
      %151 = vector.load %arg14[%c0_136, %c0_137, %c0_138] : memref<2x64x32xf32, #tpu.memory_space<vmem>>, vector<2x64x32xf32>
      tpu.vector_store %arg14[%c0_136, %c0_137, %c0_138], %150 {strides = array<i32>} : memref<2x64x32xf32, #tpu.memory_space<vmem>>, vector<2x64x32xf32>,
      %cst_139 = arith.constant 0.000000e+00 : f32
      %152 = vector.broadcast %cst_139 : f32 to vector<2x64x32xf32>
      %c0_140 = arith.constant 0 : index
      %c0_141 = arith.constant 0 : index
      %c0_142 = arith.constant 0 : index
      %153 = vector.load %arg15[%c0_140, %c0_141, %c0_142] : memref<2x64x32xf32, #tpu.memory_space<vmem>>, vector<2x64x32xf32>
      tpu.vector_store %arg15[%c0_140, %c0_141, %c0_142], %152 {strides = array<i32>} : memref<2x64x32xf32, #tpu.memory_space<vmem>>, vector<2x64x32xf32>,
    } else {
    }
    %c0 = arith.constant 0 : index
    %c0_1 = arith.constant 0 : index
    %c0_2 = arith.constant 0 : index
    %c0_3 = arith.constant 0 : index
    %3 = vector.load %arg2[%c0, %c0_1, %c0_2, %c0_3] : memref<1x1x64x32xbf16, #tpu.memory_space<vmem>>, vector<1x1x64x32xbf16>
    %4 = vector.shape_cast %3 : vector<1x1x64x32xbf16> to vector<64x32xbf16>
    %5 = arith.extf %4 : vector<64x32xbf16> to vector<64x32xf32>
    %c0_4 = arith.constant 0 : index
    %c0_5 = arith.constant 0 : index
    %6 = vector.load %arg3[%c0_4, %c0_5] : memref<1x32xf32, #tpu.memory_space<vmem>>, vector<1x32xf32>
    %7 = arith.mulf %5, %5 : vector<64x32xf32>
    %cst = arith.constant dense<0.000000e+00> : vector<64xf32>
    %8 = vector.multi_reduction <add>, %7, %cst [1] : vector<64x32xf32> to vector<64xf32>
    %9 = vector.shape_cast %8 : vector<64xf32> to vector<64x1xf32>
    %cst_6 = arith.constant 1.000000e-24 : f32
    %10 = vector.broadcast %cst_6 : f32 to vector<64x1xf32>
    %11 = arith.maximumf %9, %10 : vector<64x1xf32>
    %12 = math.rsqrt %11 : vector<64x1xf32>
    %cst_7 = arith.constant 5.65685415 : f32
    %13 = vector.broadcast %cst_7 : f32 to vector<64x1xf32>
    %14 = arith.mulf %13, %12 : vector<64x1xf32>
    %15 = vector.broadcast %14 : vector<64x1xf32> to vector<64x32xf32>
    %16 = arith.mulf %5, %15 : vector<64x32xf32>
    %17 = vector.broadcast %6 : vector<1x32xf32> to vector<64x32xf32>
    %18 = arith.mulf %16, %17 : vector<64x32xf32>
    %cst_8 = arith.constant 0.000000e+00 : f32
    %19 = vector.broadcast %cst_8 : f32 to vector<64x32xf32>
    %20 = arith.subf %19, %18 : vector<64x32xf32>
    %21 = math.exp %20 : vector<64x32xf32>
    %cst_9 = arith.constant 1.000000e+00 : f32
    %22 = vector.broadcast %cst_9 : f32 to vector<64x32xf32>
    %23 = arith.addf %22, %21 : vector<64x32xf32>
    %24 = tpu.reciprocal %23 {approx = true} : vector<64x32xf32> -> vector<64x32xf32>
    %25 = arith.mulf %18, %24 : vector<64x32xf32>
    %26 = arith.truncf %25 : vector<64x32xf32> to vector<64x32xbf16>
    %27 = vector.shape_cast %26 : vector<64x32xbf16> to vector<8x8x32xbf16>
    %c1 = arith.constant 1 : index
    %c1_10 = arith.constant 1 : index
    %c0_11 = arith.constant 0 : index
    %28 = vector.load %arg10[%c1, %c1_10, %c0_11] : memref<10x10x32xbf16, #tpu.memory_space<vmem>>, vector<8x8x32xbf16>
    tpu.vector_store %arg10[%c1, %c1_10, %c0_11], %27 {strides = array<i32>} : memref<10x10x32xbf16, #tpu.memory_space<vmem>>, vector<8x8x32xbf16>,
    %c0_12 = arith.constant 0 : index
    %c0_13 = arith.constant 0 : index
    %c0_14 = arith.constant 0 : index
    %29 = vector.load %arg10[%c0_12, %c0_13, %c0_14] : memref<10x10x32xbf16, #tpu.memory_space<vmem>>, vector<8x8x32xbf16>
    %30 = vector.shape_cast %29 : vector<8x8x32xbf16> to vector<64x32xbf16>
    %c0_15 = arith.constant 0 : index
    %c1_16 = arith.constant 1 : index
    %c0_17 = arith.constant 0 : index
    %31 = vector.load %arg10[%c0_15, %c1_16, %c0_17] : memref<10x10x32xbf16, #tpu.memory_space<vmem>>, vector<8x8x32xbf16>
    %32 = vector.shape_cast %31 : vector<8x8x32xbf16> to vector<64x32xbf16>
    %c0_18 = arith.constant 0 : index
    %c2 = arith.constant 2 : index
    %c0_19 = arith.constant 0 : index
    %33 = vector.load %arg10[%c0_18, %c2, %c0_19] : memref<10x10x32xbf16, #tpu.memory_space<vmem>>, vector<8x8x32xbf16>
    %34 = vector.shape_cast %33 : vector<8x8x32xbf16> to vector<64x32xbf16>
    %c1_20 = arith.constant 1 : index
    %c0_21 = arith.constant 0 : index
    %c0_22 = arith.constant 0 : index
    %35 = vector.load %arg10[%c1_20, %c0_21, %c0_22] : memref<10x10x32xbf16, #tpu.memory_space<vmem>>, vector<8x8x32xbf16>
    %36 = vector.shape_cast %35 : vector<8x8x32xbf16> to vector<64x32xbf16>
    %c1_23 = arith.constant 1 : index
    %c1_24 = arith.constant 1 : index
    %c0_25 = arith.constant 0 : index
    %37 = vector.load %arg10[%c1_23, %c1_24, %c0_25] : memref<10x10x32xbf16, #tpu.memory_space<vmem>>, vector<8x8x32xbf16>
    %38 = vector.shape_cast %37 : vector<8x8x32xbf16> to vector<64x32xbf16>
    %c1_26 = arith.constant 1 : index
    %c2_27 = arith.constant 2 : index
    %c0_28 = arith.constant 0 : index
    %39 = vector.load %arg10[%c1_26, %c2_27, %c0_28] : memref<10x10x32xbf16, #tpu.memory_space<vmem>>, vector<8x8x32xbf16>
    %40 = vector.shape_cast %39 : vector<8x8x32xbf16> to vector<64x32xbf16>
    %c2_29 = arith.constant 2 : index
    %c0_30 = arith.constant 0 : index
    %c0_31 = arith.constant 0 : index
    %41 = vector.load %arg10[%c2_29, %c0_30, %c0_31] : memref<10x10x32xbf16, #tpu.memory_space<vmem>>, vector<8x8x32xbf16>
    %42 = vector.shape_cast %41 : vector<8x8x32xbf16> to vector<64x32xbf16>
    %c2_32 = arith.constant 2 : index
    %c1_33 = arith.constant 1 : index
    %c0_34 = arith.constant 0 : index
    %43 = vector.load %arg10[%c2_32, %c1_33, %c0_34] : memref<10x10x32xbf16, #tpu.memory_space<vmem>>, vector<8x8x32xbf16>
    %44 = vector.shape_cast %43 : vector<8x8x32xbf16> to vector<64x32xbf16>
    %c2_35 = arith.constant 2 : index
    %c2_36 = arith.constant 2 : index
    %c0_37 = arith.constant 0 : index
    %45 = vector.load %arg10[%c2_35, %c2_36, %c0_37] : memref<10x10x32xbf16, #tpu.memory_space<vmem>>, vector<8x8x32xbf16>
    %46 = vector.shape_cast %45 : vector<8x8x32xbf16> to vector<64x32xbf16>
    %47 = tpu.concatenate %30, %32, %34, %36 in 1 : vector<64x32xbf16>, vector<64x32xbf16>, vector<64x32xbf16>, vector<64x32xbf16> -> vector<64x128xbf16>
    %c0_38 = arith.constant 0 : index
    %c0_39 = arith.constant 0 : index
    %48 = vector.load %arg12[%c0_38, %c0_39] : memref<64x288xbf16, #tpu.memory_space<vmem>>, vector<64x128xbf16>
    tpu.vector_store %arg12[%c0_38, %c0_39], %47 {strides = array<i32>} : memref<64x288xbf16, #tpu.memory_space<vmem>>, vector<64x128xbf16>,
    %49 = tpu.concatenate %38, %40, %42, %44 in 1 : vector<64x32xbf16>, vector<64x32xbf16>, vector<64x32xbf16>, vector<64x32xbf16> -> vector<64x128xbf16>
    %c0_40 = arith.constant 0 : index
    %c128 = arith.constant 128 : index
    %50 = vector.load %arg12[%c0_40, %c128] : memref<64x288xbf16, #tpu.memory_space<vmem>>, vector<64x128xbf16>
    tpu.vector_store %arg12[%c0_40, %c128], %49 {strides = array<i32>} : memref<64x288xbf16, #tpu.memory_space<vmem>>, vector<64x128xbf16>,
    %c0_41 = arith.constant 0 : index
    %c256 = arith.constant 256 : index
    %51 = vector.load %arg12[%c0_41, %c256] : memref<64x288xbf16, #tpu.memory_space<vmem>>, vector<64x32xbf16>
    tpu.vector_store %arg12[%c0_41, %c256], %46 {strides = array<i32>} : memref<64x288xbf16, #tpu.memory_space<vmem>>, vector<64x32xbf16>,
    %c0_42 = arith.constant 0 : index
    %c0_43 = arith.constant 0 : index
    %52 = vector.load %arg12[%c0_42, %c0_43] : memref<64x288xbf16, #tpu.memory_space<vmem>>, vector<64x288xbf16>
    %c0_44 = arith.constant 0 : index
    %c0_45 = arith.constant 0 : index
    %53 = vector.load %arg4[%c0_44, %c0_45] : memref<288x96xbf16, #tpu.memory_space<vmem>>, vector<288x96xbf16>
    %cst_46 = arith.constant dense<0.000000e+00> : vector<64x96xf32>
    %54 = tpu.matmul %52, %53, %cst_46 {dimension_numbers = #tpu.dot_dimension_numbers<[1], [0], [0], [1], [0, 0, 1, 1], [], []>} : vector<64x288xbf16>, vector<288x96xbf16>, vector<64x96xf32> -> vector<64x96xf32>
    %55 = vector.extract_strided_slice %54 {offsets = [0, 64], sizes = [64, 32], strides = [1, 1]} : vector<64x96xf32> to vector<64x32xf32>
    %c0_47 = arith.constant 0 : index
    %c0_48 = arith.constant 0 : index
    %c0_49 = arith.constant 0 : index
    %56 = vector.load %arg14[%c0_47, %c0_48, %c0_49] : memref<2x64x32xf32, #tpu.memory_space<vmem>>, vector<1x64x32xf32>
    %57 = vector.shape_cast %56 : vector<1x64x32xf32> to vector<64x32xf32>
    %58 = arith.addf %55, %57 : vector<64x32xf32>
    %c0_50 = arith.constant 0 : index
    %c0_51 = arith.constant 0 : index
    %59 = vector.load %arg5[%c0_50, %c0_51] : memref<1x32xf32, #tpu.memory_space<vmem>>, vector<1x32xf32>
    %60 = vector.broadcast %59 : vector<1x32xf32> to vector<64x32xf32>
    %61 = arith.addf %58, %60 : vector<64x32xf32>
    %c1_52 = arith.constant 1 : index
    %c0_53 = arith.constant 0 : index
    %c0_54 = arith.constant 0 : index
    %62 = vector.load %arg14[%c1_52, %c0_53, %c0_54] : memref<2x64x32xf32, #tpu.memory_space<vmem>>, vector<1x64x32xf32>
    %63 = vector.shape_cast %62 : vector<1x64x32xf32> to vector<64x32xf32>
    %64 = vector.extract_strided_slice %54 {offsets = [0, 32], sizes = [64, 32], strides = [1, 1]} : vector<64x96xf32> to vector<64x32xf32>
    %65 = arith.addf %63, %64 : vector<64x32xf32>
    %c0_55 = arith.constant 0 : index
    %c0_56 = arith.constant 0 : index
    %c0_57 = arith.constant 0 : index
    %66 = vector.load %arg14[%c0_55, %c0_56, %c0_57] : memref<2x64x32xf32, #tpu.memory_space<vmem>>, vector<1x64x32xf32>
    %67 = vector.shape_cast %66 : vector<1x64x32xf32> to vector<64x32xf32>
    %68 = vector.shape_cast %65 : vector<64x32xf32> to vector<1x64x32xf32>
    tpu.vector_store %arg14[%c0_55, %c0_56, %c0_57], %68 {strides = array<i32>} : memref<2x64x32xf32, #tpu.memory_space<vmem>>, vector<1x64x32xf32>,
    %69 = vector.extract_strided_slice %54 {offsets = [0, 0], sizes = [64, 32], strides = [1, 1]} : vector<64x96xf32> to vector<64x32xf32>
    %c1_58 = arith.constant 1 : index
    %c0_59 = arith.constant 0 : index
    %c0_60 = arith.constant 0 : index
    %70 = vector.load %arg14[%c1_58, %c0_59, %c0_60] : memref<2x64x32xf32, #tpu.memory_space<vmem>>, vector<1x64x32xf32>
    %71 = vector.shape_cast %70 : vector<1x64x32xf32> to vector<64x32xf32>
    %72 = vector.shape_cast %69 : vector<64x32xf32> to vector<1x64x32xf32>
    tpu.vector_store %arg14[%c1_58, %c0_59, %c0_60], %72 {strides = array<i32>} : memref<2x64x32xf32, #tpu.memory_space<vmem>>, vector<1x64x32xf32>,
    %c0_61 = arith.constant 0 : index
    %c0_62 = arith.constant 0 : index
    %73 = vector.load %arg6[%c0_61, %c0_62] : memref<1x32xf32, #tpu.memory_space<vmem>>, vector<1x32xf32>
    %74 = arith.mulf %61, %61 : vector<64x32xf32>
    %cst_63 = arith.constant dense<0.000000e+00> : vector<64xf32>
    %75 = vector.multi_reduction <add>, %74, %cst_63 [1] : vector<64x32xf32> to vector<64xf32>
    %76 = vector.shape_cast %75 : vector<64xf32> to vector<64x1xf32>
    %cst_64 = arith.constant 1.000000e-24 : f32
    %77 = vector.broadcast %cst_64 : f32 to vector<64x1xf32>
    %78 = arith.maximumf %76, %77 : vector<64x1xf32>
    %79 = math.rsqrt %78 : vector<64x1xf32>
    %cst_65 = arith.constant 5.65685415 : f32
    %80 = vector.broadcast %cst_65 : f32 to vector<64x1xf32>
    %81 = arith.mulf %80, %79 : vector<64x1xf32>
    %82 = vector.broadcast %81 : vector<64x1xf32> to vector<64x32xf32>
    %83 = arith.mulf %61, %82 : vector<64x32xf32>
    %84 = vector.broadcast %73 : vector<1x32xf32> to vector<64x32xf32>
    %85 = arith.mulf %83, %84 : vector<64x32xf32>
    %cst_66 = arith.constant 0.000000e+00 : f32
    %86 = vector.broadcast %cst_66 : f32 to vector<64x32xf32>
    %87 = arith.subf %86, %85 : vector<64x32xf32>
    %88 = math.exp %87 : vector<64x32xf32>
    %cst_67 = arith.constant 1.000000e+00 : f32
    %89 = vector.broadcast %cst_67 : f32 to vector<64x32xf32>
    %90 = arith.addf %89, %88 : vector<64x32xf32>
    %91 = tpu.reciprocal %90 {approx = true} : vector<64x32xf32> -> vector<64x32xf32>
    %92 = arith.mulf %85, %91 : vector<64x32xf32>
    %93 = arith.truncf %92 : vector<64x32xf32> to vector<64x32xbf16>
    %94 = vector.shape_cast %93 : vector<64x32xbf16> to vector<8x8x32xbf16>
    %c1_68 = arith.constant 1 : index
    %c1_69 = arith.constant 1 : index
    %c0_70 = arith.constant 0 : index
    %95 = vector.load %arg11[%c1_68, %c1_69, %c0_70] : memref<10x10x32xbf16, #tpu.memory_space<vmem>>, vector<8x8x32xbf16>
    tpu.vector_store %arg11[%c1_68, %c1_69, %c0_70], %94 {strides = array<i32>} : memref<10x10x32xbf16, #tpu.memory_space<vmem>>, vector<8x8x32xbf16>,
    %c0_71 = arith.constant 0 : index
    %c0_72 = arith.constant 0 : index
    %c0_73 = arith.constant 0 : index
    %96 = vector.load %arg11[%c0_71, %c0_72, %c0_73] : memref<10x10x32xbf16, #tpu.memory_space<vmem>>, vector<8x8x32xbf16>
    %97 = vector.shape_cast %96 : vector<8x8x32xbf16> to vector<64x32xbf16>
    %c0_74 = arith.constant 0 : index
    %c1_75 = arith.constant 1 : index
    %c0_76 = arith.constant 0 : index
    %98 = vector.load %arg11[%c0_74, %c1_75, %c0_76] : memref<10x10x32xbf16, #tpu.memory_space<vmem>>, vector<8x8x32xbf16>
    %99 = vector.shape_cast %98 : vector<8x8x32xbf16> to vector<64x32xbf16>
    %c0_77 = arith.constant 0 : index
    %c2_78 = arith.constant 2 : index
    %c0_79 = arith.constant 0 : index
    %100 = vector.load %arg11[%c0_77, %c2_78, %c0_79] : memref<10x10x32xbf16, #tpu.memory_space<vmem>>, vector<8x8x32xbf16>
    %101 = vector.shape_cast %100 : vector<8x8x32xbf16> to vector<64x32xbf16>
    %c1_80 = arith.constant 1 : index
    %c0_81 = arith.constant 0 : index
    %c0_82 = arith.constant 0 : index
    %102 = vector.load %arg11[%c1_80, %c0_81, %c0_82] : memref<10x10x32xbf16, #tpu.memory_space<vmem>>, vector<8x8x32xbf16>
    %103 = vector.shape_cast %102 : vector<8x8x32xbf16> to vector<64x32xbf16>
    %c1_83 = arith.constant 1 : index
    %c1_84 = arith.constant 1 : index
    %c0_85 = arith.constant 0 : index
    %104 = vector.load %arg11[%c1_83, %c1_84, %c0_85] : memref<10x10x32xbf16, #tpu.memory_space<vmem>>, vector<8x8x32xbf16>
    %105 = vector.shape_cast %104 : vector<8x8x32xbf16> to vector<64x32xbf16>
    %c1_86 = arith.constant 1 : index
    %c2_87 = arith.constant 2 : index
    %c0_88 = arith.constant 0 : index
    %106 = vector.load %arg11[%c1_86, %c2_87, %c0_88] : memref<10x10x32xbf16, #tpu.memory_space<vmem>>, vector<8x8x32xbf16>
    %107 = vector.shape_cast %106 : vector<8x8x32xbf16> to vector<64x32xbf16>
    %c2_89 = arith.constant 2 : index
    %c0_90 = arith.constant 0 : index
    %c0_91 = arith.constant 0 : index
    %108 = vector.load %arg11[%c2_89, %c0_90, %c0_91] : memref<10x10x32xbf16, #tpu.memory_space<vmem>>, vector<8x8x32xbf16>
    %109 = vector.shape_cast %108 : vector<8x8x32xbf16> to vector<64x32xbf16>
    %c2_92 = arith.constant 2 : index
    %c1_93 = arith.constant 1 : index
    %c0_94 = arith.constant 0 : index
    %110 = vector.load %arg11[%c2_92, %c1_93, %c0_94] : memref<10x10x32xbf16, #tpu.memory_space<vmem>>, vector<8x8x32xbf16>
    %111 = vector.shape_cast %110 : vector<8x8x32xbf16> to vector<64x32xbf16>
    %c2_95 = arith.constant 2 : index
    %c2_96 = arith.constant 2 : index
    %c0_97 = arith.constant 0 : index
    %112 = vector.load %arg11[%c2_95, %c2_96, %c0_97] : memref<10x10x32xbf16, #tpu.memory_space<vmem>>, vector<8x8x32xbf16>
    %113 = vector.shape_cast %112 : vector<8x8x32xbf16> to vector<64x32xbf16>
    %114 = tpu.concatenate %97, %99, %101, %103 in 1 : vector<64x32xbf16>, vector<64x32xbf16>, vector<64x32xbf16>, vector<64x32xbf16> -> vector<64x128xbf16>
    %c0_98 = arith.constant 0 : index
    %c0_99 = arith.constant 0 : index
    %115 = vector.load %arg13[%c0_98, %c0_99] : memref<64x288xbf16, #tpu.memory_space<vmem>>, vector<64x128xbf16>
    tpu.vector_store %arg13[%c0_98, %c0_99], %114 {strides = array<i32>} : memref<64x288xbf16, #tpu.memory_space<vmem>>, vector<64x128xbf16>,
    %116 = tpu.concatenate %105, %107, %109, %111 in 1 : vector<64x32xbf16>, vector<64x32xbf16>, vector<64x32xbf16>, vector<64x32xbf16> -> vector<64x128xbf16>
    %c0_100 = arith.constant 0 : index
    %c128_101 = arith.constant 128 : index
    %117 = vector.load %arg13[%c0_100, %c128_101] : memref<64x288xbf16, #tpu.memory_space<vmem>>, vector<64x128xbf16>
    tpu.vector_store %arg13[%c0_100, %c128_101], %116 {strides = array<i32>} : memref<64x288xbf16, #tpu.memory_space<vmem>>, vector<64x128xbf16>,
    %c0_102 = arith.constant 0 : index
    %c256_103 = arith.constant 256 : index
    %118 = vector.load %arg13[%c0_102, %c256_103] : memref<64x288xbf16, #tpu.memory_space<vmem>>, vector<64x32xbf16>
    tpu.vector_store %arg13[%c0_102, %c256_103], %113 {strides = array<i32>} : memref<64x288xbf16, #tpu.memory_space<vmem>>, vector<64x32xbf16>,
    %c0_104 = arith.constant 0 : index
    %c0_105 = arith.constant 0 : index
    %119 = vector.load %arg13[%c0_104, %c0_105] : memref<64x288xbf16, #tpu.memory_space<vmem>>, vector<64x288xbf16>
    %c0_106 = arith.constant 0 : index
    %c0_107 = arith.constant 0 : index
    %120 = vector.load %arg7[%c0_106, %c0_107] : memref<288x96xbf16, #tpu.memory_space<vmem>>, vector<288x96xbf16>
    %cst_108 = arith.constant dense<0.000000e+00> : vector<64x96xf32>
    %121 = tpu.matmul %119, %120, %cst_108 {dimension_numbers = #tpu.dot_dimension_numbers<[1], [0], [0], [1], [0, 0, 1, 1], [], []>} : vector<64x288xbf16>, vector<288x96xbf16>, vector<64x96xf32> -> vector<64x96xf32>
    %122 = vector.extract_strided_slice %121 {offsets = [0, 64], sizes = [64, 32], strides = [1, 1]} : vector<64x96xf32> to vector<64x32xf32>
    %c0_109 = arith.constant 0 : index
    %c0_110 = arith.constant 0 : index
    %c0_111 = arith.constant 0 : index
    %123 = vector.load %arg15[%c0_109, %c0_110, %c0_111] : memref<2x64x32xf32, #tpu.memory_space<vmem>>, vector<1x64x32xf32>
    %124 = vector.shape_cast %123 : vector<1x64x32xf32> to vector<64x32xf32>
    %125 = arith.addf %122, %124 : vector<64x32xf32>
    %c0_112 = arith.constant 0 : index
    %c0_113 = arith.constant 0 : index
    %126 = vector.load %arg8[%c0_112, %c0_113] : memref<1x32xf32, #tpu.memory_space<vmem>>, vector<1x32xf32>
    %127 = vector.broadcast %126 : vector<1x32xf32> to vector<64x32xf32>
    %128 = arith.addf %125, %127 : vector<64x32xf32>
    %c1_114 = arith.constant 1 : index
    %c0_115 = arith.constant 0 : index
    %c0_116 = arith.constant 0 : index
    %129 = vector.load %arg15[%c1_114, %c0_115, %c0_116] : memref<2x64x32xf32, #tpu.memory_space<vmem>>, vector<1x64x32xf32>
    %130 = vector.shape_cast %129 : vector<1x64x32xf32> to vector<64x32xf32>
    %131 = vector.extract_strided_slice %121 {offsets = [0, 32], sizes = [64, 32], strides = [1, 1]} : vector<64x96xf32> to vector<64x32xf32>
    %132 = arith.addf %130, %131 : vector<64x32xf32>
    %c0_117 = arith.constant 0 : index
    %c0_118 = arith.constant 0 : index
    %c0_119 = arith.constant 0 : index
    %133 = vector.load %arg15[%c0_117, %c0_118, %c0_119] : memref<2x64x32xf32, #tpu.memory_space<vmem>>, vector<1x64x32xf32>
    %134 = vector.shape_cast %133 : vector<1x64x32xf32> to vector<64x32xf32>
    %135 = vector.shape_cast %132 : vector<64x32xf32> to vector<1x64x32xf32>
    tpu.vector_store %arg15[%c0_117, %c0_118, %c0_119], %135 {strides = array<i32>} : memref<2x64x32xf32, #tpu.memory_space<vmem>>, vector<1x64x32xf32>,
    %136 = vector.extract_strided_slice %121 {offsets = [0, 0], sizes = [64, 32], strides = [1, 1]} : vector<64x96xf32> to vector<64x32xf32>
    %c1_120 = arith.constant 1 : index
    %c0_121 = arith.constant 0 : index
    %c0_122 = arith.constant 0 : index
    %137 = vector.load %arg15[%c1_120, %c0_121, %c0_122] : memref<2x64x32xf32, #tpu.memory_space<vmem>>, vector<1x64x32xf32>
    %138 = vector.shape_cast %137 : vector<1x64x32xf32> to vector<64x32xf32>
    %139 = vector.shape_cast %136 : vector<64x32xf32> to vector<1x64x32xf32>
    tpu.vector_store %arg15[%c1_120, %c0_121, %c0_122], %139 {strides = array<i32>} : memref<2x64x32xf32, #tpu.memory_space<vmem>>, vector<1x64x32xf32>,
    %140 = arith.extf %4 : vector<64x32xbf16> to vector<64x32xf32>
    %141 = arith.addf %128, %140 : vector<64x32xf32>
    %142 = arith.truncf %141 : vector<64x32xf32> to vector<64x32xbf16>
    %c0_123 = arith.constant 0 : index
    %c0_124 = arith.constant 0 : index
    %c0_125 = arith.constant 0 : index
    %c0_126 = arith.constant 0 : index
    %143 = vector.load %arg9[%c0_123, %c0_124, %c0_125, %c0_126] : memref<1x1x64x32xbf16, #tpu.memory_space<vmem>>, vector<1x1x64x32xbf16>
    %144 = vector.shape_cast %143 : vector<1x1x64x32xbf16> to vector<64x32xbf16>
    %145 = vector.shape_cast %142 : vector<64x32xbf16> to vector<1x1x64x32xbf16>
    tpu.vector_store %arg9[%c0_123, %c0_124, %c0_125, %c0_126], %145 {strides = array<i32>} : memref<1x1x64x32xbf16, #tpu.memory_space<vmem>>, vector<1x1x64x32xbf16>,
    return
  }
  func.func @transform_0(%arg0: i32, %arg1: i32) -> (i32, i32, i32, i32) {
    %c0_i32 = arith.constant 0 : i32
    %c0_i32_0 = arith.constant 0 : i32
    %c0_i32_1 = arith.constant 0 : i32
    return %arg0, %arg1, %c0_i32, %c0_i32_0 : i32, i32, i32, i32
  }
  func.func @transform_1(%arg0: i32, %arg1: i32) -> (i32, i32) {
    %c0_i32 = arith.constant 0 : i32
    %c0_i32_0 = arith.constant 0 : i32
    %c0_i32_1 = arith.constant 0 : i32
    return %c0_i32, %c0_i32_0 : i32, i32
  }
  func.func @transform_2(%arg0: i32, %arg1: i32) -> (i32, i32) {
    %c0_i32 = arith.constant 0 : i32
    %c0_i32_0 = arith.constant 0 : i32
    %c0_i32_1 = arith.constant 0 : i32
    return %c0_i32, %c0_i32_0 : i32, i32
  }
  func.func @transform_3(%arg0: i32, %arg1: i32) -> (i32, i32) {
    %c0_i32 = arith.constant 0 : i32
    %c0_i32_0 = arith.constant 0 : i32
    %c0_i32_1 = arith.constant 0 : i32
    return %c0_i32, %c0_i32_0 : i32, i32
  }
  func.func @transform_4(%arg0: i32, %arg1: i32) -> (i32, i32) {
    %c0_i32 = arith.constant 0 : i32
    %c0_i32_0 = arith.constant 0 : i32
    %c0_i32_1 = arith.constant 0 : i32
    return %c0_i32, %c0_i32_0 : i32, i32
  }
  func.func @transform_5(%arg0: i32, %arg1: i32) -> (i32, i32) {
    %c0_i32 = arith.constant 0 : i32
    %c0_i32_0 = arith.constant 0 : i32
    %c0_i32_1 = arith.constant 0 : i32
    return %c0_i32, %c0_i32_0 : i32, i32
  }
  func.func @transform_6(%arg0: i32, %arg1: i32) -> (i32, i32) {
    %c0_i32 = arith.constant 0 : i32
    %c0_i32_0 = arith.constant 0 : i32
    %c0_i32_1 = arith.constant 0 : i32
    return %c0_i32, %c0_i32_0 : i32, i32
  }
  func.func @transform_7(%arg0: i32, %arg1: i32) -> (i32, i32, i32, i32) {
    %c0_i32 = arith.constant 0 : i32
    %c0_i32_0 = arith.constant 0 : i32
    %c0_i32_1 = arith.constant 0 : i32
    return %arg0, %arg1, %c0_i32, %c0_i32_0 : i32, i32, i32, i32
  }
}

module attributes {stable_mosaic.version = 11 : i64} {
  func.func @_res_block_kernel(%arg0: i32, %arg1: i32, %arg2: memref<1x1x64x16xbf16, #tpu.memory_space<vmem>>, %arg3: memref<1x16xf32, #tpu.memory_space<vmem>>, %arg4: memref<144x96xbf16, #tpu.memory_space<vmem>>, %arg5: memref<1x32xf32, #tpu.memory_space<vmem>>, %arg6: memref<1x32xf32, #tpu.memory_space<vmem>>, %arg7: memref<288x96xbf16, #tpu.memory_space<vmem>>, %arg8: memref<1x32xf32, #tpu.memory_space<vmem>>, %arg9: memref<16x32xbf16, #tpu.memory_space<vmem>>, %arg10: memref<1x32xf32, #tpu.memory_space<vmem>>, %arg11: memref<1x1x64x32xbf16, #tpu.memory_space<vmem>>, %arg12: memref<10x10x16xbf16, #tpu.memory_space<vmem>>, %arg13: memref<10x10x32xbf16, #tpu.memory_space<vmem>>, %arg14: memref<64x144xbf16, #tpu.memory_space<vmem>>, %arg15: memref<64x288xbf16, #tpu.memory_space<vmem>>, %arg16: memref<2x64x32xf32, #tpu.memory_space<vmem>>, %arg17: memref<2x64x32xf32, #tpu.memory_space<vmem>>) attributes {dimension_semantics = [#tpu.dimension_semantics<parallel>, #tpu.dimension_semantics<arbitrary>], iteration_bounds = array<i64: 2, 4>, scalar_prefetch = 0 : i64, scratch_operands = 6 : i64, tpu.core_type = #tpu.core_type<tc>, window_params = [{transform_indices = @transform_0, window_bounds = array<i64: 1, 1, 64, 16>}, {pipeline_mode = #tpu.pipeline_mode<synchronous>, transform_indices = @transform_1, window_bounds = array<i64: 1, 16>}, {pipeline_mode = #tpu.pipeline_mode<synchronous>, transform_indices = @transform_2, window_bounds = array<i64: 144, 96>}, {pipeline_mode = #tpu.pipeline_mode<synchronous>, transform_indices = @transform_3, window_bounds = array<i64: 1, 32>}, {pipeline_mode = #tpu.pipeline_mode<synchronous>, transform_indices = @transform_4, window_bounds = array<i64: 1, 32>}, {pipeline_mode = #tpu.pipeline_mode<synchronous>, transform_indices = @transform_5, window_bounds = array<i64: 288, 96>}, {pipeline_mode = #tpu.pipeline_mode<synchronous>, transform_indices = @transform_6, window_bounds = array<i64: 1, 32>}, {pipeline_mode = #tpu.pipeline_mode<synchronous>, transform_indices = @transform_7, window_bounds = array<i64: 16, 32>}, {pipeline_mode = #tpu.pipeline_mode<synchronous>, transform_indices = @transform_8, window_bounds = array<i64: 1, 32>}, {transform_indices = @transform_9, window_bounds = array<i64: 1, 1, 64, 32>}]} {
    %c0_i32 = arith.constant 0 : i32
    %0 = arith.cmpi eq, %arg1, %c0_i32 : i32
    %1 = arith.extui %0 : i1 to i32
    %c0_i32_0 = arith.constant 0 : i32
    %2 = arith.cmpi ne, %1, %c0_i32_0 : i32
    scf.if %2 {
      %cst_130 = arith.constant 0.000000e+00 : bf16
      %148 = vector.broadcast %cst_130 : bf16 to vector<10x10x16xbf16>
      %c0_131 = arith.constant 0 : index
      %c0_132 = arith.constant 0 : index
      %c0_133 = arith.constant 0 : index
      %149 = vector.load %arg12[%c0_131, %c0_132, %c0_133] : memref<10x10x16xbf16, #tpu.memory_space<vmem>>, vector<10x10x16xbf16>
      tpu.vector_store %arg12[%c0_131, %c0_132, %c0_133], %148 {strides = array<i32>} : memref<10x10x16xbf16, #tpu.memory_space<vmem>>, vector<10x10x16xbf16>,
      %cst_134 = arith.constant 0.000000e+00 : bf16
      %150 = vector.broadcast %cst_134 : bf16 to vector<10x10x32xbf16>
      %c0_135 = arith.constant 0 : index
      %c0_136 = arith.constant 0 : index
      %c0_137 = arith.constant 0 : index
      %151 = vector.load %arg13[%c0_135, %c0_136, %c0_137] : memref<10x10x32xbf16, #tpu.memory_space<vmem>>, vector<10x10x32xbf16>
      tpu.vector_store %arg13[%c0_135, %c0_136, %c0_137], %150 {strides = array<i32>} : memref<10x10x32xbf16, #tpu.memory_space<vmem>>, vector<10x10x32xbf16>,
      %cst_138 = arith.constant 0.000000e+00 : f32
      %152 = vector.broadcast %cst_138 : f32 to vector<2x64x32xf32>
      %c0_139 = arith.constant 0 : index
      %c0_140 = arith.constant 0 : index
      %c0_141 = arith.constant 0 : index
      %153 = vector.load %arg16[%c0_139, %c0_140, %c0_141] : memref<2x64x32xf32, #tpu.memory_space<vmem>>, vector<2x64x32xf32>
      tpu.vector_store %arg16[%c0_139, %c0_140, %c0_141], %152 {strides = array<i32>} : memref<2x64x32xf32, #tpu.memory_space<vmem>>, vector<2x64x32xf32>,
      %cst_142 = arith.constant 0.000000e+00 : f32
      %154 = vector.broadcast %cst_142 : f32 to vector<2x64x32xf32>
      %c0_143 = arith.constant 0 : index
      %c0_144 = arith.constant 0 : index
      %c0_145 = arith.constant 0 : index
      %155 = vector.load %arg17[%c0_143, %c0_144, %c0_145] : memref<2x64x32xf32, #tpu.memory_space<vmem>>, vector<2x64x32xf32>
      tpu.vector_store %arg17[%c0_143, %c0_144, %c0_145], %154 {strides = array<i32>} : memref<2x64x32xf32, #tpu.memory_space<vmem>>, vector<2x64x32xf32>,
    } else {
    }
    %c0 = arith.constant 0 : index
    %c0_1 = arith.constant 0 : index
    %c0_2 = arith.constant 0 : index
    %c0_3 = arith.constant 0 : index
    %3 = vector.load %arg2[%c0, %c0_1, %c0_2, %c0_3] : memref<1x1x64x16xbf16, #tpu.memory_space<vmem>>, vector<1x1x64x16xbf16>
    %4 = vector.shape_cast %3 : vector<1x1x64x16xbf16> to vector<64x16xbf16>
    %5 = arith.extf %4 : vector<64x16xbf16> to vector<64x16xf32>
    %c0_4 = arith.constant 0 : index
    %c0_5 = arith.constant 0 : index
    %6 = vector.load %arg3[%c0_4, %c0_5] : memref<1x16xf32, #tpu.memory_space<vmem>>, vector<1x16xf32>
    %7 = arith.mulf %5, %5 : vector<64x16xf32>
    %cst = arith.constant dense<0.000000e+00> : vector<64xf32>
    %8 = vector.multi_reduction <add>, %7, %cst [1] : vector<64x16xf32> to vector<64xf32>
    %9 = vector.shape_cast %8 : vector<64xf32> to vector<64x1xf32>
    %cst_6 = arith.constant 1.000000e-24 : f32
    %10 = vector.broadcast %cst_6 : f32 to vector<64x1xf32>
    %11 = arith.maximumf %9, %10 : vector<64x1xf32>
    %12 = math.rsqrt %11 : vector<64x1xf32>
    %cst_7 = arith.constant 4.000000e+00 : f32
    %13 = vector.broadcast %cst_7 : f32 to vector<64x1xf32>
    %14 = arith.mulf %13, %12 : vector<64x1xf32>
    %15 = vector.broadcast %14 : vector<64x1xf32> to vector<64x16xf32>
    %16 = arith.mulf %5, %15 : vector<64x16xf32>
    %17 = vector.broadcast %6 : vector<1x16xf32> to vector<64x16xf32>
    %18 = arith.mulf %16, %17 : vector<64x16xf32>
    %cst_8 = arith.constant 0.000000e+00 : f32
    %19 = vector.broadcast %cst_8 : f32 to vector<64x16xf32>
    %20 = arith.subf %19, %18 : vector<64x16xf32>
    %21 = math.exp %20 : vector<64x16xf32>
    %cst_9 = arith.constant 1.000000e+00 : f32
    %22 = vector.broadcast %cst_9 : f32 to vector<64x16xf32>
    %23 = arith.addf %22, %21 : vector<64x16xf32>
    %24 = tpu.reciprocal %23 {approx = true} : vector<64x16xf32> -> vector<64x16xf32>
    %25 = arith.mulf %18, %24 : vector<64x16xf32>
    %26 = arith.truncf %25 : vector<64x16xf32> to vector<64x16xbf16>
    %27 = vector.shape_cast %26 : vector<64x16xbf16> to vector<8x8x16xbf16>
    %c1 = arith.constant 1 : index
    %c1_10 = arith.constant 1 : index
    %c0_11 = arith.constant 0 : index
    %28 = vector.load %arg12[%c1, %c1_10, %c0_11] : memref<10x10x16xbf16, #tpu.memory_space<vmem>>, vector<8x8x16xbf16>
    tpu.vector_store %arg12[%c1, %c1_10, %c0_11], %27 {strides = array<i32>} : memref<10x10x16xbf16, #tpu.memory_space<vmem>>, vector<8x8x16xbf16>,
    %c0_12 = arith.constant 0 : index
    %c0_13 = arith.constant 0 : index
    %c0_14 = arith.constant 0 : index
    %29 = vector.load %arg12[%c0_12, %c0_13, %c0_14] : memref<10x10x16xbf16, #tpu.memory_space<vmem>>, vector<8x8x16xbf16>
    %30 = vector.shape_cast %29 : vector<8x8x16xbf16> to vector<64x16xbf16>
    %c0_15 = arith.constant 0 : index
    %c1_16 = arith.constant 1 : index
    %c0_17 = arith.constant 0 : index
    %31 = vector.load %arg12[%c0_15, %c1_16, %c0_17] : memref<10x10x16xbf16, #tpu.memory_space<vmem>>, vector<8x8x16xbf16>
    %32 = vector.shape_cast %31 : vector<8x8x16xbf16> to vector<64x16xbf16>
    %c0_18 = arith.constant 0 : index
    %c2 = arith.constant 2 : index
    %c0_19 = arith.constant 0 : index
    %33 = vector.load %arg12[%c0_18, %c2, %c0_19] : memref<10x10x16xbf16, #tpu.memory_space<vmem>>, vector<8x8x16xbf16>
    %34 = vector.shape_cast %33 : vector<8x8x16xbf16> to vector<64x16xbf16>
    %c1_20 = arith.constant 1 : index
    %c0_21 = arith.constant 0 : index
    %c0_22 = arith.constant 0 : index
    %35 = vector.load %arg12[%c1_20, %c0_21, %c0_22] : memref<10x10x16xbf16, #tpu.memory_space<vmem>>, vector<8x8x16xbf16>
    %36 = vector.shape_cast %35 : vector<8x8x16xbf16> to vector<64x16xbf16>
    %c1_23 = arith.constant 1 : index
    %c1_24 = arith.constant 1 : index
    %c0_25 = arith.constant 0 : index
    %37 = vector.load %arg12[%c1_23, %c1_24, %c0_25] : memref<10x10x16xbf16, #tpu.memory_space<vmem>>, vector<8x8x16xbf16>
    %38 = vector.shape_cast %37 : vector<8x8x16xbf16> to vector<64x16xbf16>
    %c1_26 = arith.constant 1 : index
    %c2_27 = arith.constant 2 : index
    %c0_28 = arith.constant 0 : index
    %39 = vector.load %arg12[%c1_26, %c2_27, %c0_28] : memref<10x10x16xbf16, #tpu.memory_space<vmem>>, vector<8x8x16xbf16>
    %40 = vector.shape_cast %39 : vector<8x8x16xbf16> to vector<64x16xbf16>
    %c2_29 = arith.constant 2 : index
    %c0_30 = arith.constant 0 : index
    %c0_31 = arith.constant 0 : index
    %41 = vector.load %arg12[%c2_29, %c0_30, %c0_31] : memref<10x10x16xbf16, #tpu.memory_space<vmem>>, vector<8x8x16xbf16>
    %42 = vector.shape_cast %41 : vector<8x8x16xbf16> to vector<64x16xbf16>
    %c2_32 = arith.constant 2 : index
    %c1_33 = arith.constant 1 : index
    %c0_34 = arith.constant 0 : index
    %43 = vector.load %arg12[%c2_32, %c1_33, %c0_34] : memref<10x10x16xbf16, #tpu.memory_space<vmem>>, vector<8x8x16xbf16>
    %44 = vector.shape_cast %43 : vector<8x8x16xbf16> to vector<64x16xbf16>
    %c2_35 = arith.constant 2 : index
    %c2_36 = arith.constant 2 : index
    %c0_37 = arith.constant 0 : index
    %45 = vector.load %arg12[%c2_35, %c2_36, %c0_37] : memref<10x10x16xbf16, #tpu.memory_space<vmem>>, vector<8x8x16xbf16>
    %46 = vector.shape_cast %45 : vector<8x8x16xbf16> to vector<64x16xbf16>
    %47 = tpu.concatenate %30, %32, %34, %36, %38, %40, %42, %44 in 1 : vector<64x16xbf16>, vector<64x16xbf16>, vector<64x16xbf16>, vector<64x16xbf16>, vector<64x16xbf16>, vector<64x16xbf16>, vector<64x16xbf16>, vector<64x16xbf16> -> vector<64x128xbf16>
    %c0_38 = arith.constant 0 : index
    %c0_39 = arith.constant 0 : index
    %48 = vector.load %arg14[%c0_38, %c0_39] : memref<64x144xbf16, #tpu.memory_space<vmem>>, vector<64x128xbf16>
    tpu.vector_store %arg14[%c0_38, %c0_39], %47 {strides = array<i32>} : memref<64x144xbf16, #tpu.memory_space<vmem>>, vector<64x128xbf16>,
    %c0_40 = arith.constant 0 : index
    %c128 = arith.constant 128 : index
    %49 = vector.load %arg14[%c0_40, %c128] : memref<64x144xbf16, #tpu.memory_space<vmem>>, vector<64x16xbf16>
    tpu.vector_store %arg14[%c0_40, %c128], %46 {strides = array<i32>} : memref<64x144xbf16, #tpu.memory_space<vmem>>, vector<64x16xbf16>,
    %c0_41 = arith.constant 0 : index
    %c0_42 = arith.constant 0 : index
    %50 = vector.load %arg14[%c0_41, %c0_42] : memref<64x144xbf16, #tpu.memory_space<vmem>>, vector<64x144xbf16>
    %c0_43 = arith.constant 0 : index
    %c0_44 = arith.constant 0 : index
    %51 = vector.load %arg4[%c0_43, %c0_44] : memref<144x96xbf16, #tpu.memory_space<vmem>>, vector<144x96xbf16>
    %cst_45 = arith.constant dense<0.000000e+00> : vector<64x96xf32>
    %52 = tpu.matmul %50, %51, %cst_45 {dimension_numbers = #tpu.dot_dimension_numbers<[1], [0], [0], [1], [0, 0, 1, 1], [], []>} : vector<64x144xbf16>, vector<144x96xbf16>, vector<64x96xf32> -> vector<64x96xf32>
    %53 = vector.extract_strided_slice %52 {offsets = [0, 64], sizes = [64, 32], strides = [1, 1]} : vector<64x96xf32> to vector<64x32xf32>
    %c0_46 = arith.constant 0 : index
    %c0_47 = arith.constant 0 : index
    %c0_48 = arith.constant 0 : index
    %54 = vector.load %arg16[%c0_46, %c0_47, %c0_48] : memref<2x64x32xf32, #tpu.memory_space<vmem>>, vector<1x64x32xf32>
    %55 = vector.shape_cast %54 : vector<1x64x32xf32> to vector<64x32xf32>
    %56 = arith.addf %53, %55 : vector<64x32xf32>
    %c0_49 = arith.constant 0 : index
    %c0_50 = arith.constant 0 : index
    %57 = vector.load %arg5[%c0_49, %c0_50] : memref<1x32xf32, #tpu.memory_space<vmem>>, vector<1x32xf32>
    %58 = vector.broadcast %57 : vector<1x32xf32> to vector<64x32xf32>
    %59 = arith.addf %56, %58 : vector<64x32xf32>
    %c1_51 = arith.constant 1 : index
    %c0_52 = arith.constant 0 : index
    %c0_53 = arith.constant 0 : index
    %60 = vector.load %arg16[%c1_51, %c0_52, %c0_53] : memref<2x64x32xf32, #tpu.memory_space<vmem>>, vector<1x64x32xf32>
    %61 = vector.shape_cast %60 : vector<1x64x32xf32> to vector<64x32xf32>
    %62 = vector.extract_strided_slice %52 {offsets = [0, 32], sizes = [64, 32], strides = [1, 1]} : vector<64x96xf32> to vector<64x32xf32>
    %63 = arith.addf %61, %62 : vector<64x32xf32>
    %c0_54 = arith.constant 0 : index
    %c0_55 = arith.constant 0 : index
    %c0_56 = arith.constant 0 : index
    %64 = vector.load %arg16[%c0_54, %c0_55, %c0_56] : memref<2x64x32xf32, #tpu.memory_space<vmem>>, vector<1x64x32xf32>
    %65 = vector.shape_cast %64 : vector<1x64x32xf32> to vector<64x32xf32>
    %66 = vector.shape_cast %63 : vector<64x32xf32> to vector<1x64x32xf32>
    tpu.vector_store %arg16[%c0_54, %c0_55, %c0_56], %66 {strides = array<i32>} : memref<2x64x32xf32, #tpu.memory_space<vmem>>, vector<1x64x32xf32>,
    %67 = vector.extract_strided_slice %52 {offsets = [0, 0], sizes = [64, 32], strides = [1, 1]} : vector<64x96xf32> to vector<64x32xf32>
    %c1_57 = arith.constant 1 : index
    %c0_58 = arith.constant 0 : index
    %c0_59 = arith.constant 0 : index
    %68 = vector.load %arg16[%c1_57, %c0_58, %c0_59] : memref<2x64x32xf32, #tpu.memory_space<vmem>>, vector<1x64x32xf32>
    %69 = vector.shape_cast %68 : vector<1x64x32xf32> to vector<64x32xf32>
    %70 = vector.shape_cast %67 : vector<64x32xf32> to vector<1x64x32xf32>
    tpu.vector_store %arg16[%c1_57, %c0_58, %c0_59], %70 {strides = array<i32>} : memref<2x64x32xf32, #tpu.memory_space<vmem>>, vector<1x64x32xf32>,
    %c0_60 = arith.constant 0 : index
    %c0_61 = arith.constant 0 : index
    %71 = vector.load %arg6[%c0_60, %c0_61] : memref<1x32xf32, #tpu.memory_space<vmem>>, vector<1x32xf32>
    %72 = arith.mulf %59, %59 : vector<64x32xf32>
    %cst_62 = arith.constant dense<0.000000e+00> : vector<64xf32>
    %73 = vector.multi_reduction <add>, %72, %cst_62 [1] : vector<64x32xf32> to vector<64xf32>
    %74 = vector.shape_cast %73 : vector<64xf32> to vector<64x1xf32>
    %cst_63 = arith.constant 1.000000e-24 : f32
    %75 = vector.broadcast %cst_63 : f32 to vector<64x1xf32>
    %76 = arith.maximumf %74, %75 : vector<64x1xf32>
    %77 = math.rsqrt %76 : vector<64x1xf32>
    %cst_64 = arith.constant 5.65685415 : f32
    %78 = vector.broadcast %cst_64 : f32 to vector<64x1xf32>
    %79 = arith.mulf %78, %77 : vector<64x1xf32>
    %80 = vector.broadcast %79 : vector<64x1xf32> to vector<64x32xf32>
    %81 = arith.mulf %59, %80 : vector<64x32xf32>
    %82 = vector.broadcast %71 : vector<1x32xf32> to vector<64x32xf32>
    %83 = arith.mulf %81, %82 : vector<64x32xf32>
    %cst_65 = arith.constant 0.000000e+00 : f32
    %84 = vector.broadcast %cst_65 : f32 to vector<64x32xf32>
    %85 = arith.subf %84, %83 : vector<64x32xf32>
    %86 = math.exp %85 : vector<64x32xf32>
    %cst_66 = arith.constant 1.000000e+00 : f32
    %87 = vector.broadcast %cst_66 : f32 to vector<64x32xf32>
    %88 = arith.addf %87, %86 : vector<64x32xf32>
    %89 = tpu.reciprocal %88 {approx = true} : vector<64x32xf32> -> vector<64x32xf32>
    %90 = arith.mulf %83, %89 : vector<64x32xf32>
    %91 = arith.truncf %90 : vector<64x32xf32> to vector<64x32xbf16>
    %92 = vector.shape_cast %91 : vector<64x32xbf16> to vector<8x8x32xbf16>
    %c1_67 = arith.constant 1 : index
    %c1_68 = arith.constant 1 : index
    %c0_69 = arith.constant 0 : index
    %93 = vector.load %arg13[%c1_67, %c1_68, %c0_69] : memref<10x10x32xbf16, #tpu.memory_space<vmem>>, vector<8x8x32xbf16>
    tpu.vector_store %arg13[%c1_67, %c1_68, %c0_69], %92 {strides = array<i32>} : memref<10x10x32xbf16, #tpu.memory_space<vmem>>, vector<8x8x32xbf16>,
    %c0_70 = arith.constant 0 : index
    %c0_71 = arith.constant 0 : index
    %c0_72 = arith.constant 0 : index
    %94 = vector.load %arg13[%c0_70, %c0_71, %c0_72] : memref<10x10x32xbf16, #tpu.memory_space<vmem>>, vector<8x8x32xbf16>
    %95 = vector.shape_cast %94 : vector<8x8x32xbf16> to vector<64x32xbf16>
    %c0_73 = arith.constant 0 : index
    %c1_74 = arith.constant 1 : index
    %c0_75 = arith.constant 0 : index
    %96 = vector.load %arg13[%c0_73, %c1_74, %c0_75] : memref<10x10x32xbf16, #tpu.memory_space<vmem>>, vector<8x8x32xbf16>
    %97 = vector.shape_cast %96 : vector<8x8x32xbf16> to vector<64x32xbf16>
    %c0_76 = arith.constant 0 : index
    %c2_77 = arith.constant 2 : index
    %c0_78 = arith.constant 0 : index
    %98 = vector.load %arg13[%c0_76, %c2_77, %c0_78] : memref<10x10x32xbf16, #tpu.memory_space<vmem>>, vector<8x8x32xbf16>
    %99 = vector.shape_cast %98 : vector<8x8x32xbf16> to vector<64x32xbf16>
    %c1_79 = arith.constant 1 : index
    %c0_80 = arith.constant 0 : index
    %c0_81 = arith.constant 0 : index
    %100 = vector.load %arg13[%c1_79, %c0_80, %c0_81] : memref<10x10x32xbf16, #tpu.memory_space<vmem>>, vector<8x8x32xbf16>
    %101 = vector.shape_cast %100 : vector<8x8x32xbf16> to vector<64x32xbf16>
    %c1_82 = arith.constant 1 : index
    %c1_83 = arith.constant 1 : index
    %c0_84 = arith.constant 0 : index
    %102 = vector.load %arg13[%c1_82, %c1_83, %c0_84] : memref<10x10x32xbf16, #tpu.memory_space<vmem>>, vector<8x8x32xbf16>
    %103 = vector.shape_cast %102 : vector<8x8x32xbf16> to vector<64x32xbf16>
    %c1_85 = arith.constant 1 : index
    %c2_86 = arith.constant 2 : index
    %c0_87 = arith.constant 0 : index
    %104 = vector.load %arg13[%c1_85, %c2_86, %c0_87] : memref<10x10x32xbf16, #tpu.memory_space<vmem>>, vector<8x8x32xbf16>
    %105 = vector.shape_cast %104 : vector<8x8x32xbf16> to vector<64x32xbf16>
    %c2_88 = arith.constant 2 : index
    %c0_89 = arith.constant 0 : index
    %c0_90 = arith.constant 0 : index
    %106 = vector.load %arg13[%c2_88, %c0_89, %c0_90] : memref<10x10x32xbf16, #tpu.memory_space<vmem>>, vector<8x8x32xbf16>
    %107 = vector.shape_cast %106 : vector<8x8x32xbf16> to vector<64x32xbf16>
    %c2_91 = arith.constant 2 : index
    %c1_92 = arith.constant 1 : index
    %c0_93 = arith.constant 0 : index
    %108 = vector.load %arg13[%c2_91, %c1_92, %c0_93] : memref<10x10x32xbf16, #tpu.memory_space<vmem>>, vector<8x8x32xbf16>
    %109 = vector.shape_cast %108 : vector<8x8x32xbf16> to vector<64x32xbf16>
    %c2_94 = arith.constant 2 : index
    %c2_95 = arith.constant 2 : index
    %c0_96 = arith.constant 0 : index
    %110 = vector.load %arg13[%c2_94, %c2_95, %c0_96] : memref<10x10x32xbf16, #tpu.memory_space<vmem>>, vector<8x8x32xbf16>
    %111 = vector.shape_cast %110 : vector<8x8x32xbf16> to vector<64x32xbf16>
    %112 = tpu.concatenate %95, %97, %99, %101 in 1 : vector<64x32xbf16>, vector<64x32xbf16>, vector<64x32xbf16>, vector<64x32xbf16> -> vector<64x128xbf16>
    %c0_97 = arith.constant 0 : index
    %c0_98 = arith.constant 0 : index
    %113 = vector.load %arg15[%c0_97, %c0_98] : memref<64x288xbf16, #tpu.memory_space<vmem>>, vector<64x128xbf16>
    tpu.vector_store %arg15[%c0_97, %c0_98], %112 {strides = array<i32>} : memref<64x288xbf16, #tpu.memory_space<vmem>>, vector<64x128xbf16>,
    %114 = tpu.concatenate %103, %105, %107, %109 in 1 : vector<64x32xbf16>, vector<64x32xbf16>, vector<64x32xbf16>, vector<64x32xbf16> -> vector<64x128xbf16>
    %c0_99 = arith.constant 0 : index
    %c128_100 = arith.constant 128 : index
    %115 = vector.load %arg15[%c0_99, %c128_100] : memref<64x288xbf16, #tpu.memory_space<vmem>>, vector<64x128xbf16>
    tpu.vector_store %arg15[%c0_99, %c128_100], %114 {strides = array<i32>} : memref<64x288xbf16, #tpu.memory_space<vmem>>, vector<64x128xbf16>,
    %c0_101 = arith.constant 0 : index
    %c256 = arith.constant 256 : index
    %116 = vector.load %arg15[%c0_101, %c256] : memref<64x288xbf16, #tpu.memory_space<vmem>>, vector<64x32xbf16>
    tpu.vector_store %arg15[%c0_101, %c256], %111 {strides = array<i32>} : memref<64x288xbf16, #tpu.memory_space<vmem>>, vector<64x32xbf16>,
    %c0_102 = arith.constant 0 : index
    %c0_103 = arith.constant 0 : index
    %117 = vector.load %arg15[%c0_102, %c0_103] : memref<64x288xbf16, #tpu.memory_space<vmem>>, vector<64x288xbf16>
    %c0_104 = arith.constant 0 : index
    %c0_105 = arith.constant 0 : index
    %118 = vector.load %arg7[%c0_104, %c0_105] : memref<288x96xbf16, #tpu.memory_space<vmem>>, vector<288x96xbf16>
    %cst_106 = arith.constant dense<0.000000e+00> : vector<64x96xf32>
    %119 = tpu.matmul %117, %118, %cst_106 {dimension_numbers = #tpu.dot_dimension_numbers<[1], [0], [0], [1], [0, 0, 1, 1], [], []>} : vector<64x288xbf16>, vector<288x96xbf16>, vector<64x96xf32> -> vector<64x96xf32>
    %120 = vector.extract_strided_slice %119 {offsets = [0, 64], sizes = [64, 32], strides = [1, 1]} : vector<64x96xf32> to vector<64x32xf32>
    %c0_107 = arith.constant 0 : index
    %c0_108 = arith.constant 0 : index
    %c0_109 = arith.constant 0 : index
    %121 = vector.load %arg17[%c0_107, %c0_108, %c0_109] : memref<2x64x32xf32, #tpu.memory_space<vmem>>, vector<1x64x32xf32>
    %122 = vector.shape_cast %121 : vector<1x64x32xf32> to vector<64x32xf32>
    %123 = arith.addf %120, %122 : vector<64x32xf32>
    %c0_110 = arith.constant 0 : index
    %c0_111 = arith.constant 0 : index
    %124 = vector.load %arg8[%c0_110, %c0_111] : memref<1x32xf32, #tpu.memory_space<vmem>>, vector<1x32xf32>
    %125 = vector.broadcast %124 : vector<1x32xf32> to vector<64x32xf32>
    %126 = arith.addf %123, %125 : vector<64x32xf32>
    %c1_112 = arith.constant 1 : index
    %c0_113 = arith.constant 0 : index
    %c0_114 = arith.constant 0 : index
    %127 = vector.load %arg17[%c1_112, %c0_113, %c0_114] : memref<2x64x32xf32, #tpu.memory_space<vmem>>, vector<1x64x32xf32>
    %128 = vector.shape_cast %127 : vector<1x64x32xf32> to vector<64x32xf32>
    %129 = vector.extract_strided_slice %119 {offsets = [0, 32], sizes = [64, 32], strides = [1, 1]} : vector<64x96xf32> to vector<64x32xf32>
    %130 = arith.addf %128, %129 : vector<64x32xf32>
    %c0_115 = arith.constant 0 : index
    %c0_116 = arith.constant 0 : index
    %c0_117 = arith.constant 0 : index
    %131 = vector.load %arg17[%c0_115, %c0_116, %c0_117] : memref<2x64x32xf32, #tpu.memory_space<vmem>>, vector<1x64x32xf32>
    %132 = vector.shape_cast %131 : vector<1x64x32xf32> to vector<64x32xf32>
    %133 = vector.shape_cast %130 : vector<64x32xf32> to vector<1x64x32xf32>
    tpu.vector_store %arg17[%c0_115, %c0_116, %c0_117], %133 {strides = array<i32>} : memref<2x64x32xf32, #tpu.memory_space<vmem>>, vector<1x64x32xf32>,
    %134 = vector.extract_strided_slice %119 {offsets = [0, 0], sizes = [64, 32], strides = [1, 1]} : vector<64x96xf32> to vector<64x32xf32>
    %c1_118 = arith.constant 1 : index
    %c0_119 = arith.constant 0 : index
    %c0_120 = arith.constant 0 : index
    %135 = vector.load %arg17[%c1_118, %c0_119, %c0_120] : memref<2x64x32xf32, #tpu.memory_space<vmem>>, vector<1x64x32xf32>
    %136 = vector.shape_cast %135 : vector<1x64x32xf32> to vector<64x32xf32>
    %137 = vector.shape_cast %134 : vector<64x32xf32> to vector<1x64x32xf32>
    tpu.vector_store %arg17[%c1_118, %c0_119, %c0_120], %137 {strides = array<i32>} : memref<2x64x32xf32, #tpu.memory_space<vmem>>, vector<1x64x32xf32>,
    %c0_121 = arith.constant 0 : index
    %c0_122 = arith.constant 0 : index
    %138 = vector.load %arg9[%c0_121, %c0_122] : memref<16x32xbf16, #tpu.memory_space<vmem>>, vector<16x32xbf16>
    %cst_123 = arith.constant dense<0.000000e+00> : vector<64x32xf32>
    %139 = tpu.matmul %4, %138, %cst_123 {dimension_numbers = #tpu.dot_dimension_numbers<[1], [0], [0], [1], [0, 0, 1, 1], [], []>} : vector<64x16xbf16>, vector<16x32xbf16>, vector<64x32xf32> -> vector<64x32xf32>
    %c0_124 = arith.constant 0 : index
    %c0_125 = arith.constant 0 : index
    %140 = vector.load %arg10[%c0_124, %c0_125] : memref<1x32xf32, #tpu.memory_space<vmem>>, vector<1x32xf32>
    %141 = vector.broadcast %140 : vector<1x32xf32> to vector<64x32xf32>
    %142 = arith.addf %139, %141 : vector<64x32xf32>
    %143 = arith.addf %126, %142 : vector<64x32xf32>
    %144 = arith.truncf %143 : vector<64x32xf32> to vector<64x32xbf16>
    %c0_126 = arith.constant 0 : index
    %c0_127 = arith.constant 0 : index
    %c0_128 = arith.constant 0 : index
    %c0_129 = arith.constant 0 : index
    %145 = vector.load %arg11[%c0_126, %c0_127, %c0_128, %c0_129] : memref<1x1x64x32xbf16, #tpu.memory_space<vmem>>, vector<1x1x64x32xbf16>
    %146 = vector.shape_cast %145 : vector<1x1x64x32xbf16> to vector<64x32xbf16>
    %147 = vector.shape_cast %144 : vector<64x32xbf16> to vector<1x1x64x32xbf16>
    tpu.vector_store %arg11[%c0_126, %c0_127, %c0_128, %c0_129], %147 {strides = array<i32>} : memref<1x1x64x32xbf16, #tpu.memory_space<vmem>>, vector<1x1x64x32xbf16>,
    return
  }
  func.func @transform_0(%arg0: i32, %arg1: i32) -> (i32, i32, i32, i32) {
    %c0_i32 = arith.constant 0 : i32
    %c0_i32_0 = arith.constant 0 : i32
    %c0_i32_1 = arith.constant 0 : i32
    return %arg0, %arg1, %c0_i32, %c0_i32_0 : i32, i32, i32, i32
  }
  func.func @transform_1(%arg0: i32, %arg1: i32) -> (i32, i32) {
    %c0_i32 = arith.constant 0 : i32
    %c0_i32_0 = arith.constant 0 : i32
    %c0_i32_1 = arith.constant 0 : i32
    return %c0_i32, %c0_i32_0 : i32, i32
  }
  func.func @transform_2(%arg0: i32, %arg1: i32) -> (i32, i32) {
    %c0_i32 = arith.constant 0 : i32
    %c0_i32_0 = arith.constant 0 : i32
    %c0_i32_1 = arith.constant 0 : i32
    return %c0_i32, %c0_i32_0 : i32, i32
  }
  func.func @transform_3(%arg0: i32, %arg1: i32) -> (i32, i32) {
    %c0_i32 = arith.constant 0 : i32
    %c0_i32_0 = arith.constant 0 : i32
    %c0_i32_1 = arith.constant 0 : i32
    return %c0_i32, %c0_i32_0 : i32, i32
  }
  func.func @transform_4(%arg0: i32, %arg1: i32) -> (i32, i32) {
    %c0_i32 = arith.constant 0 : i32
    %c0_i32_0 = arith.constant 0 : i32
    %c0_i32_1 = arith.constant 0 : i32
    return %c0_i32, %c0_i32_0 : i32, i32
  }
  func.func @transform_5(%arg0: i32, %arg1: i32) -> (i32, i32) {
    %c0_i32 = arith.constant 0 : i32
    %c0_i32_0 = arith.constant 0 : i32
    %c0_i32_1 = arith.constant 0 : i32
    return %c0_i32, %c0_i32_0 : i32, i32
  }
  func.func @transform_6(%arg0: i32, %arg1: i32) -> (i32, i32) {
    %c0_i32 = arith.constant 0 : i32
    %c0_i32_0 = arith.constant 0 : i32
    %c0_i32_1 = arith.constant 0 : i32
    return %c0_i32, %c0_i32_0 : i32, i32
  }
  func.func @transform_7(%arg0: i32, %arg1: i32) -> (i32, i32) {
    %c0_i32 = arith.constant 0 : i32
    %c0_i32_0 = arith.constant 0 : i32
    %c0_i32_1 = arith.constant 0 : i32
    return %c0_i32, %c0_i32_0 : i32, i32
  }
  func.func @transform_8(%arg0: i32, %arg1: i32) -> (i32, i32) {
    %c0_i32 = arith.constant 0 : i32
    %c0_i32_0 = arith.constant 0 : i32
    %c0_i32_1 = arith.constant 0 : i32
    return %c0_i32, %c0_i32_0 : i32, i32
  }
  func.func @transform_9(%arg0: i32, %arg1: i32) -> (i32, i32, i32, i32) {
    %c0_i32 = arith.constant 0 : i32
    %c0_i32_0 = arith.constant 0 : i32
    %c0_i32_1 = arith.constant 0 : i32
    return %arg0, %arg1, %c0_i32, %c0_i32_0 : i32, i32, i32, i32
  }
}

</mosaic_0001>

<bundles_post_ra>
// kernel: up_residual_block.5
= control target key start
LH: loop header
LB: loop body
LE: loop exit
PB: predicated region body
PF: predicated region fallthrough
CT: control target
= control target key end

     0   :  { %s2365_s18 = smov 0   ;;  %s2367_s19 = smov 0   ;;  %s3145_s0 = inlined_call_operand.vmem [shape: bf16[2,4,64,32], index: 0, kind: input, shape index: {}]   ;;  %s3146_s1 = inlined_call_operand.vmem [shape: bf16[2,4,64,16], index: 1, kind: input, shape index: {}]   ;;  %s3147_s2 = inlined_call_operand.vmem [shape: bf16[288,128], index: 2, kind: input, shape index: {}]   ;;  %s3148_s3 = inlined_call_operand.vmem [shape: f32[1,32], index: 3, kind: input, shape index: {}]   ;;  %s3149_s4 = inlined_call_operand.vmem [shape: bf16[16,32], index: 4, kind: input, shape index: {}]   ;;  %s3150_s5 = inlined_call_operand.vmem [shape: bf16[2,4,64,128], index: 5, kind: output, shape index: {}]  }
   0x1   :  { %s2369_s20 = smov 0   ;;  %s2371_s21 = smov 0  }
   0x2   :  { %s2373_s22 = smov 0  }
   0x3 LB: > { %s24_s23 = sadd.s32 1, %s2321_s20  ;;  %s27_s24 = sadd.s32 1, %s2325_s21  ;;  %s2329_s22 = sphi %s2373_s22, %s15_s22   ;;  %s2325_s21 = sphi %s2371_s21, %s3172_s21   ;;  %s2321_s20 = sphi %s2369_s20, %s3171_s20   ;;  %s2317_s19 = sphi %s2367_s19, %s3170_s19   ;;  %s2313_s18 = sphi %s2365_s18, %s3169_s18  }
   0x4   : > { %p25_p0 = scmp.ge.s32.totalorder %s24_s23, 4  ;;  %p2000_p1 = scmp.ge.s32.totalorder %s2329_s22, 1 }
   0x5   : > { %p223_p2 = scmp.lt.s32.totalorder %s2329_s22, 9 }
   0x6   : > { %s3174_s23 = smov (%p25_p0, %s24_s23), 0  ;;  %s3176_s24 = smov (!%p25_p0, %s27_s24), %s2325_s21 }
   0x7   : > { %p224_p3 = pnand %p2000_p1, %p223_p2  ;;  %p29_p4 = scmp.ge.s32.totalorder %s3176_s24, 2 }
   0x8   : > { %v2260_v0 = vld [vmem:[%s3149_s4] sm:$0xff] (!%p224_p3)   ;;  %p268_p5 = scmp.lt.s32.totalorder (!%p224_p3), %s2317_s19, 1  ;;  %p270_p6 = scmp.lt.s32.totalorder (!%p224_p3), %s2313_s18, 3  ;;  %vm298_vm0 = vcmask (!%p224_p3), 253952   ;;  %vm305_vm1 = vsmask.f32 (!%p224_p3), 256 }
   0x9   : > { %s3178_s24 = smov (%p29_p4, %s3176_s24), 0  ;;  %227 = sbr.rel (%p224_p3) target bundleno = 474 (0x1da), region = 40 }
   0xa   : > { %2194 = vmatprep.subr.bf16.mxu0 (!%p224_p3), %v2260_v0  ;;  %vm2399_vm2 = vmand (!%p224_p3), %vm298_vm0, %vm305_vm1  ;;  %v316_v2 = vld [vmem:[#allocation2 + $0x20] sm:$0x1] (!%p224_p3)  ;;  %v319_v3 = vld [vmem:[#allocation2 + $0x28] sm:$0x1] (!%p224_p3)  ;;  %vm331_vm3 = vsmask.f32 (!%p224_p3), 7938 }
   0xb   : > { %2195 = vmatpush3.bf16.msra.mxu0 (!%p224_p3), %v2260_v0  ;;  %v317_v4 = vsel (!%p224_p3), %vm2399_vm2, 0, %v316_v2  ;;  %v320_v5 = vsel (!%p224_p3), %vm2399_vm2, 0, %v319_v3  ;;  %vm2409_vm4 = vmand (!%p224_p3), %vm298_vm0, %vm331_vm3  ;;  %v310_v7 = vld [vmem:[#allocation2 + $0x10] sm:$0x1] (!%p224_p3)  ;;  %v313_v8 = vld [vmem:[#allocation2 + $0x18] sm:$0x1] (!%p224_p3) }
   0xc   : > { %318 = vst [vmem:[#allocation2 + $0x20] sm:$0x1] (!%p224_p3), %v317_v4  ;;  %321 = vst [vmem:[#allocation2 + $0x28] sm:$0x1] (!%p224_p3), %v320_v5  ;;  %v311_v9 = vsel (!%p224_p3), %vm2399_vm2, 0, %v310_v7  ;;  %v314_v10 = vsel (!%p224_p3), %vm2399_vm2, 0, %v313_v8 }
   0xd   : > { %v307_v11 = vld [vmem:[#allocation2 + $0x8] sm:$0x1] (!%p224_p3)  ;;  %vm296_vm5 = vcmask (!%p224_p3), 257024   ;;  %312 = vst [vmem:[#allocation2 + $0x10] sm:$0x1] (!%p224_p3), %v311_v9  ;;  %v2331_v19 = vmov (!%p224_p3), 0  }
   0xe   : > { %315 = vst [vmem:[#allocation2 + $0x18] sm:$0x1] (!%p224_p3), %v314_v10  ;;  %v308_v12 = vsel (!%p224_p3), %vm2399_vm2, 0, %v307_v11  ;;  %v333_v13 = vld [vmem:[#allocation2 + $0xc] sm:$0x1] (!%p224_p3)  ;;  %vm1408_vm6 = vcmask (!%p224_p3), 130048   ;;  %vm2458_vm7 = vmand (!%p224_p3), %vm296_vm5, %vm331_vm3 }
   0xf   : > { %v336_v14 = vld [vmem:[#allocation2 + $0x14] sm:$0x1] (!%p224_p3)  ;;  %309 = vst [vmem:[#allocation2 + $0x8] sm:$0x1] (!%p224_p3), %v308_v12  ;;  %v334_v15 = vsel (!%p224_p3), %vm2409_vm4, 0, %v333_v13  ;;  %vm650_vm8 = vcmask (!%p224_p3), 1042432  }
  0x10   : > { %s3180_s19 = smov (!%p268_p5, %s2317_s19), 1  ;;  %s3182_s18 = smov (!%p270_p6, %s2313_s18), 3  ;;  %v337_v16 = vsel %vm2409_vm4, 0, %v336_v14  ;;  %v339_v17 = vld [vmem:[#allocation2 + $0x1c] sm:$0x1]  ;;  %vm651_vm9 = vcmask 1046532  }
  0x11   : > { %s2002_s27 = sshll.u32 %s3180_s19, 5  ;;  %s2001_s28 = sshll.u32 %s3182_s18, 3  ;;  %335 = vst [vmem:[#allocation2 + $0xc] sm:$0x1] %v334_v15  ;;  %338 = vst [vmem:[#allocation2 + $0x14] sm:$0x1] %v337_v16 }
  0x12   : > { %s274_s29 = sadd.s32 %s2002_s27, %s2001_s28  ;;  %v340_v18 = vsel %vm2409_vm4, 0, %v339_v17  ;;  %297 = vst.msk [vmem:[#allocation2] sm:$0xf] %vm296_vm5, %v2331_v19  ;;  %301 = vst.msk [vmem:[#allocation2 + $0x48] sm:$0xf] %vm296_vm5, %v2331_v19  ;;  %s2332_s16 = smov 64  }
  0x13   : > { %s2419_s30 = sshll.u32 %s274_s29, 2  ;;  %299 = vst.msk [vmem:[#allocation2 + $0x4] sm:$0x1] %vm298_vm0, %v2331_v19  ;;  %302 = vst.msk [vmem:[#allocation2 + $0x4c] sm:$0x1] %vm298_vm0, %v2331_v19  ;;  %s2333_s6 = smov 96  }
  0x14   : > { %s276_s8 = scalar_lea.vmem %s3145_s0, %s2419_s30  ;;  %341 = vst [vmem:[#allocation2 + $0x1c] sm:$0x1] %v340_v18  ;;  %s2439_s11 = scalar_lea.vmem %s3146_s1, %s2419_s30  ;;  %v465_v51 = vld [vmem:[#allocation2 + $0x20] sm:$0xf]  ;;  %v471_v56 = vld [vmem:[#allocation2 + $0x28] sm:$0xf]  ;;  %vm2546_vm10 = vmor %vm650_vm8, %vm651_vm9 }
  0x15   : > { %v357_v20 = vld [vmem:[%s276_s8] sm:$0xf]  ;;  %v358_v21 = vld [vmem:[%s276_s8 + $0x4] sm:$0xf]  ;;  %v359_v22 = vld [vmem:[%s276_s8 + $0x8] sm:$0xf] }
  0x16   : > { %v360_v23 = vld [vmem:[%s276_s8 + $0xc] sm:$0xf]  ;;  %v361_v24 = vld [vmem:[%s276_s8 + $0x10] sm:$0xf]  ;;  %v2441_v25 = vld [vmem:[%s276_s8 + $0x14] sm:$0xf] }
  0x17   : > { %v366_v26 = vshrl.u32 %v357_v20, 16  ;;  %v369_v27 = vshll.u32 %v357_v20, 16  ;;  %v374_v28 = vshrl.u32 %v358_v21, 16  ;;  %v377_v29 = vshll.u32 %v358_v21, 16  ;;  %v2443_v36 = vld [vmem:[%s276_s8 + $0x18] sm:$0xf] }
  0x18   : > { %v382_v30 = vshrl.u32 %v359_v22, 16  ;;  %v385_v31 = vshll.u32 %v359_v22, 16  ;;  %v390_v33 = vshrl.u32 %v360_v23, 16  ;;  %v393_v34 = vshll.u32 %v360_v23, 16  ;;  %v2445_v37 = vld [vmem:[%s276_s8 + $0x1c] sm:$0xf] }
  0x19   : > { %v368_v32 = vrot.slane %v366_v26, 7  ;;  %v398_v35 = vshrl.u32 %v361_v24, 16  ;;  %v376_v38 = vrot.slane %v374_v28, 7  ;;  %v401_v40 = vshll.u32 %v361_v24, 16  ;;  %v2261_v42 = vld [vmem:[%s2439_s11] sm:$0xff]   ;;  %v2262_v43 = vld [vmem:[%s2439_s11 + $0x8] sm:$0xff]  }
  0x1a   : > { %v384_v39 = vrot.slane %v382_v30, 7  ;;  %v406_v41 = vshrl.u32 %v2441_v25, 16  ;;  %v2450_v44 = vrot.slane %v390_v33, 7  ;;  %v2267_v46 = vld [vmem:[%s2439_s11 + $0x10] sm:$0xff]   ;;  %2196 = vmatprep.mubr.msk.bf16.mxu0 %vm1408_vm6, %v2261_v42  ;;  %v342_v58 = vld [vmem:[#allocation2 + $0x24] sm:$0x1] }
  0x1b   : > { %v2452_v45 = vrot.slane %v398_v35, 7  ;;  %v371_v47 = vor.u32 %v369_v27, %v368_v32  ;;  %v372_v48 = vrot.slane %v368_v32, 4  ;;  %v379_v49 = vor.u32 %v377_v29, %v376_v38  ;;  %2197 = vmatmul.mubr.msk.bf16.vlgmr.msra.gmra.mrb[0].mxu0 %vm1408_vm6, %v2262_v43  ;;  %v453_v57 = vld [vmem:[#allocation2 + $0x10] sm:$0xf]  ;;  %v459_v63 = vld [vmem:[#allocation2 + $0x18] sm:$0xf] }
  0x1c   : > { %v380_v52 = vrot.slane %v376_v38, 4  ;;  %v387_v53 = vor.u32 %v385_v31, %v384_v39  ;;  %v395_v54 = vor.u32 %v393_v34, %v2450_v44  ;;  %v388_v59 = vrot.slane %v384_v39, 4  ;;  %2200 = vmatprep.mubr.msk.bf16.mxu0 %vm1408_vm6, %v2267_v46  ;;  %v322_v0 = vld [vmem:[#allocation2 + $0x30] sm:$0x1]  ;;  %v447_v7 = vld [vmem:[#allocation2 + $0x8] sm:$0xf] }
  0x1d   : > { %v403_v55 = vor.u32 %v401_v40, %v2452_v45  ;;  %v396_v60 = vrot.slane %v2450_v44, 4  ;;  %v404_v61 = vrot.slane %v2452_v45, 4  ;;  %v2467_v62 = vrot.slane %v406_v41, 7  ;;  %v450_v8 = vld [vmem:[#allocation2 + $0xc] sm:$0x1]  ;;  %v2268_v18 = vld [vmem:[%s2439_s11 + $0x18] sm:$0xff]  }
  0x1e   : > { %v414_v2 = vshrl.u32 %v2443_v36, 16  ;;  %v422_v3 = vshrl.u32 %v2445_v37, 16  ;;  %v466_v4 = vsel %vm2458_vm7, %v395_v54, %v465_v51  ;;  %v409_v9 = vshll.u32 %v2441_v25, 16  ;;  %v456_v12 = vld [vmem:[#allocation2 + $0x14] sm:$0x1]  ;;  %v2273_v42 = vld [vmem:[%s3147_s2 + $0x40] sm:$0xff]  }
  0x1f   : > { %v472_v5 = vsel %vm2458_vm7, %v403_v55, %v471_v56  ;;  %v417_v10 = vshll.u32 %v2443_v36, 16  ;;  %467 = vst [vmem:[#allocation2 + $0x20] sm:$0xf] %v466_v4  ;;  %v454_v11 = vsel %vm2458_vm7, %v379_v49, %v453_v57  ;;  %v462_v13 = vld [vmem:[#allocation2 + $0x1c] sm:$0x1]  ;;  %v460_v15 = vsel %vm2458_vm7, %v387_v53, %v459_v63  ;;  %2148 = vmatprep.subr.bf16.mxu1 %v2273_v42  ;;  %v2274_v55 = vld [vmem:[%s3147_s2] sm:$0xff]  }
  0x20   : > { %473 = vst [vmem:[#allocation2 + $0x28] sm:$0xf] %v472_v5  ;;  %v2480_v14 = vrot.slane %v422_v3, 7  ;;  %455 = vst [vmem:[#allocation2 + $0x10] sm:$0xf] %v454_v11  ;;  %v448_v16 = vsel %vm2458_vm7, %v371_v47, %v447_v7  ;;  %v451_v17 = vsel %vm2399_vm2, %v372_v48, %v450_v8  ;;  %v425_v19 = vshll.u32 %v2445_v37, 16  ;;  %2149 = vmatpush3.bf16.msra.mxu1 %v2274_v55 }
  0x21   : > { %461 = vst [vmem:[#allocation2 + $0x18] sm:$0xf] %v460_v15  ;;  %449 = vst [vmem:[#allocation2 + $0x8] sm:$0xf] %v448_v16  ;;  %v457_v20 = vsel %vm2399_vm2, %v380_v52, %v456_v12  ;;  %v343_v21 = vsel %vm2409_vm4, 0, %v342_v58  ;;  %v2494_v22 = vrot.slane %v414_v2, 7  ;;  %v463_v23 = vsel %vm2399_vm2, %v388_v59, %v462_v13 }
  0x22   : > { %452 = vst [vmem:[#allocation2 + $0xc] sm:$0x1] %v451_v17  ;;  %458 = vst [vmem:[#allocation2 + $0x14] sm:$0x1] %v457_v20  ;;  %v323_v24 = vsel %vm2399_vm2, 0, %v322_v0  ;;  %v412_v31 = vrot.slane %v2467_v62, 4  ;;  %v2523_v43 = vor.u32 %v409_v9, %v2467_v62 }
  0x23   : > { %344 = vst [vmem:[#allocation2 + $0x24] sm:$0x1] %v343_v21  ;;  %v345_v25 = vld [vmem:[#allocation2 + $0x2c] sm:$0x1]  ;;  %v348_v26 = vld [vmem:[#allocation2 + $0x34] sm:$0x1]  ;;  %2201 = vmatmul.mubr.msk.bf16.gmra.mrb[4].mxu0 %vm1408_vm6, %v2268_v18 }
  0x24   : > { %464 = vst [vmem:[#allocation2 + $0x1c] sm:$0x1] %v463_v23  ;;  %324 = vst [vmem:[#allocation2 + $0x30] sm:$0x1] %v323_v24  ;;  %v346_v27 = vsel %vm2409_vm4, 0, %v345_v25  ;;  %v349_v28 = vsel %vm2409_vm4, 0, %v348_v26 }
  0x25   : > { %v2504_v29 = vld [vmem:[#allocation2 + $0x4] sm:$0x1]  ;;  %v2506_v30 = vld [vmem:[#allocation2] sm:$0xe]  ;;  %v420_v32 = vrot.slane %v2494_v22, 4  ;;  %v428_v33 = vrot.slane %v2480_v14, 4 }
  0x26   : > { %347 = vst [vmem:[#allocation2 + $0x2c] sm:$0x1] %v346_v27  ;;  %350 = vst [vmem:[#allocation2 + $0x34] sm:$0x1] %v349_v28  ;;  %v2010_v34 = vrot.slane %v2506_v30, 9  ;;  %v655_v38 = vrot.slane %v2504_v29, 5 }
  0x27   : > { %v2513_v35 = vld [vmem:[#allocation2] sm:$0xf]  ;;  %v524_v41 = vshll.u32 %v2504_v29, 16  ;;  %v873_v47 = vld [vmem:[#allocation2 + $0x28] sm:$0xf]  ;;  %v2277_v42 = vld [vmem:[%s3147_s2 + $0x50] sm:$0xff]  }
  0x28   : > { %v515_v39 = vshrl.u32 %v2513_v35, 16  ;;  %v518_v40 = vshll.u32 %v2513_v35, 16  ;;  %v872_v46 = vld [vmem:[#allocation2 + $0x20] sm:$0xf]  ;;  %v929_v49 = vshrl.u32 %v873_v47, 16  ;;  %v932_v51 = vshll.u32 %v873_v47, 16 }
  0x29   : > { %v2525_v48 = vld [vmem:[#allocation2 + $0x20] sm:$0xe]  ;;  %v2059_v52 = vcombine.low %v872_v46, %v873_v47  ;;  %v915_v53 = vshrl.u32 %v872_v46, 16  ;;  %v870_v54 = vld [vmem:[#allocation2 + $0x10] sm:$0xf]  ;;  %v918_v56 = vshll.u32 %v872_v46, 16 }
  0x2a   : > { %v871_v57 = vld [vmem:[#allocation2 + $0x18] sm:$0xf]  ;;  %v887_v58 = vshrl.u32 %v870_v54, 16  ;;  %v890_v59 = vshll.u32 %v870_v54, 16  ;;  %v2021_v63 = vrot.slane %v2525_v48, 9  ;;  %v931_v0 = vrot.slane %v929_v49, 4 }
  0x2b   : > { %v934_v2 = vrot.slane %v932_v51, 5  ;;  %1235 = vrot.lane.b32.xlu0 %v2059_v52, %s2332_s16  ;;  %v917_v3 = vrot.slane %v915_v53, 4  ;;  %v901_v4 = vshrl.u32 %v871_v57, 16  ;;  %v2532_v5 = vld [vmem:[#allocation2 + $0xc] sm:$0x1]  ;;  %v920_v7 = vrot.slane %v918_v56, 5 }
  0x2c   : > { %v904_v8 = vshll.u32 %v871_v57, 16  ;;  %v2058_v9 = vcombine.low %v870_v54, %v871_v57  ;;  %v889_v11 = vrot.slane %v887_v58, 4  ;;  %v2534_v12 = vld [vmem:[#allocation2 + $0x14] sm:$0x1]  ;;  %v2275_v13 = vld [vmem:[%s3147_s2 + $0x48] sm:$0xff]   ;;  %v892_v17 = vrot.slane %v890_v59, 5 }
  0x2d   : > { %v935_v15 = vor.u32 %v934_v2, %v931_v0  ;;  %v903_v16 = vrot.slane %v901_v4, 4  ;;  %v711_v18 = vshll.u32 %v2532_v5, 16  ;;  %v813_v20 = vld [vmem:[#allocation2 + $0x8] sm:$0xe]  ;;  %v921_v23 = vor.u32 %v920_v7, %v917_v3  ;;  %v814_v27 = vld [vmem:[#allocation2 + $0x10] sm:$0xe]  ;;  %2150 = vmatprep.subr.bf16.mxu1 %v2275_v13 }
  0x2e   : > { %v2276_v21 = vld [vmem:[%s3147_s2 + $0x8] sm:$0xff]   ;;  %v906_v24 = vrot.slane %v904_v8, 5  ;;  %1233 = vrot.lane.b32.xlu1 %v2058_v9, %s2332_s16  ;;  %v725_v26 = vshll.u32 %v2534_v12, 16  ;;  %v2018_v28 = vrot.slane %v813_v20, 9  ;;  %v893_v47 = vor.u32 %v892_v17, %v889_v11  ;;  %v2278_v53 = vld [vmem:[%s3147_s2 + $0x10] sm:$0xff]   ;;  %s2334_s7 = smov 32  }
  0x2f   : > { %v2554_v46 = vrot.slane %v935_v15, 4  ;;  %v839_v49 = vrot.slane %v2532_v5, 5  ;;  %v2019_v51 = vrot.slane %v814_v27, 9  ;;  %v685_v52 = vld [vmem:[#allocation2 + $0x8] sm:$0xf]  ;;  %2151 = vmatpush3.bf16.msra.mxu1 %v2276_v21  ;;  %v2560_v54 = vrot.slane %v921_v23, 4 }
  0x30   : > { %v907_v55 = vor.u32 %v906_v24, %v903_v16  ;;  %v843_v56 = vrot.slane %v2534_v12, 5  ;;  %v686_v57 = vld [vmem:[#allocation2 + $0x10] sm:$0xf]  ;;  %v702_v58 = vshrl.u32 %v685_v52, 16  ;;  %2152 = vmatprep.subr.bf16.mxu1 %v2277_v42  ;;  %v2563_v59 = vrot.slane %v893_v47, 4  ;;  %v2279_v44 = vld [vmem:[%s3147_s2 + $0x58] sm:$0xff]  }
  0x31   : > { %v840_v0 = vsel %vm2546_vm10, %v2018_v28, %v839_v49  ;;  %v716_v2 = vshrl.u32 %v686_v57, 16  ;;  %v719_v3 = vshll.u32 %v686_v57, 16  ;;  %v468_v4 = vld [vmem:[#allocation2 + $0x24] sm:$0x1]  ;;  %v2046_v9 = vcombine.low %v685_v52, %v686_v57  ;;  %v2571_v13 = vld [vmem:[#allocation2 + $0x1c] sm:$0x1] }
  0x32   : > { %v2567_v7 = vrot.slane %v907_v55, 4  ;;  %v844_v8 = vsel %vm2546_vm10, %v2019_v51, %v843_v56  ;;  %v704_v11 = vrot.slane %v702_v58, 4  ;;  %v815_v15 = vld [vmem:[#allocation2 + $0x18] sm:$0xe]  ;;  %v705_v21 = vshll.u32 %v685_v52, 16 }
  0x33   : > { %v2054_v16 = vcombine.low %v840_v0, %v844_v8  ;;  %v718_v17 = vrot.slane %v716_v2, 4  ;;  %v721_v20 = vrot.slane %v719_v3, 5  ;;  %v687_v23 = vld [vmem:[#allocation2 + $0x18] sm:$0xf]  ;;  %2153 = vmatpush3.bf16.msra.mxu1 %v2278_v53  ;;  %1134 = vrot.lane.b32.xlu1 %v2046_v9, %s2333_s6  ;;  %v469_v24 = vsel %vm2399_vm2, %v396_v60, %v468_v4  ;;  %v688_v47 = vld [vmem:[#allocation2 + $0x20] sm:$0xf] }
  0x34   : > { %v2020_v28 = vrot.slane %v815_v15, 9  ;;  %v847_v42 = vrot.slane %v2571_v13, 5  ;;  %v707_v51 = vrot.slane %v705_v21, 5  ;;  %470 = vst [vmem:[#allocation2 + $0x24] sm:$0x1] %v469_v24  ;;  %v730_v52 = vshrl.u32 %v687_v23, 16  ;;  %2154 = vmatprep.subr.bf16.mxu1 %v2279_v44 }
  0x35   : > { %1205 = vrot.lane.b32.xlu0 %v2054_v16, %s2334_s7  ;;  %v722_v49 = vor.u32 %v721_v20, %v718_v17  ;;  %v733_v53 = vshll.u32 %v687_v23, 16  ;;  %v474_v55 = vld [vmem:[#allocation2 + $0x2c] sm:$0x1]  ;;  %v744_v60 = vshrl.u32 %v688_v47, 16  ;;  %v747_v56 = vshll.u32 %v688_v47, 16  ;;  %v2280_v9 = vld [vmem:[%s3147_s2 + $0x18] sm:$0xff]  }
  0x36   : > { %v2047_v57 = vcombine.low %v687_v23, %v688_v47  ;;  %v477_v58 = vld [vmem:[#allocation2 + $0x30] sm:$0xf]  ;;  %v480_v0 = vld [vmem:[#allocation2 + $0x34] sm:$0x1]  ;;  %vm511_vm11 = vsmask.f32 3328  ;;  %v708_v3 = vor.u32 %v707_v51, %v704_v11  ;;  %v2592_v15 = vor.u32 %v417_v10, %v2494_v22 }
  0x37   : > { %vm512_vm12 = vsmask.f32 7440  ;;  %v2584_v2 = vrot.slane %v722_v49, 4  ;;  %v732_v4 = vrot.slane %v730_v52, 4  ;;  %v735_v8 = vrot.slane %v733_v53, 5  ;;  %2155 = vmatpush3.bf16.msra.mxu1 %v2280_v9 }
  0x38   : > { %1136 = vrot.lane.b32.xlu1 %v2047_v57, %s2333_s6  ;;  %v475_v16 = vsel %vm2399_vm2, %v404_v61, %v474_v55  ;;  %v478_v11 = vsel %vm2458_vm7, %v2523_v43, %v477_v58  ;;  %v2602_v17 = vld [vmem:[#allocation2 + $0x28] sm:$0xe]  ;;  %v2604_v20 = vld [vmem:[#allocation2 + $0xc] sm:$0x1]  ;;  %v746_v23 = vrot.slane %v744_v60, 4  ;;  %v749_v36 = vrot.slane %v747_v56, 5  ;;  %vm2670_vm13 = vmor %vm511_vm11, %vm512_vm12 }
  0x39   : > { %v627_v21 = vld [vmem:[#allocation2 + $0x8] sm:$0xe]  ;;  %476 = vst [vmem:[#allocation2 + $0x2c] sm:$0x1] %v475_v16  ;;  %479 = vst [vmem:[#allocation2 + $0x30] sm:$0xf] %v478_v11  ;;  %v481_v45 = vsel %vm2399_vm2, %v412_v31, %v480_v0  ;;  %v656_v61 = vsel %vm2546_vm10, %v2010_v34, %v655_v38  ;;  %v848_v24 = vsel %vm2546_vm10, %v2020_v28, %v847_v42 }
  0x3a   : > { %v2616_v10 = vld [vmem:[#allocation2 + $0x14] sm:$0x1]  ;;  %v2618_v43 = vld [vmem:[#allocation2 + $0x1c] sm:$0x1]  ;;  %v736_v47 = vor.u32 %v735_v8, %v732_v4  ;;  %482 = vst [vmem:[#allocation2 + $0x34] sm:$0x1] %v481_v45  ;;  %v750_v58 = vor.u32 %v749_v36, %v746_v23 }
  0x3b   : > { %v2011_v62 = vrot.slane %v627_v21, 9  ;;  %v659_v31 = vrot.slane %v2604_v20, 5  ;;  %v628_v49 = vld [vmem:[#allocation2 + $0x10] sm:$0xe]  ;;  %v629_v51 = vld [vmem:[#allocation2 + $0x18] sm:$0xe] }
  0x3c   : > { %v2623_v52 = vrot.slane %v708_v3, 4  ;;  %v2012_v30 = vrot.slane %v628_v49, 9  ;;  %v663_v34 = vrot.slane %v2616_v10, 5  ;;  %v2013_v38 = vrot.slane %v629_v51, 9  ;;  %v2626_v53 = vld [vmem:[#allocation2 + $0x8] sm:$0xf] }
  0x3d   : > { %v2628_v55 = vld [vmem:[#allocation2 + $0x24] sm:$0x1]  ;;  %v2022_v44 = vrot.slane %v2602_v17, 9  ;;  %v660_v28 = vsel %vm2546_vm10, %v2011_v62, %v659_v31  ;;  %v667_v42 = vrot.slane %v2618_v43, 5  ;;  %v517_v60 = vrot.slane %v515_v39, 4 }
  0x3e   : > { %v2281_v56 = vld [vmem:[%s3147_s2 + $0x60] sm:$0xff]   ;;  %v851_v57 = vrot.slane %v2628_v55, 5  ;;  %v2042_v0 = vcombine.low %v656_v61, %v660_v28  ;;  %v664_v3 = vsel %vm2546_vm10, %v2012_v30, %v663_v34  ;;  %v2642_v4 = vrot.slane %v736_v47, 4  ;;  %v631_v45 = vld [vmem:[#allocation2 + $0x28] sm:$0xe] }
  0x3f   : > { %v668_v8 = vsel %vm2546_vm10, %v2013_v38, %v667_v42  ;;  %v520_v9 = vrot.slane %v518_v40, 5  ;;  %v529_v39 = vshrl.u32 %v2626_v53, 16  ;;  %v2649_v16 = vld [vmem:[#allocation2 + $0x24] sm:$0x1]  ;;  %v630_v11 = vld [vmem:[#allocation2 + $0x20] sm:$0xe]  ;;  %2156 = vmatprep.subr.bf16.mxu1 %v2281_v56 }
  0x40   : > { %v2282_v17 = vld [vmem:[%s3147_s2 + $0x20] sm:$0xff]   ;;  %v852_v21 = vsel %vm2546_vm10, %v2021_v63, %v851_v57  ;;  %1106 = vrot.lane.b32.xlu1 %v2042_v0, %s2332_s16  ;;  %v2043_v23 = vcombine.low %v664_v3, %v668_v8  ;;  %v532_v40 = vshll.u32 %v2626_v53, 16  ;;  %v538_v36 = vshll.u32 %v2604_v20, 16  ;;  %v878_v61 = vld [vmem:[#allocation2 + $0x14] sm:$0x1] }
  0x41   : > { %v2055_v47 = vcombine.low %v848_v24, %v852_v21  ;;  %v2661_v62 = vld [vmem:[#allocation2 + $0x2c] sm:$0x1]  ;;  %v818_v31 = vld [vmem:[#allocation2 + $0x30] sm:$0xe]  ;;  %v521_v49 = vor.u32 %v520_v9, %v517_v60  ;;  %v526_v48 = vrot.slane %v524_v41, 5  ;;  %v531_v51 = vrot.slane %v529_v39, 4  ;;  %2157 = vmatpush3.bf16.msra.mxu1 %v2282_v17 }
  0x42   : > { %v879_v30 = vld [vmem:[#allocation2 + $0x1c] sm:$0x1]  ;;  %v2665_v63 = vld [vmem:[#allocation2 + $0x34] sm:$0x1]  ;;  %v855_v34 = vrot.slane %v2661_v62, 5  ;;  %v2023_v38 = vrot.slane %v818_v31, 9 }
  0x43   : > { %v534_v24 = vrot.slane %v532_v40, 5  ;;  %v2014_v28 = vrot.slane %v630_v11, 9  ;;  %1207 = vrot.lane.b32.xlu0 %v2055_v47, %s2334_s7  ;;  %v2675_v29 = vrot.slane %v750_v58, 4  ;;  %v859_v41 = vrot.slane %v2665_v63, 5  ;;  %v2678_v56 = vld [vmem:[#allocation2 + $0x2c] sm:$0x1] }
  0x44   : > { %v522_v42 = vrot.slane %v521_v49, 4  ;;  %v540_v60 = vrot.slane %v538_v36, 5  ;;  %v856_v57 = vsel %vm2546_vm10, %v2022_v44, %v855_v34  ;;  %1108 = vrot.lane.b32.xlu1 %v2043_v23, %s2332_s16  ;;  %v671_v3 = vrot.slane %v2649_v16, 5  ;;  %v998_v9 = vld [vmem:[#allocation2 + $0x10] sm:$0xe] }
  0x45   : > { %v535_v0 = vor.u32 %v534_v24, %v531_v51  ;;  %v2015_v8 = vrot.slane %v631_v45, 9  ;;  %v860_v58 = vsel %vm2546_vm10, %v2023_v38, %v859_v41  ;;  %v675_v11 = vrot.slane %v2678_v56, 5  ;;  %v999_v21 = vld [vmem:[#allocation2 + $0x18] sm:$0xe]  ;;  %v2693_v51 = vld [vmem:[#allocation2 + $0x10] sm:$0xf] }
  0x46   : > { %v527_v39 = vsel %vm2670_vm13, %v522_v42, %v526_v48  ;;  %v896_v17 = vshll.u32 %v878_v61, 16  ;;  %vm1142_vm14 = vcmask 261120   ;;  %v2056_v40 = vcombine.low %v856_v57, %v860_v58  ;;  %v2283_v48 = vld [vmem:[%s3147_s2 + $0x68] sm:$0xff]   ;;  %v2701_v41 = vld [vmem:[#allocation2 + $0x18] sm:$0xf] }
  0x47   : > { %v536_v44 = vrot.slane %v535_v0, 4  ;;  %v672_v23 = vsel %vm2546_vm10, %v2014_v28, %v671_v3  ;;  %v910_v36 = vshll.u32 %v879_v30, 16  ;;  %v676_v45 = vsel %vm2546_vm10, %v2015_v8, %v675_v11  ;;  %2158 = vmatprep.subr.bf16.mxu1 %v2283_v48  ;;  %v2284_v3 = vld [vmem:[%s3147_s2 + $0x28] sm:$0xff]   ;;  %v325_v58 = vld [vmem:[#allocation2 + $0x38] sm:$0x1] }
  0x48   : > { %v898_v47 = vrot.slane %v896_v17, 5  ;;  %v2026_v31 = vrot.slane %v998_v9, 9  ;;  %v1024_v49 = vrot.slane %v878_v61, 5  ;;  %1209 = vrot.lane.b32.xlu0 %v2056_v40, %s2334_s7  ;;  %v2044_v38 = vcombine.low %v672_v23, %v676_v45  ;;  %2159 = vmatpush3.bf16.msra.mxu1 %v2284_v3  ;;  %v2286_v45 = vld [vmem:[%s3147_s2 + $0x30] sm:$0xff]   ;;  %v351_v27 = vld [vmem:[#allocation2 + $0x3c] sm:$0x1] }
  0x49   : > { %v541_v34 = vsel %vm2670_vm13, %v536_v44, %v540_v60  ;;  %v912_v24 = vrot.slane %v910_v36, 5  ;;  %v2027_v28 = vrot.slane %v999_v21, 9  ;;  %v1028_v0 = vrot.slane %v879_v30, 5  ;;  %v2285_v30 = vld [vmem:[%s3147_s2 + $0x70] sm:$0xff]   ;;  %v2729_v36 = vld [vmem:[#allocation2 + $0x28] sm:$0xf] }
  0x4a   : > { %v2038_v42 = vcombine.low %v527_v39, %v541_v34  ;;  %v899_v61 = vsel %vm2670_vm13, %v2563_v59, %v898_v47  ;;  %v1025_v57 = vsel %vm2546_vm10, %v2026_v31, %v1024_v49  ;;  %1110 = vrot.lane.b32.xlu1 %v2044_v38, %s2332_s16  ;;  %v543_v8 = vshrl.u32 %v2693_v51, 16  ;;  %v2726_v21 = vld [vmem:[#allocation2 + $0x30] sm:$0xf]  ;;  %2160 = vmatprep.subr.bf16.mxu1 %v2285_v30  ;;  %v1000_v30 = vld [vmem:[#allocation2 + $0x20] sm:$0xe] }
  0x4b   : > { %v913_v60 = vsel %vm2670_vm13, %v2567_v7, %v912_v24  ;;  %v546_v9 = vshll.u32 %v2693_v51, 16  ;;  %v552_v59 = vshll.u32 %v2616_v10, 16  ;;  %v1029_v11 = vsel %vm2546_vm10, %v2027_v28, %v1028_v0  ;;  %v2737_v34 = vld [vmem:[#allocation2 + $0x30] sm:$0xf] }
  0x4c   : > { %v557_v17 = vshrl.u32 %v2701_v41, 16  ;;  %v560_v7 = vshll.u32 %v2701_v41, 16  ;;  %1086 = vrot.lane.b32.xlu0 %v2038_v42, %s2334_s7  ;;  %v2062_v10 = vcombine.low %v899_v61, %v913_v60  ;;  %v2066_v40 = vcombine.low %v1025_v57, %v1029_v11  ;;  %v880_v61 = vld [vmem:[#allocation2 + $0x24] sm:$0x1]  ;;  %v881_v60 = vld [vmem:[#allocation2 + $0x2c] sm:$0x1]  ;;  %2161 = vmatpush3.bf16.msra.mxu1 %v2286_v45 }
  0x4d   : > { %v545_v44 = vrot.slane %v543_v8, 4  ;;  %v548_v23 = vrot.slane %v546_v9, 5  ;;  %v566_v49 = vshll.u32 %v2618_v43, 16  ;;  %v326_v48 = vsel %vm2399_vm2, 0, %v325_v58 }
  0x4e   : > { %v559_v47 = vrot.slane %v557_v17, 4  ;;  %v562_v31 = vrot.slane %v560_v7, 5  ;;  %1313 = vst.msk [vmem:[#allocation3 + $0x10] sm:$0xff] %vm1142_vm14, %v2066_v40  ;;  %v554_v24 = vrot.slane %v552_v59, 5  ;;  %327 = vst [vmem:[#allocation2 + $0x38] sm:$0x1] %v326_v48 }
  0x4f   : > { %v549_v38 = vor.u32 %v548_v23, %v545_v44  ;;  %v943_v28 = vshrl.u32 %v2726_v21, 16  ;;  %v758_v42 = vshrl.u32 %v2729_v36, 16  ;;  %v568_v0 = vrot.slane %v566_v49, 5  ;;  %v1001_v44 = vld [vmem:[#allocation2 + $0x28] sm:$0xe] }
  0x50   : > { %v563_v57 = vor.u32 %v562_v31, %v559_v47  ;;  %v761_v3 = vshll.u32 %v2729_v36, 16  ;;  %v772_v43 = vshrl.u32 %v2737_v34, 16  ;;  %1253 = vrot.lane.b32.xlu0 %v2062_v10, %s2333_s6  ;;  %v946_v58 = vshll.u32 %v2726_v21, 16  ;;  %v2751_v49 = vld [vmem:[#allocation2 + $0x20] sm:$0xf] }
  0x51   : > { %v550_v59 = vrot.slane %v549_v38, 4  ;;  %v760_v17 = vrot.slane %v758_v42, 4  ;;  %v775_v40 = vshll.u32 %v2737_v34, 16  ;;  %v924_v47 = vshll.u32 %v880_v61, 16  ;;  %v2757_v42 = vld [vmem:[#allocation2 + $0x28] sm:$0xf] }
  0x52   : > { %v564_v11 = vrot.slane %v563_v57, 4  ;;  %v763_v7 = vrot.slane %v761_v3, 5  ;;  %v774_v45 = vrot.slane %v772_v43, 4  ;;  %v938_v31 = vshll.u32 %v881_v60, 16 }
  0x53   : > { %v555_v23 = vsel %vm2670_vm13, %v550_v59, %v554_v24  ;;  %v2755_v48 = vrot.slane %v943_v28, 4  ;;  %v777_v38 = vrot.slane %v775_v40, 5  ;;  %v2028_v57 = vrot.slane %v1000_v30, 9  ;;  %v2287_v24 = vld [vmem:[%s3147_s2 + $0x78] sm:$0xff]   ;;  %v2288_v30 = vld [vmem:[%s3147_s2 + $0x80] sm:$0xff]  }
  0x54   : > { %v569_v10 = vsel %vm2670_vm13, %v564_v11, %v568_v0  ;;  %v926_v9 = vrot.slane %v924_v47, 5  ;;  %v940_v8 = vrot.slane %v938_v31, 5  ;;  %v1032_v39 = vrot.slane %v880_v61, 5  ;;  %2162 = vmatprep.subr.bf16.mxu1 %v2287_v24  ;;  %2204 = vmatprep.subr.bf16.mxu0 %v2288_v30 }
  0x55   : > { %v2039_v3 = vcombine.low %v555_v23, %v569_v10  ;;  %v483_v43 = vld [vmem:[#allocation2 + $0x38] sm:$0xf]  ;;  %v948_v59 = vrot.slane %v946_v58, 5  ;;  %v2048_v0 = vcombine.low %v2729_v36, %v2737_v34  ;;  %v2029_v28 = vrot.slane %v1001_v44, 9  ;;  %2205 = vmatpush3.bf16.msra.mxu0 %v2288_v30 }
  0x56   : > { %v1036_v11 = vrot.slane %v881_v60, 5  ;;  %v484_v61 = vsel %vm2458_vm7, %v2592_v15, %v483_v43  ;;  %v764_v40 = vor.u32 %v763_v7, %v760_v17  ;;  %v778_v23 = vor.u32 %v777_v38, %v774_v45  ;;  %v2782_v15 = vld [vmem:[#allocation2 + $0x34] sm:$0x1]  ;;  %v2784_v17 = vld [vmem:[#allocation2 + $0x30] sm:$0xf]  ;;  %v2290_v43 = vld [vmem:[%s3147_s2 + $0x88] sm:$0xff]  }
  0x57   : > { %1088 = vrot.lane.b32.xlu1 %v2039_v3, %s2334_s7  ;;  %v1033_v58 = vsel %vm2546_vm10, %v2028_v57, %v1032_v39  ;;  %485 = vst [vmem:[#allocation2 + $0x38] sm:$0xf] %v484_v61  ;;  %v927_v36 = vsel %vm2670_vm13, %v2560_v54, %v926_v9  ;;  %v941_v34 = vsel %vm2670_vm13, %v2554_v46, %v940_v8  ;;  %v571_v44 = vshrl.u32 %v2751_v49, 16  ;;  %v2789_v45 = vld [vmem:[#allocation2 + $0x30] sm:$0xe]  ;;  %v2289_v8 = vld [vmem:[%s3147_s2 + $0x38] sm:$0xff]  }
  0x58   : > { %v1037_v60 = vsel %vm2546_vm10, %v2029_v28, %v1036_v11  ;;  %v574_v7 = vshll.u32 %v2751_v49, 16  ;;  %v580_v54 = vshll.u32 %v2649_v16, 16  ;;  %v585_v9 = vshrl.u32 %v2757_v42, 16  ;;  %v2791_v46 = vld [vmem:[#allocation2 + $0x34] sm:$0x1]  ;;  %2163 = vmatpush3.bf16.msra.mxu1 %v2289_v8  ;;  %2206 = vmatprep.subr.bf16.mxu0 %v2290_v43 }
  0x59   : > { %v2067_v39 = vcombine.low %v1033_v58, %v1037_v60  ;;  %v573_v47 = vrot.slane %v571_v44, 4  ;;  %v588_v31 = vshll.u32 %v2757_v42, 16  ;;  %v594_v10 = vshll.u32 %v2678_v56, 16  ;;  %2207 = vmatpush3.bf16.msra.mxu0 %v2290_v43  ;;  %v632_v43 = vld [vmem:[#allocation2 + $0x30] sm:$0xe] }
  0x5a   : > { %v352_v38 = vsel %vm2409_vm4, 0, %v351_v27  ;;  %v2800_v16 = vrot.slane %v764_v40, 4  ;;  %v576_v57 = vrot.slane %v574_v7, 5  ;;  %v587_v3 = vrot.slane %v585_v9, 4  ;;  %v354_v7 = vld [vmem:[#allocation2 + $0x44] sm:$0x1] }
  0x5b   : > { %1138 = vrot.lane.b32.xlu1 %v2048_v0, %s2333_s6  ;;  %1314 = vst.msk [vmem:[#allocation3 + $0x28] sm:$0xff] %vm1142_vm14, %v2067_v39  ;;  %353 = vst [vmem:[#allocation2 + $0x3c] sm:$0x1] %v352_v38  ;;  %v949_v24 = vor.u32 %v948_v59, %v2755_v48  ;;  %v2808_v56 = vrot.slane %v778_v23, 4  ;;  %v2810_v28 = vcombine.low %v927_v36, %v941_v34  ;;  %v582_v27 = vrot.slane %v580_v54, 5 }
  0x5c   : > { %v590_v11 = vrot.slane %v588_v31, 5  ;;  %v577_v30 = vor.u32 %v576_v57, %v573_v47  ;;  %v596_v0 = vrot.slane %v594_v10, 5  ;;  %v952_v61 = vshll.u32 %v2782_v15, 16  ;;  %v328_v39 = vld [vmem:[#allocation2 + $0x40] sm:$0x1] }
  0x5d   : > { %v599_v40 = vshrl.u32 %v2784_v17, 16  ;;  %v2030_v48 = vrot.slane %v2789_v45, 9  ;;  %v602_v59 = vshll.u32 %v2784_v17, 16  ;;  %v608_v60 = vshll.u32 %v2791_v46, 16 }
  0x5e   : > { %v591_v58 = vor.u32 %v590_v11, %v587_v3  ;;  %v875_v23 = vld [vmem:[#allocation2 + $0x38] sm:$0xf]  ;;  %v578_v36 = vrot.slane %v577_v30, 4  ;;  %v2817_v34 = vrot.slane %v949_v24, 4  ;;  %v2826_v38 = vrot.slane %v952_v61, 5 }
  0x5f   : > { %v601_v44 = vrot.slane %v599_v40, 4  ;;  %v957_v9 = vshrl.u32 %v875_v23, 16  ;;  %v960_v8 = vshll.u32 %v875_v23, 16  ;;  %v2060_v47 = vcombine.low %v2726_v21, %v875_v23  ;;  %v2822_v31 = vld [vmem:[#allocation2 + $0x38] sm:$0xf] }
  0x60   : > { %v592_v45 = vrot.slane %v591_v58, 4  ;;  %v583_v10 = vsel %vm2670_vm13, %v578_v36, %v582_v27  ;;  %v2828_v57 = vld [vmem:[#allocation2 + $0x38] sm:$0xe]  ;;  %v1040_v3 = vrot.slane %v2782_v15, 5  ;;  %v604_v24 = vrot.slane %v602_v59, 5 }
  0x61   : > { %v959_v11 = vrot.slane %v957_v9, 4  ;;  %v962_v30 = vrot.slane %v960_v8, 5  ;;  %1237 = vrot.lane.b32.xlu0 %v2060_v47, %s2332_s16  ;;  %v2834_v58 = vrot.slane %v608_v60, 5  ;;  %v2836_v23 = vld [vmem:[#allocation2 + $0x48] sm:$0xf]  ;;  %v613_v59 = vshrl.u32 %v2822_v31, 16 }
  0x62   : > { %v597_v21 = vsel %vm2670_vm13, %v592_v45, %v596_v0  ;;  %v486_v40 = vld [vmem:[#allocation2 + $0x3c] sm:$0x1]  ;;  %v605_v61 = vor.u32 %v604_v24, %v601_v44  ;;  %v2843_v36 = vld [vmem:[#allocation2 + $0x38] sm:$0xe]  ;;  %v1319_v9 = vld [vmem:[#allocation3 + $0x10] sm:$0xff]  ;;  %v616_v0 = vshll.u32 %v2822_v31, 16  ;;  %v427_v44 = vor.u32 %v425_v19, %v2480_v14 }
  0x63   : > { %v2040_v27 = vcombine.low %v583_v10, %v597_v21  ;;  %v487_v15 = vsel %vm2399_vm2, %v420_v32, %v486_v40  ;;  %v963_v8 = vor.u32 %v962_v30, %v959_v11  ;;  %v329_v60 = vsel %vm2399_vm2, 0, %v328_v39  ;;  %v2850_v22 = vld [vmem:[#allocation2 + $0x38] sm:$0xe]  ;;  %v2852_v45 = vld [vmem:[#allocation2 + $0x4c] sm:$0x1]  ;;  %2208 = vmatprep.mubr.msk.bf16.mxu0 %vm1142_vm14, %v1319_v9 }
  0x64   : > { %488 = vst [vmem:[#allocation2 + $0x3c] sm:$0x1] %v487_v15  ;;  %v355_v47 = vsel %vm2409_vm4, 0, %v354_v7  ;;  %v1322_v32 = vld [vmem:[#allocation3 + $0x28] sm:$0xff]  ;;  %v1041_v10 = vsel %vm2546_vm10, %v2030_v48, %v1040_v3  ;;  %v606_v39 = vrot.slane %v605_v61, 4  ;;  %v615_v24 = vrot.slane %v613_v59, 4 }
  0x65   : > { %1090 = vrot.lane.b32.xlu1 %v2040_v27, %s2334_s7  ;;  %330 = vst [vmem:[#allocation2 + $0x40] sm:$0x1] %v329_v60  ;;  %356 = vst [vmem:[#allocation2 + $0x44] sm:$0x1] %v355_v47  ;;  %v2861_v6 = vld [vmem:[#allocation2 + $0x38] sm:$0xf]  ;;  %2209 = vmatmul.mubr.msk.bf16.vlgmr.msra.gmra.mrb[8].mxu0 %vm1142_vm14, %v1322_v32  ;;  %v955_v27 = vsel %vm2670_vm13, %v2817_v34, %v2826_v38  ;;  %v2037_v32 = vcombine.low %v2784_v17, %v2822_v31 }
  0x66   : > { %v2863_v7 = vld [vmem:[#allocation2 + $0x48] sm:$0xe]  ;;  %1255 = vrot.lane.b32.xlu0 %v2810_v28, %s2333_s6  ;;  %v2031_v37 = vrot.slane %v2828_v57, 9  ;;  %v618_v19 = vrot.slane %v616_v0, 5  ;;  %v2024_v11 = vrot.slane %v2843_v36, 9  ;;  %v2016_v30 = vrot.slane %v632_v43, 9 }
  0x67   : > { %v679_v48 = vrot.slane %v2791_v46, 5  ;;  %v985_v3 = vshrl.u32 %v2836_v23, 16  ;;  %v988_v21 = vshll.u32 %v2836_v23, 16  ;;  %v786_v40 = vshrl.u32 %v2861_v6, 16 }
  0x68   : > { %v964_v28 = vrot.slane %v963_v8, 4  ;;  %v619_v15 = vor.u32 %v618_v19, %v615_v24  ;;  %v789_v57 = vshll.u32 %v2861_v6, 16  ;;  %v611_v43 = vsel %vm2670_vm13, %v606_v39, %v2834_v58 }
  0x69   : > { %v2017_v46 = vrot.slane %v2850_v22, 9  ;;  %v788_v61 = vrot.slane %v786_v40, 4  ;;  %v994_v59 = vshll.u32 %v2852_v45, 16  ;;  %v987_v36 = vrot.slane %v985_v3, 4 }
  0x6a   : > { %v990_v9 = vrot.slane %v988_v21, 5  ;;  %v791_v0 = vrot.slane %v789_v57, 5  ;;  %v680_v8 = vsel %vm2546_vm10, %v2016_v30, %v679_v48  ;;  %v620_v19 = vrot.slane %v619_v15, 4 }
  0x6b   : > { %v883_v47 = vld [vmem:[#allocation2 + $0x3c] sm:$0x1]  ;;  %v3164_v12 = vshll.u32 %v2665_v63, 16  ;;  %vm1164_vm15 = vcmask 785408   ;;  %vm1155_vm0 = vcmask 523264  }
  0x6c   : > { %v510_v34 = vld [vmem:[#allocation2 + $0x3c] sm:$0x1]  ;;  %v966_v39 = vshll.u32 %v883_v47, 16  ;;  %v1044_v24 = vrot.slane %v883_v47, 5  ;;  %v489_v21 = vld [vmem:[#allocation2 + $0x40] sm:$0xf]  ;;  %v792_v54 = vor.u32 %v791_v0, %v788_v61  ;;  %v991_v50 = vor.u32 %v990_v9, %v987_v36 }
  0x6d   : > { %v2885_v38 = vld [vmem:[#allocation2 + $0x3c] sm:$0x1]  ;;  %v622_v3 = vshll.u32 %v510_v34, 16  ;;  %v490_v40 = vsel %vm2458_vm7, %v427_v44, %v489_v21  ;;  %v492_v57 = vld [vmem:[#allocation2 + $0x44] sm:$0x1]  ;;  %v683_v48 = vrot.slane %v510_v34, 5 }
  0x6e   : > { %v863_v30 = vrot.slane %v2885_v38, 5  ;;  %v968_v58 = vrot.slane %v966_v39, 5  ;;  %v1045_v22 = vsel %vm2546_vm10, %v2031_v37, %v1044_v24  ;;  %491 = vst [vmem:[#allocation2 + $0x40] sm:$0xf] %v490_v40  ;;  %v493_v15 = vsel %vm2399_vm2, %v428_v33, %v492_v57 }
  0x6f   : > { %v624_v60 = vrot.slane %v622_v3, 5  ;;  %v2068_v47 = vcombine.low %v1041_v10, %v1045_v22  ;;  %494 = vst [vmem:[#allocation2 + $0x44] sm:$0x1] %v493_v15  ;;  %v2904_v44 = vrot.slane %v994_v59, 5  ;;  %v1052_v21 = vrot.slane %v2852_v45, 5 }
  0x70   : > { %v969_v61 = vsel %vm2670_vm13, %v964_v28, %v968_v58  ;;  %v795_v0 = vshll.u32 %v2885_v38, 16  ;;  %v684_v14 = vsel %vm2546_vm10, %v2017_v46, %v683_v48  ;;  %v864_v10 = vsel %vm2546_vm10, %v2024_v11, %v863_v30 }
  0x71   : > { %v625_v37 = vsel %vm2670_vm13, %v620_v19, %v624_v60  ;;  %v2064_v1 = vcombine.low %v955_v27, %v969_v61  ;;  %1315 = vst.msk [vmem:[#allocation3 + $0x40] sm:$0xff] %vm1142_vm14, %v2068_v47  ;;  %v713_v45 = vrot.slane %v711_v18, 5  ;;  %v2919_v59 = vrot.slane %v792_v54, 4 }
  0x72   : > { %v2041_v33 = vcombine.low %v611_v43, %v625_v37  ;;  %v727_v28 = vrot.slane %v725_v26, 5  ;;  %v3161_v36 = vshll.u32 %v2571_v13, 16  ;;  %v3162_v46 = vshll.u32 %v2628_v55, 16 }
  0x73   : > { %1257 = vrot.lane.b32.xlu0 %v2064_v1, %s2333_s6  ;;  %v2045_v43 = vcombine.low %v680_v8, %v684_v14  ;;  %v714_v5 = vsel %vm2670_vm13, %v2623_v52, %v713_v45  ;;  %v3163_v18 = vshll.u32 %v2661_v62, 16  ;;  %v783_v26 = vrot.slane %v3164_v12, 5 }
  0x74   : > { %v741_v9 = vrot.slane %v3161_v36, 5  ;;  %v755_v27 = vrot.slane %v3162_v46, 5  ;;  %1092 = vrot.lane.b32.xlu1 %v2041_v33, %s2334_s7  ;;  %v992_v13 = vrot.slane %v991_v50, 4  ;;  %v728_v55 = vsel %vm2670_vm13, %v2584_v2, %v727_v28 }
  0x75   : > { %v769_v54 = vrot.slane %v3163_v18, 5  ;;  %v820_v52 = vld [vmem:[#allocation2 + $0x40] sm:$0xe]  ;;  %v2945_v38 = vcombine.low %v714_v5, %v728_v55  ;;  %v784_v2 = vsel %vm2670_vm13, %v2808_v56, %v783_v26 }
  0x76   : > { %v742_v11 = vsel %vm2670_vm13, %v2642_v4, %v741_v9  ;;  %v756_v60 = vsel %vm2670_vm13, %v2675_v29, %v755_v27  ;;  %v876_v34 = vld [vmem:[#allocation2 + $0x40] sm:$0xf]  ;;  %v700_v4 = vld [vmem:[#allocation2 + $0x44] sm:$0x1]  ;;  %v2025_v58 = vrot.slane %v820_v52, 9  ;;  %v3165_v29 = vrot.slane %v2863_v7, 9 }
  0x77   : > { %v692_v62 = vld [vmem:[#allocation2 + $0x40] sm:$0xf]  ;;  %v2947_v63 = vcombine.low %v742_v11, %v756_v60  ;;  %v770_v8 = vsel %vm2670_vm13, %v2800_v16, %v769_v54  ;;  %v971_v22 = vshrl.u32 %v876_v34, 16  ;;  %v974_v39 = vshll.u32 %v876_v34, 16  ;;  %v884_v16 = vld [vmem:[#allocation2 + $0x44] sm:$0x1] }
  0x78   : > { %v1053_v24 = vsel %vm2546_vm10, %v3165_v29, %v1052_v21  ;;  %v809_v19 = vshll.u32 %v700_v4, 16  ;;  %v867_v3 = vrot.slane %v700_v4, 5  ;;  %1112 = vrot.lane.b32.xlu1 %v2045_v43, %s2332_s16  ;;  %v800_v40 = vshrl.u32 %v692_v62, 16  ;;  %v1004_v47 = vld [vmem:[#allocation2 + $0x40] sm:$0xe]  ;;  %v1325_v50 = vld [vmem:[#allocation3 + $0x40] sm:$0xff] }
  0x79   : > { %v803_v57 = vshll.u32 %v692_v62, 16  ;;  %v973_v30 = vrot.slane %v971_v22, 4  ;;  %v976_v48 = vrot.slane %v974_v39, 5  ;;  %v2049_v56 = vcombine.low %v2861_v6, %v692_v62  ;;  %2212 = vmatprep.mubr.msk.bf16.mxu0 %vm1142_vm14, %v1325_v50 }
  0x7a   : > { %v980_v15 = vshll.u32 %v884_v16, 16  ;;  %v868_v7 = vsel %vm2546_vm10, %v2025_v58, %v867_v3  ;;  %v802_v61 = vrot.slane %v800_v40, 4  ;;  %v2032_v21 = vrot.slane %v1004_v47, 9 }
  0x7b   : > { %v805_v37 = vrot.slane %v803_v57, 5  ;;  %v2057_v14 = vcombine.low %v864_v10, %v868_v7  ;;  %v977_v1 = vor.u32 %v976_v48, %v973_v30  ;;  %v1048_v45 = vrot.slane %v884_v16, 5 }
  0x7c   : > { %v982_v33 = vrot.slane %v980_v15, 5  ;;  %1140 = vrot.lane.b32.xlu1 %v2049_v56, %s2333_s6  ;;  %v2052_v36 = vcombine.low %v770_v8, %v784_v2  ;;  %v797_v6 = vrot.slane %v795_v0, 5  ;;  %v811_v9 = vrot.slane %v809_v19, 5 }
  0x7d   : > { %v806_v28 = vor.u32 %v805_v37, %v802_v61  ;;  %1211 = vrot.lane.b32.xlu0 %v2057_v14, %s2334_s7  ;;  %v2061_v46 = vcombine.low %v876_v34, %v2836_v23  ;;  %v978_v27 = vrot.slane %v977_v1, 4  ;;  %v1049_v43 = vsel %vm2546_vm10, %v2032_v21, %v1048_v45 }
  0x7e   : > { %v997_v10 = vsel %vm2670_vm13, %v992_v13, %v2904_v44  ;;  %v2069_v18 = vcombine.low %v1049_v43, %v1053_v24  ;;  %v798_v54 = vsel %vm2670_vm13, %v2919_v59, %v797_v6  ;;  %v3166_v2 = vcombine.low %v2513_v35, %v2626_v53 }
  0x7f   : > { %v807_v5 = vrot.slane %v806_v28, 4  ;;  %v983_v0 = vsel %vm2670_vm13, %v978_v27, %v982_v33  ;;  %v3168_v47 = vcombine.low %v2751_v49, %v2757_v42 }
  0x80   : > { %1316 = vst.msk [vmem:[#allocation3 + $0x58] sm:$0xff] %vm1142_vm14, %v2069_v18  ;;  %v2065_v25 = vcombine.low %v983_v0, %v997_v10 }
  0x81   : > { %v812_v23 = vsel %vm2670_vm13, %v807_v5, %v811_v9  ;;  %1239 = vrot.lane.b32.xlu0 %v2061_v46, %s2332_s16 }
  0x82   : > { %v2053_v12 = vcombine.low %v798_v54, %v812_v23 }
  0x85   : > { %1259 = vrot.lane.b32.xlu0 %v2065_v25, %s2333_s6 }
  0x87   : > { %v1328_v44 = vld [vmem:[#allocation3 + $0x58] sm:$0xff] }
  0x88   : > { %2213 = vmatmul.mubr.msk.bf16.gmra.mrb[12].mxu0 %vm1142_vm14, %v1328_v44 }
  0x9d   : > { %v1236_v13 = vpop.permute.xlu0 %1235 }
  0xa0   : > { %v1234_v26 = vpop.permute.xlu1 %1233 }
  0xa5   : > { %v1135_v59 = vpop.permute.xlu1 %1134 }
  0xa7   : > { %v1206_v55 = vpop.permute.xlu0 %1205 }
  0xa8   : > { %v1263_v8 = vsel %vm1142_vm14, %v2945_v38, %v1206_v55  ;;  %v3167_v38 = vcombine.low %v2693_v51, %v2701_v41 }
  0xa9   : > { %v1274_v29 = vsel %vm1155_vm0, %v1263_v8, %v1234_v26 }
  0xaa   : > { %v1137_v11 = vpop.permute.xlu1 %1136 }
  0xb2   : > { %v1107_v52 = vpop.permute.xlu1 %1106 }
  0xb5   : > { %v1208_v60 = vpop.permute.xlu0 %1207 }
  0xb6   : > { %v1109_v62 = vpop.permute.xlu1 %1108  ;;  %v1266_v30 = vsel %vm1142_vm14, %v2947_v63, %v1208_v60 }
  0xb7   : > { %v1276_v56 = vsel %vm1155_vm0, %v1266_v30, %v1236_v13 }
  0xba   : > { %v1210_v34 = vpop.permute.xlu0 %1209 }
  0xbb   : > { %v1269_v61 = vsel %vm1142_vm14, %v2052_v36, %v1210_v34  ;;  %v2070_v36 = vld [vmem:[%s3148_s3] ss:$0 sm:$0xff] }
  0xbc   : > { %v1111_v39 = vpop.permute.xlu1 %1110 }
  0xbe   : > { %v1087_v20 = vpop.permute.xlu0 %1086 }
  0xbf   : > { %v1145_v4 = vsel %vm1142_vm14, %v3166_v2, %v1087_v20 }
  0xc0   : > { %v1157_v58 = vsel %vm1155_vm0, %v1145_v4, %v1107_v52 }
  0xc1   : > { %v1166_v22 = vsel %vm1164_vm15, %v1157_v58, %v1135_v59 }
  0xc2   : > { %v1254_v24 = vpop.permute.xlu0 %1253 }
  0xc3   : > { %v1282_v19 = vsel %vm1164_vm15, %v1274_v29, %v1254_v24 }
  0xc4   : > { %1742 = vmatprep.mubr.bf16.mxu1 %v1282_v19 }
  0xc5   : > { %1743 = vmatmul.mubr.bf16.vlgmr.msra.gmra.mrb[0].mxu1 %v1166_v22 }
  0xc9   : > { %v1089_v3 = vpop.permute.xlu1 %1088 }
  0xca   : > { %v1148_v35 = vsel %vm1142_vm14, %v3167_v38, %v1089_v3 }
  0xcb   : > { %v1159_v53 = vsel %vm1155_vm0, %v1148_v35, %v1109_v62 }
  0xcc   : > { %v1169_v40 = vsel %vm1164_vm15, %v1159_v53, %v1137_v11 }
  0xcd   : > { %v1139_v57 = vpop.permute.xlu1 %1138 }
  0xd3   : > { %v1238_v16 = vpop.permute.xlu0 %1237 }
  0xd4   : > { %v1278_v63 = vsel %vm1155_vm0, %v1269_v61, %v1238_v16 }
  0xd7   : > { %v1091_v48 = vpop.permute.xlu1 %1090 }
  0xd8   : > { %v1256_v15 = vpop.permute.xlu0 %1255  ;;  %v1151_v51 = vsel %vm1142_vm14, %v3168_v47, %v1091_v48 }
  0xd9   : > { %v1285_v41 = vsel %vm1164_vm15, %v1276_v56, %v1256_v15  ;;  %v1161_v50 = vsel %vm1155_vm0, %v1151_v51, %v1111_v39 }
  0xda   : > { %v1172_v7 = vsel %vm1164_vm15, %v1161_v50, %v1139_v57  ;;  %1750 = vmatprep.mubr.bf16.mxu1 %v1285_v41 }
  0xdb   : > { %1751 = vmatmul.mubr.bf16.gmra.mrb[4].mxu1 %v1169_v40 }
  0xe5   : > { %v1258_v37 = vpop.permute.xlu0 %1257 }
  0xe6   : > { %v1093_v21 = vpop.permute.xlu1 %1092  ;;  %v1288_v14 = vsel %vm1164_vm15, %v1278_v63, %v1258_v37 }
  0xe7   : > { %1758 = vmatprep.mubr.bf16.mxu1 %v1288_v14  ;;  %v1154_v42 = vsel %vm1142_vm14, %v2037_v32, %v1093_v21 }
  0xe8   : > { %1759 = vmatmul.mubr.bf16.gmra.mrb[8].mxu1 %v1172_v7 }
  0xea   : > { %v1113_v49 = vpop.permute.xlu1 %1112 }
  0xeb   : > { %v1163_v1 = vsel %vm1155_vm0, %v1154_v42, %v1113_v49 }
  0xee   : > { %v1141_v33 = vpop.permute.xlu1 %1140  ;;  %v2198_v9 = vpop.f32.mrb[0].mxu0 }
  0xef   : > { %v1212_v45 = vpop.permute.xlu0 %1211  ;;  %v1175_v28 = vsel %vm1164_vm15, %v1163_v1, %v1141_v33  ;;  %v3021_v46 = vadd.f32 %v2198_v9, %v2070_v36  ;;  %v1455_v27 = vpop.f32.mrb[1].mxu0 }
  0xf0   : > { %v1272_v43 = vsel %vm1142_vm14, %v2053_v12, %v1212_v45  ;;  %v2199_v17 = vpop.f32.mrb[2].mxu0  ;;  %v1456_v25 = vadd.f32 %v2070_v36, %v1455_v27 }
  0xf1   : > { %v3025_v5 = vadd.f32 %v2199_v17, %v2070_v36  ;;  %1498 = vrot.lane.b32.xlu0 %v3021_v46, %s2334_s7  ;;  %v1458_v10 = vpop.f32.mrb[3].mxu0 }
  0xf2   : > { %v1459_v44 = vadd.f32 %v2070_v36, %v1458_v10 }
  0xf3   : > { %v1240_v6 = vpop.permute.xlu0 %1239  ;;  %1500 = vrot.lane.b32.xlu1 %v3025_v5, %s2334_s7 }
  0xf4   : > { %v1280_v31 = vsel %vm1155_vm0, %v1272_v43, %v1240_v6 }
  0xf5   : > { %1522 = vrot.lane.b32.xlu0 %v3021_v46, %s2332_s16 }
  0xf6   : > { %v2202_v54 = vpop.f32.mrb[4].mxu0 }
  0xf7   : > { %v1260_v32 = vpop.permute.xlu0 %1259  ;;  %1524 = vrot.lane.b32.xlu1 %v3025_v5, %s2332_s16  ;;  %v1471_v0 = vpop.f32.mrb[5].mxu0  ;;  %v3045_v26 = vadd.f32 %v2202_v54, %v2070_v36 }
  0xf8   : > { %v1291_v18 = vsel %vm1164_vm15, %v1280_v31, %v1260_v32  ;;  %v2203_v23 = vpop.f32.mrb[6].mxu0  ;;  %v3054_v59 = vadd.f32 %v2070_v36, %v1471_v0 }
  0xf9   : > { %1766 = vmatprep.mubr.bf16.mxu1 %v1291_v18  ;;  %1546 = vrot.lane.b32.xlu0 %v3021_v46, %s2333_s6  ;;  %v1474_v12 = vpop.f32.mrb[7].mxu0  ;;  %v3048_v13 = vadd.f32 %v2203_v23, %v2070_v36 }
  0xfa   : > { %1767 = vmatmul.mubr.bf16.gmra.mrb[12].mxu1 %v1175_v28  ;;  %v3060_v55 = vadd.f32 %v2070_v36, %v1474_v12 }
  0xfb   : > { %1548 = vrot.lane.b32.xlu1 %v3025_v5, %s2333_s6 }
  0xfd   : > { %1494 = vrot.lane.b32.xlu0 %v1456_v25, %s2334_s7 }
  0xff   : > { %1496 = vrot.lane.b32.xlu1 %v1459_v44, %s2334_s7 }
 0x101   : > { %1518 = vrot.lane.b32.xlu0 %v1456_v25, %s2332_s16 }
 0x103   : > { %1520 = vrot.lane.b32.xlu1 %v1459_v44, %s2332_s16 }
 0x105   : > { %1542 = vrot.lane.b32.xlu0 %v1456_v25, %s2333_s6 }
 0x107   : > { %1544 = vrot.lane.b32.xlu1 %v1459_v44, %s2333_s6 }
 0x109   : > { %1506 = vrot.lane.b32.xlu0 %v3045_v26, %s2334_s7 }
 0x10b   : > { %1508 = vrot.lane.b32.xlu1 %v3048_v13, %s2334_s7 }
 0x10d   : > { %1530 = vrot.lane.b32.xlu0 %v3045_v26, %s2332_s16 }
 0x10f   : > { %1532 = vrot.lane.b32.xlu1 %v3048_v13, %s2332_s16 }
 0x111   : > { %1502 = vrot.lane.b32.xlu0 %v3054_v59, %s2334_s7 }
 0x113   : > { %1504 = vrot.lane.b32.xlu1 %v3060_v55, %s2334_s7  ;;  %s3096_s7 = scalar_lea.vmem %s3150_s5, %s2419_s30 }
 0x115   : > { %1526 = vrot.lane.b32.xlu0 %v3054_v59, %s2332_s16 }
 0x117   : > { %1528 = vrot.lane.b32.xlu1 %v3060_v55, %s2332_s16 }
 0x119   : > { %1550 = vrot.lane.b32.xlu0 %v3054_v59, %s2333_s6 }
 0x11b   : > { %1552 = vrot.lane.b32.xlu1 %v3060_v55, %s2333_s6 }
 0x11d   : > { %1554 = vrot.lane.b32.xlu0 %v3045_v26, %s2333_s6 }
 0x11f   : > { %1556 = vrot.lane.b32.xlu1 %v3048_v13, %s2333_s6 }
 0x138   : > { %v2210_v11 = vpop.f32.mrb[8].mxu0 }
 0x139   : > { %v1809_v60 = vpop.f32.mrb[9].mxu0 }
 0x13a   : > { %v2211_v52 = vpop.f32.mrb[10].mxu0 }
 0x13b   : > { %v1812_v34 = vpop.f32.mrb[11].mxu0 }
 0x15b   : > { %v3078_v62 = vpop.f32.mrb[12].mxu0 }
 0x15c   : > { %v3080_v20 = vpop.f32.mrb[13].mxu0 }
 0x15d   : > { %v3082_v8 = vpop.f32.mrb[14].mxu0 }
 0x15e   : > { %v3084_v2 = vpop.f32.mrb[15].mxu0 }
 0x163   : > { %v1499_v4 = vpop.permute.xlu0 %1498 }
 0x164   : > { %v1568_v36 = vsel %vm1142_vm14, %v3021_v46, %v1499_v4 }
 0x165   : > { %v1501_v58 = vpop.permute.xlu1 %1500 }
 0x166   : > { %v1569_v31 = vsel %vm1142_vm14, %v3025_v5, %v1501_v58 }
 0x167   : > { %v1523_v22 = vpop.permute.xlu0 %1522 }
 0x168   : > { %v1576_v27 = vsel %vm1155_vm0, %v1568_v36, %v1523_v22 }
 0x169   : > { %v1525_v39 = vpop.permute.xlu1 %1524 }
 0x16a   : > { %v1577_v54 = vsel %vm1155_vm0, %v1569_v31, %v1525_v39 }
 0x16b   : > { %v1547_v29 = vpop.permute.xlu0 %1546 }
 0x16c   : > { %v1584_v32 = vsel %vm1164_vm15, %v1576_v27, %v1547_v29 }
 0x16d   : > { %v1549_v24 = vpop.permute.xlu1 %1548 }
 0x16e   : > { %v1585_v46 = vsel %vm1164_vm15, %v1577_v54, %v1549_v24 }
 0x16f   : > { %v1495_v19 = vpop.permute.xlu0 %1494 }
 0x170   : > { %v1566_v57 = vsel %vm1142_vm14, %v1456_v25, %v1495_v19 }
 0x171   : > { %v1497_v3 = vpop.permute.xlu1 %1496 }
 0x172   : > { %v1567_v47 = vsel %vm1142_vm14, %v1459_v44, %v1497_v3 }
 0x173   : > { %v1519_v38 = vpop.permute.xlu0 %1518 }
 0x174   : > { %v1574_v30 = vsel %vm1155_vm0, %v1566_v57, %v1519_v38 }
 0x175   : > { %v1521_v35 = vpop.permute.xlu1 %1520 }
 0x176   : > { %v1575_v50 = vsel %vm1155_vm0, %v1567_v47, %v1521_v35 }
 0x177   : > { %v1543_v53 = vpop.permute.xlu0 %1542 }
 0x178   : > { %v1582_v51 = vsel %vm1164_vm15, %v1574_v30, %v1543_v53 }
 0x179   : > { %v1545_v48 = vpop.permute.xlu1 %1544 }
 0x17a   : > { %v1583_v63 = vsel %vm1164_vm15, %v1575_v50, %v1545_v48 }
 0x17b   : > { %v1507_v49 = vpop.permute.xlu0 %1506 }
 0x17d   : > { %v1509_v1 = vpop.permute.xlu1 %1508 }
 0x17f   : > { %v1531_v33 = vpop.permute.xlu0 %1530 }
 0x181   : > { %v1533_v45 = vpop.permute.xlu1 %1532 }
 0x183   : > { %v1503_v6 = vpop.permute.xlu0 %1502 }
 0x184   : > { %v1570_v5 = vsel %vm1142_vm14, %v3054_v59, %v1503_v6 }
 0x185   : > { %v1505_v10 = vpop.permute.xlu1 %1504 }
 0x187   : > { %v1527_v44 = vpop.permute.xlu0 %1526 }
 0x188   : > { %v1578_v39 = vsel %vm1155_vm0, %v1570_v5, %v1527_v44 }
 0x18b   : > { %v1551_v22 = vpop.permute.xlu0 %1550 }
 0x198   : > { %v2164_v40 = vpop.f32.mrb[0].mxu1 }
 0x199   : > { %v2165_v16 = vpop.f32.mrb[1].mxu1 }
 0x19a   : > { %v2166_v56 = vadd.f32 %v2165_v16, %v2164_v40  ;;  %v2167_v15 = vpop.f32.mrb[2].mxu1 }
 0x19b   : > { %v2168_v41 = vpop.f32.mrb[3].mxu1 }
 0x19c   : > { %v2169_v7 = vadd.f32 %v2168_v41, %v2167_v15  ;;  %v1745_v61 = vadd.f32 %v2166_v56, %v1582_v51  ;;  %v1555_v56 = vpop.permute.xlu0 %1554 }
 0x19e   : > { %v1810_v37 = vadd.f32 %v1809_v60, %v1745_v61  ;;  %v1748_v21 = vadd.f32 %v2169_v7, %v1583_v63 }
 0x1a0   : > { %v1813_v14 = vadd.f32 %v1812_v34, %v1748_v21  ;;  %v1529_v34 = vpop.permute.xlu1 %1528 }
 0x1a2   : > { %v2123_v42 = vpack.c.bf16 %v1813_v14, %v1810_v37 }
 0x1a4   : > { %2124 = vst [vmem:[%s3096_s7] sm:$0xff] %v2123_v42   ;;  %v1553_v29 = vpop.permute.xlu1 %1552 }
 0x1a8   : > { %v1557_v41 = vpop.permute.xlu1 %1556 }
 0x1ae   : > { %v2170_v28 = vpop.f32.mrb[4].mxu1 }
 0x1af   : > { %v2171_v9 = vpop.f32.mrb[5].mxu1 }
 0x1b0   : > { %v2172_v43 = vadd.f32 %v2171_v9, %v2170_v28  ;;  %v2173_v17 = vpop.f32.mrb[6].mxu1 }
 0x1b1   : > { %v2174_v18 = vpop.f32.mrb[7].mxu1 }
 0x1b2   : > { %v1753_v0 = vadd.f32 %v2172_v43, %v1584_v32  ;;  %v2175_v23 = vadd.f32 %v2174_v18, %v2173_v17 }
 0x1b4   : > { %v1818_v25 = vadd.f32 %v2210_v11, %v1753_v0  ;;  %v1756_v12 = vadd.f32 %v2175_v23, %v1585_v46  ;;  %v1571_v11 = vsel %vm1142_vm14, %v3060_v55, %v1505_v10  ;;  %v1572_v55 = vsel %vm1142_vm14, %v3045_v26, %v1507_v49 }
 0x1b5   : > { %v1579_v35 = vsel %vm1155_vm0, %v1571_v11, %v1529_v34  ;;  %v1580_v51 = vsel %vm1155_vm0, %v1572_v55, %v1531_v33 }
 0x1b6   : > { %v1821_v60 = vadd.f32 %v2211_v52, %v1756_v12  ;;  %v1586_v52 = vsel %vm1164_vm15, %v1578_v39, %v1551_v22  ;;  %v1587_v57 = vsel %vm1164_vm15, %v1579_v35, %v1553_v29  ;;  %v1588_v61 = vsel %vm1164_vm15, %v1580_v51, %v1555_v56 }
 0x1b8   : > { %v2128_v4 = vpack.c.bf16 %v1821_v60, %v1818_v25 }
 0x1ba   : > { %2140 = vst [vmem:[%s3096_s7 + $0x8] sm:$0xff] %v2128_v4  }
 0x1bb   : > { %v2176_v19 = vpop.f32.mrb[8].mxu1 }
 0x1bc   : > { %v2177_v58 = vpop.f32.mrb[9].mxu1 }
 0x1bd   : > { %v2178_v3 = vadd.f32 %v2177_v58, %v2176_v19  ;;  %v2179_v38 = vpop.f32.mrb[10].mxu1 }
 0x1be   : > { %v2180_v24 = vpop.f32.mrb[11].mxu1 }
 0x1bf   : > { %v2181_v53 = vadd.f32 %v2180_v24, %v2179_v38  ;;  %v1761_v40 = vadd.f32 %v2178_v3, %v1586_v52 }
 0x1c1   : > { %v1826_v59 = vadd.f32 %v3080_v20, %v1761_v40  ;;  %v1764_v16 = vadd.f32 %v2181_v53, %v1587_v57  ;;  %v1573_v20 = vsel %vm1142_vm14, %v3048_v13, %v1509_v1 }
 0x1c2   : > { %v1581_v63 = vsel %vm1155_vm0, %v1573_v20, %v1533_v45 }
 0x1c3   : > { %v1829_v30 = vadd.f32 %v3084_v2, %v1764_v16  ;;  %v1589_v14 = vsel %vm1164_vm15, %v1581_v63, %v1557_v41 }
 0x1c5   : > { %v2133_v48 = vpack.c.bf16 %v1829_v30, %v1826_v59 }
 0x1c7   : > { %2141 = vst [vmem:[%s3096_s7 + $0x10] sm:$0xff] %v2133_v48  }
 0x1cd   : > { %v2182_v15 = vpop.f32.mrb[12].mxu1 }
 0x1ce   : > { %v2183_v47 = vpop.f32.mrb[13].mxu1 }
 0x1cf   : > { %v2184_v50 = vadd.f32 %v2183_v47, %v2182_v15  ;;  %v2185_v7 = vpop.f32.mrb[14].mxu1 }
 0x1d0   : > { %v2186_v2 = vpop.f32.mrb[15].mxu1 }
 0x1d1   : > { %v1769_v37 = vadd.f32 %v2184_v50, %v1588_v61  ;;  %v2187_v21 = vadd.f32 %v2186_v2, %v2185_v7 }
 0x1d3   : > { %v1834_v26 = vadd.f32 %v3078_v62, %v1769_v37  ;;  %v1772_v49 = vadd.f32 %v2187_v21, %v1589_v14 }
 0x1d5   : > { %v1837_v42 = vadd.f32 %v3082_v8, %v1772_v49 }
 0x1d7   : > { %v2138_v33 = vpack.c.bf16 %v1837_v42, %v1834_v26 }
 0x1d9   : > { %2142 = vst [vmem:[%s3096_s7 + $0x18] sm:$0xff] %v2138_v33  }
 0x1da PF: > { %s15_s22 = sadd.s32 1, %s2329_s22   ;;  %s3169_s18 = smov %s2321_s20 }
 0x1db   : > { %p12_p7 = scmp.ge.s32.totalorder %s15_s22, 10   ;;  %s3170_s19 = smov %s2325_s21 }
 0x1dc   : > { %s3171_s20 = smov %s3174_s23  ;;  %s3172_s21 = smov %s3178_s24 }
 0x1dd   :  { %14 = sbr.rel (!%p12_p7) target bundleno = 3 (0x3), region = 76 }

// kernel: up_residual_block.3
= control target key start
LH: loop header
LB: loop body
LE: loop exit
PB: predicated region body
PF: predicated region fallthrough
CT: control target
= control target key end

     0   :  { %s4373_s30 = smov 0   ;;  %s4375_s10 = smov 0   ;;  %s5947_s0 = inlined_call_operand.vmem [shape: bf16[2,4,64,16], index: 0, kind: input, shape index: {}]   ;;  %s5948_s1 = inlined_call_operand.vmem [shape: f32[1,16], index: 1, kind: input, shape index: {}]   ;;  %s5949_s2 = inlined_call_operand.vmem [shape: bf16[144,96], index: 2, kind: input, shape index: {}]   ;;  %s5950_s3 = inlined_call_operand.vmem [shape: f32[1,32], index: 3, kind: input, shape index: {}]   ;;  %s5951_s4 = inlined_call_operand.vmem [shape: f32[1,32], index: 4, kind: input, shape index: {}]   ;;  %s5952_s5 = inlined_call_operand.vmem [shape: bf16[288,96], index: 5, kind: input, shape index: {}]   ;;  %s5953_s6 = inlined_call_operand.vmem [shape: f32[1,32], index: 6, kind: input, shape index: {}]   ;;  %s5954_s7 = inlined_call_operand.vmem [shape: bf16[16,32], index: 7, kind: input, shape index: {}]   ;;  %s5955_s8 = inlined_call_operand.vmem [shape: f32[1,32], index: 8, kind: input, shape index: {}]   ;;  %s5956_s9 = inlined_call_operand.vmem [shape: bf16[2,4,64,32], index: 9, kind: output, shape index: {}]  }
   0x1   :  { %s4377_s11 = smov 0   ;;  %s4379_s12 = smov 0  }
   0x2   :  { %s4381_s13 = smov 0  }
   0x3 LB: > { %s28_s14 = sadd.s32 1, %s4303_s11  ;;  %s31_s15 = sadd.s32 1, %s4307_s12  ;;  %s4311_s13 = sphi %s4381_s13, %s19_s13   ;;  %s4307_s12 = sphi %s4379_s12, %s6024_s12   ;;  %s4303_s11 = sphi %s4377_s11, %s6023_s11   ;;  %s4299_s10 = sphi %s4375_s10, %s6022_s10   ;;  %s4295_s30 = sphi %s4373_s30, %s6021_s30  }
   0x4   : > { %p29_p0 = scmp.ge.s32.totalorder %s28_s14, 4  ;;  %p3769_p1 = scmp.ge.s32.totalorder %s4311_s13, 1 }
   0x5   : > { %p307_p2 = scmp.lt.s32.totalorder %s4311_s13, 9 }
   0x6   : > { %s6026_s14 = smov (%p29_p0, %s28_s14), 0  ;;  %s6028_s15 = smov (!%p29_p0, %s31_s15), %s4307_s12 }
   0x7   : > { %p308_p3 = pnand %p3769_p1, %p307_p2  ;;  %p33_p4 = scmp.ge.s32.totalorder %s6028_s15, 2 }
   0x9   : > { %s6030_s15 = smov (%p33_p4, %s6028_s15), 0  ;;  %311 = sbr.rel (%p308_p3) target bundleno = 1682 (0x692), region = 56 }
  0x10   : > { %p351_p5 = scmp.lt.s32.totalorder %s4299_s10, 1  ;;  %p353_p6 = scmp.lt.s32.totalorder %s4295_s30, 3 }
  0x11   : > { %p3776_p7 = scmp.ne.s32.totalorder %s4295_s30, 0 }
  0x12   : > { %s6032_s10 = smov (!%p351_p5, %s4299_s10), 1  ;;  %vm374_vm0 = vcmask (!%p3776_p7), 125952   ;;  %vm376_vm1 = vcmask (!%p3776_p7), 122880   ;;  %vm396_vm2 = vcmask (!%p3776_p7), 257024   ;;  %v4313_v0 = vmov (!%p3776_p7), 0  }
  0x13   : > { %s354_s16 = scalar_select %p353_p6, %s4295_s30, 3 }
  0x14   : > { %s3771_s17 = sshll.u32 %s6032_s10, 5  ;;  %373 = sbr.rel (%p3776_p7) target bundleno = 56 (0x38), region = 60  ;;  %375 = vst.msk [vmem:[#allocation2] sm:$0xf] (!%p3776_p7), %vm374_vm0, %v4313_v0  ;;  %378 = vst.msk [vmem:[#allocation2 + $0x8] sm:$0xf] (!%p3776_p7), %vm374_vm0, %v4313_v0 }
  0x15   : > { %s3770_s18 = sshll.u32 %s354_s16, 3  ;;  %380 = vst.msk [vmem:[#allocation2 + $0x10] sm:$0xf] (!%p3776_p7), %vm374_vm0, %v4313_v0  ;;  %382 = vst.msk [vmem:[#allocation2 + $0x18] sm:$0xf] (!%p3776_p7), %vm374_vm0, %v4313_v0  ;;  %vm398_vm3 = vcmask (!%p3776_p7), 253952  }
  0x16   : > { %s357_s19 = sadd.s32 %s3771_s17, %s3770_s18  ;;  %384 = vst.msk [vmem:[#allocation2 + $0x20] sm:$0xf] (!%p3776_p7), %vm374_vm0, %v4313_v0  ;;  %386 = vst.msk [vmem:[#allocation2 + $0x28] sm:$0xf] (!%p3776_p7), %vm374_vm0, %v4313_v0  ;;  %vm418_vm4 = vcmask (!%p3776_p7), 261120   ;;  %v4314_v1 = vmov (!%p3776_p7), 0.0  }
  0x17   : > { %s3772_s20 = sshll.u32 %s357_s19, 2  ;;  %388 = vst.msk [vmem:[#allocation2 + $0x30] sm:$0xf] (!%p3776_p7), %vm374_vm0, %v4313_v0  ;;  %390 = vst.msk [vmem:[#allocation2 + $0x38] sm:$0xf] (!%p3776_p7), %vm374_vm0, %v4313_v0 }
  0x18   : > { %s4406_s23 = scalar_lea.vmem %s5947_s0, %s3772_s20  ;;  %s4411_s26 = scalar_lea.vmem %s5956_s9, %s3772_s20  ;;  %392 = vst.msk [vmem:[#allocation2 + $0x40] sm:$0xf] (!%p3776_p7), %vm374_vm0, %v4313_v0  ;;  %394 = vst.msk [vmem:[#allocation2 + $0x48] sm:$0xf] (!%p3776_p7), %vm374_vm0, %v4313_v0 }
  0x19   : > { %377 = vst.msk [vmem:[#allocation2 + $0x4] sm:$0x1] (!%p3776_p7), %vm376_vm1, %v4313_v0  ;;  %379 = vst.msk [vmem:[#allocation2 + $0xc] sm:$0x1] (!%p3776_p7), %vm376_vm1, %v4313_v0 }
  0x1a   : > { %381 = vst.msk [vmem:[#allocation2 + $0x14] sm:$0x1] (!%p3776_p7), %vm376_vm1, %v4313_v0  ;;  %383 = vst.msk [vmem:[#allocation2 + $0x1c] sm:$0x1] (!%p3776_p7), %vm376_vm1, %v4313_v0 }
  0x1b   : > { %385 = vst.msk [vmem:[#allocation2 + $0x24] sm:$0x1] %vm376_vm1, %v4313_v0  ;;  %387 = vst.msk [vmem:[#allocation2 + $0x2c] sm:$0x1] %vm376_vm1, %v4313_v0 }
  0x1c   : > { %389 = vst.msk [vmem:[#allocation2 + $0x34] sm:$0x1] %vm376_vm1, %v4313_v0  ;;  %391 = vst.msk [vmem:[#allocation2 + $0x3c] sm:$0x1] %vm376_vm1, %v4313_v0 }
  0x1d   : > { %393 = vst.msk [vmem:[#allocation2 + $0x44] sm:$0x1] %vm376_vm1, %v4313_v0  ;;  %395 = vst.msk [vmem:[#allocation2 + $0x4c] sm:$0x1] %vm376_vm1, %v4313_v0 }
  0x1e   : > { %397 = vst.msk [vmem:[#allocation3] sm:$0xf] %vm396_vm2, %v4313_v0  ;;  %400 = vst.msk [vmem:[#allocation3 + $0x8] sm:$0xf] %vm396_vm2, %v4313_v0 }
  0x1f   : > { %402 = vst.msk [vmem:[#allocation3 + $0x10] sm:$0xf] %vm396_vm2, %v4313_v0  ;;  %404 = vst.msk [vmem:[#allocation3 + $0x18] sm:$0xf] %vm396_vm2, %v4313_v0 }
  0x20   : > { %406 = vst.msk [vmem:[#allocation3 + $0x20] sm:$0xf] %vm396_vm2, %v4313_v0  ;;  %408 = vst.msk [vmem:[#allocation3 + $0x28] sm:$0xf] %vm396_vm2, %v4313_v0 }
  0x21   : > { %410 = vst.msk [vmem:[#allocation3 + $0x30] sm:$0xf] %vm396_vm2, %v4313_v0  ;;  %412 = vst.msk [vmem:[#allocation3 + $0x38] sm:$0xf] %vm396_vm2, %v4313_v0 }
  0x22   : > { %414 = vst.msk [vmem:[#allocation3 + $0x40] sm:$0xf] %vm396_vm2, %v4313_v0  ;;  %416 = vst.msk [vmem:[#allocation3 + $0x48] sm:$0xf] %vm396_vm2, %v4313_v0 }
  0x23   : > { %399 = vst.msk [vmem:[#allocation3 + $0x4] sm:$0x1] %vm398_vm3, %v4313_v0  ;;  %401 = vst.msk [vmem:[#allocation3 + $0xc] sm:$0x1] %vm398_vm3, %v4313_v0 }
  0x24   : > { %403 = vst.msk [vmem:[#allocation3 + $0x14] sm:$0x1] %vm398_vm3, %v4313_v0  ;;  %405 = vst.msk [vmem:[#allocation3 + $0x1c] sm:$0x1] %vm398_vm3, %v4313_v0 }
  0x25   : > { %407 = vst.msk [vmem:[#allocation3 + $0x24] sm:$0x1] %vm398_vm3, %v4313_v0  ;;  %409 = vst.msk [vmem:[#allocation3 + $0x2c] sm:$0x1] %vm398_vm3, %v4313_v0 }
  0x26   : > { %411 = vst.msk [vmem:[#allocation3 + $0x34] sm:$0x1] %vm398_vm3, %v4313_v0  ;;  %413 = vst.msk [vmem:[#allocation3 + $0x3c] sm:$0x1] %vm398_vm3, %v4313_v0 }
  0x27   : > { %415 = vst.msk [vmem:[#allocation3 + $0x44] sm:$0x1] %vm398_vm3, %v4313_v0  ;;  %417 = vst.msk [vmem:[#allocation3 + $0x4c] sm:$0x1] %vm398_vm3, %v4313_v0 }
  0x28   : > { %419 = vst.msk [vmem:[#allocation6] sm:$0xff] %vm418_vm4, %v4314_v1  ;;  %420 = vst.msk [vmem:[#allocation6 + $0x8] sm:$0xff] %vm418_vm4, %v4314_v1 }
  0x29   : > { %421 = vst.msk [vmem:[#allocation6 + $0x10] sm:$0xff] %vm418_vm4, %v4314_v1  ;;  %422 = vst.msk [vmem:[#allocation6 + $0x18] sm:$0xff] %vm418_vm4, %v4314_v1 }
  0x2a   : > { %423 = vst.msk [vmem:[#allocation6 + $0x20] sm:$0xff] %vm418_vm4, %v4314_v1  ;;  %424 = vst.msk [vmem:[#allocation6 + $0x28] sm:$0xff] %vm418_vm4, %v4314_v1 }
  0x2b   : > { %425 = vst.msk [vmem:[#allocation6 + $0x30] sm:$0xff] %vm418_vm4, %v4314_v1  ;;  %426 = vst.msk [vmem:[#allocation6 + $0x38] sm:$0xff] %vm418_vm4, %v4314_v1 }
  0x2c   : > { %427 = vst.msk [vmem:[#allocation6 + $0x40] sm:$0xff] %vm418_vm4, %v4314_v1  ;;  %428 = vst.msk [vmem:[#allocation6 + $0x48] sm:$0xff] %vm418_vm4, %v4314_v1 }
  0x2d   : > { %429 = vst.msk [vmem:[#allocation6 + $0x50] sm:$0xff] %vm418_vm4, %v4314_v1  ;;  %430 = vst.msk [vmem:[#allocation6 + $0x58] sm:$0xff] %vm418_vm4, %v4314_v1 }
  0x2e   : > { %431 = vst.msk [vmem:[#allocation6 + $0x60] sm:$0xff] %vm418_vm4, %v4314_v1  ;;  %432 = vst.msk [vmem:[#allocation6 + $0x68] sm:$0xff] %vm418_vm4, %v4314_v1 }
  0x2f   : > { %433 = vst.msk [vmem:[#allocation6 + $0x70] sm:$0xff] %vm418_vm4, %v4314_v1  ;;  %434 = vst.msk [vmem:[#allocation6 + $0x78] sm:$0xff] %vm418_vm4, %v4314_v1 }
  0x30   : > { %435 = vst.msk [vmem:[#allocation7] sm:$0xff] %vm418_vm4, %v4314_v1  ;;  %436 = vst.msk [vmem:[#allocation7 + $0x8] sm:$0xff] %vm418_vm4, %v4314_v1 }
  0x31   : > { %437 = vst.msk [vmem:[#allocation7 + $0x10] sm:$0xff] %vm418_vm4, %v4314_v1  ;;  %438 = vst.msk [vmem:[#allocation7 + $0x18] sm:$0xff] %vm418_vm4, %v4314_v1 }
  0x32   : > { %439 = vst.msk [vmem:[#allocation7 + $0x20] sm:$0xff] %vm418_vm4, %v4314_v1  ;;  %440 = vst.msk [vmem:[#allocation7 + $0x28] sm:$0xff] %vm418_vm4, %v4314_v1 }
  0x33   : > { %441 = vst.msk [vmem:[#allocation7 + $0x30] sm:$0xff] %vm418_vm4, %v4314_v1  ;;  %442 = vst.msk [vmem:[#allocation7 + $0x38] sm:$0xff] %vm418_vm4, %v4314_v1 }
  0x34   : > { %443 = vst.msk [vmem:[#allocation7 + $0x40] sm:$0xff] %vm418_vm4, %v4314_v1  ;;  %444 = vst.msk [vmem:[#allocation7 + $0x48] sm:$0xff] %vm418_vm4, %v4314_v1 }
  0x35   : > { %445 = vst.msk [vmem:[#allocation7 + $0x50] sm:$0xff] %vm418_vm4, %v4314_v1  ;;  %446 = vst.msk [vmem:[#allocation7 + $0x58] sm:$0xff] %vm418_vm4, %v4314_v1 }
  0x36   : > { %447 = vst.msk [vmem:[#allocation7 + $0x60] sm:$0xff] %vm418_vm4, %v4314_v1  ;;  %448 = vst.msk [vmem:[#allocation7 + $0x68] sm:$0xff] %vm418_vm4, %v4314_v1 }
  0x37   : > { %449 = vst.msk [vmem:[#allocation7 + $0x70] sm:$0xff] %vm418_vm4, %v4314_v1  ;;  %450 = vst.msk [vmem:[#allocation7 + $0x78] sm:$0xff] %vm418_vm4, %v4314_v1 }
  0x38 PF: > { %v453_v2 = vld [vmem:[%s4406_s23 + $0x8] sm:$0xff]   ;;  %v451_v3 = vld [vmem:[%s4406_s23] sm:$0xff]   ;;  %v456_v4 = vld [vmem:[%s4406_s23 + $0x10] sm:$0xff]   ;;  %vm476_vm5 = vcmask 130048   ;;  %vm909_vm6 = vcmask 1042432   ;;  %vm910_vm7 = vcmask 1046532  }
  0x39   : > { %v461_v5 = vunpack.c.l.bf16 %v453_v2  ;;  %v4468_v6 = vunpack.c.l.bf16 %v451_v3  ;;  %v4470_v7 = vunpack.c.h.bf16 %v453_v2  ;;  %v458_v8 = vld [vmem:[%s4406_s23 + $0x18] sm:$0xff]   ;;  %v4473_v9 = vunpack.c.h.bf16 %v451_v3  ;;  %v3777_v49 = vld [vmem:[%s5948_s1] ss:$0 sm:$0xff]  ;;  %vm4544_vm8 = vmor %vm909_vm6, %vm910_vm7  ;;  %s4315_s29 = smov 48   ;;  %s4316_s30 = smov 96  }
  0x3a   : > { %v4475_v10 = vunpack.c.h.bf16 %v456_v4  ;;  %v4477_v11 = vunpack.c.l.bf16 %v456_v4  ;;  %v4489_v18 = vunpack.c.h.bf16 %v458_v8  ;;  %v4493_v21 = vunpack.c.l.bf16 %v458_v8  ;;  %s4317_s10 = smov 32   ;;  %s4318_s16 = smov 80  }
  0x3b   : > { %v470_v12 = vmul.f32 %v461_v5, %v461_v5  ;;  %v468_v13 = vmul.f32 %v4468_v6, %v4468_v6  ;;  %v471_v14 = vmul.f32 %v4470_v7, %v4470_v7  ;;  %v469_v15 = vmul.f32 %v4473_v9, %v4473_v9  ;;  %s4319_s17 = smov 16   ;;  %s4320_s18 = smov 112  }
  0x3c   : > { %v473_v16 = vmul.f32 %v4475_v10, %v4475_v10  ;;  %v472_v17 = vmul.f32 %v4477_v11, %v4477_v11  ;;  %v475_v22 = vmul.f32 %v4489_v18, %v4489_v18  ;;  %v474_v25 = vmul.f32 %v4493_v21, %v4493_v21  ;;  %s4321_s19 = smov 64  }
  0x3d   : > { %v483_v19 = vsel %vm476_vm5, %v470_v12, 0.0  ;;  %v477_v20 = vsel %vm476_vm5, %v468_v13, 0.0  ;;  %v486_v23 = vsel %vm476_vm5, %v471_v14, 0.0  ;;  %v480_v24 = vsel %vm476_vm5, %v469_v15, 0.0 }
  0x3e   : > { %484 = vadd.xlane.f32.xlu1 %v483_v19  ;;  %478 = vadd.xlane.f32.xlu0 %v477_v20  ;;  %v492_v26 = vsel %vm476_vm5, %v473_v16, 0.0  ;;  %v489_v27 = vsel %vm476_vm5, %v472_v17, 0.0  ;;  %v498_v28 = vsel %vm476_vm5, %v475_v22, 0.0  ;;  %v495_v29 = vsel %vm476_vm5, %v474_v25, 0.0 }
  0x3f   : > { %vm700_vm9 = vcmask 125952   ;;  %vm706_vm10 = vcmask 122880   ;;  %vm701_vm11 = vsmask.f32 7938  ;;  %vm707_vm12 = vsmask.f32 256 }
  0x40   : > { %vm4561_vm13 = vmand %vm700_vm9, %vm701_vm11  ;;  %vm770_vm15 = vsmask.f32 3328  ;;  %vm771_vm0 = vsmask.f32 7440  ;;  %vm1501_vm2 = vcmask 261120   ;;  %vm1510_vm3 = vcmask 392192  }
  0x41   : > { %vm4568_vm14 = vmand %vm706_vm10, %vm707_vm12  ;;  %vm1519_vm4 = vcmask 523264   ;;  %vm1528_vm6 = vcmask 654336   ;;  %vm1537_vm7 = vcmask 785408   ;;  %vm1546_vm9 = vcmask 916480  }
  0x42   : > { %487 = vadd.xlane.f32.xlu1 %v486_v23  ;;  %481 = vadd.xlane.f32.xlu0 %v480_v24  ;;  %vm4614_vm1 = vmor %vm770_vm15, %vm771_vm0  ;;  %vm2168_vm10 = vcmask 257024  }
  0x46   : > { %493 = vadd.xlane.f32.xlu1 %v492_v26  ;;  %490 = vadd.xlane.f32.xlu0 %v489_v27 }
  0x4a   : > { %499 = vadd.xlane.f32.xlu1 %v498_v28  ;;  %496 = vadd.xlane.f32.xlu0 %v495_v29 }
  0xcb   : > { %v485_v30 = vpop.xlane.xlu1 %484  ;;  %v479_v31 = vpop.xlane.xlu0 %478 }
  0xcc   : > { %v503_v32 = vmax.f32 %v485_v30, 1e-24  ;;  %v501_v33 = vmax.f32 %v479_v31, 1e-24 }
  0xce   : > { %4171 = vrsqrt.f32 %v503_v32 }
  0xcf   : > { %4173 = vrsqrt.f32 %v501_v33  ;;  %v488_v34 = vpop.xlane.xlu1 %487  ;;  %v482_v35 = vpop.xlane.xlu0 %481 }
  0xd0   : > { %v504_v36 = vmax.f32 %v488_v34, 1e-24  ;;  %v502_v37 = vmax.f32 %v482_v35, 1e-24 }
  0xd2   : > { %4175 = vrsqrt.f32 %v504_v36  ;;  %v754_v36 = vld [vmem:[#allocation2] sm:$0xf] }
  0xd3   : > { %4177 = vrsqrt.f32 %v502_v37  ;;  %v494_v38 = vpop.xlane.xlu1 %493  ;;  %v491_v39 = vpop.xlane.xlu0 %490 }
  0xd4   : > { %v506_v40 = vmax.f32 %v494_v38, 1e-24  ;;  %v505_v41 = vmax.f32 %v491_v39, 1e-24 }
  0xd6   : > { %4179 = vrsqrt.f32 %v506_v40  ;;  %v774_v40 = vshrl.u32 %v754_v36, 16 }
  0xd7   : > { %4181 = vrsqrt.f32 %v505_v41  ;;  %v500_v42 = vpop.xlane.xlu1 %499  ;;  %v497_v43 = vpop.xlane.xlu0 %496  ;;  %v777_v41 = vshll.u32 %v754_v36, 16 }
  0xd8   : > { %v4172_v44 = vpop.eup %4171  ;;  %v508_v45 = vmax.f32 %v500_v42, 1e-24  ;;  %v507_v46 = vmax.f32 %v497_v43, 1e-24 }
  0xd9   : > { %v4174_v47 = vpop.eup %4173  ;;  %v519_v48 = vmul.f32 4.0, %v4172_v44 }
  0xda   : > { %v517_v50 = vmul.f32 4.0, %v4174_v47  ;;  %4183 = vrsqrt.f32 %v508_v45  ;;  %v885_v47 = vld [vmem:[#allocation2] sm:$0xe] }
  0xdb   : > { %v527_v51 = vmul.f32 %v519_v48, %v461_v5  ;;  %4185 = vrsqrt.f32 %v507_v46  ;;  %v4539_v46 = vld [vmem:[#allocation2 + $0x4] sm:$0x1]  ;;  %v776_v48 = vrot.slane %v774_v40, 4 }
  0xdc   : > { %v4176_v52 = vpop.eup %4175  ;;  %v525_v53 = vmul.f32 %v517_v50, %v4468_v6 }
  0xdd   : > { %v4178_v54 = vpop.eup %4177  ;;  %v4509_v55 = vmul.f32 %v3777_v49, %v527_v51  ;;  %v520_v56 = vmul.f32 4.0, %v4176_v52 }
  0xde   : > { %v4511_v57 = vmul.f32 %v3777_v49, %v525_v53  ;;  %v518_v58 = vmul.f32 4.0, %v4178_v54 }
  0xdf   : > { %v549_v59 = vsub.f32 0.0, %v4509_v55  ;;  %v528_v60 = vmul.f32 %v520_v56, %v4470_v7  ;;  %v3786_v56 = vrot.slane %v885_v47, 9 }
  0xe0   : > { %v4180_v61 = vpop.eup %4179  ;;  %v547_v62 = vsub.f32 0.0, %v4511_v57  ;;  %v526_v63 = vmul.f32 %v518_v58, %v4473_v9  ;;  %v914_v58 = vrot.slane %v4539_v46, 5 }
  0xe1   : > { %v4182_v0 = vpop.eup %4181  ;;  %v559_v1 = vmul.f32 1.442695, %v549_v59  ;;  %v4517_v2 = vmul.f32 %v3777_v49, %v528_v60  ;;  %v522_v3 = vmul.f32 4.0, %v4180_v61 }
  0xe2   : > { %v555_v4 = vmul.f32 1.442695, %v547_v62  ;;  %v4519_v5 = vmul.f32 %v3777_v49, %v526_v63  ;;  %v521_v6 = vmul.f32 4.0, %v4182_v0 }
  0xe3   : > { %4187 = vpow2.f32 %v559_v1  ;;  %v550_v8 = vsub.f32 0.0, %v4517_v2  ;;  %v530_v12 = vmul.f32 %v522_v3, %v4475_v10  ;;  %v4548_v3 = vld [vmem:[#allocation2 + $0x48] sm:$0xf] }
  0xe4   : > { %v4184_v7 = vpop.eup %4183  ;;  %4189 = vpow2.f32 %v555_v4  ;;  %v548_v13 = vsub.f32 0.0, %v4519_v5  ;;  %v529_v9 = vmul.f32 %v521_v6, %v4477_v11 }
  0xe5   : > { %v4186_v14 = vpop.eup %4185  ;;  %v561_v15 = vmul.f32 1.442695, %v550_v8  ;;  %v4525_v16 = vmul.f32 %v3777_v49, %v530_v12  ;;  %v524_v17 = vmul.f32 4.0, %v4184_v7  ;;  %v4553_v8 = vsel %vm4544_vm8, %v3786_v56, %v914_v58  ;;  %v718_v12 = vld [vmem:[#allocation2 + $0x18] sm:$0xf] }
  0xe6   : > { %v557_v19 = vmul.f32 1.442695, %v548_v13  ;;  %v4527_v20 = vmul.f32 %v3777_v49, %v529_v9  ;;  %v523_v22 = vmul.f32 4.0, %v4186_v14  ;;  %v783_v14 = vshll.u32 %v4539_v46, 16  ;;  %v727_v46 = vld [vmem:[#allocation2 + $0x24] sm:$0x1] }
  0xe7   : > { %4191 = vpow2.f32 %v561_v15  ;;  %v552_v23 = vsub.f32 0.0, %v4525_v16  ;;  %v532_v10 = vmul.f32 %v524_v17, %v4489_v18 }
  0xe8   : > { %4193 = vpow2.f32 %v557_v19  ;;  %v551_v24 = vsub.f32 0.0, %v4527_v20  ;;  %v531_v25 = vmul.f32 %v523_v22, %v4493_v21 }
  0xe9   : > { %v565_v11 = vmul.f32 1.442695, %v552_v23  ;;  %v4533_v26 = vmul.f32 %v3777_v49, %v532_v10  ;;  %v1244_v23 = vshrl.u32 %v4548_v3, 16 }
  0xea   : > { %v563_v27 = vmul.f32 1.442695, %v551_v24  ;;  %v4535_v28 = vmul.f32 %v3777_v49, %v531_v25  ;;  %v779_v49 = vrot.slane %v777_v41, 5  ;;  %v703_v24 = vld [vmem:[#allocation2 + $0x8] sm:$0xf] }
  0xeb   : > { %4195 = vpow2.f32 %v565_v11  ;;  %v554_v29 = vsub.f32 0.0, %v4533_v26 }
  0xec   : > { %4197 = vpow2.f32 %v563_v27  ;;  %v553_v30 = vsub.f32 0.0, %v4535_v28  ;;  %v780_v62 = vor.u32 %v779_v49, %v776_v48 }
  0xed   : > { %v4188_v31 = vpop.eup %4187  ;;  %v569_v32 = vmul.f32 1.442695, %v554_v29  ;;  %v1247_v29 = vshll.u32 %v4548_v3, 16 }
  0xee   : > { %v4190_v18 = vpop.eup %4189  ;;  %v573_v33 = vadd.f32 1.0, %v4188_v31  ;;  %v567_v34 = vmul.f32 1.442695, %v553_v30  ;;  %v4556_v9 = vrot.slane %v780_v62, 4 }
  0xef   : > { %v571_v35 = vadd.f32 1.0, %v4190_v18  ;;  %4199 = vpow2.f32 %v569_v32  ;;  %v709_v18 = vld [vmem:[#allocation2 + $0xc] sm:$0x1] }
  0xf0   : > { %4201 = vrcp.f32 %v573_v33 }
  0xf1   : > { %v4192_v21 = vpop.eup %4191  ;;  %4203 = vrcp.f32 %v571_v35 }
  0xf2   : > { %v4194_v37 = vpop.eup %4193  ;;  %v574_v38 = vadd.f32 1.0, %v4192_v21  ;;  %4205 = vpow2.f32 %v567_v34 }
  0xf3   : > { %v572_v39 = vadd.f32 1.0, %v4194_v37 }
  0xf4   : > { %4207 = vrcp.f32 %v574_v38 }
  0xf5   : > { %v4196_v42 = vpop.eup %4195  ;;  %4209 = vrcp.f32 %v572_v39 }
  0xf6   : > { %v4198_v43 = vpop.eup %4197  ;;  %v576_v44 = vadd.f32 1.0, %v4196_v42 }
  0xf7   : > { %v575_v45 = vadd.f32 1.0, %v4198_v43 }
  0xf8   : > { %4211 = vrcp.f32 %v576_v44 }
  0xf9   : > { %v4200_v50 = vpop.eup %4199  ;;  %4213 = vrcp.f32 %v575_v45  ;;  %v724_v45 = vld [vmem:[#allocation2 + $0x20] sm:$0xf] }
  0xfa   : > { %v4202_v51 = vpop.eup %4201  ;;  %v578_v52 = vadd.f32 1.0, %v4200_v50 }
  0xfb   : > { %v4204_v53 = vpop.eup %4203  ;;  %v589_v54 = vmul.f32 %v4202_v51, %v4509_v55  ;;  %v712_v51 = vld [vmem:[#allocation2 + $0x10] sm:$0xf] }
  0xfc   : > { %v4206_v59 = vpop.eup %4205  ;;  %v587_v60 = vmul.f32 %v4204_v53, %v4511_v57  ;;  %4215 = vrcp.f32 %v578_v52 }
  0xfd   : > { %v3974_v63 = vpack.c.bf16 %v589_v54, %v589_v54  ;;  %v577_v0 = vadd.f32 1.0, %v4206_v59  ;;  %v4584_v59 = vrot.slane %v783_v14, 5 }
  0xfe   : > { %v4208_v1 = vpop.eup %4207  ;;  %v3972_v55 = vpack.c.bf16 %v587_v60, %v587_v60 }
  0xff   : > { %v4210_v4 = vpop.eup %4209  ;;  %v636_v6 = vshrl.u32 %v3974_v63, 16  ;;  %v590_v57 = vmul.f32 %v4208_v1, %v4517_v2  ;;  %4217 = vrcp.f32 %v577_v0  ;;  %v721_v2 = vld [vmem:[#allocation2 + $0x1c] sm:$0x1]  ;;  %v639_v19 = vshll.u32 %v3974_v63, 16  ;;  %v4592_v1 = vld [vmem:[#allocation2 + $0x4c] sm:$0x1] }
 0x100   : > { %v620_v7 = vshrl.u32 %v3972_v55, 16  ;;  %v588_v13 = vmul.f32 %v4210_v4, %v4519_v5  ;;  %v623_v11 = vshll.u32 %v3972_v55, 16  ;;  %v4590_v0 = vrot.slane %v1244_v23, 4  ;;  %v4594_v55 = vld [vmem:[#allocation2 + $0x48] sm:$0xe] }
 0x101   : > { %v638_v17 = vrot.slane %v636_v6, 7  ;;  %v3975_v22 = vpack.c.bf16 %v590_v57, %v590_v57  ;;  %v736_v6 = vld [vmem:[#allocation2 + $0x30] sm:$0xf] }
 0x102   : > { %v4212_v10 = vpop.eup %4211  ;;  %v622_v25 = vrot.slane %v620_v7, 7  ;;  %v3973_v27 = vpack.c.bf16 %v588_v13, %v588_v13  ;;  %v739_v7 = vld [vmem:[#allocation2 + $0x34] sm:$0x1] }
 0x103   : > { %v4214_v30 = vpop.eup %4213  ;;  %v641_v31 = vor.u32 %v639_v19, %v638_v17  ;;  %v642_v32 = vrot.slane %v638_v17, 4  ;;  %v644_v33 = vshrl.u32 %v3975_v22, 16  ;;  %v647_v34 = vshll.u32 %v3975_v22, 16  ;;  %v733_v22 = vld [vmem:[#allocation2 + $0x2c] sm:$0x1] }
 0x104   : > { %v625_v35 = vor.u32 %v623_v11, %v622_v25  ;;  %v626_v21 = vrot.slane %v622_v25, 4  ;;  %v628_v36 = vshrl.u32 %v3973_v27, 16  ;;  %v631_v37 = vshll.u32 %v3973_v27, 16 }
 0x105   : > { %v719_v38 = vsel %vm4561_vm13, %v641_v31, %v718_v12  ;;  %v722_v39 = vsel %vm4568_vm14, %v642_v32, %v721_v2  ;;  %v646_v40 = vrot.slane %v644_v33, 7  ;;  %v592_v41 = vmul.f32 %v4212_v10, %v4525_v16  ;;  %v715_v16 = vld [vmem:[#allocation2 + $0x14] sm:$0x1]  ;;  %v730_v2 = vld [vmem:[#allocation2 + $0x28] sm:$0xf] }
 0x106   : > { %v4216_v42 = vpop.eup %4215  ;;  %720 = vst [vmem:[#allocation2 + $0x18] sm:$0xf] %v719_v38  ;;  %723 = vst [vmem:[#allocation2 + $0x1c] sm:$0x1] %v722_v39  ;;  %v704_v43 = vsel %vm4561_vm13, %v625_v35, %v703_v24  ;;  %v710_v44 = vsel %vm4568_vm14, %v626_v21, %v709_v18  ;;  %v630_v47 = vrot.slane %v628_v36, 7  ;;  %v591_v48 = vmul.f32 %v4214_v30, %v4527_v20 }
 0x107   : > { %705 = vst [vmem:[#allocation2 + $0x8] sm:$0xf] %v704_v43  ;;  %711 = vst [vmem:[#allocation2 + $0xc] sm:$0x1] %v710_v44  ;;  %v649_v49 = vor.u32 %v647_v34, %v646_v40  ;;  %v650_v50 = vrot.slane %v646_v40, 4  ;;  %v3977_v52 = vpack.c.bf16 %v592_v41, %v592_v41  ;;  %v594_v53 = vmul.f32 %v4216_v42, %v4533_v26 }
 0x108   : > { %v633_v54 = vor.u32 %v631_v37, %v630_v47  ;;  %v634_v56 = vrot.slane %v630_v47, 4  ;;  %v3976_v58 = vpack.c.bf16 %v591_v48, %v591_v48  ;;  %v4600_v12 = vrot.slane %v1247_v29, 5  ;;  %v748_v41 = vld [vmem:[#allocation2 + $0x40] sm:$0xf]  ;;  %v751_v42 = vld [vmem:[#allocation2 + $0x44] sm:$0x1] }
 0x109   : > { %v4218_v60 = vpop.eup %4217  ;;  %v725_v62 = vsel %vm4561_vm13, %v649_v49, %v724_v45  ;;  %v728_v20 = vsel %vm4568_vm14, %v650_v50, %v727_v46  ;;  %v660_v63 = vshrl.u32 %v3977_v52, 16  ;;  %v663_v14 = vshll.u32 %v3977_v52, 16  ;;  %v742_v47 = vld [vmem:[#allocation2 + $0x38] sm:$0xf]  ;;  %v3952_v38 = vld [vmem:[%s5955_s8] ss:$0 sm:$0xff] }
 0x10a   : > { %726 = vst [vmem:[#allocation2 + $0x20] sm:$0xf] %v725_v62  ;;  %729 = vst [vmem:[#allocation2 + $0x24] sm:$0x1] %v728_v20  ;;  %v713_v26 = vsel %vm4561_vm13, %v633_v54, %v712_v51  ;;  %v716_v4 = vsel %vm4568_vm14, %v634_v56, %v715_v16  ;;  %v652_v57 = vshrl.u32 %v3976_v58, 16  ;;  %v3979_v17 = vpack.c.bf16 %v594_v53, %v594_v53 }
 0x10b   : > { %714 = vst [vmem:[#allocation2 + $0x10] sm:$0xf] %v713_v26  ;;  %717 = vst [vmem:[#allocation2 + $0x14] sm:$0x1] %v716_v4  ;;  %v662_v13 = vrot.slane %v660_v63, 7  ;;  %v593_v19 = vmul.f32 %v4218_v60, %v4535_v28  ;;  %v655_v10 = vshll.u32 %v3976_v58, 16 }
 0x10c   : > { %v654_v23 = vrot.slane %v652_v57, 7  ;;  %v676_v29 = vshrl.u32 %v3979_v17, 16  ;;  %v679_v30 = vshll.u32 %v3979_v17, 16  ;;  %v745_v60 = vld [vmem:[#allocation2 + $0x3c] sm:$0x1] }
 0x10d   : > { %v665_v11 = vor.u32 %v663_v14, %v662_v13  ;;  %v666_v27 = vrot.slane %v662_v13, 4  ;;  %v4605_v31 = vld [vmem:[#allocation2 + $0x18] sm:$0xf]  ;;  %v3978_v33 = vpack.c.bf16 %v593_v19, %v593_v19 }
 0x10e   : > { %v657_v32 = vor.u32 %v655_v10, %v654_v23  ;;  %v658_v18 = vrot.slane %v654_v23, 4  ;;  %v944_v34 = vld [vmem:[#allocation2 + $0x8] sm:$0xf]  ;;  %v1160_v35 = vshrl.u32 %v4605_v31, 16  ;;  %v678_v36 = vrot.slane %v676_v29, 7 }
 0x10f   : > { %v737_v28 = vsel %vm4561_vm13, %v665_v11, %v736_v6  ;;  %v740_v21 = vsel %vm4568_vm14, %v666_v27, %v739_v7  ;;  %v961_v37 = vshrl.u32 %v944_v34, 16  ;;  %v668_v43 = vshrl.u32 %v3978_v33, 16  ;;  %v4638_v63 = vld [vmem:[#allocation2 + $0x18] sm:$0xf] }
 0x110   : > { %738 = vst [vmem:[#allocation2 + $0x30] sm:$0xf] %v737_v28  ;;  %741 = vst [vmem:[#allocation2 + $0x34] sm:$0x1] %v740_v21  ;;  %v731_v39 = vsel %vm4561_vm13, %v657_v32, %v730_v2  ;;  %v734_v40 = vsel %vm4568_vm14, %v658_v18, %v733_v22  ;;  %v671_v44 = vshll.u32 %v3978_v33, 16  ;;  %v681_v45 = vor.u32 %v679_v30, %v678_v36 }
 0x111   : > { %732 = vst [vmem:[#allocation2 + $0x28] sm:$0xf] %v731_v39  ;;  %735 = vst [vmem:[#allocation2 + $0x2c] sm:$0x1] %v734_v40  ;;  %v682_v46 = vrot.slane %v678_v36, 4  ;;  %v4622_v48 = vrot.slane %v961_v37, 4 }
 0x112   : > { %v964_v49 = vshll.u32 %v944_v34, 16  ;;  %v670_v50 = vrot.slane %v668_v43, 7  ;;  %v945_v51 = vld [vmem:[#allocation2 + $0x10] sm:$0xf]  ;;  %v4624_v52 = vrot.slane %v1160_v35, 4  ;;  %v749_v56 = vsel %vm4561_vm13, %v681_v45, %v748_v41 }
 0x113   : > { %v1129_v16 = vld [vmem:[#allocation2 + $0x10] sm:$0xf]  ;;  %v752_v58 = vsel %vm4568_vm14, %v682_v46, %v751_v42  ;;  %v3822_v20 = vcombine.low %v944_v34, %v945_v51  ;;  %750 = vst [vmem:[#allocation2 + $0x40] sm:$0xf] %v749_v56  ;;  %v975_v6 = vshrl.u32 %v945_v51, 16  ;;  %v978_v57 = vshll.u32 %v945_v51, 16 }
 0x114   : > { %v4636_v62 = vrot.slane %v964_v49, 5  ;;  %753 = vst [vmem:[#allocation2 + $0x44] sm:$0x1] %v752_v58  ;;  %v673_v26 = vor.u32 %v671_v44, %v670_v50  ;;  %v674_v4 = vrot.slane %v670_v50, 4  ;;  %v1131_v7 = vld [vmem:[#allocation2 + $0x20] sm:$0xf]  ;;  %v3834_v17 = vcombine.low %v1129_v16, %v4605_v31 }
 0x115   : > { %1393 = vrot.lane.b32.xlu1 %v3822_v20, %s4315_s29  ;;  %v1146_v13 = vshrl.u32 %v1129_v16, 16  ;;  %v1149_v14 = vshll.u32 %v1129_v16, 16  ;;  %v1163_v2 = vshll.u32 %v4605_v31, 16  ;;  %v947_v19 = vld [vmem:[#allocation2 + $0x20] sm:$0xf]  ;;  %v4647_v10 = vrot.slane %v975_v6, 4 }
 0x116   : > { %v743_v22 = vsel %vm4561_vm13, %v673_v26, %v742_v47  ;;  %v746_v23 = vsel %vm4568_vm14, %v674_v4, %v745_v60  ;;  %v4649_v11 = vrot.slane %v978_v57, 5  ;;  %v1174_v31 = vshrl.u32 %v1131_v7, 16  ;;  %v4659_v35 = vld [vmem:[#allocation2 + $0x14] sm:$0x1]  ;;  %v1258_v40 = vld [vmem:[#allocation2 + $0x18] sm:$0xe]  ;;  %vm5240_vm14 = vmand %vm2168_vm10, %vm701_vm11 }
 0x117   : > { %744 = vst [vmem:[#allocation2 + $0x38] sm:$0xf] %v743_v22  ;;  %747 = vst [vmem:[#allocation2 + $0x3c] sm:$0x1] %v746_v23  ;;  %v4651_v27 = vrot.slane %v1146_v13, 4  ;;  %v4653_v29 = vrot.slane %v1149_v14, 5  ;;  %v3823_v16 = vcombine.low %v4638_v63, %v947_v19 }
 0x118   : > { %v4655_v30 = vrot.slane %v1163_v2, 5  ;;  %v949_v32 = vld [vmem:[#allocation2 + $0x30] sm:$0xf]  ;;  %v1132_v18 = vld [vmem:[#allocation2 + $0x28] sm:$0xf]  ;;  %v1177_v15 = vshll.u32 %v1131_v7, 16 }
 0x119   : > { %v989_v33 = vshrl.u32 %v4638_v63, 16  ;;  %v992_v5 = vshll.u32 %v4638_v63, 16  ;;  %v1003_v34 = vshrl.u32 %v947_v19, 16  ;;  %1461 = vrot.lane.b32.xlu1 %v3834_v17, %s4316_s30  ;;  %v4662_v28 = vrot.slane %v1174_v31, 4  ;;  %v948_v39 = vld [vmem:[#allocation2 + $0x28] sm:$0xf] }
 0x11a   : > { %v3835_v21 = vcombine.low %v1131_v7, %v1132_v18  ;;  %v1188_v36 = vshrl.u32 %v1132_v18, 16  ;;  %v1191_v37 = vshll.u32 %v1132_v18, 16  ;;  %v4664_v41 = vrot.slane %v1177_v15, 5  ;;  %v4672_v45 = vld [vmem:[#allocation2 + $0x1c] sm:$0x1] }
 0x11b   : > { %v4666_v42 = vrot.slane %v989_v33, 4  ;;  %v4668_v43 = vrot.slane %v992_v5, 5  ;;  %v4670_v44 = vrot.slane %v1003_v34, 4  ;;  %v1257_v46 = vld [vmem:[#allocation2 + $0x10] sm:$0xe]  ;;  %v1006_v51 = vshll.u32 %v947_v19, 16 }
 0x11c   : > { %v886_v47 = vld [vmem:[#allocation2 + $0x8] sm:$0xe]  ;;  %1463 = vrot.lane.b32.xlu0 %v3835_v21, %s4316_s30  ;;  %v4675_v49 = vrot.slane %v1188_v36, 4  ;;  %v4677_v50 = vrot.slane %v1191_v37, 5  ;;  %v4680_v56 = vld [vmem:[#allocation2 + $0xc] sm:$0x1]  ;;  %v3824_v6 = vcombine.low %v948_v39, %v949_v32 }
 0x11d   : > { %v4682_v58 = vld [vmem:[#allocation2 + $0xc] sm:$0x1]  ;;  %v1072_v60 = vld [vmem:[#allocation2 + $0x8] sm:$0xe]  ;;  %v1073_v20 = vld [vmem:[#allocation2 + $0x10] sm:$0xe]  ;;  %1395 = vrot.lane.b32.xlu1 %v3823_v16, %s4315_s29 }
 0x11e   : > { %v1031_v26 = vshrl.u32 %v949_v32, 16  ;;  %v1034_v4 = vshll.u32 %v949_v32, 16  ;;  %v1017_v57 = vshrl.u32 %v948_v39, 16  ;;  %v4684_v7 = vld [vmem:[#allocation2 + $0x14] sm:$0x1]  ;;  %v4688_v14 = vrot.slane %v1006_v51, 5 }
 0x11f   : > { %v4686_v13 = vld [vmem:[#allocation2 + $0x1c] sm:$0x1]  ;;  %v1020_v2 = vshll.u32 %v948_v39, 16  ;;  %v3802_v63 = vrot.slane %v1257_v46, 9  ;;  %v1283_v17 = vrot.slane %v4659_v35, 5  ;;  %v3803_v32 = vrot.slane %v1258_v40, 9 }
 0x120   : > { %v1074_v19 = vld [vmem:[#allocation2 + $0x18] sm:$0xe]  ;;  %v4692_v22 = vrot.slane %v1031_v26, 4  ;;  %v4694_v23 = vrot.slane %v1034_v4, 5  ;;  %v4696_v31 = vrot.slane %v1017_v57, 4  ;;  %1397 = vrot.lane.b32.xlu0 %v3824_v6, %s4315_s29  ;;  %v1287_v34 = vrot.slane %v4672_v45, 5 }
 0x121   : > { %v4698_v18 = vld [vmem:[#allocation2 + $0x24] sm:$0x1]  ;;  %v1075_v15 = vld [vmem:[#allocation2 + $0x20] sm:$0xe]  ;;  %v4701_v33 = vrot.slane %v1020_v2, 5  ;;  %v1284_v5 = vsel %vm4544_vm8, %v3802_v63, %v1283_v17  ;;  %v3787_v21 = vrot.slane %v886_v47, 9 }
 0x122   : > { %v4706_v36 = vld [vmem:[#allocation2 + $0x14] sm:$0x1]  ;;  %v918_v37 = vrot.slane %v4680_v56, 5  ;;  %v3794_v39 = vrot.slane %v1072_v60, 9  ;;  %v1098_v40 = vrot.slane %v4682_v58, 5  ;;  %v3795_v46 = vrot.slane %v1073_v20, 9 }
 0x123   : > { %v4710_v51 = vld [vmem:[#allocation2 + $0x1c] sm:$0x1]  ;;  %v1288_v16 = vsel %vm4544_vm8, %v3803_v32, %v1287_v34  ;;  %v1102_v26 = vrot.slane %v4684_v7, 5  ;;  %v3796_v4 = vrot.slane %v1074_v19, 9  ;;  %v1106_v6 = vrot.slane %v4686_v13, 5 }
 0x124   : > { %v887_v57 = vld [vmem:[#allocation2 + $0x10] sm:$0xe]  ;;  %v3842_v47 = vcombine.low %v1284_v5, %v1288_v16  ;;  %v919_v2 = vsel %vm4544_vm8, %v3787_v21, %v918_v37  ;;  %v1099_v60 = vsel %vm4544_vm8, %v3794_v39, %v1098_v40  ;;  %v3797_v63 = vrot.slane %v1075_v15, 9  ;;  %v888_v20 = vld [vmem:[#allocation2 + $0x18] sm:$0xe] }
 0x125   : > { %v4720_v17 = vld [vmem:[#allocation2 + $0x8] sm:$0xf]  ;;  %v3818_v54 = vcombine.low %v4553_v8, %v919_v2  ;;  %v1103_v32 = vsel %vm4544_vm8, %v3795_v46, %v1102_v26  ;;  %v1107_v19 = vsel %vm4544_vm8, %v3796_v4, %v1106_v6  ;;  %v1110_v5 = vrot.slane %v4698_v18, 5  ;;  %v4728_v34 = vld [vmem:[#allocation2 + $0x24] sm:$0x1] }
 0x126   : > { %v4730_v21 = vld [vmem:[#allocation2 + $0x2c] sm:$0x1]  ;;  %1579 = vst.msk [vmem:[#allocation4 + $0x8] sm:$0xff] %vm476_vm5, %v3842_v47  ;;  %v3830_v15 = vcombine.low %v1099_v60, %v1103_v32  ;;  %v3788_v37 = vrot.slane %v887_v57, 9  ;;  %v922_v39 = vrot.slane %v4706_v36, 5  ;;  %v3789_v40 = vrot.slane %v888_v20, 9 }
 0x127   : > { %v889_v8 = vld [vmem:[#allocation2 + $0x20] sm:$0xe]  ;;  %1365 = vrot.lane.b32.xlu1 %v3818_v54, %s4317_s10  ;;  %v1111_v46 = vsel %vm4544_vm8, %v3797_v63, %v1110_v5  ;;  %v926_v16 = vrot.slane %v4710_v51, 5  ;;  %v788_v26 = vshrl.u32 %v4720_v17, 16  ;;  %v791_v4 = vshll.u32 %v4720_v17, 16 }
 0x128   : > { %v890_v6 = vld [vmem:[#allocation2 + $0x28] sm:$0xe]  ;;  %1433 = vrot.lane.b32.xlu0 %v3830_v15, %s4318_s16  ;;  %v3831_v57 = vcombine.low %v1107_v19, %v1111_v46  ;;  %v923_v47 = vsel %vm4544_vm8, %v3788_v37, %v922_v39  ;;  %v797_v2 = vshll.u32 %v4680_v56, 16  ;;  %v3790_v54 = vrot.slane %v889_v8, 9  ;;  %v4744_v60 = vld [vmem:[#allocation2 + $0x2c] sm:$0x1] }
 0x129   : > { %v4746_v63 = vld [vmem:[#allocation2 + $0x34] sm:$0x1]  ;;  %v927_v20 = vsel %vm4544_vm8, %v3789_v40, %v926_v16  ;;  %v790_v32 = vrot.slane %v788_v26, 4  ;;  %v793_v5 = vrot.slane %v791_v4, 5  ;;  %v930_v24 = vrot.slane %v4728_v34, 5 }
 0x12a   : > { %v1076_v25 = vld [vmem:[#allocation2 + $0x28] sm:$0xe]  ;;  %v3819_v15 = vcombine.low %v923_v47, %v927_v20  ;;  %v799_v19 = vrot.slane %v797_v2, 5  ;;  %v3791_v46 = vrot.slane %v890_v6, 9  ;;  %v934_v37 = vrot.slane %v4730_v21, 5 }
 0x12b   : > { %v1077_v39 = vld [vmem:[#allocation2 + $0x30] sm:$0xe]  ;;  %1435 = vrot.lane.b32.xlu1 %v3831_v57, %s4318_s16  ;;  %v794_v56 = vor.u32 %v793_v5, %v790_v32  ;;  %v931_v8 = vsel %vm4544_vm8, %v3790_v54, %v930_v24  ;;  %v3798_v53 = vrot.slane %v1076_v25, 9  ;;  %v1114_v40 = vrot.slane %v4744_v60, 5  ;;  %v1134_v26 = vld [vmem:[#allocation2 + $0x38] sm:$0xf] }
 0x12c   : > { %v1133_v16 = vld [vmem:[#allocation2 + $0x30] sm:$0xf]  ;;  %1367 = vrot.lane.b32.xlu0 %v3819_v15, %s4317_s10  ;;  %v935_v4 = vsel %vm4544_vm8, %v3791_v46, %v934_v37  ;;  %v3799_v6 = vrot.slane %v1077_v39, 9  ;;  %v1118_v47 = vrot.slane %v4746_v63, 5  ;;  %v1216_v46 = vshrl.u32 %v1134_v26, 16 }
 0x12d   : > { %v1202_v2 = vshrl.u32 %v1133_v16, 16  ;;  %v1584_v20 = vld [vmem:[#allocation4 + $0x8] sm:$0xff]  ;;  %v795_v57 = vrot.slane %v794_v56, 4  ;;  %v3820_v32 = vcombine.low %v931_v8, %v935_v4  ;;  %v1115_v24 = vsel %vm4544_vm8, %v3798_v53, %v1114_v40 }
 0x12e   : > { %v1205_v25 = vshll.u32 %v1133_v16, 16  ;;  %3855 = vmatprep.mubr.msk.bf16.mxu0 %vm476_vm5, %v1584_v20  ;;  %v1119_v54 = vsel %vm4544_vm8, %v3799_v6, %v1118_v47  ;;  %v3836_v15 = vcombine.low %v1133_v16, %v1134_v26  ;;  %v1219_v8 = vshll.u32 %v1134_v26, 16 }
 0x12f   : > { %v4765_v5 = vrot.slane %v1202_v2, 4  ;;  %v800_v37 = vsel %vm4614_vm1, %v795_v57, %v799_v19  ;;  %1369 = vrot.lane.b32.xlu1 %v3820_v32, %s4317_s10  ;;  %v3832_v39 = vcombine.low %v1115_v24, %v1119_v54  ;;  %v5972_v53 = vsel %vm4614_vm1, %v4556_v9, %v4584_v59  ;;  %v4799_v32 = vld [vmem:[#allocation2 + $0x10] sm:$0xf] }
 0x130   : > { %v4770_v56 = vrot.slane %v1205_v25, 5  ;;  %v3814_v40 = vcombine.low %v5972_v53, %v800_v37  ;;  %v4777_v4 = vrot.slane %v1216_v46, 4  ;;  %v1152_v16 = vor.u32 %v4653_v29, %v4651_v27  ;;  %v4817_v53 = vld [vmem:[#allocation2 + $0x20] sm:$0xf] }
 0x131   : > { %v1155_v6 = vshll.u32 %v4659_v35, 16  ;;  %v4782_v19 = vrot.slane %v1219_v8, 5  ;;  %v1166_v47 = vor.u32 %v4655_v30, %v4624_v52  ;;  %v1169_v26 = vshll.u32 %v4672_v45, 16 }
 0x132   : > { %v967_v2 = vor.u32 %v4636_v62, %v4622_v48  ;;  %1345 = vrot.lane.b32.xlu0 %v3814_v40, %s4319_s17  ;;  %v1153_v9 = vrot.slane %v1152_v16, 4  ;;  %v970_v20 = vshll.u32 %v4682_v58, 16  ;;  %v981_v27 = vor.u32 %v4649_v11, %v4647_v10 }
 0x133   : > { %v1157_v59 = vrot.slane %v1155_v6, 5  ;;  %1465 = vrot.lane.b32.xlu1 %v3836_v15, %s4316_s30  ;;  %v1167_v29 = vrot.slane %v1166_v47, 4  ;;  %v1171_v35 = vrot.slane %v1169_v26, 5  ;;  %v984_v30 = vshll.u32 %v4684_v7, 16 }
 0x134   : > { %v968_v52 = vrot.slane %v967_v2, 4  ;;  %v972_v62 = vrot.slane %v970_v20, 5  ;;  %v982_v45 = vrot.slane %v981_v27, 4  ;;  %v995_v57 = vor.u32 %v4668_v43, %v4666_v42  ;;  %v4810_v43 = vld [vmem:[#allocation2 + $0x18] sm:$0xf] }
 0x135   : > { %v1158_v48 = vsel %vm4614_vm1, %v1153_v9, %v1157_v59  ;;  %v1172_v10 = vsel %vm4614_vm1, %v1167_v29, %v1171_v35  ;;  %v986_v11 = vrot.slane %v984_v30, 5  ;;  %v998_v58 = vshll.u32 %v4686_v13, 16  ;;  %v4828_v9 = vld [vmem:[#allocation2 + $0x28] sm:$0xf] }
 0x136   : > { %v1009_v24 = vor.u32 %v4688_v14, %v4670_v44  ;;  %1437 = vrot.lane.b32.xlu0 %v3832_v39, %s4318_s16  ;;  %v3838_v7 = vcombine.low %v1158_v48, %v1172_v10  ;;  %v973_v25 = vsel %vm4614_vm1, %v968_v52, %v972_v62  ;;  %v996_v54 = vrot.slane %v995_v57, 4 }
 0x137   : > { %v1012_v42 = vshll.u32 %v4698_v18, 16  ;;  %v987_v15 = vsel %vm4614_vm1, %v982_v45, %v986_v11  ;;  %v1000_v46 = vrot.slane %v998_v58, 5  ;;  %v802_v13 = vshrl.u32 %v4799_v32, 16 }
 0x138   : > { %v1010_v37 = vrot.slane %v1009_v24, 4  ;;  %v3826_v8 = vcombine.low %v973_v25, %v987_v15  ;;  %v805_v14 = vshll.u32 %v4799_v32, 16  ;;  %v811_v39 = vshll.u32 %v4706_v36, 16  ;;  %v1140_v15 = vld [vmem:[#allocation2 + $0x2c] sm:$0x1] }
 0x139   : > { %v1014_v44 = vrot.slane %v1012_v42, 5  ;;  %v1001_v18 = vsel %vm4614_vm1, %v996_v54, %v1000_v46  ;;  %v804_v40 = vrot.slane %v802_v13, 4  ;;  %v816_v16 = vshrl.u32 %v4810_v43, 16 }
 0x13a   : > { %v819_v6 = vshll.u32 %v4810_v43, 16  ;;  %1481 = vrot.lane.b32.xlu0 %v3838_v7, %s4320_s18  ;;  %1413 = vrot.lane.b32.xlu1 %v3826_v8, %s4321_s19  ;;  %v807_v36 = vrot.slane %v805_v14, 5  ;;  %v813_v26 = vrot.slane %v811_v39, 5  ;;  %v825_v2 = vshll.u32 %v4710_v51, 16  ;;  %v1139_v51 = vld [vmem:[#allocation2 + $0x24] sm:$0x1] }
 0x13b   : > { %v1015_v47 = vsel %vm4614_vm1, %v1010_v37, %v1014_v44  ;;  %v818_v20 = vrot.slane %v816_v16, 4  ;;  %v830_v29 = vshrl.u32 %v4817_v53, 16  ;;  %v833_v30 = vshll.u32 %v4817_v53, 16  ;;  %v1259_v44 = vld [vmem:[#allocation2 + $0x20] sm:$0xe] }
 0x13c   : > { %v3827_v59 = vcombine.low %v1001_v18, %v1015_v47  ;;  %v821_v27 = vrot.slane %v819_v6, 5  ;;  %v808_v35 = vor.u32 %v807_v36, %v804_v40  ;;  %v827_v52 = vrot.slane %v825_v2, 5  ;;  %v1260_v40 = vld [vmem:[#allocation2 + $0x28] sm:$0xe] }
 0x13d   : > { %v839_v48 = vshll.u32 %v4728_v34, 16  ;;  %v832_v45 = vrot.slane %v830_v29, 4  ;;  %v844_v57 = vshrl.u32 %v4828_v9, 16  ;;  %v847_v10 = vshll.u32 %v4828_v9, 16 }
 0x13e   : > { %v822_v62 = vor.u32 %v821_v27, %v818_v20  ;;  %1415 = vrot.lane.b32.xlu0 %v3827_v59, %s4321_s19  ;;  %v809_v11 = vrot.slane %v808_v35, 4  ;;  %v835_v58 = vrot.slane %v833_v30, 5  ;;  %v853_v7 = vshll.u32 %v4730_v21, 16  ;;  %v950_v20 = vld [vmem:[#allocation2 + $0x38] sm:$0xf] }
 0x13f   : > { %v841_v24 = vrot.slane %v839_v48, 5  ;;  %v846_v54 = vrot.slane %v844_v57, 4  ;;  %v849_v42 = vrot.slane %v847_v10, 5  ;;  %v1180_v34 = vor.u32 %v4664_v41, %v4662_v28  ;;  %v951_v41 = vld [vmem:[#allocation2 + $0x40] sm:$0xf] }
 0x140   : > { %v823_v25 = vrot.slane %v822_v62, 4  ;;  %v814_v46 = vsel %vm4614_vm1, %v809_v11, %v813_v26  ;;  %v836_v37 = vor.u32 %v835_v58, %v832_v45  ;;  %v855_v13 = vrot.slane %v853_v7, 5  ;;  %v4854_v62 = vld [vmem:[#allocation2 + $0x34] sm:$0x1]  ;;  %v891_v45 = vld [vmem:[#allocation2 + $0x30] sm:$0xe] }
 0x141   : > { %v1183_v8 = vshll.u32 %v1139_v51, 16  ;;  %v850_v39 = vor.u32 %v849_v42, %v846_v54  ;;  %v1181_v18 = vrot.slane %v1180_v34, 4  ;;  %v1194_v21 = vor.u32 %v4677_v50, %v4675_v49  ;;  %v4858_v58 = vld [vmem:[#allocation2 + $0x3c] sm:$0x1] }
 0x142   : > { %v828_v14 = vsel %vm4614_vm1, %v823_v25, %v827_v52  ;;  %v837_v6 = vrot.slane %v836_v37, 4  ;;  %v1197_v28 = vshll.u32 %v1140_v15, 16  ;;  %v3804_v2 = vrot.slane %v1259_v44, 9 }
 0x143   : > { %v3815_v16 = vcombine.low %v814_v46, %v828_v14  ;;  %v1185_v47 = vrot.slane %v1183_v8, 5  ;;  %v851_v36 = vrot.slane %v850_v39, 4  ;;  %v1195_v26 = vrot.slane %v1194_v21, 4 }
 0x144   : > { %v1291_v59 = vrot.slane %v1139_v51, 5  ;;  %v842_v27 = vsel %vm4614_vm1, %v837_v6, %v841_v24  ;;  %v1199_v49 = vrot.slane %v1197_v28, 5  ;;  %v3805_v50 = vrot.slane %v1260_v40, 9  ;;  %v892_v24 = vld [vmem:[#allocation2 + $0x38] sm:$0xe] }
 0x145   : > { %1347 = vrot.lane.b32.xlu1 %v3815_v16, %s4319_s17  ;;  %v1186_v29 = vsel %vm4614_vm1, %v1181_v18, %v1185_v47  ;;  %v856_v35 = vsel %vm4614_vm1, %v851_v36, %v855_v13  ;;  %v1295_v30 = vrot.slane %v1140_v15, 5  ;;  %v1059_v48 = vshrl.u32 %v951_v41, 16  ;;  %v1141_v16 = vld [vmem:[#allocation2 + $0x34] sm:$0x1] }
 0x146   : > { %v1292_v52 = vsel %vm4544_vm8, %v3804_v2, %v1291_v59  ;;  %v3816_v57 = vcombine.low %v842_v27, %v856_v35  ;;  %v1200_v10 = vsel %vm4614_vm1, %v1195_v26, %v1199_v49  ;;  %v1062_v51 = vshll.u32 %v951_v41, 16  ;;  %v1261_v26 = vld [vmem:[#allocation2 + $0x30] sm:$0xe]  ;;  %v1262_v59 = vld [vmem:[#allocation2 + $0x38] sm:$0xe] }
 0x147   : > { %v3825_v11 = vcombine.low %v950_v20, %v951_v41  ;;  %v1296_v7 = vsel %vm4544_vm8, %v3805_v50, %v1295_v30  ;;  %v3839_v25 = vcombine.low %v1186_v29, %v1200_v10  ;;  %v4862_v54 = vrot.slane %v1059_v48, 4  ;;  %v1142_v41 = vld [vmem:[#allocation2 + $0x3c] sm:$0x1]  ;;  %v4891_v48 = vld [vmem:[#allocation2 + $0x30] sm:$0xf] }
 0x148   : > { %v1045_v42 = vshrl.u32 %v950_v20, 16  ;;  %1349 = vrot.lane.b32.xlu0 %v3816_v57, %s4319_s17  ;;  %v3843_v15 = vcombine.low %v1292_v52, %v1296_v7  ;;  %v1064_v34 = vrot.slane %v1062_v51, 5  ;;  %v1048_v46 = vshll.u32 %v950_v20, 16  ;;  %v4887_v49 = vld [vmem:[#allocation2 + $0x3c] sm:$0x1] }
 0x149   : > { %v3792_v37 = vrot.slane %v891_v45, 9  ;;  %1483 = vrot.lane.b32.xlu1 %v3839_v25, %s4320_s18  ;;  %v938_v8 = vrot.slane %v4854_v62, 5  ;;  %v3793_v44 = vrot.slane %v892_v24, 9  ;;  %v942_v14 = vrot.slane %v4858_v58, 5  ;;  %v4897_v51 = vld [vmem:[#allocation2 + $0x44] sm:$0x1] }
 0x14a   : > { %v1047_v13 = vrot.slane %v1045_v42, 4  ;;  %1580 = vst.msk [vmem:[#allocation4 + $0x18] sm:$0xff] %vm476_vm5, %v3843_v15  ;;  %v1050_v39 = vrot.slane %v1048_v46, 5  ;;  %v1023_v18 = vor.u32 %v4701_v33, %v4696_v31  ;;  %v1026_v21 = vshll.u32 %v4744_v60, 16  ;;  %v4907_v46 = vld [vmem:[#allocation2 + $0x38] sm:$0xf] }
 0x14b   : > { %v1037_v40 = vor.u32 %v4694_v23, %v4692_v22  ;;  %v939_v6 = vsel %vm4544_vm8, %v3792_v37, %v938_v8  ;;  %v943_v47 = vsel %vm4544_vm8, %v3793_v44, %v942_v14  ;;  %v1040_v28 = vshll.u32 %v4746_v63, 16 }
 0x14c   : > { %v1208_v36 = vor.u32 %v4770_v56, %v4765_v5  ;;  %v3821_v31 = vcombine.low %v939_v6, %v943_v47  ;;  %v1024_v33 = vrot.slane %v1023_v18, 4  ;;  %v1028_v60 = vrot.slane %v1026_v21, 5 }
 0x14d   : > { %v1038_v2 = vrot.slane %v1037_v40, 4  ;;  %1399 = vrot.lane.b32.xlu1 %v3825_v11, %s4315_s29  ;;  %v1042_v22 = vrot.slane %v1040_v28, 5  ;;  %v1211_v20 = vshll.u32 %v1141_v16, 16  ;;  %v1222_v27 = vor.u32 %v4782_v19, %v4777_v4 }
 0x14e   : > { %v1209_v23 = vrot.slane %v1208_v36, 4  ;;  %1371 = vrot.lane.b32.xlu0 %v3821_v31, %s4317_s10  ;;  %v1029_v63 = vsel %vm4614_vm1, %v1024_v33, %v1028_v60  ;;  %v1225_v5 = vshll.u32 %v1142_v41, 16  ;;  %v3806_v56 = vrot.slane %v1261_v26, 9  ;;  %v1078_v31 = vld [vmem:[#allocation2 + $0x38] sm:$0xe] }
 0x14f   : > { %v1299_v29 = vrot.slane %v1141_v16, 5  ;;  %v1043_v50 = vsel %vm4614_vm1, %v1038_v2, %v1042_v22  ;;  %v1213_v35 = vrot.slane %v1211_v20, 5  ;;  %v1223_v52 = vrot.slane %v1222_v27, 4 }
 0x150   : > { %v3807_v30 = vrot.slane %v1262_v59, 9  ;;  %v3828_v45 = vcombine.low %v1029_v63, %v1043_v50  ;;  %v1227_v4 = vrot.slane %v1225_v5, 5  ;;  %v1303_v57 = vrot.slane %v1142_v41, 5  ;;  %v1079_v59 = vld [vmem:[#allocation2 + $0x40] sm:$0xe] }
 0x151   : > { %v1300_v19 = vsel %vm4544_vm8, %v3806_v56, %v1299_v29  ;;  %v1214_v10 = vsel %vm4614_vm1, %v1209_v23, %v1213_v35  ;;  %v1051_v11 = vor.u32 %v1050_v39, %v1047_v13  ;;  %v1054_v24 = vshll.u32 %v4887_v49, 16  ;;  %v1135_v39 = vld [vmem:[#allocation2 + $0x40] sm:$0xf]  ;;  %v1143_v50 = vld [vmem:[#allocation2 + $0x44] sm:$0x1] }
 0x152   : > { %v1065_v7 = vor.u32 %v1064_v34, %v4862_v54  ;;  %1417 = vrot.lane.b32.xlu1 %v3828_v45, %s4321_s19  ;;  %v1228_v25 = vsel %vm4614_vm1, %v1223_v52, %v1227_v4  ;;  %v1304_v42 = vsel %vm4544_vm8, %v3807_v30, %v1303_v57  ;;  %v1068_v15 = vshll.u32 %v4897_v51, 16  ;;  %v1263_v63 = vld [vmem:[#allocation2 + $0x40] sm:$0xe] }
 0x153   : > { %v858_v37 = vshrl.u32 %v4891_v48, 16  ;;  %v3840_v8 = vcombine.low %v1214_v10, %v1228_v25  ;;  %v3844_v13 = vcombine.low %v1300_v19, %v1304_v42  ;;  %v1052_v44 = vrot.slane %v1051_v11, 4  ;;  %v4131_v11 = vld [vmem:[%s5949_s2] sm:$0xff]  }
 0x154   : > { %v1056_v14 = vrot.slane %v1054_v24, 5  ;;  %v1066_v54 = vrot.slane %v1065_v7, 4  ;;  %v1070_v34 = vrot.slane %v1068_v15, 5  ;;  %v861_v21 = vshll.u32 %v4891_v48, 16 }
 0x155   : > { %v860_v18 = vrot.slane %v858_v37, 4  ;;  %1581 = vst.msk [vmem:[#allocation4 + $0x28] sm:$0xff] %vm476_vm5, %v3844_v13  ;;  %1485 = vrot.lane.b32.xlu0 %v3840_v8, %s4320_s18  ;;  %v867_v16 = vshll.u32 %v4854_v62, 16  ;;  %v872_v6 = vshrl.u32 %v4907_v46, 16  ;;  %v875_v47 = vshll.u32 %v4907_v46, 16 }
 0x156   : > { %v1057_v40 = vsel %vm4614_vm1, %v1052_v44, %v1056_v14  ;;  %v1071_v28 = vsel %vm4614_vm1, %v1066_v54, %v1070_v34  ;;  %v863_v41 = vrot.slane %v861_v21, 5  ;;  %v881_v36 = vshll.u32 %v4858_v58, 16  ;;  %v1740_v14 = vld [vmem:[#allocation6] sm:$0xff] }
 0x157   : > { %v1230_v26 = vshrl.u32 %v1135_v39, 16  ;;  %v3829_v33 = vcombine.low %v1057_v40, %v1071_v28  ;;  %v874_v60 = vrot.slane %v872_v6, 4  ;;  %v877_v2 = vrot.slane %v875_v47, 5  ;;  %v1742_v6 = vld [vmem:[#allocation6 + $0x10] sm:$0xff] }
 0x158   : > { %v1253_v22 = vshll.u32 %v4592_v1, 16  ;;  %v864_v23 = vor.u32 %v863_v41, %v860_v18  ;;  %v869_v62 = vrot.slane %v867_v16, 5  ;;  %v1233_v27 = vshll.u32 %v1135_v39, 16  ;;  %v4133_v41 = vld [vmem:[%s5949_s2 + $0x10] sm:$0xff]  }
 0x159   : > { %v1232_v20 = vrot.slane %v1230_v26, 4  ;;  %1419 = vrot.lane.b32.xlu0 %v3829_v33, %s4321_s19  ;;  %v878_v5 = vor.u32 %v877_v2, %v874_v60  ;;  %v883_v56 = vrot.slane %v881_v36, 5  ;;  %v3837_v29 = vcombine.low %v1135_v39, %v4548_v3  ;;  %v1743_v26 = vld [vmem:[#allocation6 + $0x18] sm:$0xff]  ;;  %v1741_v33 = vld [vmem:[#allocation6 + $0x8] sm:$0xff]  ;;  %v4135_v2 = vld [vmem:[%s5949_s2 + $0x20] sm:$0xff]  }
 0x15a   : > { %v3800_v58 = vrot.slane %v1078_v31, 9  ;;  %v865_v35 = vrot.slane %v864_v23, 4  ;;  %v1235_v52 = vrot.slane %v1233_v27, 5  ;;  %v1122_v30 = vrot.slane %v4887_v49, 5  ;;  %v4134_v31 = vld [vmem:[%s5949_s2 + $0x18] sm:$0xff]   ;;  %v1745_v60 = vld [vmem:[#allocation6 + $0x28] sm:$0xff] }
 0x15b   : > { %v3801_v45 = vrot.slane %v1079_v59, 9  ;;  %v879_v4 = vrot.slane %v878_v5, 4  ;;  %v1126_v19 = vrot.slane %v4897_v51, 5  ;;  %v1239_v57 = vshll.u32 %v1143_v50, 16  ;;  %v3859_v59 = vld [vmem:[%s5950_s3] ss:$0 sm:$0xff] }
 0x15c   : > { %v3808_v10 = vrot.slane %v1263_v63, 9  ;;  %v1236_v24 = vor.u32 %v1235_v52, %v1232_v20  ;;  %v1307_v7 = vrot.slane %v1143_v50, 5  ;;  %v5973_v3 = vrot.slane %v4592_v1, 5  ;;  %v4136_v23 = vld [vmem:[%s5949_s2 + $0x28] sm:$0xff]   ;;  %v4137_v20 = vld [vmem:[%s5949_s2 + $0x30] sm:$0xff]   ;;  %v4138_v63 = vld [vmem:[%s5949_s2 + $0x38] sm:$0xff]  }
 0x15d   : > { %v5974_v25 = vrot.slane %v4594_v55, 9  ;;  %v870_v49 = vsel %vm4614_vm1, %v865_v35, %v869_v62  ;;  %v884_v51 = vsel %vm4614_vm1, %v879_v4, %v883_v56  ;;  %1467 = vrot.lane.b32.xlu0 %v3837_v29, %s4316_s30  ;;  %v5975_v15 = vor.u32 %v4600_v12, %v4590_v0  ;;  %v4132_v0 = vld [vmem:[%s5949_s2 + $0x8] sm:$0xff]   ;;  %v1744_v62 = vld [vmem:[#allocation6 + $0x20] sm:$0xff]  ;;  %v1746_v27 = vld [vmem:[#allocation6 + $0x30] sm:$0xff] }
 0x15e   : > { %v3817_v8 = vcombine.low %v870_v49, %v884_v51  ;;  %v1123_v1 = vsel %vm4544_vm8, %v3800_v58, %v1122_v30  ;;  %v1255_v55 = vrot.slane %v1253_v22, 5  ;;  %v1308_v13 = vsel %vm4544_vm8, %v3808_v10, %v1307_v7  ;;  %v1747_v22 = vld [vmem:[#allocation6 + $0x38] sm:$0xff]  ;;  %v4139_v5 = vld [vmem:[%s5949_s2 + $0x40] sm:$0xff]  }
 0x15f   : > { %v1312_v42 = vsel %vm4544_vm8, %v5974_v25, %v5973_v3  ;;  %v1251_v37 = vrot.slane %v5975_v15, 4  ;;  %v4322_v44 = vmov 0   ;;  %v1127_v39 = vsel %vm4544_vm8, %v3801_v45, %v1126_v19 }
 0x160   : > { %1675 = vmatprep.subr.bf16.mxu0 %v4322_v44  ;;  %v1237_v54 = vrot.slane %v1236_v24, 4  ;;  %v1241_v34 = vrot.slane %v1239_v57, 5  ;;  %v3845_v18 = vcombine.low %v1308_v13, %v1312_v42  ;;  %1351 = vrot.lane.b32.xlu1 %v3817_v8, %s4319_s17  ;;  %v3811_v12 = vcombine.low %v4799_v32, %v4810_v43  ;;  %v4267_v57 = vld [vmem:[#allocation2] sm:$0xf]  ;;  %v1588_v43 = vld [vmem:[#allocation4 + $0x28] sm:$0xff] }
 0x161   : > { %1676 = vmatpush1.bf16.msra.mxu0 %v4131_v11  ;;  %v3812_v21 = vcombine.low %v4817_v53, %v4828_v9  ;;  %v3813_v40 = vcombine.low %v4891_v48, %v4907_v46  ;;  %1756 = vrot.lane.b32.xlu0 %v1740_v14, %s4321_s19  ;;  %v3833_v16 = vcombine.low %v1123_v1, %v1127_v39  ;;  %v1586_v1 = vld [vmem:[#allocation4 + $0x18] sm:$0xff] }
 0x162   : > { %1677 = vmatprep.subr.bf16.mxu0 %v4322_v44  ;;  %1582 = vst.msk [vmem:[#allocation4 + $0x38] sm:$0xff] %vm476_vm5, %v3845_v18  ;;  %v1242_v47 = vsel %vm4614_vm1, %v1237_v54, %v1241_v34  ;;  %v1256_v28 = vsel %vm4614_vm1, %v1251_v37, %v1255_v55  ;;  %v3810_v10 = vcombine.low %v4267_v57, %v4720_v17 }
 0x163   : > { %v3841_v36 = vcombine.low %v1242_v47, %v1256_v28 }
 0x164   : > { %1439 = vrot.lane.b32.xlu1 %v3833_v16, %s4318_s16 }
 0x165   : > { %1678 = vmatpush1.bf16.msra.mxu0 %v4132_v0  ;;  %1760 = vrot.lane.b32.xlu0 %v1742_v6, %s4321_s19 }
 0x166   : > { %1679 = vmatprep.subr.bf16.mxu0 %v4322_v44 }
 0x168   : > { %1487 = vrot.lane.b32.xlu1 %v3841_v36, %s4320_s18 }
 0x169   : > { %1680 = vmatpush1.bf16.msra.mxu0 %v4133_v41  ;;  %1762 = vrot.lane.b32.xlu0 %v1743_v26, %s4321_s19 }
 0x16a   : > { %1681 = vmatprep.subr.bf16.mxu0 %v4322_v44 }
 0x16c   : > { %1758 = vrot.lane.b32.xlu1 %v1741_v33, %s4321_s19  ;;  %v1590_v33 = vld [vmem:[#allocation4 + $0x38] sm:$0xff] }
 0x16d   : > { %1682 = vmatpush1.bf16.msra.mxu0 %v4134_v31  ;;  %1766 = vrot.lane.b32.xlu0 %v1745_v60, %s4321_s19 }
 0x16e   : > { %1683 = vmatprep.subr.bf16.mxu0 %v4322_v44 }
 0x170   : > { %1794 = vrot.lane.b32.xlu1 %v3859_v59, %s4321_s19 }
 0x171   : > { %1684 = vmatpush1.bf16.msra.mxu0 %v4135_v2  ;;  %1770 = vrot.lane.b32.xlu0 %v1747_v22, %s4321_s19 }
 0x172   : > { %1685 = vmatprep.subr.bf16.mxu0 %v4322_v44 }
 0x174   : > { %1764 = vrot.lane.b32.xlu1 %v1744_v62, %s4321_s19 }
 0x175   : > { %1686 = vmatpush1.bf16.msra.mxu0 %v4136_v23 }
 0x176   : > { %1687 = vmatprep.subr.bf16.mxu0 %v4322_v44 }
 0x178   : > { %1768 = vrot.lane.b32.xlu1 %v1746_v27, %s4321_s19 }
 0x179   : > { %1688 = vmatpush1.bf16.msra.mxu0 %v4137_v20 }
 0x17a   : > { %1689 = vmatprep.subr.bf16.mxu0 %v4322_v44 }
 0x17d   : > { %1690 = vmatpush1.bf16.msra.mxu0 %v4138_v63 }
 0x17e   : > { %1691 = vmatprep.subr.bf16.mxu0 %v4322_v44 }
 0x181   : > { %1692 = vmatpush1.bf16.msra.mxu0 %v4139_v5  ;;  %v4268_v5 = vld [vmem:[%s4406_s23] sm:$0xff]  }
 0x187   : > { %v1394_v56 = vpop.permute.xlu1 %1393 }
 0x18b   : > { %v1462_v29 = vpop.permute.xlu1 %1461 }
 0x18e   : > { %v1464_v58 = vpop.permute.xlu0 %1463 }
 0x18f   : > { %v1396_v50 = vpop.permute.xlu1 %1395 }
 0x192   : > { %v1398_v35 = vpop.permute.xlu0 %1397 }
 0x199   : > { %v1366_v52 = vpop.permute.xlu1 %1365 }
 0x19a   : > { %v1434_v30 = vpop.permute.xlu0 %1433 }
 0x19d   : > { %v1436_v45 = vpop.permute.xlu1 %1435 }
 0x19e   : > { %v1368_v4 = vpop.permute.xlu0 %1367 }
 0x1a1   : > { %v1370_v19 = vpop.permute.xlu1 %1369 }
 0x1a4   : > { %v1346_v11 = vpop.permute.xlu0 %1345 }
 0x1a5   : > { %v1491_v24 = vsel %vm476_vm5, %v3810_v10, %v1346_v11  ;;  %v1466_v7 = vpop.permute.xlu1 %1465 }
 0x1a6   : > { %v1503_v3 = vsel %vm1501_vm2, %v1491_v24, %v1366_v52  ;;  %v5048_v52 = vld [vmem:[#allocation6 + $0x48] sm:$0xff] }
 0x1a7   : > { %v1512_v49 = vsel %vm1510_vm3, %v1503_v3, %v1394_v56  ;;  %5977 = vst [vmem:[#allocation9_spill] sm:$0xff] %v5048_v52 }
 0x1a8   : > { %v1438_v25 = vpop.permute.xlu0 %1437 }
 0x1ac   : > { %v1414_v42 = vpop.permute.xlu1 %1413  ;;  %v1482_v37 = vpop.permute.xlu0 %1481 }
 0x1ad   : > { %v1521_v51 = vsel %vm1519_vm4, %v1512_v49, %v1414_v42 }
 0x1ae   : > { %v1530_v17 = vsel %vm1528_vm6, %v1521_v51, %v1434_v30  ;;  %v5074_v51 = vld [vmem:[#allocation6 + $0x58] sm:$0xff] }
 0x1af   : > { %v1539_v15 = vsel %vm1537_vm7, %v1530_v17, %v1462_v29  ;;  %5980 = vst [vmem:[#allocation12_spill] sm:$0xff] %v5074_v51 }
 0x1b0   : > { %v1548_v8 = vsel %vm1546_vm9, %v1539_v15, %v1482_v37  ;;  %v1416_v55 = vpop.permute.xlu0 %1415 }
 0x1b1   : > { %1708 = vmatmul.mubr.bf16.vlgmr.msra.gmra.mrb[0].mxu0 %v1548_v8 }
 0x1b2   : > { %3856 = vmatprep.mubr.msk.bf16.mxu0 %vm476_vm5, %v1586_v1 }
 0x1b7   : > { %v1348_v13 = vpop.permute.xlu1 %1347 }
 0x1b8   : > { %v1494_v44 = vsel %vm476_vm5, %v3811_v12, %v1348_v13 }
 0x1b9   : > { %v1505_v14 = vsel %vm1501_vm2, %v1494_v44, %v1368_v4 }
 0x1ba   : > { %v1514_v39 = vsel %vm1510_vm3, %v1505_v14, %v1396_v50  ;;  %v1350_v0 = vpop.permute.xlu0 %1349 }
 0x1bb   : > { %v1523_v54 = vsel %vm1519_vm4, %v1514_v39, %v1416_v55  ;;  %v1484_v18 = vpop.permute.xlu1 %1483  ;;  %v1497_v32 = vsel %vm476_vm5, %v3812_v21, %v1350_v0  ;;  %v5100_v0 = vld [vmem:[#allocation6 + $0x68] sm:$0xff] }
 0x1bc   : > { %v1532_v34 = vsel %vm1528_vm6, %v1523_v54, %v1436_v45  ;;  %v1507_v47 = vsel %vm1501_vm2, %v1497_v32, %v1370_v19  ;;  %v5096_v54 = vld [vmem:[#allocation6 + $0x60] sm:$0xff]  ;;  %5984 = vst [vmem:[#allocation16_spill] sm:$0xff] %v5100_v0 }
 0x1bd   : > { %v1541_v16 = vsel %vm1537_vm7, %v1532_v34, %v1464_v58  ;;  %v1516_v36 = vsel %vm1510_vm3, %v1507_v47, %v1398_v35  ;;  %5982 = vst [vmem:[#allocation14_spill] sm:$0xff] %v5096_v54 }
 0x1be   : > { %v1551_v6 = vsel %vm1546_vm9, %v1541_v16, %v1484_v18 }
 0x1bf   : > { %1716 = vmatmul.mubr.bf16.gmra.mrb[4].mxu0 %v1551_v6  ;;  %v1400_v12 = vpop.permute.xlu1 %1399 }
 0x1c0   : > { %3857 = vmatprep.mubr.msk.bf16.mxu0 %vm476_vm5, %v1588_v43  ;;  %v1372_v28 = vpop.permute.xlu0 %1371 }
 0x1c4   : > { %v1418_v41 = vpop.permute.xlu1 %1417 }
 0x1c5   : > { %v1525_v26 = vsel %vm1519_vm4, %v1516_v36, %v1418_v41 }
 0x1c6   : > { %v1534_v31 = vsel %vm1528_vm6, %v1525_v26, %v1438_v25  ;;  %v5070_v25 = vld [vmem:[#allocation6 + $0x50] sm:$0xff] }
 0x1c7   : > { %v1543_v53 = vsel %vm1537_vm7, %v1534_v31, %v1466_v7  ;;  %v1486_v9 = vpop.permute.xlu0 %1485  ;;  %5978 = vst [vmem:[#allocation10_spill] sm:$0xff] %v5070_v25  ;;  %v5122_v31 = vld [vmem:[#allocation6 + $0x70] sm:$0xff] }
 0x1c8   : > { %v1554_v21 = vsel %vm1546_vm9, %v1543_v53, %v1486_v9  ;;  %5986 = vst [vmem:[#allocation18_spill] sm:$0xff] %v5122_v31 }
 0x1c9   : > { %1724 = vmatmul.mubr.bf16.gmra.mrb[8].mxu0 %v1554_v21  ;;  %v5126_v21 = vld [vmem:[#allocation6 + $0x78] sm:$0xff] }
 0x1ca   : > { %3858 = vmatprep.mubr.msk.bf16.mxu0 %vm476_vm5, %v1590_v33  ;;  %5988 = vst [vmem:[#allocation20_spill] sm:$0xff] %v5126_v21 }
 0x1cb   : > { %v1420_v60 = vpop.permute.xlu0 %1419 }
 0x1cf   : > { %v1468_v63 = vpop.permute.xlu0 %1467 }
 0x1d2   : > { %v1352_v2 = vpop.permute.xlu1 %1351 }
 0x1d3   : > { %v1500_v59 = vsel %vm476_vm5, %v3813_v40, %v1352_v2  ;;  %v1757_v46 = vpop.permute.xlu0 %1756  ;;  %v5042_v40 = vld [vmem:[#allocation6 + $0x40] sm:$0xff] }
 0x1d4   : > { %v1509_v22 = vsel %vm1501_vm2, %v1500_v59, %v1372_v28  ;;  %5976 = vst [vmem:[#allocation8_spill] sm:$0xff] %v5042_v40 }
 0x1d5   : > { %v1518_v23 = vsel %vm1510_vm3, %v1509_v22, %v1400_v12 }
 0x1d6   : > { %v1527_v62 = vsel %vm1519_vm4, %v1518_v23, %v1420_v60  ;;  %v1440_v20 = vpop.permute.xlu1 %1439 }
 0x1d7   : > { %v1536_v27 = vsel %vm1528_vm6, %v1527_v62, %v1440_v20  ;;  %v1761_v7 = vpop.permute.xlu0 %1760 }
 0x1d8   : > { %v1545_v56 = vsel %vm1537_vm7, %v1536_v27, %v1468_v63 }
 0x1da   : > { %v1488_v29 = vpop.permute.xlu1 %1487 }
 0x1db   : > { %v1557_v58 = vsel %vm1546_vm9, %v1545_v56, %v1488_v29  ;;  %v1763_v49 = vpop.permute.xlu0 %1762 }
 0x1dc   : > { %1732 = vmatmul.mubr.bf16.gmra.mrb[12].mxu0 %v1557_v58 }
 0x1dd   : > { %4061 = vmatprep.mubr.msk.bf16.mxu0 %vm476_vm5, %v4268_v5 }
 0x1de   : > { %v1759_v48 = vpop.permute.xlu1 %1758 }
 0x1df   : > { %v1767_v18 = vpop.permute.xlu0 %1766 }
 0x1e2   : > { %v5046_v35 = vpop.permute.xlu1 %1794 }
 0x1e3   : > { %v1771_v9 = vpop.permute.xlu0 %1770 }
 0x1e6   : > { %v1765_v39 = vpop.permute.xlu1 %1764 }
 0x1ea   : > { %v1769_v26 = vpop.permute.xlu1 %1768 }
 0x284   : > { %v5044_v50 = vpop.f32.mrb[0].mxu0 }
 0x285   : > { %v1780_v30 = vadd.f32 %v1757_v46, %v5044_v50  ;;  %v1711_v45 = vpop.f32.mrb[1].mxu0  ;;  %1862 = vst.msk [vmem:[#allocation6 + $0x40] sm:$0xff] %vm1501_vm2, %v5044_v50 }
 0x286   : > { %v5053_v4 = vpop.f32.mrb[2].mxu0 }
 0x287   : > { %v1781_v19 = vadd.f32 %v1759_v48, %v5053_v4  ;;  %v1714_v57 = vpop.f32.mrb[3].mxu0  ;;  %v5057_v10 = vadd.f32 %v5046_v35, %v1780_v30  ;;  %1863 = vst.msk [vmem:[#allocation6 + $0x48] sm:$0xff] %vm1501_vm2, %v5053_v4 }
 0x289   : > { %v5062_v11 = vadd.f32 %v5046_v35, %v1781_v19  ;;  %v1871_v24 = vmul.f32 %v5057_v10, %v5057_v10 }
 0x28b   : > { %1887 = vrot.lane.b32.xlu1 %v1871_v24, %s4321_s19  ;;  %v1872_v3 = vmul.f32 %v5062_v11, %v5062_v11 }
 0x28d   : > { %1889 = vrot.lane.b32.xlu0 %v1872_v3, %s4321_s19 }
 0x292   : > { %v5072_v42 = vpop.f32.mrb[4].mxu0 }
 0x293   : > { %5979 = vst [vmem:[#allocation11_spill] sm:$0xff] %v5072_v42  ;;  %v1782_v17 = vadd.f32 %v1761_v7, %v5072_v42  ;;  %v1719_v15 = vpop.f32.mrb[5].mxu0  ;;  %1864 = vst.msk [vmem:[#allocation6 + $0x50] sm:$0xff] %vm1501_vm2, %v5072_v42 }
 0x294   : > { %v5079_v37 = vpop.f32.mrb[6].mxu0  ;;  %v4140_v15 = vld [vmem:[%s5954_s7] sm:$0xff]  }
 0x295   : > { %5981 = vst [vmem:[#allocation13_spill] sm:$0xff] %v5079_v37  ;;  %v5082_v8 = vadd.f32 %v5046_v35, %v1782_v17  ;;  %v1783_v1 = vadd.f32 %v1763_v49, %v5079_v37  ;;  %v1722_v55 = vpop.f32.mrb[7].mxu0  ;;  %1865 = vst.msk [vmem:[#allocation6 + $0x58] sm:$0xff] %vm1501_vm2, %v5079_v37  ;;  %v3860_v17 = vld [vmem:[%s5951_s4] ss:$0 sm:$0xff]  ;;  %4059 = vmatprep.subr.bf16.mxu0 %v4140_v15 }
 0x296   : > { %v4270_v55 = vld [vmem:[%s4406_s23 + $0x10] sm:$0xff]   ;;  %4060 = vmatpush3.bf16.msra.mxu0 %v4140_v15 }
 0x297   : > { %v5088_v13 = vadd.f32 %v5046_v35, %v1783_v1  ;;  %v1873_v44 = vmul.f32 %v5082_v8, %v5082_v8  ;;  %v4269_v1 = vld [vmem:[%s4406_s23 + $0x8] sm:$0xff]  }
 0x299   : > { %1891 = vrot.lane.b32.xlu1 %v1873_v44, %s4321_s19  ;;  %v1874_v14 = vmul.f32 %v5088_v13, %v5088_v13  ;;  %4062 = vmatmul.mubr.msk.bf16.vlgmr.msra.gmra.mrb[16].mxu0 %vm476_vm5, %v4269_v1  ;;  %v4271_v44 = vld [vmem:[%s4406_s23 + $0x18] sm:$0xff]  }
 0x29a   : > { %4065 = vmatprep.mubr.msk.bf16.mxu0 %vm476_vm5, %v4270_v55 }
 0x29b   : > { %1893 = vrot.lane.b32.xlu0 %v1874_v14, %s4321_s19 }
 0x29c   : > { %v5098_v34 = vpop.f32.mrb[8].mxu0 }
 0x29d   : > { %5983 = vst [vmem:[#allocation15_spill] sm:$0xff] %v5098_v34  ;;  %v1784_v16 = vadd.f32 %v1765_v39, %v5098_v34  ;;  %v1727_v6 = vpop.f32.mrb[9].mxu0  ;;  %1866 = vst.msk [vmem:[#allocation6 + $0x60] sm:$0xff] %vm1501_vm2, %v5098_v34 }
 0x29e   : > { %v5105_v32 = vpop.f32.mrb[10].mxu0 }
 0x29f   : > { %5985 = vst [vmem:[#allocation17_spill] sm:$0xff] %v5105_v32  ;;  %v5108_v43 = vadd.f32 %v5046_v35, %v1784_v16  ;;  %v1785_v12 = vadd.f32 %v1767_v18, %v5105_v32  ;;  %v1730_v47 = vpop.f32.mrb[11].mxu0  ;;  %1867 = vst.msk [vmem:[#allocation6 + $0x68] sm:$0xff] %vm1501_vm2, %v5105_v32  ;;  %v4164_v32 = vld [vmem:[%s5952_s5 + $0x38] sm:$0xff]  }
 0x2a1   : > { %v5114_v28 = vadd.f32 %v5046_v35, %v1785_v12  ;;  %v1875_v41 = vmul.f32 %v5108_v43, %v5108_v43  ;;  %4066 = vmatmul.mubr.msk.bf16.gmra.mrb[20].mxu0 %vm476_vm5, %v4271_v44  ;;  %vm2173_vm5 = vcmask 253952  }
 0x2a2   : > { %vm5234_vm13 = vmand %vm2173_vm5, %vm707_vm12 }
 0x2a3   : > { %1895 = vrot.lane.b32.xlu1 %v1875_v41, %s4321_s19  ;;  %v1876_v36 = vmul.f32 %v5114_v28, %v5114_v28 }
 0x2a5   : > { %1897 = vrot.lane.b32.xlu0 %v1876_v36, %s4321_s19 }
 0x2af   : > { %v5124_v53 = vpop.f32.mrb[12].mxu0 }
 0x2b0   : > { %5987 = vst [vmem:[#allocation19_spill] sm:$0xff] %v5124_v53  ;;  %v1786_v33 = vadd.f32 %v1769_v26, %v5124_v53  ;;  %v1735_v60 = vpop.f32.mrb[13].mxu0  ;;  %1868 = vst.msk [vmem:[#allocation6 + $0x70] sm:$0xff] %vm1501_vm2, %v5124_v53 }
 0x2b1   : > { %v5131_v2 = vpop.f32.mrb[14].mxu0 }
 0x2b2   : > { %5989 = vst [vmem:[#allocation21_spill] sm:$0xff] %v5131_v2  ;;  %v5134_v59 = vadd.f32 %v5046_v35, %v1786_v33  ;;  %v1787_v22 = vadd.f32 %v1771_v9, %v5131_v2  ;;  %v1738_v23 = vpop.f32.mrb[15].mxu0  ;;  %1869 = vst.msk [vmem:[#allocation6 + $0x78] sm:$0xff] %vm1501_vm2, %v5131_v2 }
 0x2b4   : > { %v5140_v62 = vadd.f32 %v5046_v35, %v1787_v22  ;;  %v1877_v20 = vmul.f32 %v5134_v59, %v5134_v59 }
 0x2b6   : > { %1899 = vrot.lane.b32.xlu1 %v1877_v20, %s4321_s19  ;;  %v1878_v27 = vmul.f32 %v5140_v62, %v5140_v62 }
 0x2b8   : > { %1901 = vrot.lane.b32.xlu0 %v1878_v27, %s4321_s19 }
 0x2fd   : > { %v1888_v63 = vpop.permute.xlu1 %1887 }
 0x2fe   : > { %v1911_v5 = vsel %vm1501_vm2, %v1888_v63, 0.0 }
 0x2ff   : > { %1912 = vadd.xlane.f32.xlu1 %v1911_v5  ;;  %v1890_v56 = vpop.permute.xlu0 %1889 }
 0x300   : > { %v1914_v29 = vsel %vm1501_vm2, %v1890_v56, 0.0 }
 0x301   : > { %1915 = vadd.xlane.f32.xlu0 %v1914_v29 }
 0x30b   : > { %v1892_v58 = vpop.permute.xlu1 %1891 }
 0x30c   : > { %v1917_v48 = vsel %vm1501_vm2, %v1892_v58, 0.0 }
 0x30d   : > { %1918 = vadd.xlane.f32.xlu0 %v1917_v48  ;;  %v1894_v46 = vpop.permute.xlu0 %1893 }
 0x30e   : > { %v1920_v35 = vsel %vm1501_vm2, %v1894_v46, 0.0 }
 0x311   : > { %1921 = vadd.xlane.f32.xlu0 %v1920_v35 }
 0x315   : > { %v1896_v30 = vpop.permute.xlu1 %1895 }
 0x316   : > { %v1923_v45 = vsel %vm1501_vm2, %v1896_v30, 0.0 }
 0x317   : > { %1924 = vadd.xlane.f32.xlu1 %v1923_v45  ;;  %v1898_v19 = vpop.permute.xlu0 %1897 }
 0x318   : > { %v1926_v57 = vsel %vm1501_vm2, %v1898_v19, 0.0 }
 0x319   : > { %1927 = vadd.xlane.f32.xlu0 %v1926_v57 }
 0x328   : > { %v1900_v24 = vpop.permute.xlu1 %1899 }
 0x329   : > { %v1929_v7 = vsel %vm1501_vm2, %v1900_v24, 0.0 }
 0x32a   : > { %1930 = vadd.xlane.f32.xlu1 %v1929_v7  ;;  %v1902_v3 = vpop.permute.xlu0 %1901 }
 0x32b   : > { %v1932_v49 = vsel %vm1501_vm2, %v1902_v3, 0.0 }
 0x32c   : > { %1933 = vadd.xlane.f32.xlu0 %v1932_v49 }
 0x33b   : > { %1972 = vrot.lane.b32.xlu1 %v3860_v17, %s4321_s19 }
 0x38c   : > { %v1913_v18 = vpop.xlane.xlu1 %1912 }
 0x38d   : > { %v1935_v16 = vmax.f32 %v1913_v18, 1e-24 }
 0x38e   : > { %v1916_v14 = vpop.xlane.xlu0 %1915 }
 0x38f   : > { %v1936_v12 = vmax.f32 %v1916_v14, 1e-24  ;;  %4219 = vrsqrt.f32 %v1935_v16 }
 0x391   : > { %4221 = vrsqrt.f32 %v1936_v12 }
 0x399   : > { %v4220_v60 = vpop.eup %4219 }
 0x39a   : > { %v1919_v39 = vpop.xlane.xlu0 %1918  ;;  %v1951_v5 = vmul.f32 5.656854, %v4220_v60 }
 0x39b   : > { %v1937_v47 = vmax.f32 %v1919_v39, 1e-24  ;;  %v4222_v22 = vpop.eup %4221 }
 0x39c   : > { %v1952_v48 = vmul.f32 5.656854, %v4222_v22  ;;  %v1959_v45 = vmul.f32 %v1951_v5, %v5057_v10 }
 0x39d   : > { %4223 = vrsqrt.f32 %v1937_v47 }
 0x39e   : > { %v1922_v6 = vpop.xlane.xlu0 %1921  ;;  %v1960_v3 = vmul.f32 %v1952_v48, %v5062_v11 }
 0x39f   : > { %v1938_v41 = vmax.f32 %v1922_v6, 1e-24 }
 0x3a1   : > { %4225 = vrsqrt.f32 %v1938_v41 }
 0x3a4   : > { %v1925_v36 = vpop.xlane.xlu1 %1924 }
 0x3a5   : > { %v1939_v26 = vmax.f32 %v1925_v36, 1e-24 }
 0x3a6   : > { %v1928_v9 = vpop.xlane.xlu0 %1927 }
 0x3a7   : > { %v1940_v33 = vmax.f32 %v1928_v9, 1e-24  ;;  %4227 = vrsqrt.f32 %v1939_v26  ;;  %v4224_v23 = vpop.eup %4223 }
 0x3a8   : > { %v1953_v46 = vmul.f32 5.656854, %v4224_v23 }
 0x3a9   : > { %4229 = vrsqrt.f32 %v1940_v33 }
 0x3aa   : > { %v1961_v49 = vmul.f32 %v1953_v46, %v5082_v8 }
 0x3ab   : > { %v4226_v20 = vpop.eup %4225 }
 0x3ac   : > { %v1954_v56 = vmul.f32 5.656854, %v4226_v20 }
 0x3ae   : > { %v1962_v19 = vmul.f32 %v1954_v56, %v5088_v13 }
 0x3b1   : > { %v4228_v27 = vpop.eup %4227 }
 0x3b2   : > { %v1955_v29 = vmul.f32 5.656854, %v4228_v27 }
 0x3b3   : > { %v4230_v63 = vpop.eup %4229 }
 0x3b4   : > { %v1956_v58 = vmul.f32 5.656854, %v4230_v63  ;;  %v1963_v57 = vmul.f32 %v1955_v29, %v5108_v43 }
 0x3b6   : > { %v1964_v24 = vmul.f32 %v1956_v58, %v5114_v28 }
 0x3b7   : > { %v1931_v35 = vpop.xlane.xlu1 %1930 }
 0x3b8   : > { %v1941_v30 = vmax.f32 %v1931_v35, 1e-24 }
 0x3b9   : > { %v1934_v7 = vpop.xlane.xlu0 %1933 }
 0x3ba   : > { %4231 = vrsqrt.f32 %v1941_v30  ;;  %v1942_v17 = vmax.f32 %v1934_v7, 1e-24 }
 0x3bb   : > { %v1973_v15 = vpop.permute.xlu1 %1972 }
 0x3bc   : > { %4233 = vrsqrt.f32 %v1942_v17  ;;  %v1975_v1 = vmul.f32 %v1973_v15, %v1959_v45  ;;  %v1976_v55 = vmul.f32 %v1973_v15, %v1960_v3  ;;  %v1977_v44 = vmul.f32 %v1973_v15, %v1961_v49 }
 0x3bd   : > { %v5175_v14 = vmul.f32 %v1973_v15, %v1962_v19  ;;  %v5177_v10 = vmul.f32 %v1973_v15, %v1963_v57  ;;  %v5179_v13 = vmul.f32 %v1973_v15, %v1964_v24 }
 0x3be   : > { %v1983_v43 = vsub.f32 0.0, %v1975_v1  ;;  %v1984_v28 = vsub.f32 0.0, %v1976_v55  ;;  %v1985_v39 = vsub.f32 0.0, %v1977_v44 }
 0x3bf   : > { %v1986_v11 = vsub.f32 0.0, %v5175_v14  ;;  %v1987_v8 = vsub.f32 0.0, %v5177_v10  ;;  %v1988_v18 = vsub.f32 0.0, %v5179_v13 }
 0x3c0   : > { %v1991_v16 = vmul.f32 1.442695, %v1983_v43  ;;  %v1993_v6 = vmul.f32 1.442695, %v1984_v28  ;;  %v1995_v12 = vmul.f32 1.442695, %v1985_v39 }
 0x3c1   : > { %v1997_v47 = vmul.f32 1.442695, %v1986_v11  ;;  %v1999_v41 = vmul.f32 1.442695, %v1987_v8  ;;  %v2001_v36 = vmul.f32 1.442695, %v1988_v18 }
 0x3c2   : > { %4235 = vpow2.f32 %v1991_v16 }
 0x3c3   : > { %4237 = vpow2.f32 %v1993_v6 }
 0x3c4   : > { %v4232_v26 = vpop.eup %4231  ;;  %4239 = vpow2.f32 %v1995_v12 }
 0x3c5   : > { %v1957_v9 = vmul.f32 5.656854, %v4232_v26  ;;  %4241 = vpow2.f32 %v1997_v47 }
 0x3c6   : > { %v4234_v33 = vpop.eup %4233  ;;  %4243 = vpow2.f32 %v1999_v41 }
 0x3c7   : > { %v1958_v60 = vmul.f32 5.656854, %v4234_v33  ;;  %4245 = vpow2.f32 %v2001_v36  ;;  %v1965_v22 = vmul.f32 %v1957_v9, %v5134_v59 }
 0x3c9   : > { %v1966_v23 = vmul.f32 %v1958_v60, %v5140_v62  ;;  %v5186_v27 = vmul.f32 %v1973_v15, %v1965_v22 }
 0x3cb   : > { %v5188_v56 = vmul.f32 %v1973_v15, %v1966_v23  ;;  %v1989_v45 = vsub.f32 0.0, %v5186_v27 }
 0x3cc   : > { %v4236_v20 = vpop.eup %4235 }
 0x3cd   : > { %v4238_v63 = vpop.eup %4237  ;;  %v2007_v5 = vadd.f32 1.0, %v4236_v20  ;;  %v1990_v19 = vsub.f32 0.0, %v5188_v56  ;;  %v2003_v24 = vmul.f32 1.442695, %v1989_v45 }
 0x3ce   : > { %v4240_v29 = vpop.eup %4239  ;;  %v2008_v58 = vadd.f32 1.0, %v4238_v63 }
 0x3cf   : > { %v4242_v48 = vpop.eup %4241  ;;  %4247 = vrcp.f32 %v2007_v5  ;;  %v2009_v46 = vadd.f32 1.0, %v4240_v29  ;;  %v2005_v7 = vmul.f32 1.442695, %v1990_v19 }
 0x3d0   : > { %v4244_v35 = vpop.eup %4243  ;;  %4249 = vrcp.f32 %v2008_v58  ;;  %v2010_v30 = vadd.f32 1.0, %v4242_v48 }
 0x3d1   : > { %v4246_v59 = vpop.eup %4245  ;;  %4251 = vrcp.f32 %v2009_v46  ;;  %v2011_v62 = vadd.f32 1.0, %v4244_v35 }
 0x3d2   : > { %4253 = vrcp.f32 %v2010_v30  ;;  %v2012_v57 = vadd.f32 1.0, %v4246_v59 }
 0x3d3   : > { %4255 = vrcp.f32 %v2011_v62 }
 0x3d4   : > { %4257 = vrcp.f32 %v2012_v57 }
 0x3d5   : > { %4259 = vpow2.f32 %v2003_v24 }
 0x3d6   : > { %4261 = vpow2.f32 %v2005_v7 }
 0x3d9   : > { %v4248_v3 = vpop.eup %4247 }
 0x3da   : > { %v4250_v49 = vpop.eup %4249  ;;  %v2023_v17 = vmul.f32 %v4248_v3, %v1975_v1 }
 0x3db   : > { %v4252_v15 = vpop.eup %4251  ;;  %v2024_v43 = vmul.f32 %v4250_v49, %v1976_v55 }
 0x3dc   : > { %v4254_v28 = vpop.eup %4253  ;;  %v3980_v39 = vpack.c.bf16 %v2023_v17, %v2023_v17  ;;  %v2025_v11 = vmul.f32 %v4252_v15, %v1977_v44 }
 0x3dd   : > { %v4256_v8 = vpop.eup %4255  ;;  %v3981_v18 = vpack.c.bf16 %v2024_v43, %v2024_v43  ;;  %v2026_v16 = vmul.f32 %v4254_v28, %v5175_v14 }
 0x3de   : > { %v4258_v6 = vpop.eup %4257  ;;  %v2056_v12 = vshrl.u32 %v3980_v39, 16  ;;  %v3982_v47 = vpack.c.bf16 %v2025_v11, %v2025_v11  ;;  %v2059_v9 = vshll.u32 %v3980_v39, 16  ;;  %v2027_v60 = vmul.f32 %v4256_v8, %v5177_v10 }
 0x3df   : > { %v2064_v41 = vshrl.u32 %v3981_v18, 16  ;;  %v3983_v36 = vpack.c.bf16 %v2026_v16, %v2026_v16  ;;  %v2028_v1 = vmul.f32 %v4258_v6, %v5179_v13  ;;  %v4260_v55 = vpop.eup %4259  ;;  %v2067_v14 = vshll.u32 %v3981_v18, 16 }
 0x3e0   : > { %v2058_v26 = vrot.slane %v2056_v12, 7  ;;  %v2072_v33 = vshrl.u32 %v3982_v47, 16  ;;  %v4262_v63 = vpop.eup %4261  ;;  %v3984_v29 = vpack.c.bf16 %v2027_v60, %v2027_v60  ;;  %v2013_v48 = vadd.f32 1.0, %v4260_v55 }
 0x3e1   : > { %v2066_v44 = vrot.slane %v2064_v41, 7  ;;  %v2080_v20 = vshrl.u32 %v3983_v36, 16  ;;  %v3985_v58 = vpack.c.bf16 %v2028_v1, %v2028_v1  ;;  %v2014_v30 = vadd.f32 1.0, %v4262_v63 }
 0x3e2   : > { %v2062_v22 = vrot.slane %v2058_v26, 4  ;;  %v2061_v23 = vor.u32 %v2059_v9, %v2058_v26  ;;  %v2074_v5 = vrot.slane %v2072_v33, 7  ;;  %4263 = vrcp.f32 %v2013_v48 }
 0x3e3   : > { %v2070_v46 = vrot.slane %v2066_v44, 4  ;;  %v2069_v35 = vor.u32 %v2067_v14, %v2066_v44  ;;  %v2082_v10 = vrot.slane %v2080_v20, 7  ;;  %v2075_v13 = vshll.u32 %v3982_v47, 16 }
 0x3e4   : > { %2121 = vrot.lane.b32.xlu1 %v2062_v22, %s4321_s19  ;;  %2119 = vrot.lane.b32.xlu0 %v2061_v23, %s4321_s19  ;;  %v2083_v45 = vshll.u32 %v3983_v36, 16  ;;  %4265 = vrcp.f32 %v2014_v30  ;;  %v2088_v19 = vshrl.u32 %v3984_v29, 16  ;;  %v2096_v57 = vshrl.u32 %v3985_v58, 16  ;;  %v5213_v22 = vpop.f32.mrb[16].mxu0 }
 0x3e5   : > { %v2077_v59 = vor.u32 %v2075_v13, %v2074_v5  ;;  %v2078_v24 = vrot.slane %v2074_v5, 4  ;;  %v2086_v7 = vrot.slane %v2082_v10, 4  ;;  %v2091_v17 = vshll.u32 %v3984_v29, 16  ;;  %v5215_v23 = vpop.f32.mrb[17].mxu0 }
 0x3e6   : > { %v2085_v62 = vor.u32 %v2083_v45, %v2082_v10  ;;  %v2090_v3 = vrot.slane %v2088_v19, 7  ;;  %v2098_v49 = vrot.slane %v2096_v57, 7  ;;  %v2099_v15 = vshll.u32 %v3985_v58, 16  ;;  %v5217_v44 = vpop.f32.mrb[18].mxu0  ;;  %v2220_v58 = vld [vmem:[#allocation3] sm:$0xf] }
 0x3e7   : > { %v5219_v20 = vpop.f32.mrb[19].mxu0  ;;  %v2237_v48 = vshrl.u32 %v2220_v58, 16  ;;  %v2175_v45 = vld [vmem:[#allocation3 + $0xc] sm:$0x1] }
 0x3e8   : > { %2125 = vrot.lane.b32.xlu0 %v2070_v46, %s4321_s19  ;;  %2123 = vrot.lane.b32.xlu1 %v2069_v35, %s4321_s19  ;;  %v2093_v39 = vor.u32 %v2091_v17, %v2090_v3  ;;  %v2101_v11 = vor.u32 %v2099_v15, %v2098_v49  ;;  %v2094_v12 = vrot.slane %v2090_v3, 4  ;;  %v2102_v47 = vrot.slane %v2098_v49, 4  ;;  %v5221_v63 = vpop.f32.mrb[20].mxu0  ;;  %v5229_v35 = vld [vmem:[#allocation3 + $0x48] sm:$0xf] }
 0x3e9   : > { %v5223_v14 = vpop.f32.mrb[21].mxu0  ;;  %v2240_v46 = vshll.u32 %v2220_v58, 16  ;;  %v2704_v10 = vshrl.u32 %v5229_v35, 16  ;;  %v2707_v30 = vshll.u32 %v5229_v35, 16  ;;  %v2239_v19 = vrot.slane %v2237_v48, 4 }
 0x3ea   : > { %v5225_v5 = vpop.f32.mrb[22].mxu0 }
 0x3eb   : > { %v5227_v29 = vpop.f32.mrb[23].mxu0  ;;  %v2242_v57 = vrot.slane %v2240_v46, 5  ;;  %v2706_v3 = vrot.slane %v2704_v10, 4  ;;  %v2709_v49 = vrot.slane %v2707_v30, 5  ;;  %v2187_v30 = vld [vmem:[#allocation3 + $0x1c] sm:$0x1] }
 0x3ec   : > { %2127 = vrot.lane.b32.xlu1 %v2077_v59, %s4321_s19  ;;  %2131 = vrot.lane.b32.xlu0 %v2085_v62, %s4321_s19  ;;  %v4264_v43 = vpop.eup %4263  ;;  %v2170_v62 = vld [vmem:[#allocation3 + $0x8] sm:$0xf] }
 0x3ed   : > { %v2029_v8 = vmul.f32 %v4264_v43, %v5186_v27  ;;  %v2178_v43 = vld [vmem:[#allocation3 + $0x10] sm:$0xf] }
 0x3ee   : > { %v4266_v28 = vpop.eup %4265 }
 0x3ef   : > { %v2030_v18 = vmul.f32 %v4266_v28, %v5188_v56  ;;  %v3986_v16 = vpack.c.bf16 %v2029_v8, %v2029_v8  ;;  %v2604_v28 = vld [vmem:[#allocation3 + $0x4c] sm:$0x1]  ;;  %v2348_v8 = vld [vmem:[#allocation3] sm:$0xe] }
 0x3f0   : > { %2129 = vrot.lane.b32.xlu1 %v2078_v24, %s4321_s19  ;;  %2133 = vrot.lane.b32.xlu0 %v2086_v7, %s4321_s19  ;;  %v2771_v48 = vrot.slane %v2604_v28, 5 }
 0x3f1   : > { %v3987_v6 = vpack.c.bf16 %v2030_v18, %v2030_v18  ;;  %v2104_v41 = vshrl.u32 %v3986_v16, 16  ;;  %v2107_v9 = vshll.u32 %v3986_v16, 16  ;;  %v2243_v18 = vor.u32 %v2242_v57, %v2239_v19  ;;  %v4149_v57 = vld [vmem:[%s5952_s5 + $0x40] sm:$0xff]  }
 0x3f2   : > { %3996 = vmatprep.subr.bf16.mxu1 %v4149_v57  ;;  %v4152_v57 = vld [vmem:[%s5952_s5 + $0x8] sm:$0xff]  }
 0x3f3   : > { %v2112_v36 = vshrl.u32 %v3987_v6, 16  ;;  %v2106_v26 = vrot.slane %v2104_v41, 7  ;;  %v2115_v27 = vshll.u32 %v3987_v6, 16  ;;  %v2713_v41 = vshll.u32 %v2604_v28, 16 }
 0x3f4   : > { %2135 = vrot.lane.b32.xlu1 %v2093_v39, %s4321_s19  ;;  %2139 = vrot.lane.b32.xlu0 %v2101_v11, %s4321_s19  ;;  %v2181_v39 = vld [vmem:[#allocation3 + $0x14] sm:$0x1]  ;;  %v2228_v11 = vld [vmem:[#allocation3 + $0x4] sm:$0x1] }
 0x3f5   : > { %v2114_v33 = vrot.slane %v2112_v36, 7  ;;  %v2109_v60 = vor.u32 %v2107_v9, %v2106_v26  ;;  %v2110_v1 = vrot.slane %v2106_v26, 4  ;;  %v2246_v16 = vshll.u32 %v2228_v11, 16  ;;  %v2724_v36 = vld [vmem:[#allocation3 + $0x48] sm:$0xe] }
 0x3f6   : > { %v3892_v58 = vrot.slane %v2724_v36, 9  ;;  %v5258_v19 = vrot.slane %v2713_v41, 5 }
 0x3f7   : > { %v2117_v56 = vor.u32 %v2115_v27, %v2114_v33  ;;  %v2118_v55 = vrot.slane %v2114_v33, 4  ;;  %v3869_v33 = vrot.slane %v2348_v8, 9  ;;  %v2374_v27 = vrot.slane %v2228_v11, 5  ;;  %v2202_v8 = vld [vmem:[#allocation3 + $0x30] sm:$0xf] }
 0x3f8   : > { %2137 = vrot.lane.b32.xlu1 %v2094_v12, %s4321_s19  ;;  %2141 = vrot.lane.b32.xlu0 %v2102_v47, %s4321_s19  ;;  %v2710_v47 = vor.u32 %v2709_v49, %v2706_v3 }
 0x3f9   : > { %v5277_v28 = vsel %vm4544_vm8, %v3869_v33, %v2374_v27  ;;  %v2196_v27 = vld [vmem:[#allocation3 + $0x28] sm:$0xf] }
 0x3fc   : > { %2143 = vrot.lane.b32.xlu1 %v2109_v60, %s4321_s19  ;;  %2147 = vrot.lane.b32.xlu0 %v2117_v56, %s4321_s19  ;;  %v2184_v60 = vld [vmem:[#allocation3 + $0x18] sm:$0xf]  ;;  %v2190_v56 = vld [vmem:[#allocation3 + $0x20] sm:$0xf] }
 0x400   : > { %2145 = vrot.lane.b32.xlu1 %v2110_v1, %s4321_s19  ;;  %v5252_v1 = vrot.slane %v2243_v18, 4 }
 0x404   : > { %2149 = vrot.lane.b32.xlu1 %v2118_v55, %s4321_s19  ;;  %v5254_v55 = vrot.slane %v2246_v16, 5 }
 0x456   : > { %v2122_v24 = vpop.permute.xlu1 %2121  ;;  %v2120_v7 = vpop.permute.xlu0 %2119 }
 0x457   : > { %v2176_v17 = vsel %vm5234_vm13, %v2122_v24, %v2175_v45  ;;  %v2171_v15 = vsel %vm5240_vm14, %v2120_v7, %v2170_v62  ;;  %v2193_v45 = vld [vmem:[#allocation3 + $0x24] sm:$0x1]  ;;  %v5256_v62 = vrot.slane %v2710_v47, 4  ;;  %v4150_v24 = vld [vmem:[%s5952_s5] sm:$0xff]   ;;  %v4151_v7 = vld [vmem:[%s5952_s5 + $0x48] sm:$0xff]  }
 0x458   : > { %2177 = vst [vmem:[#allocation3 + $0xc] sm:$0x1] %v2176_v17  ;;  %2172 = vst [vmem:[#allocation3 + $0x8] sm:$0xf] %v2171_v15  ;;  %3997 = vmatpush3.bf16.msra.mxu1 %v4150_v24 }
 0x459   : > { %3998 = vmatprep.subr.bf16.mxu1 %v4151_v7  ;;  %v6000_v61 = vsel %vm4614_vm1, %v5256_v62, %v5258_v19 }
 0x45a   : > { %v2124_v6 = vpop.permute.xlu1 %2123  ;;  %v2126_v12 = vpop.permute.xlu0 %2125 }
 0x45b   : > { %v2179_v26 = vsel %vm5240_vm14, %v2124_v6, %v2178_v43  ;;  %v2182_v9 = vsel %vm5234_vm13, %v2126_v12, %v2181_v39 }
 0x45c   : > { %2180 = vst [vmem:[#allocation3 + $0x10] sm:$0xf] %v2179_v26  ;;  %2183 = vst [vmem:[#allocation3 + $0x14] sm:$0x1] %v2182_v9  ;;  %v5292_v26 = vsel %vm4544_vm8, %v3892_v58, %v2771_v48  ;;  %3999 = vmatpush3.bf16.msra.mxu1 %v4152_v57  ;;  %v2199_v57 = vld [vmem:[#allocation3 + $0x2c] sm:$0x1] }
 0x45e   : > { %v2128_v46 = vpop.permute.xlu1 %2127  ;;  %v2132_v10 = vpop.permute.xlu0 %2131 }
 0x45f   : > { %v2185_v3 = vsel %vm5240_vm14, %v2128_v46, %v2184_v60  ;;  %v2191_v49 = vsel %vm5240_vm14, %v2132_v10, %v2190_v56  ;;  %v2404_v17 = vld [vmem:[#allocation3 + $0x8] sm:$0xf]  ;;  %v5273_v15 = vld [vmem:[#allocation3 + $0xc] sm:$0x1] }
 0x460   : > { %v2532_v43 = vld [vmem:[#allocation3 + $0x8] sm:$0xe]  ;;  %2186 = vst [vmem:[#allocation3 + $0x18] sm:$0xf] %v2185_v3  ;;  %2192 = vst [vmem:[#allocation3 + $0x20] sm:$0xf] %v2191_v49 }
 0x461   : > { %v2421_v39 = vshrl.u32 %v2404_v17, 16  ;;  %v2424_v11 = vshll.u32 %v2404_v17, 16  ;;  %v3877_v18 = vrot.slane %v2532_v43, 9  ;;  %v5280_v16 = vld [vmem:[#allocation3 + $0xc] sm:$0x1]  ;;  %v2558_v6 = vrot.slane %v5273_v15, 5 }
 0x462   : > { %v2349_v12 = vld [vmem:[#allocation3 + $0x8] sm:$0xe]  ;;  %v2378_v47 = vrot.slane %v5280_v16, 5  ;;  %v2130_v9 = vpop.permute.xlu1 %2129  ;;  %v2134_v33 = vpop.permute.xlu0 %2133  ;;  %v4153_v3 = vld [vmem:[%s5952_s5 + $0x50] sm:$0xff]  }
 0x463   : > { %v5284_v41 = vld [vmem:[#allocation3 + $0x8] sm:$0xf]  ;;  %v2423_v60 = vrot.slane %v2421_v39, 4  ;;  %v2426_v56 = vrot.slane %v2424_v11, 5  ;;  %v3870_v46 = vrot.slane %v2349_v12, 9  ;;  %v2188_v58 = vsel %vm5234_vm13, %v2130_v9, %v2187_v30  ;;  %4000 = vmatprep.subr.bf16.mxu1 %v4153_v3 }
 0x464   : > { %5994 = vst [vmem:[#allocation22_spill] sm:$0xff] %v5284_v41  ;;  %v2251_v10 = vshrl.u32 %v5284_v41, 16  ;;  %v2194_v48 = vsel %vm5234_vm13, %v2134_v33, %v2193_v45  ;;  %v2405_v24 = vld [vmem:[#allocation3 + $0x10] sm:$0xf]  ;;  %v5305_v49 = vld [vmem:[#allocation3 + $0x14] sm:$0x1]  ;;  %v2559_v7 = vsel %vm4544_vm8, %v3877_v18, %v2558_v6 }
 0x465   : > { %v2533_v43 = vld [vmem:[#allocation3 + $0x10] sm:$0xe]  ;;  %2189 = vst [vmem:[#allocation3 + $0x1c] sm:$0x1] %v2188_v58  ;;  %2195 = vst [vmem:[#allocation3 + $0x24] sm:$0x1] %v2194_v48  ;;  %v3905_v30 = vcombine.low %v2404_v17, %v2405_v24  ;;  %v2427_v9 = vor.u32 %v2426_v56, %v2423_v60  ;;  %v2379_v18 = vsel %vm4544_vm8, %v3870_v46, %v2378_v47 }
 0x466   : > { %v2435_v11 = vshrl.u32 %v2405_v24, 16  ;;  %v2438_v12 = vshll.u32 %v2405_v24, 16  ;;  %v5313_v45 = vld [vmem:[#allocation3 + $0x10] sm:$0xf]  ;;  %v3878_v33 = vrot.slane %v2533_v43, 9  ;;  %v2562_v36 = vrot.slane %v5305_v49, 5  ;;  %v2136_v58 = vpop.permute.xlu1 %2135  ;;  %v2140_v56 = vpop.permute.xlu0 %2139 }
 0x467   : > { %v4154_v6 = vld [vmem:[%s5952_s5 + $0x10] sm:$0xff]   ;;  %2853 = vrot.lane.b32.xlu1 %v3905_v30, %s4316_s30  ;;  %v5323_v60 = vrot.slane %v2427_v9, 4  ;;  %v3901_v24 = vcombine.low %v5277_v28, %v2379_v18  ;;  %v2197_v43 = vsel %vm5240_vm14, %v2136_v58, %v2196_v27  ;;  %v2203_v47 = vsel %vm5240_vm14, %v2140_v56, %v2202_v8  ;;  %v2205_v39 = vld [vmem:[#allocation3 + $0x34] sm:$0x1]  ;;  %v2534_v18 = vld [vmem:[#allocation3 + $0x18] sm:$0xe] }
 0x468   : > { %v2437_v48 = vrot.slane %v2435_v11, 4  ;;  %v2440_v17 = vrot.slane %v2438_v12, 5  ;;  %v2563_v46 = vsel %vm4544_vm8, %v3878_v33, %v2562_v36  ;;  %v2590_v11 = vld [vmem:[#allocation3 + $0x18] sm:$0xf]  ;;  %v2606_v12 = vshrl.u32 %v5313_v45, 16  ;;  %4001 = vmatpush3.bf16.msra.mxu1 %v4154_v6 }
 0x469   : > { %2198 = vst [vmem:[#allocation3 + $0x28] sm:$0xf] %v2197_v43  ;;  %2204 = vst [vmem:[#allocation3 + $0x30] sm:$0xf] %v2203_v47  ;;  %v3913_v9 = vcombine.low %v2559_v7, %v2563_v46  ;;  %v2609_v28 = vshll.u32 %v5313_v45, 16  ;;  %v2620_v3 = vshrl.u32 %v2590_v11, 16  ;;  %v3917_v8 = vcombine.low %v5313_v45, %v2590_v11 }
 0x46a   : > { %v2441_v30 = vor.u32 %v2440_v17, %v2437_v48  ;;  %v5334_v27 = vrot.slane %v2606_v12, 4  ;;  %v2623_v58 = vshll.u32 %v2590_v11, 16  ;;  %v2253_v56 = vrot.slane %v2251_v10, 4  ;;  %v2535_v36 = vld [vmem:[#allocation3 + $0x20] sm:$0xe]  ;;  %v2138_v48 = vpop.permute.xlu1 %2137  ;;  %v2142_v7 = vpop.permute.xlu0 %2141 }
 0x46b   : > { %2921 = vrot.lane.b32.xlu0 %v3913_v9, %s4317_s10  ;;  %2825 = vrot.lane.b32.xlu1 %v3901_v24, %s4321_s19  ;;  %v5341_v17 = vrot.slane %v2609_v28, 5  ;;  %v5343_v43 = vrot.slane %v2620_v3, 4  ;;  %v2208_v47 = vld [vmem:[#allocation3 + $0x38] sm:$0xf]  ;;  %v2254_v46 = vshll.u32 %v5284_v41, 16  ;;  %v2200_v10 = vsel %vm5234_vm13, %v2138_v48, %v2199_v57 }
 0x46c   : > { %v5337_v33 = vrot.slane %v2441_v30, 4  ;;  %v5346_v12 = vld [vmem:[#allocation3 + $0x18] sm:$0xf]  ;;  %v2206_v45 = vsel %vm5234_vm13, %v2142_v7, %v2205_v39  ;;  %v5352_v6 = vrot.slane %v2623_v58, 5  ;;  %v2260_v24 = vshll.u32 %v5280_v16, 16 }
 0x46d   : > { %v5355_v11 = vld [vmem:[#allocation3 + $0x1c] sm:$0x1]  ;;  %v5357_v30 = vld [vmem:[#allocation3 + $0x24] sm:$0x1]  ;;  %2201 = vst [vmem:[#allocation3 + $0x2c] sm:$0x1] %v2200_v10 }
 0x46e   : > { %2207 = vst [vmem:[#allocation3 + $0x34] sm:$0x1] %v2206_v45  ;;  %v2256_v9 = vrot.slane %v2254_v46, 5  ;;  %v3879_v3 = vrot.slane %v2534_v18, 9  ;;  %v2566_v21 = vrot.slane %v5355_v11, 5  ;;  %v2262_v48 = vrot.slane %v2260_v24, 5  ;;  %v2144_v31 = vpop.permute.xlu1 %2143 }
 0x46f   : > { %v5361_v57 = vld [vmem:[#allocation3 + $0x20] sm:$0xf]  ;;  %v3880_v58 = vrot.slane %v2535_v36, 9  ;;  %v2570_v7 = vrot.slane %v5357_v30, 5  ;;  %2949 = vrot.lane.b32.xlu0 %v3917_v8, %s4321_s19  ;;  %v2449_v18 = vshrl.u32 %v5346_v12, 16  ;;  %v2452_v45 = vshll.u32 %v5346_v12, 16  ;;  %v2148_v36 = vpop.permute.xlu0 %2147 }
 0x470   : > { %v2214_v39 = vld [vmem:[#allocation3 + $0x40] sm:$0xf]  ;;  %v2257_v10 = vor.u32 %v2256_v9, %v2253_v56  ;;  %v2567_v46 = vsel %vm4544_vm8, %v3879_v3, %v2566_v21  ;;  %v2209_v24 = vsel %vm5240_vm14, %v2144_v31, %v2208_v47  ;;  %v2463_v56 = vshrl.u32 %v5361_v57, 16  ;;  %v2592_v9 = vld [vmem:[#allocation3 + $0x28] sm:$0xf] }
 0x471   : > { %v2591_v28 = vld [vmem:[#allocation3 + $0x20] sm:$0xf]  ;;  %v2571_v0 = vsel %vm4544_vm8, %v3880_v58, %v2570_v7  ;;  %v4155_v21 = vld [vmem:[%s5952_s5 + $0x58] sm:$0xff]   ;;  %2210 = vst [vmem:[#allocation3 + $0x38] sm:$0xf] %v2209_v24  ;;  %v2215_v16 = vsel %vm5240_vm14, %v2148_v36, %v2214_v39  ;;  %v2451_v54 = vrot.slane %v2449_v18, 4  ;;  %v5996_v13 = vcombine.low %v5346_v12, %v5361_v57 }
 0x472   : > { %v2258_v3 = vrot.slane %v2257_v10, 4  ;;  %v3914_v31 = vcombine.low %v2567_v46, %v2571_v0  ;;  %v2211_v47 = vld [vmem:[#allocation3 + $0x3c] sm:$0x1]  ;;  %2216 = vst [vmem:[#allocation3 + $0x40] sm:$0xf] %v2215_v16  ;;  %v2454_v58 = vrot.slane %v2452_v45, 5  ;;  %4002 = vmatprep.subr.bf16.mxu1 %v4155_v21  ;;  %v2146_v10 = vpop.permute.xlu1 %2145  ;;  %v5995_v45 = vsel %vm4614_vm1, %v5252_v1, %v5254_v55 }
 0x473   : > { %v2465_v7 = vrot.slane %v2463_v56, 4  ;;  %v2466_v8 = vshll.u32 %v5361_v57, 16  ;;  %v2634_v51 = vshrl.u32 %v2591_v28, 16  ;;  %v5383_v25 = vld [vmem:[#allocation3 + $0x14] sm:$0x1]  ;;  %v2637_v59 = vshll.u32 %v2591_v28, 16 }
 0x474   : > { %v2263_v52 = vsel %vm4614_vm1, %v2258_v3, %v2262_v48  ;;  %2923 = vrot.lane.b32.xlu0 %v3914_v31, %s4317_s10  ;;  %v2648_v39 = vshrl.u32 %v2592_v9, 16  ;;  %v2651_v0 = vshll.u32 %v2592_v9, 16  ;;  %v2217_v46 = vld [vmem:[#allocation3 + $0x44] sm:$0x1]  ;;  %v2350_v18 = vld [vmem:[#allocation3 + $0x10] sm:$0xe]  ;;  %v2212_v48 = vsel %vm5234_vm13, %v2146_v10, %v2211_v47 }
 0x475   : > { %v4156_v16 = vld [vmem:[%s5952_s5 + $0x18] sm:$0xff]   ;;  %v3897_v24 = vcombine.low %v5995_v45, %v2263_v52  ;;  %v2455_v36 = vor.u32 %v2454_v58, %v2451_v54  ;;  %v2468_v56 = vrot.slane %v2466_v8, 5  ;;  %v5398_v21 = vld [vmem:[#allocation3 + $0x1c] sm:$0x1]  ;;  %v2351_v3 = vld [vmem:[#allocation3 + $0x18] sm:$0xe]  ;;  %v3918_v8 = vcombine.low %v2591_v28, %v2592_v9 }
 0x476   : > { %v4157_v31 = vld [vmem:[%s5952_s5 + $0x60] sm:$0xff]   ;;  %2213 = vst [vmem:[#allocation3 + $0x3c] sm:$0x1] %v2212_v48  ;;  %v5403_v40 = vrot.slane %v2634_v51, 4  ;;  %v5405_v41 = vrot.slane %v2637_v59, 5  ;;  %v5407_v2 = vrot.slane %v2648_v39, 4  ;;  %4003 = vmatpush3.bf16.msra.mxu1 %v4156_v16  ;;  %v2150_v10 = vpop.permute.xlu1 %2149 }
 0x477   : > { %v5409_v52 = vrot.slane %v2651_v0, 5  ;;  %v2597_v1 = vld [vmem:[#allocation3 + $0x14] sm:$0x1]  ;;  %2805 = vrot.lane.b32.xlu1 %v3897_v24, %s4317_s10  ;;  %v5412_v54 = vrot.slane %v2455_v36, 4  ;;  %v2469_v55 = vor.u32 %v2468_v56, %v2465_v7  ;;  %v3871_v47 = vrot.slane %v2350_v18, 9  ;;  %4004 = vmatprep.subr.bf16.mxu1 %v4157_v31 }
 0x478   : > { %v2598_v58 = vld [vmem:[#allocation3 + $0x1c] sm:$0x1]  ;;  %v2382_v51 = vrot.slane %v5383_v25, 5  ;;  %v3872_v59 = vrot.slane %v2351_v3, 9  ;;  %v2386_v39 = vrot.slane %v5398_v21, 5  ;;  %v2612_v0 = vor.u32 %v5341_v17, %v5334_v27  ;;  %v4158_v16 = vld [vmem:[%s5952_s5 + $0x20] sm:$0xff]   ;;  %2951 = vrot.lane.b32.xlu0 %v3918_v8, %s4321_s19 }
 0x479   : > { %v2717_v45 = vld [vmem:[#allocation3 + $0x10] sm:$0xe]  ;;  %v5421_v24 = vrot.slane %v2469_v55, 4  ;;  %v2218_v28 = vsel %vm5234_vm13, %v2150_v10, %v2217_v46  ;;  %v2615_v9 = vshll.u32 %v2597_v1, 16  ;;  %v2626_v7 = vor.u32 %v5352_v6, %v5343_v43  ;;  %v2718_v18 = vld [vmem:[#allocation3 + $0x18] sm:$0xe] }
 0x47a   : > { %2219 = vst [vmem:[#allocation3 + $0x44] sm:$0x1] %v2218_v28  ;;  %v2383_v27 = vsel %vm4544_vm8, %v3871_v47, %v2382_v51  ;;  %v2387_v17 = vsel %vm4544_vm8, %v3872_v59, %v2386_v39  ;;  %v2613_v48 = vrot.slane %v2612_v0, 4  ;;  %v2629_v36 = vshll.u32 %v2598_v58, 16  ;;  %v5432_v56 = vld [vmem:[#allocation3 + $0x10] sm:$0xf]  ;;  %4005 = vmatpush3.bf16.msra.mxu1 %v4158_v16 }
 0x47b   : > { %2855 = vrot.lane.b32.xlu1 %v5996_v13, %s4316_s30  ;;  %v3902_v46 = vcombine.low %v2383_v27, %v2387_v17  ;;  %v2617_v43 = vrot.slane %v2615_v9, 5  ;;  %v2627_v6 = vrot.slane %v2626_v7, 4  ;;  %v3885_v3 = vrot.slane %v2717_v45, 9  ;;  %v5438_v31 = vld [vmem:[#allocation3 + $0x18] sm:$0xf] }
 0x47c   : > { %v4159_v55 = vld [vmem:[%s5952_s5 + $0x68] sm:$0xff]   ;;  %v2631_v8 = vrot.slane %v2629_v36, 5  ;;  %v2743_v47 = vrot.slane %v2597_v1, 5  ;;  %v3886_v10 = vrot.slane %v2718_v18, 9  ;;  %v2747_v51 = vrot.slane %v2598_v58, 5 }
 0x47d   : > { %v2618_v59 = vsel %vm4614_vm1, %v2613_v48, %v2617_v43  ;;  %v2265_v12 = vshrl.u32 %v5432_v56, 16  ;;  %v2268_v57 = vshll.u32 %v5432_v56, 16  ;;  %v2274_v39 = vshll.u32 %v5383_v25, 16  ;;  %4006 = vmatprep.subr.bf16.mxu1 %v4159_v55  ;;  %v4160_v0 = vld [vmem:[%s5952_s5 + $0x28] sm:$0xff]   ;;  %v5458_v28 = vld [vmem:[#allocation3 + $0x2c] sm:$0x1] }
 0x47e   : > { %v2632_v45 = vsel %vm4614_vm1, %v2627_v6, %v2631_v8  ;;  %v2744_v1 = vsel %vm4544_vm8, %v3885_v3, %v2743_v47  ;;  %v2748_v58 = vsel %vm4544_vm8, %v3886_v10, %v2747_v51  ;;  %v2279_v16 = vshrl.u32 %v5438_v31, 16  ;;  %v2536_v9 = vld [vmem:[#allocation3 + $0x28] sm:$0xe]  ;;  %v5461_v17 = vld [vmem:[#allocation3 + $0x34] sm:$0x1]  ;;  %4007 = vmatpush3.bf16.msra.mxu1 %v4160_v0  ;;  %v4161_v51 = vld [vmem:[%s5952_s5 + $0x70] sm:$0xff]  }
 0x47f   : > { %2827 = vrot.lane.b32.xlu1 %v3902_v46, %s4321_s19  ;;  %v3921_v25 = vcombine.low %v2618_v59, %v2632_v45  ;;  %v3925_v7 = vcombine.low %v2744_v1, %v2748_v58  ;;  %v2267_v18 = vrot.slane %v2265_v12, 4  ;;  %v2270_v27 = vrot.slane %v2268_v57, 5  ;;  %v2537_v48 = vld [vmem:[#allocation3 + $0x30] sm:$0xe]  ;;  %v5465_v3 = vld [vmem:[#allocation3 + $0x28] sm:$0xf]  ;;  %4008 = vmatprep.subr.bf16.mxu1 %v4161_v51 }
 0x480   : > { %v2276_v36 = vrot.slane %v2274_v39, 5  ;;  %v2281_v13 = vrot.slane %v2279_v16, 4  ;;  %v2282_v43 = vshll.u32 %v5438_v31, 16  ;;  %v2288_v6 = vshll.u32 %v5398_v21, 16  ;;  %v5471_v10 = vld [vmem:[#allocation3 + $0x30] sm:$0xf] }
 0x481   : > { %3029 = vst.msk [vmem:[#allocation5 + $0x10] sm:$0xff] %vm1501_vm2, %v3925_v7  ;;  %2969 = vrot.lane.b32.xlu0 %v3921_v25, %s4316_s30  ;;  %v2271_v46 = vor.u32 %v2270_v27, %v2267_v18  ;;  %v3881_v8 = vrot.slane %v2536_v9, 9  ;;  %v2574_v47 = vrot.slane %v5458_v28, 5  ;;  %v3882_v12 = vrot.slane %v2537_v48, 9  ;;  %v2593_v58 = vld [vmem:[#allocation3 + $0x30] sm:$0xf] }
 0x482   : > { %v2284_v59 = vrot.slane %v2282_v43, 5  ;;  %v2290_v21 = vrot.slane %v2288_v6, 5  ;;  %v2578_v57 = vrot.slane %v5461_v17, 5  ;;  %v2477_v1 = vshrl.u32 %v5465_v3, 16  ;;  %v4162_v16 = vld [vmem:[%s5952_s5 + $0x30] sm:$0xff]   ;;  %v4163_v48 = vld [vmem:[%s5952_s5 + $0x78] sm:$0xff]  }
 0x483   : > { %v2272_v39 = vrot.slane %v2271_v46, 4  ;;  %v2575_v0 = vsel %vm4544_vm8, %v3881_v8, %v2574_v47  ;;  %v2480_v7 = vshll.u32 %v5465_v3, 16  ;;  %v3907_v18 = vcombine.low %v5465_v3, %v5471_v10  ;;  %v2594_v27 = vld [vmem:[#allocation3 + $0x38] sm:$0xf]  ;;  %4009 = vmatpush3.bf16.msra.mxu1 %v4162_v16  ;;  %v5498_v3 = vld [vmem:[#allocation3 + $0x2c] sm:$0x1] }
 0x484   : > { %v2285_v9 = vor.u32 %v2284_v59, %v2281_v13  ;;  %v2579_v25 = vsel %vm4544_vm8, %v3882_v12, %v2578_v57  ;;  %v2479_v46 = vrot.slane %v2477_v1, 4  ;;  %v2491_v13 = vshrl.u32 %v5471_v10, 16  ;;  %v5496_v12 = vld [vmem:[#allocation3 + $0x24] sm:$0x1]  ;;  %4010 = vmatprep.subr.bf16.mxu1 %v4163_v48  ;;  %v5536_v42 = vld [vmem:[#allocation3 + $0x3c] sm:$0x1] }
 0x485   : > { %v2277_v43 = vsel %vm4614_vm1, %v2272_v39, %v2276_v36  ;;  %v3915_v6 = vcombine.low %v2575_v0, %v2579_v25  ;;  %v2482_v47 = vrot.slane %v2480_v7, 5  ;;  %v2494_v51 = vshll.u32 %v5471_v10, 16  ;;  %v2352_v0 = vld [vmem:[#allocation3 + $0x20] sm:$0xe]  ;;  %v2353_v10 = vld [vmem:[#allocation3 + $0x28] sm:$0xe] }
 0x486   : > { %v2286_v8 = vrot.slane %v2285_v9, 4  ;;  %v2662_v59 = vshrl.u32 %v2593_v58, 16  ;;  %v2493_v57 = vrot.slane %v2491_v13, 4  ;;  %v2665_v45 = vshll.u32 %v2593_v58, 16  ;;  %v2599_v7 = vld [vmem:[#allocation3 + $0x24] sm:$0x1] }
 0x487   : > { %2925 = vrot.lane.b32.xlu0 %v3915_v6, %s4317_s10  ;;  %v2676_v36 = vshrl.u32 %v2594_v27, 16  ;;  %v2679_v39 = vshll.u32 %v2594_v27, 16  ;;  %v2483_v16 = vor.u32 %v2482_v47, %v2479_v46  ;;  %v2496_v9 = vrot.slane %v2494_v51, 5  ;;  %v2600_v13 = vld [vmem:[#allocation3 + $0x2c] sm:$0x1]  ;;  %4011 = vmatpush3.bf16.msra.mxu1 %v4164_v32 }
 0x488   : > { %v2291_v1 = vsel %vm4614_vm1, %v2286_v8, %v2290_v21  ;;  %v5503_v25 = vrot.slane %v2662_v59, 4  ;;  %v5505_v53 = vrot.slane %v2665_v45, 5  ;;  %v3919_v46 = vcombine.low %v2593_v58, %v2594_v27  ;;  %v2719_v47 = vld [vmem:[#allocation3 + $0x20] sm:$0xe] }
 0x489   : > { %v3898_v55 = vcombine.low %v2277_v43, %v2291_v1  ;;  %v5507_v48 = vrot.slane %v2676_v36, 4  ;;  %v5509_v6 = vrot.slane %v2679_v39, 5  ;;  %v5514_v34 = vrot.slane %v2483_v16, 4  ;;  %v2720_v36 = vld [vmem:[#allocation3 + $0x28] sm:$0xe] }
 0x48a   : > { %v2497_v21 = vor.u32 %v2496_v9, %v2493_v57  ;;  %v3873_v8 = vrot.slane %v2352_v0, 9  ;;  %v2390_v45 = vrot.slane %v5496_v12, 5  ;;  %v3874_v43 = vrot.slane %v2353_v10, 9 }
 0x48b   : > { %2807 = vrot.lane.b32.xlu1 %v3898_v55, %s4317_s10  ;;  %v2394_v51 = vrot.slane %v5498_v3, 5  ;;  %v2640_v59 = vor.u32 %v5405_v41, %v5403_v40  ;;  %2953 = vrot.lane.b32.xlu0 %v3919_v46, %s4321_s19  ;;  %v2643_v57 = vshll.u32 %v2599_v7, 16  ;;  %v2654_v58 = vor.u32 %v5409_v52, %v5407_v2  ;;  %v5526_v55 = vld [vmem:[#allocation3 + $0x20] sm:$0xf] }
 0x48c   : > { %v5521_v39 = vrot.slane %v2497_v21, 4  ;;  %v2657_v27 = vshll.u32 %v2600_v13, 16  ;;  %v2391_v0 = vsel %vm4544_vm8, %v3873_v8, %v2390_v45  ;;  %v3887_v41 = vrot.slane %v2719_v47, 9  ;;  %v5532_v21 = vld [vmem:[#allocation3 + $0x28] sm:$0xf] }
 0x48d   : > { %v2395_v1 = vsel %vm4544_vm8, %v3874_v43, %v2394_v51  ;;  %v2641_v40 = vrot.slane %v2640_v59, 4  ;;  %v2645_v16 = vrot.slane %v2643_v57, 5  ;;  %v2655_v9 = vrot.slane %v2654_v58, 4  ;;  %v5544_v51 = vld [vmem:[#allocation3 + $0x44] sm:$0x1] }
 0x48e   : > { %v3903_v32 = vcombine.low %v2391_v0, %v2395_v1  ;;  %v2659_v10 = vrot.slane %v2657_v27, 5  ;;  %v2751_v2 = vrot.slane %v2599_v7, 5  ;;  %v3888_v52 = vrot.slane %v2720_v36, 9  ;;  %v2539_v57 = vld [vmem:[#allocation3 + $0x40] sm:$0xe] }
 0x48f   : > { %2857 = vrot.lane.b32.xlu1 %v3907_v18, %s4316_s30  ;;  %v2755_v46 = vrot.slane %v2600_v13, 5  ;;  %v2293_v37 = vshrl.u32 %v5526_v55, 16  ;;  %v2646_v8 = vsel %vm4614_vm1, %v2641_v40, %v2645_v16  ;;  %v2296_v45 = vshll.u32 %v5526_v55, 16  ;;  %v2538_v18 = vld [vmem:[#allocation3 + $0x38] sm:$0xe] }
 0x490   : > { %v2660_v47 = vsel %vm4614_vm1, %v2655_v9, %v2659_v10  ;;  %v2302_v43 = vshll.u32 %v5496_v12, 16  ;;  %v2752_v7 = vsel %vm4544_vm8, %v3887_v41, %v2751_v2  ;;  %v5550_v58 = vld [vmem:[#allocation3 + $0x34] sm:$0x1]  ;;  %v2307_v40 = vshrl.u32 %v5532_v21, 16  ;;  %v5553_v12 = vld [vmem:[#allocation3 + $0x3c] sm:$0x1] }
 0x491   : > { %v2756_v13 = vsel %vm4544_vm8, %v3888_v52, %v2755_v46  ;;  %v3922_v59 = vcombine.low %v2646_v8, %v2660_v47  ;;  %v2295_v36 = vrot.slane %v2293_v37, 4  ;;  %v2298_v0 = vrot.slane %v2296_v45, 5  ;;  %v2354_v10 = vld [vmem:[#allocation3 + $0x30] sm:$0xe]  ;;  %v2355_v47 = vld [vmem:[#allocation3 + $0x38] sm:$0xe] }
 0x492   : > { %v3926_v27 = vcombine.low %v2752_v7, %v2756_v13  ;;  %v2304_v1 = vrot.slane %v2302_v43, 5  ;;  %v2310_v41 = vshll.u32 %v5532_v21, 16  ;;  %v2316_v16 = vshll.u32 %v5498_v3, 16 }
 0x493   : > { %2829 = vrot.lane.b32.xlu1 %v3903_v32, %s4321_s19  ;;  %2971 = vrot.lane.b32.xlu0 %v3922_v59, %s4316_s30  ;;  %v2299_v2 = vor.u32 %v2298_v0, %v2295_v36  ;;  %v2309_v52 = vrot.slane %v2307_v40, 4  ;;  %v3883_v46 = vrot.slane %v2538_v18, 9  ;;  %v2582_v8 = vrot.slane %v5536_v42, 5  ;;  %v5566_v32 = vld [vmem:[%s5952_s5 + $0x80] sm:$0xff]  }
 0x494   : > { %3030 = vst.msk [vmem:[#allocation5 + $0x28] sm:$0xff] %vm1501_vm2, %v3926_v27  ;;  %v2312_v45 = vrot.slane %v2310_v41, 5  ;;  %v2318_v3 = vrot.slane %v2316_v16, 5  ;;  %v3884_v43 = vrot.slane %v2539_v57, 9  ;;  %v2586_v7 = vrot.slane %v5544_v51, 5  ;;  %4047 = vmatprep.subr.bf16.mxu1 %v5566_v32 }
 0x495   : > { %v2300_v13 = vrot.slane %v2299_v2, 4  ;;  %v2583_v59 = vsel %vm4544_vm8, %v3883_v46, %v2582_v8  ;;  %v3875_v36 = vrot.slane %v2354_v10, 9  ;;  %v2398_v18 = vrot.slane %v5550_v58, 5  ;;  %v2601_v27 = vld [vmem:[#allocation3 + $0x34] sm:$0x1] }
 0x496   : > { %v2313_v0 = vor.u32 %v2312_v45, %v2309_v52  ;;  %v2587_v40 = vsel %vm4544_vm8, %v3884_v43, %v2586_v7  ;;  %v3876_v9 = vrot.slane %v2355_v47, 9  ;;  %v2402_v41 = vrot.slane %v5553_v12, 5  ;;  %v2602_v57 = vld [vmem:[#allocation3 + $0x3c] sm:$0x1]  ;;  %v2721_v16 = vld [vmem:[#allocation3 + $0x30] sm:$0xe] }
 0x497   : > { %v2305_v2 = vsel %vm4614_vm1, %v2300_v13, %v2304_v1  ;;  %v3916_v37 = vcombine.low %v2583_v59, %v2587_v40  ;;  %v2399_v10 = vsel %vm4544_vm8, %v3875_v36, %v2398_v18  ;;  %v2668_v46 = vor.u32 %v5505_v53, %v5503_v25  ;;  %v2722_v43 = vld [vmem:[#allocation3 + $0x38] sm:$0xe]  ;;  %v5587_v40 = vld [vmem:[#allocation3 + $0x30] sm:$0xf] }
 0x498   : > { %v2314_v8 = vrot.slane %v2313_v0, 4  ;;  %v2403_v52 = vsel %vm4544_vm8, %v3876_v9, %v2402_v41  ;;  %v2671_v45 = vshll.u32 %v2601_v27, 16  ;;  %v2682_v47 = vor.u32 %v5509_v6, %v5507_v48  ;;  %v5591_v9 = vld [vmem:[#allocation3 + $0x38] sm:$0xf] }
 0x499   : > { %2927 = vrot.lane.b32.xlu0 %v3916_v37, %s4317_s10  ;;  %v3904_v7 = vcombine.low %v2399_v10, %v2403_v52  ;;  %v2669_v1 = vrot.slane %v2668_v46, 4  ;;  %v2685_v13 = vshll.u32 %v2602_v57, 16  ;;  %v3889_v59 = vrot.slane %v2721_v16, 9 }
 0x49a   : > { %v2319_v53 = vsel %vm4614_vm1, %v2314_v8, %v2318_v3  ;;  %v2673_v25 = vrot.slane %v2671_v45, 5  ;;  %v2683_v36 = vrot.slane %v2682_v47, 4  ;;  %v2759_v18 = vrot.slane %v2601_v27, 5  ;;  %v2595_v8 = vld [vmem:[#allocation3 + $0x40] sm:$0xf] }
 0x49b   : > { %v3899_v0 = vcombine.low %v2305_v2, %v2319_v53  ;;  %v2687_v41 = vrot.slane %v2685_v13, 5  ;;  %v3890_v48 = vrot.slane %v2722_v43, 9  ;;  %v2763_v6 = vrot.slane %v2602_v57, 5 }
 0x49c   : > { %v2674_v37 = vsel %vm4614_vm1, %v2669_v1, %v2673_v25  ;;  %v2760_v16 = vsel %vm4544_vm8, %v3889_v59, %v2759_v18  ;;  %v2321_v10 = vshrl.u32 %v5587_v40, 16  ;;  %v2324_v46 = vshll.u32 %v5587_v40, 16  ;;  %v5606_v1 = vld [vmem:[#allocation3 + $0x38] sm:$0xf] }
 0x49d   : > { %2809 = vrot.lane.b32.xlu1 %v3899_v0, %s4317_s10  ;;  %v2688_v3 = vsel %vm4614_vm1, %v2683_v36, %v2687_v41  ;;  %v2764_v27 = vsel %vm4544_vm8, %v3890_v48, %v2763_v6  ;;  %v2330_v57 = vshll.u32 %v5550_v58, 16  ;;  %v2335_v2 = vshrl.u32 %v5591_v9, 16  ;;  %v5610_v36 = vld [vmem:[#allocation3 + $0x40] sm:$0xf] }
 0x49e   : > { %v3923_v52 = vcombine.low %v2674_v37, %v2688_v3  ;;  %v3927_v45 = vcombine.low %v2760_v16, %v2764_v27  ;;  %v2323_v47 = vrot.slane %v2321_v10, 4  ;;  %v2326_v43 = vrot.slane %v2324_v46, 5 }
 0x49f   : > { %v2332_v13 = vrot.slane %v2330_v57, 5  ;;  %v2337_v59 = vrot.slane %v2335_v2, 4  ;;  %v2338_v53 = vshll.u32 %v5591_v9, 16  ;;  %v2344_v25 = vshll.u32 %v5553_v12, 16  ;;  %v2603_v12 = vld [vmem:[#allocation3 + $0x44] sm:$0x1] }
 0x4a0   : > { %3031 = vst.msk [vmem:[#allocation5 + $0x40] sm:$0xff] %vm1501_vm2, %v3927_v45  ;;  %2973 = vrot.lane.b32.xlu0 %v3923_v52, %s4316_s30  ;;  %v2327_v58 = vor.u32 %v2326_v43, %v2323_v47  ;;  %v2690_v18 = vshrl.u32 %v2595_v8, 16  ;;  %v2693_v0 = vshll.u32 %v2595_v8, 16  ;;  %v3920_v41 = vcombine.low %v2595_v8, %v5229_v35  ;;  %v2723_v57 = vld [vmem:[#allocation3 + $0x40] sm:$0xe] }
 0x4a1   : > { %2831 = vrot.lane.b32.xlu1 %v3904_v7, %s4321_s19  ;;  %v2340_v48 = vrot.slane %v2338_v53, 5  ;;  %v2346_v6 = vrot.slane %v2344_v25, 5  ;;  %v2505_v37 = vshrl.u32 %v5606_v1, 16  ;;  %v2508_v16 = vshll.u32 %v5606_v1, 16 }
 0x4a2   : > { %v2328_v10 = vrot.slane %v2327_v58, 4  ;;  %v2692_v46 = vrot.slane %v2690_v18, 4  ;;  %v2695_v3 = vrot.slane %v2693_v0, 5  ;;  %v3908_v27 = vcombine.low %v5606_v1, %v5610_v36 }
 0x4a3   : > { %v2341_v2 = vor.u32 %v2340_v48, %v2337_v59  ;;  %v2507_v52 = vrot.slane %v2505_v37, 4  ;;  %v2510_v45 = vrot.slane %v2508_v16, 5  ;;  %v2519_v35 = vshrl.u32 %v5610_v36, 16 }
 0x4a4   : > { %v2333_v7 = vsel %vm4614_vm1, %v2328_v10, %v2332_v13  ;;  %v2696_v8 = vor.u32 %v2695_v3, %v2692_v46  ;;  %2955 = vrot.lane.b32.xlu0 %v3920_v41, %s4321_s19  ;;  %v2522_v47 = vshll.u32 %v5610_v36, 16  ;;  %v2699_v43 = vshll.u32 %v2603_v12, 16 }
 0x4a5   : > { %v2342_v53 = vrot.slane %v2341_v2, 4  ;;  %v2521_v25 = vrot.slane %v2519_v35, 4  ;;  %v3891_v58 = vrot.slane %v2723_v57, 9  ;;  %v2767_v18 = vrot.slane %v2603_v12, 5 }
 0x4a6   : > { %v2697_v1 = vrot.slane %v2696_v8, 4  ;;  %v2524_v0 = vrot.slane %v2522_v47, 5  ;;  %v2701_v59 = vrot.slane %v2699_v43, 5  ;;  %v5997_v48 = vshll.u32 %v5273_v15, 16 }
 0x4a7   : > { %v2347_v16 = vsel %vm4614_vm1, %v2342_v53, %v2346_v6  ;;  %v2768_v13 = vsel %vm4544_vm8, %v3891_v58, %v2767_v18  ;;  %v5998_v41 = vshll.u32 %v5305_v49, 16  ;;  %v5999_v10 = vshll.u32 %v5355_v11, 16  ;;  %v3331_v53 = vld [vmem:[#allocation7] sm:$0xff] }
 0x4a8   : > { %v2432_v37 = vrot.slane %v5997_v48, 5  ;;  %v3900_v3 = vcombine.low %v2333_v7, %v2347_v16  ;;  %v2702_v12 = vsel %vm4614_vm1, %v2697_v1, %v2701_v59  ;;  %v3928_v57 = vcombine.low %v2768_v13, %v5292_v26  ;;  %v3332_v48 = vld [vmem:[#allocation7 + $0x8] sm:$0xff]  ;;  %v3337_v16 = vld [vmem:[#allocation7 + $0x30] sm:$0xff]  ;;  %v3338_v13 = vld [vmem:[#allocation7 + $0x38] sm:$0xff] }
 0x4a9   : > { %v2446_v36 = vrot.slane %v5998_v41, 5  ;;  %v2460_v46 = vrot.slane %v5999_v10, 5  ;;  %v3924_v49 = vcombine.low %v2702_v12, %v6000_v61  ;;  %v6001_v26 = vshll.u32 %v5357_v30, 16  ;;  %v3951_v41 = vld [vmem:[%s5953_s6] ss:$0 sm:$0xff] }
 0x4aa   : > { %v2433_v15 = vsel %vm4614_vm1, %v5323_v60, %v2432_v37  ;;  %2811 = vrot.lane.b32.xlu1 %v3900_v3, %s4317_s10  ;;  %3032 = vst.msk [vmem:[#allocation5 + $0x58] sm:$0xff] %vm1501_vm2, %v3928_v57  ;;  %v3894_v62 = vcombine.low %v5432_v56, %v5438_v31  ;;  %v6002_v19 = vshll.u32 %v5458_v28, 16  ;;  %v2511_v8 = vor.u32 %v2510_v45, %v2507_v52  ;;  %v3335_v37 = vld [vmem:[#allocation7 + $0x20] sm:$0xff] }
 0x4ab   : > { %v2447_v11 = vsel %vm4614_vm1, %v5337_v33, %v2446_v36  ;;  %v2461_v6 = vsel %vm4614_vm1, %v5412_v54, %v2460_v46  ;;  %v2474_v2 = vrot.slane %v6001_v26, 5  ;;  %v6003_v33 = vshll.u32 %v5461_v17, 16  ;;  %2975 = vrot.lane.b32.xlu0 %v3924_v49, %s4316_s30 }
 0x4ac   : > { %v5656_v60 = vcombine.low %v2433_v15, %v2447_v11  ;;  %v2488_v35 = vrot.slane %v6002_v19, 5  ;;  %v3895_v54 = vcombine.low %v5526_v55, %v5532_v21  ;;  %v6004_v47 = vshll.u32 %v5536_v42, 16  ;;  %v6010_v15 = vld [vmem:[#allocation19_spill] sm:$0xff]  ;;  %v4272_v11 = vld [vmem:[#allocation3] sm:$0xf] }
 0x4ad   : > { %v2502_v7 = vrot.slane %v6003_v33, 5  ;;  %v2475_v30 = vsel %vm4614_vm1, %v5421_v24, %v2474_v2  ;;  %v2525_v18 = vor.u32 %v2524_v0, %v2521_v25  ;;  %v2512_v1 = vrot.slane %v2511_v8, 4 }
 0x4ae   : > { %v2516_v43 = vrot.slane %v6004_v47, 5  ;;  %v5672_v58 = vcombine.low %v2461_v6, %v2475_v30  ;;  %v2489_v28 = vsel %vm4614_vm1, %v5514_v34, %v2488_v35  ;;  %v6005_v52 = vshll.u32 %v5544_v51, 16  ;;  %2859 = vrot.lane.b32.xlu1 %v3908_v27, %s4316_s30  ;;  %v3334_v51 = vld [vmem:[#allocation7 + $0x18] sm:$0xff]  ;;  %v3336_v27 = vld [vmem:[#allocation7 + $0x28] sm:$0xff]  ;;  %v6012_v6 = vld [vmem:[#allocation22_spill] sm:$0xff] }
 0x4af   : > { %v2503_v17 = vsel %vm4614_vm1, %v5521_v39, %v2502_v7  ;;  %v3896_v42 = vcombine.low %v5587_v40, %v5591_v9  ;;  %v2526_v59 = vrot.slane %v2525_v18, 4  ;;  %3347 = vrot.lane.b32.xlu0 %v3331_v53, %s4321_s19  ;;  %v3333_v39 = vld [vmem:[#allocation7 + $0x10] sm:$0xff]  ;;  %v3543_v36 = vadd.f32 %v3952_v38, %v5215_v23 }
 0x4b0   : > { %v5680_v24 = vcombine.low %v2489_v28, %v2503_v17  ;;  %v2530_v45 = vrot.slane %v6005_v52, 5  ;;  %v2517_v34 = vsel %vm4614_vm1, %v2512_v1, %v2516_v43  ;;  %v3546_v10 = vadd.f32 %v3952_v38, %v5219_v20  ;;  %v4166_v28 = vld [vmem:[%s5952_s5 + $0x88] sm:$0xff]  }
 0x4b1   : > { %v3551_v46 = vadd.f32 %v5213_v22, %v3952_v38  ;;  %v3554_v3 = vadd.f32 %v5217_v44, %v3952_v38  ;;  %v3559_v12 = vadd.f32 %v3952_v38, %v5223_v14  ;;  %v3562_v23 = vadd.f32 %v3952_v38, %v5227_v29  ;;  %v6006_v44 = vld [vmem:[#allocation11_spill] sm:$0xff] }
 0x4b2   : > { %v2531_v25 = vsel %vm4614_vm1, %v2526_v59, %v2530_v45  ;;  %3349 = vrot.lane.b32.xlu1 %v3332_v48, %s4321_s19  ;;  %v3567_v20 = vadd.f32 %v5221_v63, %v3952_v38  ;;  %v3570_v22 = vadd.f32 %v5225_v5, %v3952_v38  ;;  %v6007_v63 = vld [vmem:[#allocation13_spill] sm:$0xff]  ;;  %v6008_v14 = vld [vmem:[#allocation15_spill] sm:$0xff]  ;;  %v3893_v26 = vcombine.low %v4272_v11, %v6012_v6 }
 0x4b3   : > { %v5692_v0 = vcombine.low %v2517_v34, %v2531_v25  ;;  %3351 = vrot.lane.b32.xlu0 %v3333_v39, %s4321_s19  ;;  %v6009_v5 = vld [vmem:[#allocation17_spill] sm:$0xff] }
 0x4b6   : > { %3353 = vrot.lane.b32.xlu1 %v3334_v51, %s4321_s19 }
 0x4b7   : > { %3355 = vrot.lane.b32.xlu0 %v3335_v37, %s4321_s19 }
 0x4ba   : > { %3357 = vrot.lane.b32.xlu1 %v3336_v27, %s4321_s19 }
 0x4bb   : > { %3359 = vrot.lane.b32.xlu0 %v3337_v16, %s4321_s19 }
 0x4be   : > { %3361 = vrot.lane.b32.xlu1 %v3338_v13, %s4321_s19 }
 0x4bf   : > { %3385 = vrot.lane.b32.xlu0 %v3951_v41, %s4321_s19 }
 0x4c2   : > { %3581 = vrot.lane.b32.xlu1 %v3543_v36, %s4321_s19 }
 0x4c3   : > { %3583 = vrot.lane.b32.xlu0 %v3546_v10, %s4321_s19 }
 0x4c6   : > { %3585 = vrot.lane.b32.xlu1 %v3551_v46, %s4321_s19 }
 0x4c7   : > { %3587 = vrot.lane.b32.xlu0 %v3554_v3, %s4321_s19 }
 0x4ca   : > { %3589 = vrot.lane.b32.xlu1 %v3559_v12, %s4321_s19 }
 0x4cb   : > { %3591 = vrot.lane.b32.xlu0 %v3562_v23, %s4321_s19 }
 0x4ce   : > { %3593 = vrot.lane.b32.xlu1 %v3567_v20, %s4321_s19 }
 0x4cf   : > { %3595 = vrot.lane.b32.xlu0 %v3570_v22, %s4321_s19 }
 0x4d2   : > { %1822 = vrot.lane.b32.xlu1 %v5044_v50, %s4316_s30  ;;  %v6011_v50 = vld [vmem:[#allocation21_spill] sm:$0xff] }
 0x4d3   : > { %1824 = vrot.lane.b32.xlu0 %v5053_v4, %s4316_s30 }
 0x4d6   : > { %1826 = vrot.lane.b32.xlu1 %v6006_v44, %s4316_s30  ;;  %v3038_v44 = vld [vmem:[#allocation5 + $0x28] sm:$0xff] }
 0x4d7   : > { %1828 = vrot.lane.b32.xlu0 %v6007_v63, %s4316_s30  ;;  %v3041_v63 = vld [vmem:[#allocation5 + $0x40] sm:$0xff] }
 0x4d9   : > { %v2854_v29 = vpop.permute.xlu1 %2853 }
 0x4da   : > { %1830 = vrot.lane.b32.xlu1 %v6008_v14, %s4316_s30 }
 0x4db   : > { %1832 = vrot.lane.b32.xlu0 %v6009_v5, %s4316_s30 }
 0x4dd   : > { %v2922_v57 = vpop.permute.xlu0 %2921  ;;  %v2826_v61 = vpop.permute.xlu1 %2825 }
 0x4de   : > { %1834 = vrot.lane.b32.xlu1 %v6010_v15, %s4316_s30  ;;  %v2979_v8 = vsel %vm1501_vm2, %v5656_v60, %v2922_v57  ;;  %v3044_v15 = vld [vmem:[#allocation5 + $0x58] sm:$0xff] }
 0x4df   : > { %1836 = vrot.lane.b32.xlu0 %v6011_v50, %s4316_s30 }
 0x4e1   : > { %v2950_v4 = vpop.permute.xlu0 %2949 }
 0x4e2   : > { %v2990_v47 = vsel %vm1519_vm4, %v2979_v8, %v2950_v4 }
 0x4e6   : > { %v2924_v49 = vpop.permute.xlu0 %2923 }
 0x4e7   : > { %v2982_v48 = vsel %vm1501_vm2, %v5672_v58, %v2924_v49 }
 0x4e9   : > { %v2806_v2 = vpop.permute.xlu1 %2805 }
 0x4ea   : > { %v2863_v19 = vsel %vm1501_vm2, %v3893_v26, %v2806_v2  ;;  %v2952_v7 = vpop.permute.xlu0 %2951 }
 0x4eb   : > { %v2874_v35 = vsel %vm1519_vm4, %v2863_v19, %v2826_v61 }
 0x4ec   : > { %v2882_v33 = vsel %vm1537_vm7, %v2874_v35, %v2854_v29  ;;  %v6013_v35 = vld [vmem:[#allocation8_spill] sm:$0xff] }
 0x4ed   : > { %v2856_v30 = vpop.permute.xlu1 %2855 }
 0x4f1   : > { %v2828_v17 = vpop.permute.xlu1 %2827 }
 0x4f3   : > { %v2970_v43 = vpop.permute.xlu0 %2969 }
 0x4f4   : > { %v2998_v53 = vsel %vm1537_vm7, %v2990_v47, %v2970_v43  ;;  %v6015_v43 = vld [vmem:[#allocation10_spill] sm:$0xff] }
 0x4f5   : > { %3233 = vmatprep.mubr.bf16.mxu1 %v2998_v53 }
 0x4f6   : > { %3234 = vmatmul.mubr.bf16.vlgmr.msra.gmra.mrb[0].mxu1 %v2882_v33 }
 0x4f7   : > { %4048 = vmatpush3.bf16.msra.mxu1 %v5566_v32  ;;  %v2992_v32 = vsel %vm1519_vm4, %v2982_v48, %v2952_v7 }
 0x4f8   : > { %4049 = vmatprep.subr.bf16.mxu1 %v4166_v28 }
 0x4f9   : > { %v2926_v18 = vpop.permute.xlu0 %2925 }
 0x4fa   : > { %v2985_v37 = vsel %vm1501_vm2, %v5680_v24, %v2926_v18 }
 0x4fb   : > { %4050 = vmatpush3.bf16.msra.mxu1 %v4166_v28 }
 0x4fd   : > { %v2808_v1 = vpop.permute.xlu1 %2807  ;;  %v2954_v45 = vpop.permute.xlu0 %2953 }
 0x4fe   : > { %v2866_v60 = vsel %vm1501_vm2, %v3894_v62, %v2808_v1  ;;  %v2994_v27 = vsel %vm1519_vm4, %v2985_v37, %v2954_v45 }
 0x4ff   : > { %v2876_v52 = vsel %vm1519_vm4, %v2866_v60, %v2828_v17  ;;  %v6016_v17 = vld [vmem:[#allocation12_spill] sm:$0xff]  ;;  %v6017_v60 = vld [vmem:[#allocation14_spill] sm:$0xff] }
 0x500   : > { %v2885_v59 = vsel %vm1537_vm7, %v2876_v52, %v2856_v30  ;;  %v6014_v30 = vld [vmem:[#allocation9_spill] sm:$0xff] }
 0x501   : > { %v2858_v34 = vpop.permute.xlu1 %2857 }
 0x505   : > { %v2972_v39 = vpop.permute.xlu0 %2971  ;;  %v2830_v51 = vpop.permute.xlu1 %2829 }
 0x506   : > { %v3001_v25 = vsel %vm1537_vm7, %v2992_v32, %v2972_v39  ;;  %v6019_v32 = vld [vmem:[#allocation18_spill] sm:$0xff] }
 0x507   : > { %3241 = vmatprep.mubr.bf16.mxu1 %v3001_v25 }
 0x508   : > { %3242 = vmatmul.mubr.bf16.gmra.mrb[4].mxu1 %v2885_v59  ;;  %v6018_v59 = vld [vmem:[#allocation16_spill] sm:$0xff] }
 0x50b   : > { %v2928_v56 = vpop.permute.xlu0 %2927 }
 0x50c   : > { %v2988_v55 = vsel %vm1501_vm2, %v5692_v0, %v2928_v56  ;;  %v3035_v0 = vld [vmem:[#allocation5 + $0x10] sm:$0xff] }
 0x50f   : > { %v2810_v31 = vpop.permute.xlu1 %2809 }
 0x510   : > { %v2869_v62 = vsel %vm1501_vm2, %v3895_v54, %v2810_v31 }
 0x511   : > { %v2878_v58 = vsel %vm1519_vm4, %v2869_v62, %v2830_v51  ;;  %v6020_v51 = vld [vmem:[#allocation20_spill] sm:$0xff] }
 0x512   : > { %v2888_v16 = vsel %vm1537_vm7, %v2878_v58, %v2858_v34  ;;  %v2974_v38 = vpop.permute.xlu0 %2973 }
 0x513   : > { %v3004_v13 = vsel %vm1537_vm7, %v2994_v27, %v2974_v38  ;;  %v2832_v41 = vpop.permute.xlu1 %2831 }
 0x514   : > { %3249 = vmatprep.mubr.bf16.mxu1 %v3004_v13 }
 0x515   : > { %3250 = vmatmul.mubr.bf16.gmra.mrb[8].mxu1 %v2888_v16 }
 0x516   : > { %v2956_v36 = vpop.permute.xlu0 %2955 }
 0x517   : > { %v2996_v24 = vsel %vm1519_vm4, %v2988_v55, %v2956_v36 }
 0x51c   : > { %v2812_v21 = vpop.permute.xlu1 %2811 }
 0x51d   : > { %v2872_v54 = vsel %vm1501_vm2, %v3896_v42, %v2812_v21  ;;  %v2976_v10 = vpop.permute.xlu0 %2975 }
 0x51e   : > { %v3007_v46 = vsel %vm1537_vm7, %v2996_v24, %v2976_v10  ;;  %v2880_v3 = vsel %vm1519_vm4, %v2872_v54, %v2832_v41 }
 0x51f   : > { %3257 = vmatprep.mubr.bf16.mxu1 %v3007_v46 }
 0x520   : > { %v2860_v12 = vpop.permute.xlu1 %2859 }
 0x521   : > { %v2891_v23 = vsel %vm1537_vm7, %v2880_v3, %v2860_v12  ;;  %v5782_v20 = vpop.permute.xlu0 %3347 }
 0x522   : > { %3258 = vmatmul.mubr.bf16.gmra.mrb[12].mxu1 %v2891_v23 }
 0x523   : > { %4051 = vmatprep.mubr.msk.bf16.mxu1 %vm1501_vm2, %v3035_v0 }
 0x524   : > { %v5785_v40 = vpop.permute.xlu1 %3349 }
 0x525   : > { %v5787_v9 = vpop.permute.xlu0 %3351 }
 0x528   : > { %v5789_v42 = vpop.permute.xlu1 %3353 }
 0x529   : > { %v5791_v22 = vpop.permute.xlu0 %3355 }
 0x52a   : > { %4052 = vmatmul.mubr.msk.bf16.vlgmr.msra.gmra.mrb[16].mxu1 %vm1501_vm2, %v3038_v44 }
 0x52b   : > { %4055 = vmatprep.mubr.msk.bf16.mxu1 %vm1501_vm2, %v3041_v63 }
 0x52c   : > { %v5795_v14 = vpop.permute.xlu1 %3357 }
 0x52d   : > { %v5797_v5 = vpop.permute.xlu0 %3359 }
 0x530   : > { %v5799_v29 = vpop.permute.xlu1 %3361 }
 0x531   : > { %v5801_v57 = vpop.permute.xlu0 %3385 }
 0x532   : > { %4056 = vmatmul.mubr.msk.bf16.gmra.mrb[20].mxu1 %vm1501_vm2, %v3044_v15 }
 0x534   : > { %v5804_v50 = vpop.permute.xlu1 %3581 }
 0x535   : > { %v5806_v4 = vpop.permute.xlu0 %3583 }
 0x538   : > { %v5808_v61 = vpop.permute.xlu1 %3585 }
 0x539   : > { %v5810_v49 = vpop.permute.xlu0 %3587 }
 0x53c   : > { %v5812_v11 = vpop.permute.xlu1 %3589 }
 0x53d   : > { %v5814_v6 = vpop.permute.xlu0 %3591 }
 0x540   : > { %v5816_v26 = vpop.permute.xlu1 %3593 }
 0x541   : > { %v5818_v2 = vpop.permute.xlu0 %3595 }
 0x544   : > { %v1823_v19 = vpop.permute.xlu1 %1822 }
 0x545   : > { %v1846_v33 = vadd.f32 %v1823_v19, %v6013_v35  ;;  %v1825_v7 = vpop.permute.xlu0 %1824 }
 0x546   : > { %v1847_v8 = vadd.f32 %v1825_v7, %v6014_v30 }
 0x547   : > { %1854 = vst.msk [vmem:[#allocation6] sm:$0xff] %vm1501_vm2, %v1846_v33  ;;  %v5836_v33 = vld [vmem:[#allocation7 + $0x50] sm:$0xff] }
 0x548   : > { %v1827_v47 = vpop.permute.xlu1 %1826  ;;  %1855 = vst.msk [vmem:[#allocation6 + $0x8] sm:$0xff] %vm1501_vm2, %v1847_v8  ;;  %v5838_v8 = vld [vmem:[#allocation7 + $0x40] sm:$0xff] }
 0x549   : > { %v1848_v53 = vadd.f32 %v1827_v47, %v6015_v43  ;;  %v1829_v28 = vpop.permute.xlu0 %1828 }
 0x54a   : > { %v1849_v18 = vadd.f32 %v1829_v28, %v6016_v17 }
 0x54b   : > { %1856 = vst.msk [vmem:[#allocation6 + $0x10] sm:$0xff] %vm1501_vm2, %v1848_v53  ;;  %v5840_v53 = vld [vmem:[#allocation7 + $0x58] sm:$0xff] }
 0x54c   : > { %v1831_v1 = vpop.permute.xlu1 %1830  ;;  %1857 = vst.msk [vmem:[#allocation6 + $0x18] sm:$0xff] %vm1501_vm2, %v1849_v18 }
 0x54d   : > { %v1850_v52 = vadd.f32 %v1831_v1, %v6017_v60  ;;  %v1833_v45 = vpop.permute.xlu0 %1832  ;;  %v5845_v1 = vld [vmem:[#allocation7 + $0x48] sm:$0xff] }
 0x54e   : > { %v1851_v48 = vadd.f32 %v1833_v45, %v6018_v59 }
 0x54f   : > { %1858 = vst.msk [vmem:[#allocation6 + $0x20] sm:$0xff] %vm1501_vm2, %v1850_v52 }
 0x550   : > { %v1835_v34 = vpop.permute.xlu1 %1834  ;;  %1859 = vst.msk [vmem:[#allocation6 + $0x28] sm:$0xff] %vm1501_vm2, %v1851_v48  ;;  %v5855_v48 = vld [vmem:[#allocation7 + $0x70] sm:$0xff] }
 0x551   : > { %v1852_v39 = vadd.f32 %v1835_v34, %v6019_v32  ;;  %v1837_v25 = vpop.permute.xlu0 %1836 }
 0x552   : > { %v1853_v56 = vadd.f32 %v1837_v25, %v6020_v51  ;;  %v5860_v25 = vld [vmem:[#allocation7 + $0x60] sm:$0xff] }
 0x553   : > { %1860 = vst.msk [vmem:[#allocation6 + $0x30] sm:$0xff] %vm1501_vm2, %v1852_v39 }
 0x554   : > { %1861 = vst.msk [vmem:[#allocation6 + $0x38] sm:$0xff] %vm1501_vm2, %v1853_v56 }
 0x5c9   : > { %v4012_v31 = vpop.f32.mrb[0].mxu1 }
 0x5ca   : > { %v4013_v62 = vpop.f32.mrb[1].mxu1 }
 0x5cb   : > { %v4014_v37 = vadd.f32 %v4013_v62, %v4012_v31  ;;  %v4015_v58 = vpop.f32.mrb[2].mxu1  ;;  %v5862_v31 = vld [vmem:[#allocation7 + $0x78] sm:$0xff] }
 0x5cc   : > { %v4016_v27 = vpop.f32.mrb[3].mxu1 }
 0x5cd   : > { %v4017_v16 = vadd.f32 %v4016_v27, %v4015_v58  ;;  %v5868_v27 = vld [vmem:[#allocation7 + $0x68] sm:$0xff] }
 0x5db   : > { %v4018_v38 = vpop.f32.mrb[4].mxu1 }
 0x5dc   : > { %v4019_v13 = vpop.f32.mrb[5].mxu1 }
 0x5dd   : > { %v4020_v41 = vadd.f32 %v4019_v13, %v4018_v38  ;;  %v4021_v36 = vpop.f32.mrb[6].mxu1 }
 0x5de   : > { %v4022_v55 = vpop.f32.mrb[7].mxu1 }
 0x5df   : > { %v4023_v21 = vadd.f32 %v4022_v55, %v4021_v36 }
 0x5e8   : > { %v4024_v54 = vpop.f32.mrb[8].mxu1 }
 0x5e9   : > { %v4025_v24 = vpop.f32.mrb[9].mxu1 }
 0x5ea   : > { %v4026_v10 = vadd.f32 %v4025_v24, %v4024_v54  ;;  %v4027_v46 = vpop.f32.mrb[10].mxu1 }
 0x5eb   : > { %v4028_v3 = vpop.f32.mrb[11].mxu1 }
 0x5ec   : > { %v4029_v12 = vadd.f32 %v4028_v3, %v4027_v46 }
 0x5f5   : > { %v4030_v23 = vpop.f32.mrb[12].mxu1 }
 0x5f6   : > { %v4031_v0 = vpop.f32.mrb[13].mxu1 }
 0x5f7   : > { %v4032_v44 = vadd.f32 %v4031_v0, %v4030_v23  ;;  %v4033_v63 = vpop.f32.mrb[14].mxu1 }
 0x5f8   : > { %v4034_v15 = vpop.f32.mrb[15].mxu1 }
 0x5f9   : > { %v4035_v19 = vadd.f32 %v4034_v15, %v4033_v63 }
 0x5fd   : > { %v4053_v35 = vpop.f32.mrb[16].mxu1 }
 0x5fe   : > { %v3309_v7 = vadd.f32 %v4053_v35, %v4020_v41  ;;  %v3300_v30 = vpop.f32.mrb[17].mxu1 }
 0x5ff   : > { %v3301_v47 = vadd.f32 %v4014_v37, %v3300_v30  ;;  %v4054_v43 = vpop.f32.mrb[18].mxu1 }
 0x600   : > { %v3373_v28 = vadd.f32 %v5787_v9, %v3309_v7  ;;  %v3312_v17 = vadd.f32 %v4054_v43, %v4023_v21  ;;  %3417 = vrot.lane.b32.xlu1 %v3309_v7, %s4316_s30  ;;  %v3303_v18 = vpop.f32.mrb[19].mxu1  ;;  %3455 = vst.msk [vmem:[#allocation7 + $0x50] sm:$0xff] %vm1501_vm2, %v3309_v7 }
 0x601   : > { %v3304_v60 = vadd.f32 %v4017_v16, %v3303_v18  ;;  %3453 = vst.msk [vmem:[#allocation7 + $0x40] sm:$0xff] %vm1501_vm2, %v3301_v47  ;;  %v3371_v34 = vadd.f32 %v5782_v20, %v3301_v47 }
 0x602   : > { %v3390_v52 = vadd.f32 %v5801_v57, %v3373_v28  ;;  %v3374_v45 = vadd.f32 %v5789_v42, %v3312_v17  ;;  %3419 = vrot.lane.b32.xlu0 %v3312_v17, %s4316_s30  ;;  %3456 = vst.msk [vmem:[#allocation7 + $0x58] sm:$0xff] %vm1501_vm2, %v3312_v17 }
 0x603   : > { %3454 = vst.msk [vmem:[#allocation7 + $0x48] sm:$0xff] %vm1501_vm2, %v3304_v60  ;;  %v3372_v62 = vadd.f32 %v5785_v40, %v3304_v60 }
 0x604   : > { %v3391_v9 = vadd.f32 %v5801_v57, %v3374_v45  ;;  %3413 = vrot.lane.b32.xlu1 %v3301_v47, %s4316_s30  ;;  %v3607_v42 = vadd.f32 %v5808_v61, %v3390_v52  ;;  %v3388_v61 = vadd.f32 %v5801_v57, %v3371_v34 }
 0x605   : > { %v4057_v59 = vpop.f32.mrb[20].mxu1 }
 0x606   : > { %v3325_v32 = vadd.f32 %v4057_v59, %v4032_v44  ;;  %v3316_v39 = vpop.f32.mrb[21].mxu1  ;;  %3415 = vrot.lane.b32.xlu0 %v3304_v60, %s4316_s30  ;;  %v3608_v20 = vadd.f32 %v5810_v49, %v3391_v9  ;;  %v3990_v40 = vpack.c.bf16 %v3607_v42, %v3607_v42  ;;  %v3389_v49 = vadd.f32 %v5801_v57, %v3372_v62 }
 0x607   : > { %v3317_v51 = vadd.f32 %v4026_v10, %v3316_v39  ;;  %v4058_v56 = vpop.f32.mrb[22].mxu1 }
 0x608   : > { %v3328_v37 = vadd.f32 %v4058_v56, %v4035_v19  ;;  %v3319_v58 = vpop.f32.mrb[23].mxu1  ;;  %3425 = vrot.lane.b32.xlu1 %v3325_v32, %s4316_s30  ;;  %3459 = vst.msk [vmem:[#allocation7 + $0x70] sm:$0xff] %vm1501_vm2, %v3325_v32  ;;  %v3991_v41 = vpack.c.bf16 %v3608_v20, %v3608_v20  ;;  %v3377_v36 = vadd.f32 %v5797_v5, %v3325_v32 }
 0x609   : > { %v3320_v16 = vadd.f32 %v4029_v12, %v3319_v58  ;;  %3457 = vst.msk [vmem:[#allocation7 + $0x60] sm:$0xff] %vm1501_vm2, %v3317_v51  ;;  %v3375_v38 = vadd.f32 %v5791_v22, %v3317_v51  ;;  %v3605_v22 = vadd.f32 %v5804_v50, %v3388_v61  ;;  %v3606_v24 = vadd.f32 %v5806_v4, %v3389_v49 }
 0x60a   : > { %3427 = vrot.lane.b32.xlu0 %v3328_v37, %s4316_s30  ;;  %3460 = vst.msk [vmem:[#allocation7 + $0x78] sm:$0xff] %vm1501_vm2, %v3328_v37  ;;  %v3378_v21 = vadd.f32 %v5799_v29, %v3328_v37 }
 0x60b   : > { %3458 = vst.msk [vmem:[#allocation7 + $0x68] sm:$0xff] %vm1501_vm2, %v3320_v16  ;;  %v3376_v13 = vadd.f32 %v5795_v14, %v3320_v16  ;;  %v3392_v55 = vadd.f32 %v5801_v57, %v3375_v38  ;;  %v3394_v14 = vadd.f32 %v5801_v57, %v3377_v36  ;;  %v3988_v10 = vpack.c.bf16 %v3605_v22, %v3605_v22 }
 0x60c   : > { %3641 = vrot.lane.b32.xlu1 %v3990_v40, %s4321_s19  ;;  %v3395_v46 = vadd.f32 %v5801_v57, %v3378_v21  ;;  %v3989_v50 = vpack.c.bf16 %v3606_v24, %v3606_v24 }
 0x60d   : > { %v3393_v54 = vadd.f32 %v5801_v57, %v3376_v13  ;;  %v3609_v5 = vadd.f32 %v5812_v11, %v3392_v55  ;;  %v3611_v12 = vadd.f32 %v5816_v26, %v3394_v14 }
 0x60e   : > { %3643 = vrot.lane.b32.xlu0 %v3991_v41, %s4321_s19  ;;  %v3612_v23 = vadd.f32 %v5818_v2, %v3395_v46 }
 0x60f   : > { %v3610_v29 = vadd.f32 %v5814_v6, %v3393_v54  ;;  %v3992_v3 = vpack.c.bf16 %v3609_v5, %v3609_v5  ;;  %v3994_v11 = vpack.c.bf16 %v3611_v12, %v3611_v12 }
 0x610   : > { %3421 = vrot.lane.b32.xlu1 %v3317_v51, %s4316_s30  ;;  %v3995_v57 = vpack.c.bf16 %v3612_v23, %v3612_v23 }
 0x611   : > { %v3993_v4 = vpack.c.bf16 %v3610_v29, %v3610_v29 }
 0x612   : > { %3423 = vrot.lane.b32.xlu0 %v3320_v16, %s4316_s30 }
 0x614   : > { %3637 = vrot.lane.b32.xlu1 %v3988_v10, %s4321_s19 }
 0x616   : > { %3639 = vrot.lane.b32.xlu0 %v3989_v50, %s4321_s19 }
 0x618   : > { %3645 = vrot.lane.b32.xlu1 %v3992_v3, %s4321_s19 }
 0x61a   : > { %3647 = vrot.lane.b32.xlu0 %v3993_v4, %s4321_s19 }
 0x61c   : > { %3649 = vrot.lane.b32.xlu1 %v3994_v11, %s4321_s19 }
 0x61e   : > { %3651 = vrot.lane.b32.xlu0 %v3995_v57, %s4321_s19 }
 0x672   : > { %v3418_v0 = vpop.permute.xlu1 %3417 }
 0x673   : > { %v3439_v6 = vadd.f32 %v3418_v0, %v5836_v33 }
 0x674   : > { %v3420_v44 = vpop.permute.xlu0 %3419 }
 0x675   : > { %3447 = vst.msk [vmem:[#allocation7 + $0x10] sm:$0xff] %vm1501_vm2, %v3439_v6  ;;  %v3440_v26 = vadd.f32 %v3420_v44, %v5840_v53 }
 0x676   : > { %v3414_v63 = vpop.permute.xlu1 %3413 }
 0x677   : > { %3448 = vst.msk [vmem:[#allocation7 + $0x18] sm:$0xff] %vm1501_vm2, %v3440_v26  ;;  %v3437_v2 = vadd.f32 %v3414_v63, %v5838_v8 }
 0x678   : > { %v3416_v15 = vpop.permute.xlu0 %3415 }
 0x679   : > { %3445 = vst.msk [vmem:[#allocation7] sm:$0xff] %vm1501_vm2, %v3437_v2  ;;  %v3438_v19 = vadd.f32 %v3416_v15, %v5845_v1 }
 0x67a   : > { %v3426_v35 = vpop.permute.xlu1 %3425 }
 0x67b   : > { %3446 = vst.msk [vmem:[#allocation7 + $0x8] sm:$0xff] %vm1501_vm2, %v3438_v19  ;;  %v3443_v33 = vadd.f32 %v3426_v35, %v5855_v48 }
 0x67c   : > { %v3428_v7 = vpop.permute.xlu0 %3427 }
 0x67d   : > { %3451 = vst.msk [vmem:[#allocation7 + $0x30] sm:$0xff] %vm1501_vm2, %v3443_v33  ;;  %v3444_v30 = vadd.f32 %v3428_v7, %v5862_v31 }
 0x67e   : > { %v3642_v47 = vpop.permute.xlu1 %3641 }
 0x67f   : > { %3452 = vst.msk [vmem:[#allocation7 + $0x38] sm:$0xff] %vm1501_vm2, %v3444_v30 }
 0x680   : > { %3664 = vst.msk [vmem:[%s4411_s26 + $0x8] sm:$0xf] %vm2168_vm10, %v3642_v47  ;;  %v3644_v8 = vpop.permute.xlu0 %3643 }
 0x681   : > { %3665 = vst.msk [vmem:[%s4411_s26 + $0xc] sm:$0xf] %vm2168_vm10, %v3644_v8 }
 0x682   : > { %v3422_v43 = vpop.permute.xlu1 %3421 }
 0x683   : > { %v3441_v53 = vadd.f32 %v3422_v43, %v5860_v25 }
 0x684   : > { %v3424_v28 = vpop.permute.xlu0 %3423 }
 0x685   : > { %3449 = vst.msk [vmem:[#allocation7 + $0x20] sm:$0xff] %vm1501_vm2, %v3441_v53  ;;  %v3442_v17 = vadd.f32 %v3424_v28, %v5868_v27 }
 0x686   : > { %v3638_v18 = vpop.permute.xlu1 %3637 }
 0x687   : > { %3450 = vst.msk [vmem:[#allocation7 + $0x28] sm:$0xff] %vm1501_vm2, %v3442_v17 }
 0x688   : > { %3662 = vst.msk [vmem:[%s4411_s26] sm:$0xf] %vm2168_vm10, %v3638_v18  ;;  %v3640_v1 = vpop.permute.xlu0 %3639 }
 0x689   : > { %3663 = vst.msk [vmem:[%s4411_s26 + $0x4] sm:$0xf] %vm2168_vm10, %v3640_v1 }
 0x68a   : > { %v3646_v60 = vpop.permute.xlu1 %3645 }
 0x68b   : > { %3666 = vst.msk [vmem:[%s4411_s26 + $0x10] sm:$0xf] %vm2168_vm10, %v3646_v60 }
 0x68c   : > { %v3648_v52 = vpop.permute.xlu0 %3647 }
 0x68d   : > { %3667 = vst.msk [vmem:[%s4411_s26 + $0x14] sm:$0xf] %vm2168_vm10, %v3648_v52 }
 0x68e   : > { %v3650_v45 = vpop.permute.xlu1 %3649 }
 0x68f   : > { %3668 = vst.msk [vmem:[%s4411_s26 + $0x18] sm:$0xf] %vm2168_vm10, %v3650_v45 }
 0x690   : > { %v3652_v9 = vpop.permute.xlu0 %3651 }
 0x691   : > { %3669 = vst.msk [vmem:[%s4411_s26 + $0x1c] sm:$0xf] %vm2168_vm10, %v3652_v9 }
 0x692 PF: > { %s19_s13 = sadd.s32 1, %s4311_s13   ;;  %s6021_s30 = smov %s4303_s11 }
 0x693   : > { %p16_p8 = scmp.ge.s32.totalorder %s19_s13, 10   ;;  %s6022_s10 = smov %s4307_s12 }
 0x694   : > { %s6023_s11 = smov %s6026_s14  ;;  %s6024_s12 = smov %s6030_s15 }
 0x695   :  { %18 = sbr.rel (!%p16_p8) target bundleno = 3 (0x3), region = 96 }

// kernel: up_residual_block.4
= control target key start
LH: loop header
LB: loop body
LE: loop exit
PB: predicated region body
PF: predicated region fallthrough
CT: control target
= control target key end

     0   :  { %s4403_s24 = smov 0   ;;  %s4405_s25 = smov 0   ;;  %s6021_s0 = inlined_call_operand.vmem [shape: bf16[2,4,64,32], index: 0, kind: input, shape index: {}]   ;;  %s6022_s1 = inlined_call_operand.vmem [shape: f32[1,32], index: 1, kind: input, shape index: {}]   ;;  %s6023_s2 = inlined_call_operand.vmem [shape: bf16[288,96], index: 2, kind: input, shape index: {}]   ;;  %s6024_s3 = inlined_call_operand.vmem [shape: f32[1,32], index: 3, kind: input, shape index: {}]   ;;  %s6025_s4 = inlined_call_operand.vmem [shape: f32[1,32], index: 4, kind: input, shape index: {}]   ;;  %s6026_s5 = inlined_call_operand.vmem [shape: bf16[288,96], index: 5, kind: input, shape index: {}]   ;;  %s6027_s6 = inlined_call_operand.vmem [shape: f32[1,32], index: 6, kind: input, shape index: {}]   ;;  %s6028_s7 = inlined_call_operand.vmem [shape: bf16[2,4,64,32], index: 7, kind: output, shape index: {}]  }
   0x1   :  { %s4407_s26 = smov 0   ;;  %s4409_s27 = smov 0  }
   0x2   :  { %s4411_s28 = smov 0  }
   0x3 LB: > { %s26_s29 = sadd.s32 1, %s4348_s26  ;;  %s29_s30 = sadd.s32 1, %s4352_s27  ;;  %s4356_s28 = sphi %s4411_s28, %s17_s28   ;;  %s4352_s27 = sphi %s4409_s27, %s6119_s27   ;;  %s4348_s26 = sphi %s4407_s26, %s6118_s26   ;;  %s4344_s25 = sphi %s4405_s25, %s6117_s25   ;;  %s4340_s24 = sphi %s4403_s24, %s6116_s24  }
   0x4   : > { %p27_p0 = scmp.ge.s32.totalorder %s26_s29, 4  ;;  %p3730_p1 = scmp.ge.s32.totalorder %s4356_s28, 1 }
   0x5   : > { %p257_p2 = scmp.lt.s32.totalorder %s4356_s28, 9 }
   0x6   : > { %s6121_s29 = smov (%p27_p0, %s26_s29), 0  ;;  %s6123_s30 = smov (!%p27_p0, %s29_s30), %s4352_s27 }
   0x7   : > { %p258_p3 = pnand %p3730_p1, %p257_p2  ;;  %p31_p4 = scmp.ge.s32.totalorder %s6123_s30, 2 }
   0x9   : > { %s6125_s30 = smov (%p31_p4, %s6123_s30), 0  ;;  %261 = sbr.rel (%p258_p3) target bundleno = 1661 (0x67d), region = 48 }
  0x10   : > { %p297_p5 = scmp.lt.s32.totalorder %s4344_s25, 1  ;;  %p299_p6 = scmp.lt.s32.totalorder %s4340_s24, 3 }
  0x11   : > { %p3737_p7 = scmp.ne.s32.totalorder %s4340_s24, 0 }
  0x12   : > { %s6127_s25 = smov (!%p297_p5, %s4344_s25), 1  ;;  %vm320_vm0 = vcmask (!%p3737_p7), 257024   ;;  %vm322_vm1 = vcmask (!%p3737_p7), 253952   ;;  %vm362_vm2 = vcmask (!%p3737_p7), 261120   ;;  %v4358_v0 = vmov (!%p3737_p7), 0  }
  0x13   : > { %s300_s8 = scalar_select %p299_p6, %s4340_s24, 3 }
  0x14   : > { %s3732_s9 = sshll.u32 %s6127_s25, 5  ;;  %319 = sbr.rel (%p3737_p7) target bundleno = 56 (0x38), region = 52  ;;  %321 = vst.msk [vmem:[#allocation2] sm:$0xf] (!%p3737_p7), %vm320_vm0, %v4358_v0  ;;  %324 = vst.msk [vmem:[#allocation2 + $0x8] sm:$0xf] (!%p3737_p7), %vm320_vm0, %v4358_v0 }
  0x15   : > { %s3731_s10 = sshll.u32 %s300_s8, 3  ;;  %326 = vst.msk [vmem:[#allocation2 + $0x10] sm:$0xf] (!%p3737_p7), %vm320_vm0, %v4358_v0  ;;  %328 = vst.msk [vmem:[#allocation2 + $0x18] sm:$0xf] (!%p3737_p7), %vm320_vm0, %v4358_v0  ;;  %v4359_v1 = vmov (!%p3737_p7), 0.0  }
  0x16   : > { %s303_s11 = sadd.s32 %s3732_s9, %s3731_s10  ;;  %330 = vst.msk [vmem:[#allocation2 + $0x20] sm:$0xf] (!%p3737_p7), %vm320_vm0, %v4358_v0  ;;  %332 = vst.msk [vmem:[#allocation2 + $0x28] sm:$0xf] (!%p3737_p7), %vm320_vm0, %v4358_v0 }
  0x17   : > { %s3733_s12 = sshll.u32 %s303_s11, 2  ;;  %334 = vst.msk [vmem:[#allocation2 + $0x30] sm:$0xf] (!%p3737_p7), %vm320_vm0, %v4358_v0  ;;  %336 = vst.msk [vmem:[#allocation2 + $0x38] sm:$0xf] (!%p3737_p7), %vm320_vm0, %v4358_v0 }
  0x18   : > { %s4436_s15 = scalar_lea.vmem %s6021_s0, %s3733_s12  ;;  %s4441_s18 = scalar_lea.vmem %s6028_s7, %s3733_s12  ;;  %338 = vst.msk [vmem:[#allocation2 + $0x40] sm:$0xf] (!%p3737_p7), %vm320_vm0, %v4358_v0  ;;  %340 = vst.msk [vmem:[#allocation2 + $0x48] sm:$0xf] (!%p3737_p7), %vm320_vm0, %v4358_v0 }
  0x19   : > { %342 = vst.msk [vmem:[#allocation3] sm:$0xf] (!%p3737_p7), %vm320_vm0, %v4358_v0  ;;  %344 = vst.msk [vmem:[#allocation3 + $0x8] sm:$0xf] (!%p3737_p7), %vm320_vm0, %v4358_v0 }
  0x1a   : > { %346 = vst.msk [vmem:[#allocation3 + $0x10] sm:$0xf] (!%p3737_p7), %vm320_vm0, %v4358_v0  ;;  %348 = vst.msk [vmem:[#allocation3 + $0x18] sm:$0xf] (!%p3737_p7), %vm320_vm0, %v4358_v0 }
  0x1b   : > { %350 = vst.msk [vmem:[#allocation3 + $0x20] sm:$0xf] %vm320_vm0, %v4358_v0  ;;  %352 = vst.msk [vmem:[#allocation3 + $0x28] sm:$0xf] %vm320_vm0, %v4358_v0 }
  0x1c   : > { %354 = vst.msk [vmem:[#allocation3 + $0x30] sm:$0xf] %vm320_vm0, %v4358_v0  ;;  %356 = vst.msk [vmem:[#allocation3 + $0x38] sm:$0xf] %vm320_vm0, %v4358_v0 }
  0x1d   : > { %358 = vst.msk [vmem:[#allocation3 + $0x40] sm:$0xf] %vm320_vm0, %v4358_v0  ;;  %360 = vst.msk [vmem:[#allocation3 + $0x48] sm:$0xf] %vm320_vm0, %v4358_v0 }
  0x1e   : > { %323 = vst.msk [vmem:[#allocation2 + $0x4] sm:$0x1] %vm322_vm1, %v4358_v0  ;;  %325 = vst.msk [vmem:[#allocation2 + $0xc] sm:$0x1] %vm322_vm1, %v4358_v0 }
  0x1f   : > { %327 = vst.msk [vmem:[#allocation2 + $0x14] sm:$0x1] %vm322_vm1, %v4358_v0  ;;  %329 = vst.msk [vmem:[#allocation2 + $0x1c] sm:$0x1] %vm322_vm1, %v4358_v0 }
  0x20   : > { %331 = vst.msk [vmem:[#allocation2 + $0x24] sm:$0x1] %vm322_vm1, %v4358_v0  ;;  %333 = vst.msk [vmem:[#allocation2 + $0x2c] sm:$0x1] %vm322_vm1, %v4358_v0 }
  0x21   : > { %335 = vst.msk [vmem:[#allocation2 + $0x34] sm:$0x1] %vm322_vm1, %v4358_v0  ;;  %337 = vst.msk [vmem:[#allocation2 + $0x3c] sm:$0x1] %vm322_vm1, %v4358_v0 }
  0x22   : > { %339 = vst.msk [vmem:[#allocation2 + $0x44] sm:$0x1] %vm322_vm1, %v4358_v0  ;;  %341 = vst.msk [vmem:[#allocation2 + $0x4c] sm:$0x1] %vm322_vm1, %v4358_v0 }
  0x23   : > { %343 = vst.msk [vmem:[#allocation3 + $0x4] sm:$0x1] %vm322_vm1, %v4358_v0  ;;  %345 = vst.msk [vmem:[#allocation3 + $0xc] sm:$0x1] %vm322_vm1, %v4358_v0 }
  0x24   : > { %347 = vst.msk [vmem:[#allocation3 + $0x14] sm:$0x1] %vm322_vm1, %v4358_v0  ;;  %349 = vst.msk [vmem:[#allocation3 + $0x1c] sm:$0x1] %vm322_vm1, %v4358_v0 }
  0x25   : > { %351 = vst.msk [vmem:[#allocation3 + $0x24] sm:$0x1] %vm322_vm1, %v4358_v0  ;;  %353 = vst.msk [vmem:[#allocation3 + $0x2c] sm:$0x1] %vm322_vm1, %v4358_v0 }
  0x26   : > { %355 = vst.msk [vmem:[#allocation3 + $0x34] sm:$0x1] %vm322_vm1, %v4358_v0  ;;  %357 = vst.msk [vmem:[#allocation3 + $0x3c] sm:$0x1] %vm322_vm1, %v4358_v0 }
  0x27   : > { %359 = vst.msk [vmem:[#allocation3 + $0x44] sm:$0x1] %vm322_vm1, %v4358_v0  ;;  %361 = vst.msk [vmem:[#allocation3 + $0x4c] sm:$0x1] %vm322_vm1, %v4358_v0 }
  0x28   : > { %363 = vst.msk [vmem:[#allocation6] sm:$0xff] %vm362_vm2, %v4359_v1  ;;  %364 = vst.msk [vmem:[#allocation6 + $0x8] sm:$0xff] %vm362_vm2, %v4359_v1 }
  0x29   : > { %365 = vst.msk [vmem:[#allocation6 + $0x10] sm:$0xff] %vm362_vm2, %v4359_v1  ;;  %366 = vst.msk [vmem:[#allocation6 + $0x18] sm:$0xff] %vm362_vm2, %v4359_v1 }
  0x2a   : > { %367 = vst.msk [vmem:[#allocation6 + $0x20] sm:$0xff] %vm362_vm2, %v4359_v1  ;;  %368 = vst.msk [vmem:[#allocation6 + $0x28] sm:$0xff] %vm362_vm2, %v4359_v1 }
  0x2b   : > { %369 = vst.msk [vmem:[#allocation6 + $0x30] sm:$0xff] %vm362_vm2, %v4359_v1  ;;  %370 = vst.msk [vmem:[#allocation6 + $0x38] sm:$0xff] %vm362_vm2, %v4359_v1 }
  0x2c   : > { %371 = vst.msk [vmem:[#allocation6 + $0x40] sm:$0xff] %vm362_vm2, %v4359_v1  ;;  %372 = vst.msk [vmem:[#allocation6 + $0x48] sm:$0xff] %vm362_vm2, %v4359_v1 }
  0x2d   : > { %373 = vst.msk [vmem:[#allocation6 + $0x50] sm:$0xff] %vm362_vm2, %v4359_v1  ;;  %374 = vst.msk [vmem:[#allocation6 + $0x58] sm:$0xff] %vm362_vm2, %v4359_v1 }
  0x2e   : > { %375 = vst.msk [vmem:[#allocation6 + $0x60] sm:$0xff] %vm362_vm2, %v4359_v1  ;;  %376 = vst.msk [vmem:[#allocation6 + $0x68] sm:$0xff] %vm362_vm2, %v4359_v1 }
  0x2f   : > { %377 = vst.msk [vmem:[#allocation6 + $0x70] sm:$0xff] %vm362_vm2, %v4359_v1  ;;  %378 = vst.msk [vmem:[#allocation6 + $0x78] sm:$0xff] %vm362_vm2, %v4359_v1 }
  0x30   : > { %379 = vst.msk [vmem:[#allocation7] sm:$0xff] %vm362_vm2, %v4359_v1  ;;  %380 = vst.msk [vmem:[#allocation7 + $0x8] sm:$0xff] %vm362_vm2, %v4359_v1 }
  0x31   : > { %381 = vst.msk [vmem:[#allocation7 + $0x10] sm:$0xff] %vm362_vm2, %v4359_v1  ;;  %382 = vst.msk [vmem:[#allocation7 + $0x18] sm:$0xff] %vm362_vm2, %v4359_v1 }
  0x32   : > { %383 = vst.msk [vmem:[#allocation7 + $0x20] sm:$0xff] %vm362_vm2, %v4359_v1  ;;  %384 = vst.msk [vmem:[#allocation7 + $0x28] sm:$0xff] %vm362_vm2, %v4359_v1 }
  0x33   : > { %385 = vst.msk [vmem:[#allocation7 + $0x30] sm:$0xff] %vm362_vm2, %v4359_v1  ;;  %386 = vst.msk [vmem:[#allocation7 + $0x38] sm:$0xff] %vm362_vm2, %v4359_v1 }
  0x34   : > { %387 = vst.msk [vmem:[#allocation7 + $0x40] sm:$0xff] %vm362_vm2, %v4359_v1  ;;  %388 = vst.msk [vmem:[#allocation7 + $0x48] sm:$0xff] %vm362_vm2, %v4359_v1 }
  0x35   : > { %389 = vst.msk [vmem:[#allocation7 + $0x50] sm:$0xff] %vm362_vm2, %v4359_v1  ;;  %390 = vst.msk [vmem:[#allocation7 + $0x58] sm:$0xff] %vm362_vm2, %v4359_v1 }
  0x36   : > { %391 = vst.msk [vmem:[#allocation7 + $0x60] sm:$0xff] %vm362_vm2, %v4359_v1  ;;  %392 = vst.msk [vmem:[#allocation7 + $0x68] sm:$0xff] %vm362_vm2, %v4359_v1 }
  0x37   : > { %393 = vst.msk [vmem:[#allocation7 + $0x70] sm:$0xff] %vm362_vm2, %v4359_v1  ;;  %394 = vst.msk [vmem:[#allocation7 + $0x78] sm:$0xff] %vm362_vm2, %v4359_v1 }
  0x38 PF: > { %v3972_v2 = vld [vmem:[%s4436_s15 + $0x8] sm:$0xff]   ;;  %vm420_vm3 = vcmask 261120   ;;  %v3957_v3 = vld [vmem:[%s4436_s15] sm:$0xff]   ;;  %v3973_v4 = vld [vmem:[%s4436_s15 + $0x10] sm:$0xff]   ;;  %vm853_vm4 = vcmask 1042432   ;;  %vm854_vm5 = vcmask 1046532  }
  0x39   : > { %v4518_v5 = vunpack.c.l.bf16 %v3972_v2  ;;  %v4520_v6 = vunpack.c.l.bf16 %v3957_v3  ;;  %v4522_v7 = vunpack.c.h.bf16 %v3972_v2  ;;  %v4524_v8 = vunpack.c.h.bf16 %v3957_v3  ;;  %v3974_v9 = vld [vmem:[%s4436_s15 + $0x18] sm:$0xff]   ;;  %v4159_v30 = vld [vmem:[%s6023_s2 + $0x80] sm:$0xff]   ;;  %v4161_v31 = vld [vmem:[%s6023_s2 + $0x88] sm:$0xff]   ;;  %s4360_s17 = smov 64   ;;  %s4361_s19 = smov 96  }
  0x3a   : > { %v4527_v10 = vunpack.c.h.bf16 %v3973_v4  ;;  %v4529_v11 = vunpack.c.l.bf16 %v3973_v4  ;;  %v4531_v12 = vunpack.c.h.bf16 %v3974_v9  ;;  %v4533_v13 = vunpack.c.l.bf16 %v3974_v9  ;;  %4067 = vmatprep.subr.bf16.mxu1 %v4159_v30  ;;  %v3738_v51 = vld [vmem:[%s6022_s1] ss:$0 sm:$0xff]  ;;  %vm4607_vm8 = vmor %vm853_vm4, %vm854_vm5  ;;  %s4362_s12 = smov 32  }
  0x3b   : > { %v414_v14 = vmul.f32 %v4518_v5, %v4518_v5  ;;  %v412_v15 = vmul.f32 %v4520_v6, %v4520_v6  ;;  %v415_v16 = vmul.f32 %v4522_v7, %v4522_v7  ;;  %v413_v17 = vmul.f32 %v4524_v8, %v4524_v8  ;;  %4068 = vmatpush3.bf16.msra.mxu1 %v4159_v30  ;;  %v4166_v2 = vld [vmem:[%s6023_s2 + $0x40] sm:$0xff]  }
  0x3c   : > { %6041 = vst [vmem:[#allocation8_spill] sm:$0xff] %v4527_v10  ;;  %6042 = vst [vmem:[#allocation9_spill] sm:$0xff] %v4531_v12  ;;  %v417_v18 = vmul.f32 %v4527_v10, %v4527_v10  ;;  %v416_v19 = vmul.f32 %v4529_v11, %v4529_v11  ;;  %v419_v22 = vmul.f32 %v4531_v12, %v4531_v12  ;;  %4069 = vmatprep.subr.bf16.mxu1 %v4161_v31  ;;  %vm714_vm6 = vsmask.f32 3328 }
  0x3d   : > { %6043 = vst [vmem:[#allocation10_spill] sm:$0xff] %v4533_v13  ;;  %v427_v20 = vsel %vm420_vm3, %v414_v14, 0.0  ;;  %v421_v21 = vsel %vm420_vm3, %v412_v15, 0.0  ;;  %v418_v23 = vmul.f32 %v4533_v13, %v4533_v13  ;;  %v430_v24 = vsel %vm420_vm3, %v415_v16, 0.0  ;;  %3975 = vmatprep.subr.bf16.mxu0 %v4166_v2 }
  0x3e   : > { %428 = vadd.xlane.f32.xlu1 %v427_v20  ;;  %422 = vadd.xlane.f32.xlu0 %v421_v21  ;;  %v424_v25 = vsel %vm420_vm3, %v413_v17, 0.0  ;;  %v436_v26 = vsel %vm420_vm3, %v417_v18, 0.0  ;;  %v433_v27 = vsel %vm420_vm3, %v416_v19, 0.0  ;;  %v442_v28 = vsel %vm420_vm3, %v419_v22, 0.0 }
  0x3f   : > { %v439_v29 = vsel %vm420_vm3, %v418_v23, 0.0  ;;  %4070 = vmatpush3.bf16.msra.mxu1 %v4161_v31  ;;  %vm715_vm7 = vsmask.f32 7440  ;;  %vm644_vm9 = vcmask 257024   ;;  %vm645_vm11 = vsmask.f32 7938 }
  0x40   : > { %vm4617_vm10 = vmor %vm714_vm6, %vm715_vm7  ;;  %vm650_vm12 = vcmask 253952   ;;  %vm651_vm13 = vsmask.f32 256  ;;  %vm1357_vm0 = vcmask 523264   ;;  %vm1366_vm1 = vcmask 785408  }
  0x41   : > { %vm4634_vm14 = vmand %vm644_vm9, %vm645_vm11 }
  0x42   : > { %431 = vadd.xlane.f32.xlu1 %v430_v24  ;;  %425 = vadd.xlane.f32.xlu0 %v424_v25  ;;  %vm4642_vm15 = vmand %vm650_vm12, %vm651_vm13 }
  0x46   : > { %437 = vadd.xlane.f32.xlu1 %v436_v26  ;;  %434 = vadd.xlane.f32.xlu0 %v433_v27 }
  0x4a   : > { %443 = vadd.xlane.f32.xlu1 %v442_v28  ;;  %440 = vadd.xlane.f32.xlu0 %v439_v29 }
  0xcb   : > { %v429_v32 = vpop.xlane.xlu1 %428  ;;  %v423_v33 = vpop.xlane.xlu0 %422 }
  0xcc   : > { %v447_v34 = vmax.f32 %v429_v32, 1e-24  ;;  %v445_v35 = vmax.f32 %v423_v33, 1e-24 }
  0xce   : > { %4212 = vrsqrt.f32 %v447_v34 }
  0xcf   : > { %4214 = vrsqrt.f32 %v445_v35  ;;  %v432_v36 = vpop.xlane.xlu1 %431  ;;  %v426_v37 = vpop.xlane.xlu0 %425 }
  0xd0   : > { %v448_v38 = vmax.f32 %v432_v36, 1e-24  ;;  %v446_v39 = vmax.f32 %v426_v37, 1e-24 }
  0xd2   : > { %4216 = vrsqrt.f32 %v448_v38 }
  0xd3   : > { %4218 = vrsqrt.f32 %v446_v39  ;;  %v438_v40 = vpop.xlane.xlu1 %437  ;;  %v435_v41 = vpop.xlane.xlu0 %434 }
  0xd4   : > { %v450_v42 = vmax.f32 %v438_v40, 1e-24  ;;  %v449_v43 = vmax.f32 %v435_v41, 1e-24 }
  0xd6   : > { %4220 = vrsqrt.f32 %v450_v42  ;;  %v698_v42 = vld [vmem:[#allocation2] sm:$0xf] }
  0xd7   : > { %4222 = vrsqrt.f32 %v449_v43  ;;  %v444_v44 = vpop.xlane.xlu1 %443  ;;  %v441_v45 = vpop.xlane.xlu0 %440 }
  0xd8   : > { %v4213_v46 = vpop.eup %4212  ;;  %v452_v47 = vmax.f32 %v444_v44, 1e-24  ;;  %v451_v48 = vmax.f32 %v441_v45, 1e-24 }
  0xd9   : > { %v4215_v49 = vpop.eup %4214  ;;  %v463_v50 = vmul.f32 5.656854, %v4213_v46 }
  0xda   : > { %v461_v52 = vmul.f32 5.656854, %v4215_v49  ;;  %4224 = vrsqrt.f32 %v452_v47  ;;  %v718_v47 = vshrl.u32 %v698_v42, 16 }
  0xdb   : > { %v471_v53 = vmul.f32 %v4518_v5, %v463_v50  ;;  %4226 = vrsqrt.f32 %v451_v48  ;;  %v721_v48 = vshll.u32 %v698_v42, 16 }
  0xdc   : > { %v4217_v54 = vpop.eup %4216  ;;  %v469_v55 = vmul.f32 %v4520_v6, %v461_v52 }
  0xdd   : > { %v4219_v56 = vpop.eup %4218  ;;  %v4570_v57 = vmul.f32 %v3738_v51, %v471_v53  ;;  %v464_v58 = vmul.f32 5.656854, %v4217_v54  ;;  %v720_v53 = vrot.slane %v718_v47, 4  ;;  %v723_v54 = vrot.slane %v721_v48, 5  ;;  %v647_v47 = vld [vmem:[#allocation2 + $0x8] sm:$0xf] }
  0xde   : > { %v4572_v59 = vmul.f32 %v3738_v51, %v469_v55  ;;  %v462_v60 = vmul.f32 5.656854, %v4219_v56 }
  0xdf   : > { %v493_v61 = vsub.f32 0.0, %v4570_v57  ;;  %v472_v62 = vmul.f32 %v4522_v7, %v464_v58 }
  0xe0   : > { %v4221_v63 = vpop.eup %4220  ;;  %v491_v0 = vsub.f32 0.0, %v4572_v59  ;;  %v470_v1 = vmul.f32 %v4524_v8, %v462_v60 }
  0xe1   : > { %v4223_v3 = vpop.eup %4222  ;;  %v503_v4 = vmul.f32 1.442695, %v493_v61  ;;  %v4581_v9 = vmul.f32 %v3738_v51, %v472_v62  ;;  %v466_v14 = vmul.f32 5.656854, %v4221_v63  ;;  %v706_v61 = vld [vmem:[#allocation2 + $0x4] sm:$0x1]  ;;  %v724_v63 = vor.u32 %v723_v54, %v720_v53 }
  0xe2   : > { %v499_v15 = vmul.f32 1.442695, %v491_v0  ;;  %v4583_v16 = vmul.f32 %v3738_v51, %v470_v1  ;;  %v465_v17 = vmul.f32 5.656854, %v4223_v3  ;;  %v829_v62 = vld [vmem:[#allocation2] sm:$0xe] }
  0xe3   : > { %4228 = vpow2.f32 %v503_v4  ;;  %v494_v18 = vsub.f32 0.0, %v4581_v9  ;;  %v474_v19 = vmul.f32 %v4527_v10, %v466_v14  ;;  %v727_v0 = vshll.u32 %v706_v61, 16  ;;  %v4603_v4 = vld [vmem:[#allocation2 + $0x48] sm:$0xf] }
  0xe4   : > { %v4225_v20 = vpop.eup %4224  ;;  %4230 = vpow2.f32 %v499_v15  ;;  %v492_v21 = vsub.f32 0.0, %v4583_v16  ;;  %v473_v22 = vmul.f32 %v4529_v11, %v465_v17  ;;  %v3747_v17 = vrot.slane %v829_v62, 9 }
  0xe5   : > { %v4227_v23 = vpop.eup %4226  ;;  %v505_v24 = vmul.f32 1.442695, %v494_v18  ;;  %v4589_v25 = vmul.f32 %v3738_v51, %v474_v19  ;;  %v468_v26 = vmul.f32 5.656854, %v4225_v20  ;;  %v858_v18 = vrot.slane %v706_v61, 5 }
  0xe6   : > { %v501_v27 = vmul.f32 1.442695, %v492_v21  ;;  %v4591_v28 = vmul.f32 %v3738_v51, %v473_v22  ;;  %v467_v29 = vmul.f32 5.656854, %v4227_v23  ;;  %v4611_v22 = vrot.slane %v724_v63, 4 }
  0xe7   : > { %4232 = vpow2.f32 %v505_v24  ;;  %v496_v30 = vsub.f32 0.0, %v4589_v25  ;;  %v476_v31 = vmul.f32 %v4531_v12, %v468_v26  ;;  %v4613_v23 = vrot.slane %v727_v0, 5 }
  0xe8   : > { %4234 = vpow2.f32 %v501_v27  ;;  %v495_v32 = vsub.f32 0.0, %v4591_v28  ;;  %v475_v33 = vmul.f32 %v4533_v13, %v467_v29 }
  0xe9   : > { %v509_v34 = vmul.f32 1.442695, %v496_v30  ;;  %v4597_v35 = vmul.f32 %v3738_v51, %v476_v31  ;;  %v1191_v30 = vshll.u32 %v4603_v4, 16 }
  0xea   : > { %v507_v36 = vmul.f32 1.442695, %v495_v32  ;;  %v4599_v37 = vmul.f32 %v3738_v51, %v475_v33 }
  0xeb   : > { %4236 = vpow2.f32 %v509_v34  ;;  %v498_v38 = vsub.f32 0.0, %v4597_v35  ;;  %v662_v34 = vld [vmem:[#allocation2 + $0x18] sm:$0xf] }
  0xec   : > { %4238 = vpow2.f32 %v507_v36  ;;  %v497_v39 = vsub.f32 0.0, %v4599_v37 }
  0xed   : > { %v4229_v40 = vpop.eup %4228  ;;  %v513_v41 = vmul.f32 1.442695, %v498_v38 }
  0xee   : > { %v4231_v43 = vpop.eup %4230  ;;  %v517_v44 = vadd.f32 1.0, %v4229_v40  ;;  %v511_v45 = vmul.f32 1.442695, %v497_v39  ;;  %v4627_v39 = vsel %vm4607_vm8, %v3747_v17, %v858_v18 }
  0xef   : > { %v515_v46 = vadd.f32 1.0, %v4231_v43  ;;  %4240 = vpow2.f32 %v513_v41 }
  0xf0   : > { %4242 = vrcp.f32 %v517_v44 }
  0xf1   : > { %v4233_v49 = vpop.eup %4232  ;;  %4244 = vrcp.f32 %v515_v46 }
  0xf2   : > { %v4235_v50 = vpop.eup %4234  ;;  %v518_v51 = vadd.f32 1.0, %v4233_v49  ;;  %4246 = vpow2.f32 %v511_v45 }
  0xf3   : > { %v516_v52 = vadd.f32 1.0, %v4235_v50 }
  0xf4   : > { %4248 = vrcp.f32 %v518_v51  ;;  %v4646_v51 = vrot.slane %v1191_v30, 5 }
  0xf5   : > { %v4237_v55 = vpop.eup %4236  ;;  %4250 = vrcp.f32 %v516_v52 }
  0xf6   : > { %v4239_v56 = vpop.eup %4238  ;;  %v520_v58 = vadd.f32 1.0, %v4237_v55  ;;  %v653_v55 = vld [vmem:[#allocation2 + $0xc] sm:$0x1] }
  0xf7   : > { %v519_v60 = vadd.f32 1.0, %v4239_v56 }
  0xf8   : > { %4252 = vrcp.f32 %v520_v58 }
  0xf9   : > { %v4241_v1 = vpop.eup %4240  ;;  %4254 = vrcp.f32 %v519_v60 }
  0xfa   : > { %v4243_v2 = vpop.eup %4242  ;;  %v522_v3 = vadd.f32 1.0, %v4241_v1 }
  0xfb   : > { %v4245_v14 = vpop.eup %4244  ;;  %v533_v15 = vmul.f32 %v4243_v2, %v4570_v57  ;;  %v668_v2 = vld [vmem:[#allocation2 + $0x20] sm:$0xf]  ;;  %v3410_v57 = vld [vmem:[#allocation7 + $0x30] sm:$0xff] }
  0xfc   : > { %v4247_v19 = vpop.eup %4246  ;;  %v531_v20 = vmul.f32 %v4245_v14, %v4572_v59  ;;  %4256 = vrcp.f32 %v522_v3  ;;  %v1188_v59 = vshrl.u32 %v4603_v4, 16  ;;  %v671_v3 = vld [vmem:[#allocation2 + $0x24] sm:$0x1] }
  0xfd   : > { %v3934_v24 = vpack.c.bf16 %v533_v15, %v533_v15  ;;  %v521_v26 = vadd.f32 1.0, %v4247_v19 }
  0xfe   : > { %v4249_v27 = vpop.eup %4248  ;;  %v3932_v29 = vpack.c.bf16 %v531_v20, %v531_v20  ;;  %v4638_v45 = vrot.slane %v1188_v59, 4  ;;  %v656_v20 = vld [vmem:[#allocation2 + $0x10] sm:$0xf] }
  0xff   : > { %v4251_v31 = vpop.eup %4250  ;;  %v580_v32 = vshrl.u32 %v3934_v24, 16  ;;  %v534_v33 = vmul.f32 %v4249_v27, %v4581_v9  ;;  %4258 = vrcp.f32 %v521_v26  ;;  %v665_v9 = vld [vmem:[#allocation2 + $0x1c] sm:$0x1]  ;;  %v583_v43 = vshll.u32 %v3934_v24, 16  ;;  %v659_v24 = vld [vmem:[#allocation2 + $0x14] sm:$0x1] }
 0x100   : > { %v564_v36 = vshrl.u32 %v3932_v29, 16  ;;  %v532_v38 = vmul.f32 %v4251_v31, %v4583_v16  ;;  %v567_v49 = vshll.u32 %v3932_v29, 16  ;;  %v4659_v31 = vld [vmem:[#allocation2 + $0x48] sm:$0xe] }
 0x101   : > { %v582_v42 = vrot.slane %v580_v32, 7  ;;  %v3935_v44 = vpack.c.bf16 %v534_v33, %v534_v33  ;;  %v4167_v32 = vld [vmem:[%s6023_s2] sm:$0xff]   ;;  %v4168_v33 = vld [vmem:[%s6023_s2 + $0x48] sm:$0xff]  }
 0x102   : > { %v4253_v16 = vpop.eup %4252  ;;  %v566_v48 = vrot.slane %v564_v36, 7  ;;  %v3933_v50 = vpack.c.bf16 %v532_v38, %v532_v38  ;;  %v4667_v38 = vld [vmem:[#allocation2 + $0x4c] sm:$0x1]  ;;  %3976 = vmatpush3.bf16.msra.mxu0 %v4167_v32 }
 0x103   : > { %v4255_v52 = vpop.eup %4254  ;;  %v585_v53 = vor.u32 %v583_v43, %v582_v42  ;;  %v586_v54 = vrot.slane %v582_v42, 4  ;;  %v588_v56 = vshrl.u32 %v3935_v44, 16  ;;  %v591_v58 = vshll.u32 %v3935_v44, 16  ;;  %3977 = vmatprep.subr.bf16.mxu0 %v4168_v33 }
 0x104   : > { %v569_v60 = vor.u32 %v567_v49, %v566_v48  ;;  %v570_v61 = vrot.slane %v566_v48, 4  ;;  %v572_v62 = vshrl.u32 %v3933_v50, 16  ;;  %v575_v63 = vshll.u32 %v3933_v50, 16 }
 0x105   : > { %v663_v0 = vsel %vm4634_vm14, %v585_v53, %v662_v34  ;;  %v666_v1 = vsel %vm4642_vm15, %v586_v54, %v665_v9  ;;  %v590_v14 = vrot.slane %v588_v56, 7  ;;  %v536_v15 = vmul.f32 %v4253_v16, %v4589_v25  ;;  %v674_v54 = vld [vmem:[#allocation2 + $0x28] sm:$0xf] }
 0x106   : > { %v4257_v17 = vpop.eup %4256  ;;  %664 = vst [vmem:[#allocation2 + $0x18] sm:$0xf] %v663_v0  ;;  %667 = vst [vmem:[#allocation2 + $0x1c] sm:$0x1] %v666_v1  ;;  %v648_v18 = vsel %vm4634_vm14, %v569_v60, %v647_v47  ;;  %v654_v19 = vsel %vm4642_vm15, %v570_v61, %v653_v55  ;;  %v574_v26 = vrot.slane %v572_v62, 7  ;;  %v535_v59 = vmul.f32 %v4255_v52, %v4591_v28 }
 0x107   : > { %649 = vst [vmem:[#allocation2 + $0x8] sm:$0xf] %v648_v18  ;;  %655 = vst [vmem:[#allocation2 + $0xc] sm:$0x1] %v654_v19  ;;  %v593_v27 = vor.u32 %v591_v58, %v590_v14  ;;  %v594_v29 = vrot.slane %v590_v14, 4  ;;  %v3937_v30 = vpack.c.bf16 %v536_v15, %v536_v15  ;;  %v538_v25 = vmul.f32 %v4257_v17, %v4597_v35  ;;  %v4169_v15 = vld [vmem:[%s6023_s2 + $0x8] sm:$0xff]  }
 0x108   : > { %v577_v34 = vor.u32 %v575_v63, %v574_v26  ;;  %v578_v36 = vrot.slane %v574_v26, 4  ;;  %v3936_v28 = vpack.c.bf16 %v535_v59, %v535_v59  ;;  %v1194_v9 = vor.u32 %v4646_v51, %v4638_v45  ;;  %v680_v45 = vld [vmem:[#allocation2 + $0x30] sm:$0xf]  ;;  %v683_v51 = vld [vmem:[#allocation2 + $0x34] sm:$0x1]  ;;  %3978 = vmatpush3.bf16.msra.mxu0 %v4169_v15 }
 0x109   : > { %v4259_v42 = vpop.eup %4258  ;;  %v669_v35 = vsel %vm4634_vm14, %v593_v27, %v668_v2  ;;  %v672_v43 = vsel %vm4642_vm15, %v594_v29, %v671_v3  ;;  %v604_v44 = vshrl.u32 %v3937_v30, 16  ;;  %v1197_v16 = vshll.u32 %v4667_v38, 16  ;;  %v677_v58 = vld [vmem:[#allocation2 + $0x2c] sm:$0x1] }
 0x10a   : > { %670 = vst [vmem:[#allocation2 + $0x20] sm:$0xf] %v669_v35  ;;  %673 = vst [vmem:[#allocation2 + $0x24] sm:$0x1] %v672_v43  ;;  %v657_v47 = vsel %vm4634_vm14, %v577_v34, %v656_v20  ;;  %v660_v48 = vsel %vm4642_vm15, %v578_v36, %v659_v24  ;;  %v596_v49 = vshrl.u32 %v3936_v28, 16  ;;  %v3770_v50 = vrot.slane %v4659_v31, 9 }
 0x10b   : > { %658 = vst [vmem:[#allocation2 + $0x10] sm:$0xf] %v657_v47  ;;  %661 = vst [vmem:[#allocation2 + $0x14] sm:$0x1] %v660_v48  ;;  %v606_v52 = vrot.slane %v604_v44, 7  ;;  %v607_v53 = vshll.u32 %v3937_v30, 16  ;;  %v3939_v55 = vpack.c.bf16 %v538_v25, %v538_v25  ;;  %v537_v56 = vmul.f32 %v4259_v42, %v4599_v37 }
 0x10c   : > { %v598_v60 = vrot.slane %v596_v49, 7  ;;  %v599_v61 = vshll.u32 %v3936_v28, 16  ;;  %v1255_v62 = vrot.slane %v4667_v38, 5  ;;  %v4683_v63 = vrot.slane %v1194_v9, 4  ;;  %v692_v25 = vld [vmem:[#allocation2 + $0x40] sm:$0xf] }
 0x10d   : > { %v609_v0 = vor.u32 %v607_v53, %v606_v52  ;;  %v610_v1 = vrot.slane %v606_v52, 4  ;;  %v620_v2 = vshrl.u32 %v3939_v55, 16  ;;  %v1074_v3 = vld [vmem:[#allocation2 + $0x18] sm:$0xf]  ;;  %v4685_v14 = vrot.slane %v1197_v16, 5  ;;  %v4170_v42 = vld [vmem:[%s6023_s2 + $0x50] sm:$0xff]  }
 0x10e   : > { %v601_v17 = vor.u32 %v599_v61, %v598_v60  ;;  %v602_v18 = vrot.slane %v598_v60, 4  ;;  %v3938_v37 = vpack.c.bf16 %v537_v56, %v537_v56  ;;  %v1104_v19 = vshrl.u32 %v1074_v3, 16  ;;  %v4694_v27 = vld [vmem:[#allocation2 + $0x8] sm:$0xf]  ;;  %v695_v31 = vld [vmem:[#allocation2 + $0x44] sm:$0x1]  ;;  %3979 = vmatprep.subr.bf16.mxu0 %v4170_v42 }
 0x10f   : > { %v681_v20 = vsel %vm4634_vm14, %v609_v0, %v680_v45  ;;  %v684_v24 = vsel %vm4642_vm15, %v610_v1, %v683_v51  ;;  %v622_v26 = vrot.slane %v620_v2, 7  ;;  %v623_v59 = vshll.u32 %v3939_v55, 16  ;;  %v686_v28 = vld [vmem:[#allocation2 + $0x38] sm:$0xf]  ;;  %v689_v51 = vld [vmem:[#allocation2 + $0x3c] sm:$0x1] }
 0x110   : > { %682 = vst [vmem:[#allocation2 + $0x30] sm:$0xf] %v681_v20  ;;  %685 = vst [vmem:[#allocation2 + $0x34] sm:$0x1] %v684_v24  ;;  %v675_v29 = vsel %vm4634_vm14, %v601_v17, %v674_v54  ;;  %v678_v30 = vsel %vm4642_vm15, %v602_v18, %v677_v58  ;;  %v612_v32 = vshrl.u32 %v3938_v37, 16  ;;  %v1107_v33 = vshll.u32 %v1074_v3, 16 }
 0x111   : > { %676 = vst [vmem:[#allocation2 + $0x28] sm:$0xf] %v675_v29  ;;  %679 = vst [vmem:[#allocation2 + $0x2c] sm:$0x1] %v678_v30  ;;  %v625_v34 = vor.u32 %v623_v59, %v622_v26  ;;  %v626_v36 = vrot.slane %v622_v26, 4  ;;  %v615_v38 = vshll.u32 %v3938_v37, 16  ;;  %v4708_v47 = vsel %vm4607_vm8, %v3770_v50, %v1255_v62 }
 0x112   : > { %v4700_v9 = vrot.slane %v1104_v19, 4  ;;  %v614_v35 = vrot.slane %v612_v32, 7  ;;  %v1073_v43 = vld [vmem:[#allocation2 + $0x10] sm:$0xf]  ;;  %v905_v16 = vshrl.u32 %v4694_v27, 16  ;;  %v4720_v56 = vrot.slane %v1107_v33, 5 }
 0x113   : > { %v889_v44 = vld [vmem:[#allocation2 + $0x10] sm:$0xf]  ;;  %v693_v45 = vsel %vm4634_vm14, %v625_v34, %v692_v25  ;;  %v696_v49 = vsel %vm4642_vm15, %v626_v36, %v695_v31  ;;  %v3795_v52 = vcombine.low %v1073_v43, %v1074_v3  ;;  %v1090_v53 = vshrl.u32 %v1073_v43, 16  ;;  %v4718_v54 = vld [vmem:[#allocation2 + $0x18] sm:$0xf] }
 0x114   : > { %694 = vst [vmem:[#allocation2 + $0x40] sm:$0xf] %v693_v45  ;;  %697 = vst [vmem:[#allocation2 + $0x44] sm:$0x1] %v696_v49  ;;  %v617_v50 = vor.u32 %v615_v38, %v614_v35  ;;  %v618_v55 = vrot.slane %v614_v35, 4  ;;  %v1093_v58 = vshll.u32 %v1073_v43, 16  ;;  %v3783_v17 = vcombine.low %v4694_v27, %v889_v44 }
 0x115   : > { %v1075_v60 = vld [vmem:[#allocation2 + $0x20] sm:$0xf]  ;;  %1435 = vrot.lane.b32.xlu1 %v3795_v52, %s4360_s17  ;;  %v4723_v61 = vrot.slane %v1090_v53, 4  ;;  %v907_v62 = vrot.slane %v905_v16, 4  ;;  %v908_v0 = vshll.u32 %v4694_v27, 16  ;;  %v919_v1 = vshrl.u32 %v889_v44, 16 }
 0x116   : > { %v891_v2 = vld [vmem:[#allocation2 + $0x20] sm:$0xf]  ;;  %v687_v3 = vsel %vm4634_vm14, %v617_v50, %v686_v28  ;;  %v690_v15 = vsel %vm4642_vm15, %v618_v55, %v689_v51  ;;  %v922_v18 = vshll.u32 %v889_v44, 16  ;;  %v1118_v20 = vshrl.u32 %v1075_v60, 16  ;;  %v4733_v31 = vld [vmem:[#allocation2 + $0xc] sm:$0x1] }
 0x117   : > { %688 = vst [vmem:[#allocation2 + $0x38] sm:$0xf] %v687_v3  ;;  %691 = vst [vmem:[#allocation2 + $0x3c] sm:$0x1] %v690_v15  ;;  %v910_v37 = vrot.slane %v908_v0, 5  ;;  %v921_v19 = vrot.slane %v919_v1, 4  ;;  %v3784_v1 = vcombine.low %v4718_v54, %v891_v2 }
 0x118   : > { %v1121_v24 = vshll.u32 %v1075_v60, 16  ;;  %v924_v26 = vrot.slane %v922_v18, 5  ;;  %v1076_v59 = vld [vmem:[#allocation2 + $0x28] sm:$0xf]  ;;  %v933_v29 = vshrl.u32 %v4718_v54, 16  ;;  %v936_v30 = vshll.u32 %v4718_v54, 16 }
 0x119   : > { %v947_v25 = vshrl.u32 %v891_v2, 16  ;;  %v4735_v32 = vrot.slane %v1093_v58, 5  ;;  %v911_v33 = vor.u32 %v910_v37, %v907_v62  ;;  %1337 = vrot.lane.b32.xlu1 %v3783_v17, %s4361_s19  ;;  %v4738_v27 = vrot.slane %v1118_v20, 4  ;;  %v4740_v36 = vld [vmem:[#allocation2 + $0x14] sm:$0x1]  ;;  %v4172_v15 = vld [vmem:[%s6023_s2 + $0x58] sm:$0xff]  }
 0x11a   : > { %v3796_v34 = vcombine.low %v1075_v60, %v1076_v59  ;;  %v1016_v28 = vld [vmem:[#allocation2 + $0x8] sm:$0xe]  ;;  %v1017_v38 = vld [vmem:[#allocation2 + $0x10] sm:$0xe]  ;;  %v925_v42 = vor.u32 %v924_v26, %v921_v19  ;;  %v1132_v35 = vshrl.u32 %v1076_v59, 16  ;;  %v1135_v43 = vshll.u32 %v1076_v59, 16 }
 0x11b   : > { %v935_v44 = vrot.slane %v933_v29, 4  ;;  %v4742_v16 = vld [vmem:[#allocation2 + $0x14] sm:$0x1]  ;;  %v4747_v49 = vrot.slane %v1121_v24, 5  ;;  %v938_v51 = vrot.slane %v936_v30, 5  ;;  %v949_v52 = vrot.slane %v947_v25, 4 }
 0x11c   : > { %v4171_v45 = vld [vmem:[%s6023_s2 + $0x10] sm:$0xff]   ;;  %1437 = vrot.lane.b32.xlu0 %v3796_v34, %s4360_s17  ;;  %v950_v53 = vshll.u32 %v891_v2, 16  ;;  %v4750_v50 = vld [vmem:[#allocation2 + $0x1c] sm:$0x1]  ;;  %v1202_v58 = vld [vmem:[#allocation2 + $0x18] sm:$0xe] }
 0x11d   : > { %v1201_v55 = vld [vmem:[#allocation2 + $0x10] sm:$0xe]  ;;  %v4752_v60 = vrot.slane %v911_v33, 4  ;;  %v4754_v62 = vrot.slane %v925_v42, 4  ;;  %v4756_v0 = vrot.slane %v1132_v35, 4  ;;  %3980 = vmatpush3.bf16.msra.mxu0 %v4171_v45  ;;  %v4762_v17 = vrot.slane %v1135_v43, 5  ;;  %1339 = vrot.lane.b32.xlu1 %v3784_v1, %s4361_s19 }
 0x11e   : > { %v830_v3 = vld [vmem:[#allocation2 + $0x8] sm:$0xe]  ;;  %v939_v18 = vor.u32 %v938_v51, %v935_v44  ;;  %v952_v37 = vrot.slane %v950_v53, 5  ;;  %v4765_v20 = vld [vmem:[#allocation2 + $0xc] sm:$0x1]  ;;  %v4173_v54 = vld [vmem:[%s6023_s2 + $0x18] sm:$0xff]   ;;  %3981 = vmatprep.subr.bf16.mxu0 %v4172_v15 }
 0x11f   : > { %v4767_v24 = vld [vmem:[#allocation2 + $0x1c] sm:$0x1]  ;;  %v3755_v2 = vrot.slane %v1016_v28, 9  ;;  %v1042_v26 = vrot.slane %v4733_v31, 5  ;;  %v3756_v59 = vrot.slane %v1017_v38, 9  ;;  %v1046_v29 = vrot.slane %v4740_v36, 5 }
 0x120   : > { %v1018_v30 = vld [vmem:[#allocation2 + $0x18] sm:$0xe]  ;;  %v1019_v25 = vld [vmem:[#allocation2 + $0x20] sm:$0xe]  ;;  %v953_v33 = vor.u32 %v952_v37, %v949_v52  ;;  %v3763_v42 = vrot.slane %v1201_v55, 9  ;;  %v1227_v35 = vrot.slane %v4742_v16, 5 }
 0x121   : > { %v4777_v43 = vld [vmem:[#allocation2 + $0x24] sm:$0x1]  ;;  %v1043_v38 = vsel %vm4607_vm8, %v3755_v2, %v1042_v26  ;;  %v1047_v45 = vsel %vm4607_vm8, %v3756_v59, %v1046_v29  ;;  %v3764_v51 = vrot.slane %v1202_v58, 9  ;;  %v1231_v52 = vrot.slane %v4750_v50, 5  ;;  %v4789_v53 = vld [vmem:[#allocation2 + $0x2c] sm:$0x1]  ;;  %3982 = vmatpush3.bf16.msra.mxu0 %v4173_v54 }
 0x122   : > { %v4779_v44 = vld [vmem:[#allocation2 + $0x24] sm:$0x1]  ;;  %v1203_v55 = vld [vmem:[#allocation2 + $0x20] sm:$0xe]  ;;  %v4791_v1 = vrot.slane %v939_v18, 4  ;;  %v3791_v15 = vcombine.low %v1043_v38, %v1047_v45  ;;  %v1228_v37 = vsel %vm4607_vm8, %v3763_v42, %v1227_v35  ;;  %v3748_v34 = vrot.slane %v830_v3, 9 }
 0x123   : > { %v4174_v28 = vld [vmem:[%s6023_s2 + $0x60] sm:$0xff]   ;;  %v1204_v19 = vld [vmem:[#allocation2 + $0x28] sm:$0xe]  ;;  %v4795_v48 = vld [vmem:[#allocation2 + $0x14] sm:$0x1]  ;;  %v4797_v2 = vrot.slane %v953_v33, 4  ;;  %v1232_v58 = vsel %vm4607_vm8, %v3764_v51, %v1231_v52 }
 0x124   : > { %3983 = vmatprep.subr.bf16.mxu0 %v4174_v28  ;;  %v862_v26 = vrot.slane %v4765_v20, 5  ;;  %v4803_v18 = vld [vmem:[#allocation2 + $0x1c] sm:$0x1]  ;;  %v831_v59 = vld [vmem:[#allocation2 + $0x10] sm:$0xe]  ;;  %v4175_v3 = vld [vmem:[%s6023_s2 + $0x20] sm:$0xff]   ;;  %1407 = vrot.lane.b32.xlu0 %v3791_v15, %s4362_s12  ;;  %v3803_v29 = vcombine.low %v1228_v37, %v1232_v58 }
 0x125   : > { %v3757_v33 = vrot.slane %v1018_v30, 9  ;;  %v1050_v42 = vrot.slane %v4767_v24, 5  ;;  %v3758_v35 = vrot.slane %v1019_v25, 9  ;;  %v832_v28 = vld [vmem:[#allocation2 + $0x18] sm:$0xe]  ;;  %v4176_v38 = vld [vmem:[%s6023_s2 + $0x68] sm:$0xff]   ;;  %3984 = vmatpush3.bf16.msra.mxu0 %v4175_v3 }
 0x126   : > { %v863_v45 = vsel %vm4607_vm8, %v3748_v34, %v862_v26  ;;  %v1054_v51 = vrot.slane %v4777_v43, 5  ;;  %v3765_v52 = vrot.slane %v1203_v55, 9  ;;  %v1235_v54 = vrot.slane %v4779_v44, 5  ;;  %v4817_v40 = vld [vmem:[#allocation2 + $0x2c] sm:$0x1]  ;;  %1515 = vst.msk [vmem:[#allocation4 + $0x10] sm:$0xff] %vm420_vm3, %v3803_v29  ;;  %3985 = vmatprep.subr.bf16.mxu0 %v4176_v38 }
 0x127   : > { %v3779_v30 = vcombine.low %v4627_v39, %v863_v45  ;;  %v1051_v25 = vsel %vm4607_vm8, %v3757_v33, %v1050_v42  ;;  %v3766_v15 = vrot.slane %v1204_v19, 9  ;;  %v1239_v37 = vrot.slane %v4789_v53, 5  ;;  %v4824_v58 = vld [vmem:[#allocation2 + $0x34] sm:$0x1]  ;;  %v1020_v34 = vld [vmem:[#allocation2 + $0x28] sm:$0xe] }
 0x128   : > { %v1055_v55 = vsel %vm4607_vm8, %v3758_v35, %v1054_v51  ;;  %v1236_v26 = vsel %vm4607_vm8, %v3765_v52, %v1235_v54  ;;  %v3749_v3 = vrot.slane %v831_v59, 9  ;;  %v866_v29 = vrot.slane %v4795_v48, 5  ;;  %v1021_v39 = vld [vmem:[#allocation2 + $0x30] sm:$0xe]  ;;  %v4831_v45 = vld [vmem:[#allocation2 + $0x34] sm:$0x1] }
 0x129   : > { %1309 = vrot.lane.b32.xlu1 %v3779_v30, %s4360_s17  ;;  %v3792_v19 = vcombine.low %v1051_v25, %v1055_v55  ;;  %v1240_v33 = vsel %vm4607_vm8, %v3766_v15, %v1239_v37  ;;  %v3750_v42 = vrot.slane %v832_v28, 9  ;;  %v870_v38 = vrot.slane %v4803_v18, 5  ;;  %v4837_v12 = vld [vmem:[#allocation2 + $0x3c] sm:$0x1]  ;;  %v1205_v35 = vld [vmem:[#allocation2 + $0x30] sm:$0xe] }
 0x12a   : > { %v3804_v59 = vcombine.low %v1236_v26, %v1240_v33  ;;  %v867_v51 = vsel %vm4607_vm8, %v3749_v3, %v866_v29  ;;  %v1206_v13 = vld [vmem:[#allocation2 + $0x38] sm:$0xe]  ;;  %v4843_v30 = vld [vmem:[#allocation2 + $0x8] sm:$0xf]  ;;  %v3759_v25 = vrot.slane %v1020_v34, 9  ;;  %v1058_v15 = vrot.slane %v4817_v40, 5 }
 0x12b   : > { %1409 = vrot.lane.b32.xlu0 %v3792_v19, %s4362_s12  ;;  %v871_v28 = vsel %vm4607_vm8, %v3750_v42, %v870_v38  ;;  %v3760_v37 = vrot.slane %v1021_v39, 9  ;;  %v1062_v26 = vrot.slane %v4824_v58, 5  ;;  %v3767_v3 = vrot.slane %v1205_v35, 9  ;;  %v4856_v34 = vld [vmem:[#allocation2 + $0x44] sm:$0x1] }
 0x12c   : > { %1516 = vst.msk [vmem:[#allocation4 + $0x28] sm:$0xff] %vm420_vm3, %v3804_v59  ;;  %v3780_v55 = vcombine.low %v867_v51, %v871_v28  ;;  %v1243_v29 = vrot.slane %v4831_v45, 5  ;;  %v1059_v33 = vsel %vm4607_vm8, %v3759_v25, %v1058_v15  ;;  %v3768_v52 = vrot.slane %v1206_v13, 9  ;;  %v1207_v13 = vld [vmem:[#allocation2 + $0x40] sm:$0xe] }
 0x12d   : > { %v1247_v19 = vrot.slane %v4837_v12, 5  ;;  %v732_v42 = vshrl.u32 %v4843_v30, 16  ;;  %v1521_v38 = vld [vmem:[#allocation4 + $0x10] sm:$0xff]  ;;  %v1063_v39 = vsel %vm4607_vm8, %v3760_v37, %v1062_v26  ;;  %v735_v59 = vshll.u32 %v4843_v30, 16  ;;  %v4870_v54 = vld [vmem:[#allocation2 + $0x24] sm:$0x1] }
 0x12e   : > { %1311 = vrot.lane.b32.xlu1 %v3780_v55, %s4360_s17  ;;  %v1244_v35 = vsel %vm4607_vm8, %v3767_v3, %v1243_v29  ;;  %v741_v51 = vshll.u32 %v4765_v20, 16  ;;  %4071 = vmatprep.mubr.msk.bf16.mxu1 %vm420_vm3, %v1521_v38  ;;  %v3793_v28 = vcombine.low %v1059_v33, %v1063_v39  ;;  %v1096_v55 = vor.u32 %v4735_v32, %v4723_v61  ;;  %v833_v37 = vld [vmem:[#allocation2 + $0x20] sm:$0xe]  ;;  %v4177_v26 = vld [vmem:[%s6023_s2 + $0x28] sm:$0xff]  }
 0x12f   : > { %v1248_v25 = vsel %vm4607_vm8, %v3768_v52, %v1247_v19  ;;  %v734_v15 = vrot.slane %v732_v42, 4  ;;  %v737_v20 = vrot.slane %v735_v59, 5  ;;  %v1099_v38 = vshll.u32 %v4742_v16, 16  ;;  %v834_v33 = vld [vmem:[#allocation2 + $0x28] sm:$0xe]  ;;  %v4178_v52 = vld [vmem:[%s6023_s2 + $0x70] sm:$0xff]   ;;  %3986 = vmatpush3.bf16.msra.mxu0 %v4177_v26 }
 0x130   : > { %v3805_v3 = vcombine.low %v1244_v35, %v1248_v25  ;;  %v743_v29 = vrot.slane %v741_v51, 5  ;;  %1411 = vrot.lane.b32.xlu0 %v3793_v28, %s4362_s12  ;;  %v1097_v61 = vrot.slane %v1096_v55, 4  ;;  %v1110_v32 = vor.u32 %v4720_v56, %v4700_v9  ;;  %v4883_v39 = vld [vmem:[#allocation2 + $0x2c] sm:$0x1]  ;;  %v4179_v16 = vld [vmem:[%s6023_s2 + $0x30] sm:$0xff]   ;;  %3987 = vmatprep.subr.bf16.mxu0 %v4178_v52  ;;  %v4180_v9 = vld [vmem:[%s6023_s2 + $0x78] sm:$0xff]  }
 0x131   : > { %v1113_v19 = vshll.u32 %v4750_v50, 16  ;;  %v3769_v42 = vrot.slane %v1207_v13, 9  ;;  %v738_v35 = vor.u32 %v737_v20, %v734_v15  ;;  %v1101_v59 = vrot.slane %v1099_v38, 5  ;;  %v1077_v25 = vld [vmem:[#allocation2 + $0x30] sm:$0xf] }
 0x132   : > { %1517 = vst.msk [vmem:[#allocation4 + $0x40] sm:$0xff] %vm420_vm3, %v3805_v3  ;;  %v1251_v51 = vrot.slane %v4856_v34, 5  ;;  %v3751_v28 = vrot.slane %v833_v37, 9  ;;  %v1111_v50 = vrot.slane %v1110_v32, 4  ;;  %v874_v55 = vrot.slane %v4870_v54, 5 }
 0x133   : > { %v1524_v56 = vld [vmem:[#allocation4 + $0x28] sm:$0xff]  ;;  %v1115_v13 = vrot.slane %v1113_v19, 5  ;;  %v3752_v26 = vrot.slane %v834_v33, 9  ;;  %v739_v3 = vrot.slane %v738_v35, 4  ;;  %v1102_v15 = vsel %vm4617_vm10, %v1097_v61, %v1101_v59  ;;  %v1078_v33 = vld [vmem:[#allocation2 + $0x38] sm:$0xf]  ;;  %3988 = vmatpush3.bf16.msra.mxu0 %v4179_v16 }
 0x134   : > { %4072 = vmatmul.mubr.msk.bf16.vlgmr.msra.gmra.mrb[0].mxu1 %vm420_vm3, %v1524_v56  ;;  %v1252_v37 = vsel %vm4607_vm8, %v3769_v42, %v1251_v51  ;;  %v878_v20 = vrot.slane %v4883_v39, 5  ;;  %v875_v32 = vsel %vm4607_vm8, %v3751_v28, %v874_v55  ;;  %v1146_v19 = vshrl.u32 %v1077_v25, 16  ;;  %v4905_v56 = vld [vmem:[#allocation2 + $0x10] sm:$0xf]  ;;  %v4911_v51 = vld [vmem:[#allocation2 + $0x18] sm:$0xf]  ;;  %3989 = vmatprep.subr.bf16.mxu0 %v4180_v9 }
 0x135   : > { %v1116_v38 = vsel %vm4617_vm10, %v1111_v50, %v1115_v13  ;;  %v3806_v52 = vcombine.low %v1252_v37, %v4708_v47  ;;  %v744_v61 = vsel %vm4617_vm10, %v739_v3, %v743_v29  ;;  %v1149_v59 = vshll.u32 %v1077_v25, 16 }
 0x136   : > { %v3799_v35 = vcombine.low %v1102_v15, %v1116_v38  ;;  %v879_v42 = vsel %vm4607_vm8, %v3752_v26, %v878_v20  ;;  %v984_v47 = vshll.u32 %v4824_v58, 16  ;;  %v6052_v28 = vsel %vm4617_vm10, %v4611_v22, %v4613_v23 }
 0x137   : > { %v3775_v50 = vcombine.low %v6052_v28, %v744_v61  ;;  %1518 = vst.msk [vmem:[#allocation4 + $0x58] sm:$0xff] %vm420_vm3, %v3806_v52  ;;  %v3781_v16 = vcombine.low %v875_v32, %v879_v42  ;;  %v4920_v29 = vrot.slane %v1146_v19, 4  ;;  %v4923_v13 = vrot.slane %v1149_v59, 5  ;;  %v4935_v32 = vld [vmem:[#allocation2 + $0x28] sm:$0xf] }
 0x138   : > { %1455 = vrot.lane.b32.xlu0 %v3799_v35, %s4361_s19  ;;  %v3797_v55 = vcombine.low %v1077_v25, %v1078_v33  ;;  %v1160_v26 = vshrl.u32 %v1078_v33, 16  ;;  %v746_v9 = vshrl.u32 %v4905_v56, 16  ;;  %v749_v15 = vshll.u32 %v4905_v56, 16 }
 0x139   : > { %v1527_v3 = vld [vmem:[#allocation4 + $0x40] sm:$0xff]  ;;  %1289 = vrot.lane.b32.xlu1 %v3775_v50, %s4362_s12  ;;  %v755_v22 = vshll.u32 %v4795_v48, 16  ;;  %v760_v23 = vshrl.u32 %v4911_v51, 16  ;;  %v763_v37 = vshll.u32 %v4911_v51, 16  ;;  %v1163_v38 = vshll.u32 %v1078_v33, 16 }
 0x13a   : > { %4075 = vmatprep.mubr.msk.bf16.mxu1 %vm420_vm3, %v1527_v3  ;;  %v4932_v20 = vrot.slane %v1160_v26, 4  ;;  %v748_v25 = vrot.slane %v746_v9, 4  ;;  %v769_v52 = vshll.u32 %v4803_v18, 16  ;;  %v751_v19 = vrot.slane %v749_v15, 5  ;;  %v893_v9 = vld [vmem:[#allocation2 + $0x30] sm:$0xf] }
 0x13b   : > { %v757_v61 = vrot.slane %v755_v22, 5  ;;  %v762_v35 = vrot.slane %v760_v23, 4  ;;  %v765_v42 = vrot.slane %v763_v37, 5  ;;  %v1124_v59 = vor.u32 %v4747_v49, %v4738_v27  ;;  %v4182_v49 = vld [vmem:[%s6023_s2 + $0x38] sm:$0xff]  }
 0x13c   : > { %1439 = vrot.lane.b32.xlu0 %v3797_v55, %s4360_s17  ;;  %v771_v48 = vrot.slane %v769_v52, 5  ;;  %v1127_v28 = vshll.u32 %v4779_v44, 16  ;;  %v1138_v33 = vor.u32 %v4762_v17, %v4756_v0  ;;  %v752_v18 = vor.u32 %v751_v19, %v748_v25  ;;  %3990 = vmatpush3.bf16.msra.mxu0 %v4182_v49 }
 0x13d   : > { %1313 = vrot.lane.b32.xlu1 %v3781_v16, %s4360_s17  ;;  %v766_v50 = vor.u32 %v765_v42, %v762_v35  ;;  %v1141_v26 = vshll.u32 %v4789_v53, 16  ;;  %v961_v3 = vshrl.u32 %v4935_v32, 16  ;;  %v1125_v55 = vrot.slane %v1124_v59, 4  ;;  %v4951_v53 = vld [vmem:[#allocation2 + $0x3c] sm:$0x1] }
 0x13e   : > { %v1530_v15 = vld [vmem:[#allocation4 + $0x58] sm:$0xff]  ;;  %v1129_v22 = vrot.slane %v1127_v28, 5  ;;  %v1139_v23 = vrot.slane %v1138_v33, 4  ;;  %v964_v27 = vshll.u32 %v4935_v32, 16  ;;  %v753_v0 = vrot.slane %v752_v18, 4 }
 0x13f   : > { %4076 = vmatmul.mubr.msk.bf16.gmra.mrb[4].mxu1 %vm420_vm3, %v1530_v15  ;;  %v767_v17 = vrot.slane %v766_v50, 4  ;;  %v1143_v44 = vrot.slane %v1141_v26, 5  ;;  %v963_v16 = vrot.slane %v961_v3, 4  ;;  %v1165_v37 = vrot.slane %v1163_v38, 5  ;;  %v1022_v35 = vld [vmem:[#allocation2 + $0x38] sm:$0xe] }
 0x140   : > { %v966_v25 = vrot.slane %v964_v27, 5  ;;  %v975_v52 = vshrl.u32 %v893_v9, 16  ;;  %v978_v19 = vshll.u32 %v893_v9, 16  ;;  %v758_v42 = vsel %vm4617_vm10, %v753_v0, %v757_v61  ;;  %v4961_v18 = vld [vmem:[#allocation2 + $0x44] sm:$0x1] }
 0x141   : > { %v772_v59 = vsel %vm4617_vm10, %v767_v17, %v771_v48  ;;  %v1130_v28 = vsel %vm4617_vm10, %v1125_v55, %v1129_v22  ;;  %v1144_v33 = vsel %vm4617_vm10, %v1139_v23, %v1143_v44  ;;  %v1023_v38 = vld [vmem:[#allocation2 + $0x40] sm:$0xe]  ;;  %v3785_v15 = vcombine.low %v4935_v32, %v893_v9  ;;  %v4967_v17 = vld [vmem:[#allocation2 + $0x28] sm:$0xf] }
 0x142   : > { %v3776_v50 = vcombine.low %v758_v42, %v772_v59  ;;  %v3800_v26 = vcombine.low %v1130_v28, %v1144_v33  ;;  %v967_v3 = vor.u32 %v966_v25, %v963_v16  ;;  %v4964_v27 = vld [vmem:[#allocation2 + $0x20] sm:$0xf]  ;;  %v977_v61 = vrot.slane %v975_v52, 4 }
 0x143   : > { %v980_v49 = vrot.slane %v978_v19, 5  ;;  %v998_v48 = vshll.u32 %v4951_v53, 16  ;;  %v3761_v0 = vrot.slane %v1022_v35, 9  ;;  %v1012_v55 = vshll.u32 %v4961_v18, 16 }
 0x144   : > { %1291 = vrot.lane.b32.xlu1 %v3776_v50, %s4362_s12  ;;  %1457 = vrot.lane.b32.xlu0 %v3800_v26, %s4361_s19  ;;  %v1066_v22 = vrot.slane %v4951_v53, 5  ;;  %v3762_v23 = vrot.slane %v1023_v38, 9  ;;  %v1070_v32 = vrot.slane %v4961_v18, 5  ;;  %v4974_v9 = vrot.slane %v967_v3, 4  ;;  %v4985_v50 = vld [vmem:[#allocation2 + $0x40] sm:$0xf] }
 0x145   : > { %v774_v44 = vshrl.u32 %v4964_v27, 16  ;;  %v777_v16 = vshll.u32 %v4964_v27, 16  ;;  %v783_v25 = vshll.u32 %v4870_v54, 16  ;;  %v788_v35 = vshrl.u32 %v4967_v17, 16 }
 0x146   : > { %v1067_v52 = vsel %vm4607_vm8, %v3761_v0, %v1066_v22  ;;  %v1071_v19 = vsel %vm4607_vm8, %v3762_v23, %v1070_v32  ;;  %v791_v42 = vshll.u32 %v4967_v17, 16  ;;  %v981_v59 = vor.u32 %v980_v49, %v977_v61  ;;  %v712_v32 = vld [vmem:[#allocation2 + $0x34] sm:$0x1] }
 0x147   : > { %v3794_v28 = vcombine.low %v1067_v52, %v1071_v19  ;;  %v776_v33 = vrot.slane %v774_v44, 4  ;;  %v779_v38 = vrot.slane %v777_v16, 5  ;;  %v785_v26 = vrot.slane %v783_v25, 5  ;;  %v835_v52 = vld [vmem:[#allocation2 + $0x30] sm:$0xe] }
 0x148   : > { %1341 = vrot.lane.b32.xlu1 %v3785_v15, %s4361_s19  ;;  %v790_v54 = vrot.slane %v788_v35, 4  ;;  %v793_v3 = vrot.slane %v791_v42, 5  ;;  %v797_v0 = vshll.u32 %v4883_v39, 16  ;;  %v1152_v23 = vor.u32 %v4923_v13, %v4920_v29  ;;  %v836_v13 = vld [vmem:[#allocation2 + $0x38] sm:$0xe] }
 0x149   : > { %1413 = vrot.lane.b32.xlu0 %v3794_v28, %s4362_s12  ;;  %v780_v22 = vor.u32 %v779_v38, %v776_v33  ;;  %v1155_v61 = vshll.u32 %v4831_v45, 16  ;;  %v1166_v49 = vor.u32 %v1165_v37, %v4932_v20  ;;  %v1169_v15 = vshll.u32 %v4837_v12, 16  ;;  %v713_v28 = vld [vmem:[#allocation2 + $0x3c] sm:$0x1] }
 0x14a   : > { %v794_v44 = vor.u32 %v793_v3, %v790_v54  ;;  %v799_v16 = vrot.slane %v797_v0, 5  ;;  %v1174_v25 = vshrl.u32 %v4985_v50, 16  ;;  %v1153_v39 = vrot.slane %v1152_v23, 4  ;;  %v5003_v3 = vld [vmem:[#allocation2 + $0x30] sm:$0xf] }
 0x14b   : > { %v781_v19 = vrot.slane %v780_v22, 4  ;;  %v1157_v35 = vrot.slane %v1155_v61, 5  ;;  %v1167_v42 = vrot.slane %v1166_v49, 4  ;;  %v1171_v38 = vrot.slane %v1169_v15, 5  ;;  %v5009_v49 = vld [vmem:[#allocation2 + $0x38] sm:$0xf] }
 0x14c   : > { %v795_v33 = vrot.slane %v794_v44, 4  ;;  %v1176_v29 = vrot.slane %v1174_v25, 4  ;;  %v1177_v45 = vshll.u32 %v4985_v50, 16  ;;  %v4997_v20 = vrot.slane %v981_v59, 4 }
 0x14d   : > { %v786_v37 = vsel %vm4617_vm10, %v781_v19, %v785_v26  ;;  %v1158_v12 = vsel %vm4617_vm10, %v1153_v39, %v1157_v35  ;;  %v3753_v54 = vrot.slane %v835_v52, 9  ;;  %v1172_v22 = vsel %vm4617_vm10, %v1167_v42, %v1171_v38  ;;  %v5021_v38 = vld [vmem:[#allocation2 + $0x38] sm:$0xf] }
 0x14e   : > { %v800_v0 = vsel %vm4617_vm10, %v795_v33, %v799_v16  ;;  %v1179_v23 = vrot.slane %v1177_v45, 5  ;;  %v882_v61 = vrot.slane %v712_v32, 5  ;;  %v3801_v44 = vcombine.low %v1158_v12, %v1172_v22  ;;  %v895_v45 = vld [vmem:[#allocation2 + $0x40] sm:$0xf] }
 0x14f   : > { %v3777_v59 = vcombine.low %v786_v37, %v800_v0  ;;  %v3754_v15 = vrot.slane %v836_v13, 9  ;;  %v886_v26 = vrot.slane %v713_v28, 5  ;;  %v3798_v25 = vcombine.low %v4985_v50, %v4603_v4 }
 0x150   : > { %v1180_v52 = vor.u32 %v1179_v23, %v1176_v29  ;;  %v1183_v19 = vshll.u32 %v4856_v34, 16  ;;  %v802_v39 = vshrl.u32 %v5003_v3, 16  ;;  %1459 = vrot.lane.b32.xlu0 %v3801_v44, %s4361_s19  ;;  %v805_v35 = vshll.u32 %v5003_v3, 16 }
 0x151   : > { %1293 = vrot.lane.b32.xlu1 %v3777_v59, %s4362_s12  ;;  %v887_v16 = vsel %vm4607_vm8, %v3754_v15, %v886_v26  ;;  %v811_v42 = vshll.u32 %v712_v32, 16  ;;  %v816_v33 = vshrl.u32 %v5009_v49, 16  ;;  %v883_v4 = vsel %vm4607_vm8, %v3753_v54, %v882_v61 }
 0x152   : > { %v1181_v34 = vrot.slane %v1180_v52, 4  ;;  %v1185_v50 = vrot.slane %v1183_v19, 5  ;;  %v804_v29 = vrot.slane %v802_v39, 4  ;;  %v3782_v13 = vcombine.low %v883_v4, %v887_v16 }
 0x153   : > { %v807_v37 = vrot.slane %v805_v35, 5  ;;  %v818_v12 = vrot.slane %v816_v33, 4  ;;  %v819_v0 = vshll.u32 %v5009_v49, 16  ;;  %v825_v32 = vshll.u32 %v713_v28, 16 }
 0x154   : > { %v1186_v22 = vsel %vm4617_vm10, %v1181_v34, %v1185_v50  ;;  %v989_v23 = vshrl.u32 %v5021_v38, 16  ;;  %v992_v59 = vshll.u32 %v5021_v38, 16  ;;  %1441 = vrot.lane.b32.xlu0 %v3798_v25, %s4360_s17  ;;  %v813_v61 = vrot.slane %v811_v42, 5 }
 0x155   : > { %1315 = vrot.lane.b32.xlu1 %v3782_v13, %s4360_s17  ;;  %v808_v54 = vor.u32 %v807_v37, %v804_v29  ;;  %v821_v44 = vrot.slane %v819_v0, 5  ;;  %v1003_v15 = vshrl.u32 %v895_v45, 16  ;;  %v6053_v26 = vsel %vm4617_vm10, %v4683_v63, %v4685_v14 }
 0x156   : > { %v3802_v52 = vcombine.low %v1186_v22, %v6053_v26  ;;  %v991_v19 = vrot.slane %v989_v23, 4  ;;  %v994_v28 = vrot.slane %v992_v59, 5  ;;  %v1006_v39 = vshll.u32 %v895_v45, 16 }
 0x157   : > { %v809_v16 = vrot.slane %v808_v54, 4  ;;  %v822_v35 = vor.u32 %v821_v44, %v818_v12  ;;  %v827_v33 = vrot.slane %v825_v32, 5  ;;  %v1005_v4 = vrot.slane %v1003_v15, 4 }
 0x158   : > { %v995_v25 = vor.u32 %v994_v28, %v991_v19  ;;  %v1008_v34 = vrot.slane %v1006_v39, 5  ;;  %v6054_v50 = vshll.u32 %v4733_v31, 16  ;;  %v6055_v29 = vshll.u32 %v4740_v36, 16  ;;  %1461 = vrot.lane.b32.xlu0 %v3802_v52, %s4361_s19  ;;  %v1817_v39 = vld [vmem:[#allocation6] sm:$0xff] }
 0x159   : > { %v814_v63 = vsel %vm4617_vm10, %v809_v16, %v813_v61  ;;  %v823_v14 = vrot.slane %v822_v35, 4  ;;  %v6056_v37 = vshll.u32 %v4767_v24, 16  ;;  %v6057_v12 = vshll.u32 %v4777_v43, 16 }
 0x15a   : > { %v916_v42 = vrot.slane %v6054_v50, 5  ;;  %v930_v13 = vrot.slane %v6055_v29, 5  ;;  %v996_v32 = vrot.slane %v995_v25, 4  ;;  %v1009_v23 = vor.u32 %v1008_v34, %v1005_v4  ;;  %v1821_v4 = vld [vmem:[#allocation6 + $0x20] sm:$0xff]  ;;  %v1822_v50 = vld [vmem:[#allocation6 + $0x28] sm:$0xff]  ;;  %v1824_v29 = vld [vmem:[#allocation6 + $0x38] sm:$0xff] }
 0x15b   : > { %v944_v0 = vrot.slane %v6056_v37, 5  ;;  %v958_v22 = vrot.slane %v6057_v12, 5  ;;  %v828_v59 = vsel %vm4617_vm10, %v823_v14, %v827_v33  ;;  %v1014_v19 = vrot.slane %v1012_v55, 5  ;;  %v1820_v33 = vld [vmem:[#allocation6 + $0x18] sm:$0xff]  ;;  %v4308_v37 = vld [vmem:[#allocation2] sm:$0xf] }
 0x15c   : > { %v917_v31 = vsel %vm4617_vm10, %v4752_v60, %v916_v42  ;;  %v931_v36 = vsel %vm4617_vm10, %v4754_v62, %v930_v13  ;;  %v3778_v61 = vcombine.low %v814_v63, %v828_v59  ;;  %v1010_v44 = vrot.slane %v1009_v23, 4  ;;  %1833 = vrot.lane.b32.xlu0 %v1817_v39, %s4360_s17  ;;  %v1823_v42 = vld [vmem:[#allocation6 + $0x30] sm:$0xff] }
 0x15d   : > { %v3787_v54 = vcombine.low %v917_v31, %v931_v36  ;;  %v945_v24 = vsel %vm4617_vm10, %v4791_v1, %v944_v0  ;;  %v959_v43 = vsel %vm4617_vm10, %v4797_v2, %v958_v22  ;;  %v6058_v60 = vshll.u32 %v4817_v40, 16 }
 0x15e   : > { %v3788_v15 = vcombine.low %v945_v24, %v959_v43  ;;  %v986_v62 = vrot.slane %v984_v47, 5  ;;  %1295 = vrot.lane.b32.xlu1 %v3778_v61, %s4362_s12  ;;  %v3772_v1 = vcombine.low %v4905_v56, %v4911_v51  ;;  %v1000_v2 = vrot.slane %v998_v48, 5 }
 0x15f   : > { %v972_v26 = vrot.slane %v6058_v60, 5  ;;  %v3773_v58 = vcombine.low %v4964_v27, %v4967_v17  ;;  %v3774_v47 = vcombine.low %v5003_v3, %v5009_v49  ;;  %v1015_v51 = vsel %vm4617_vm10, %v1010_v44, %v1014_v19 }
 0x160   : > { %v987_v40 = vsel %vm4617_vm10, %v4997_v20, %v986_v62  ;;  %v1001_v56 = vsel %vm4617_vm10, %v996_v32, %v1000_v2  ;;  %v1818_v20 = vld [vmem:[#allocation6 + $0x8] sm:$0xff]  ;;  %v3771_v0 = vcombine.low %v4308_v37, %v4843_v30 }
 0x161   : > { %v973_v52 = vsel %vm4617_vm10, %v4974_v9, %v972_v26  ;;  %v3786_v9 = vcombine.low %v5021_v38, %v895_v45  ;;  %v5088_v53 = vcombine.low %v1001_v56, %v1015_v51  ;;  %v3829_v38 = vld [vmem:[%s6024_s3] ss:$0 sm:$0xff]  ;;  %v1819_v45 = vld [vmem:[#allocation6 + $0x10] sm:$0xff] }
 0x162   : > { %v3789_v28 = vcombine.low %v973_v52, %v987_v40  ;;  %1837 = vrot.lane.b32.xlu0 %v1819_v45, %s4360_s17 }
 0x163   : > { %1343 = vrot.lane.b32.xlu1 %v3786_v9, %s4361_s19 }
 0x166   : > { %1839 = vrot.lane.b32.xlu0 %v1820_v33, %s4360_s17 }
 0x167   : > { %1835 = vrot.lane.b32.xlu1 %v1818_v20, %s4360_s17 }
 0x16a   : > { %1843 = vrot.lane.b32.xlu0 %v1822_v50, %s4360_s17 }
 0x16b   : > { %1871 = vrot.lane.b32.xlu1 %v3829_v38, %s4360_s17 }
 0x16e   : > { %1847 = vrot.lane.b32.xlu0 %v1824_v29, %s4360_s17 }
 0x16f   : > { %1841 = vrot.lane.b32.xlu1 %v1821_v4, %s4360_s17 }
 0x173   : > { %1845 = vrot.lane.b32.xlu1 %v1823_v42, %s4360_s17 }
 0x187   : > { %v1436_v18 = vpop.permute.xlu1 %1435 }
 0x18b   : > { %v1338_v55 = vpop.permute.xlu1 %1337 }
 0x18e   : > { %v1438_v48 = vpop.permute.xlu0 %1437 }
 0x18f   : > { %v1340_v35 = vpop.permute.xlu1 %1339 }
 0x196   : > { %v1408_v16 = vpop.permute.xlu0 %1407 }
 0x197   : > { %v1465_v14 = vsel %vm420_vm3, %v3787_v54, %v1408_v16 }
 0x198   : > { %v1476_v12 = vsel %vm1357_vm0, %v1465_v14, %v1436_v18 }
 0x19b   : > { %v1310_v34 = vpop.permute.xlu1 %1309 }
 0x19d   : > { %v1410_v25 = vpop.permute.xlu0 %1409 }
 0x19e   : > { %v1468_v43 = vsel %vm420_vm3, %v3788_v15, %v1410_v25 }
 0x19f   : > { %v1478_v30 = vsel %vm1357_vm0, %v1468_v43, %v1438_v48 }
 0x1a0   : > { %v1312_v63 = vpop.permute.xlu1 %1311 }
 0x1a2   : > { %v1412_v13 = vpop.permute.xlu0 %1411 }
 0x1a3   : > { %v1471_v40 = vsel %vm420_vm3, %v3789_v28, %v1412_v13 }
 0x1aa   : > { %v1456_v22 = vpop.permute.xlu0 %1455 }
 0x1ab   : > { %v1290_v32 = vpop.permute.xlu1 %1289  ;;  %v1484_v23 = vsel %vm1366_vm1, %v1476_v12, %v1456_v22 }
 0x1ac   : > { %v1347_v31 = vsel %vm420_vm3, %v3771_v0, %v1290_v32  ;;  %1719 = vmatprep.mubr.bf16.mxu0 %v1484_v23  ;;  %v5139_v0 = vld [vmem:[#allocation6 + $0x40] sm:$0xff]  ;;  %v5145_v23 = vld [vmem:[#allocation6 + $0x48] sm:$0xff] }
 0x1ad   : > { %v1359_v36 = vsel %vm1357_vm0, %v1347_v31, %v1310_v34  ;;  %6059 = vst [vmem:[#allocation11_spill] sm:$0xff] %v5139_v0  ;;  %6061 = vst [vmem:[#allocation13_spill] sm:$0xff] %v5145_v23 }
 0x1ae   : > { %v1368_v59 = vsel %vm1366_vm1, %v1359_v36, %v1338_v55  ;;  %v1440_v24 = vpop.permute.xlu0 %1439 }
 0x1af   : > { %1720 = vmatmul.mubr.bf16.vlgmr.msra.gmra.mrb[0].mxu0 %v1368_v59  ;;  %v1314_v54 = vpop.permute.xlu1 %1313  ;;  %v1480_v15 = vsel %vm1357_vm0, %v1471_v40, %v1440_v24 }
 0x1b6   : > { %v1292_v61 = vpop.permute.xlu1 %1291  ;;  %v1458_v44 = vpop.permute.xlu0 %1457 }
 0x1b7   : > { %v1350_v60 = vsel %vm420_vm3, %v3772_v1, %v1292_v61  ;;  %v1487_v26 = vsel %vm1366_vm1, %v1478_v30, %v1458_v44 }
 0x1b8   : > { %v1361_v62 = vsel %vm1357_vm0, %v1350_v60, %v1312_v63  ;;  %1727 = vmatprep.mubr.bf16.mxu0 %v1487_v26 }
 0x1b9   : > { %v1371_v52 = vsel %vm1366_vm1, %v1361_v62, %v1340_v35 }
 0x1ba   : > { %1728 = vmatmul.mubr.bf16.gmra.mrb[4].mxu0 %v1371_v52  ;;  %v1342_v2 = vpop.permute.xlu1 %1341 }
 0x1bb   : > { %v1414_v19 = vpop.permute.xlu0 %1413 }
 0x1bc   : > { %v1474_v28 = vsel %vm420_vm3, %v5088_v53, %v1414_v19 }
 0x1c2   : > { %v1460_v56 = vpop.permute.xlu0 %1459 }
 0x1c3   : > { %v1294_v9 = vpop.permute.xlu1 %1293  ;;  %v1490_v51 = vsel %vm1366_vm1, %v1480_v15, %v1460_v56 }
 0x1c4   : > { %v1353_v1 = vsel %vm420_vm3, %v3773_v58, %v1294_v9  ;;  %1735 = vmatprep.mubr.bf16.mxu0 %v1490_v51  ;;  %v5171_v9 = vld [vmem:[#allocation6 + $0x58] sm:$0xff] }
 0x1c5   : > { %v1363_v18 = vsel %vm1357_vm0, %v1353_v1, %v1314_v54  ;;  %6065 = vst [vmem:[#allocation17_spill] sm:$0xff] %v5171_v9 }
 0x1c6   : > { %v1374_v48 = vsel %vm1366_vm1, %v1363_v18, %v1342_v2  ;;  %v1442_v55 = vpop.permute.xlu0 %1441  ;;  %v5167_v2 = vld [vmem:[#allocation6 + $0x50] sm:$0xff] }
 0x1c7   : > { %1736 = vmatmul.mubr.bf16.gmra.mrb[8].mxu0 %v1374_v48  ;;  %v1316_v20 = vpop.permute.xlu1 %1315  ;;  %v1482_v39 = vsel %vm1357_vm0, %v1474_v28, %v1442_v55  ;;  %6063 = vst [vmem:[#allocation15_spill] sm:$0xff] %v5167_v2 }
 0x1ca   : > { %v1462_v38 = vpop.permute.xlu0 %1461 }
 0x1cb   : > { %v1493_v27 = vsel %vm1366_vm1, %v1482_v39, %v1462_v38 }
 0x1cc   : > { %1743 = vmatprep.mubr.bf16.mxu0 %v1493_v27 }
 0x1ce   : > { %v1834_v37 = vpop.permute.xlu0 %1833 }
 0x1d0   : > { %v1296_v17 = vpop.permute.xlu1 %1295 }
 0x1d1   : > { %v1356_v58 = vsel %vm420_vm3, %v3774_v47, %v1296_v17 }
 0x1d2   : > { %v1365_v45 = vsel %vm1357_vm0, %v1356_v58, %v1316_v20 }
 0x1d4   : > { %v1838_v24 = vpop.permute.xlu0 %1837 }
 0x1d5   : > { %v1344_v16 = vpop.permute.xlu1 %1343 }
 0x1d6   : > { %v1377_v35 = vsel %vm1366_vm1, %v1365_v45, %v1344_v16  ;;  %v5193_v45 = vld [vmem:[#allocation6 + $0x60] sm:$0xff] }
 0x1d7   : > { %1744 = vmatmul.mubr.bf16.gmra.mrb[12].mxu0 %v1377_v35  ;;  %6067 = vst [vmem:[#allocation19_spill] sm:$0xff] %v5193_v45 }
 0x1d8   : > { %v1840_v15 = vpop.permute.xlu0 %1839 }
 0x1d9   : > { %v1836_v13 = vpop.permute.xlu1 %1835 }
 0x1dd   : > { %v5143_v32 = vpop.permute.xlu1 %1871 }
 0x1e1   : > { %v1842_v58 = vpop.permute.xlu1 %1841 }
 0x207   : > { %v4073_v53 = vpop.f32.mrb[0].mxu1 }
 0x208   : > { %v1786_v33 = vpop.f32.mrb[1].mxu1 }
 0x209   : > { %v4074_v4 = vpop.f32.mrb[2].mxu1 }
 0x20a   : > { %v1789_v25 = vpop.f32.mrb[3].mxu1 }
 0x212   : > { %v5135_v34 = vpop.f32.mrb[4].mxu1 }
 0x213   : > { %v1802_v50 = vpop.f32.mrb[5].mxu1 }
 0x214   : > { %v5137_v42 = vpop.f32.mrb[6].mxu1 }
 0x215   : > { %v1805_v29 = vpop.f32.mrb[7].mxu1 }
 0x282   : > { %v3991_v3 = vpop.f32.mrb[0].mxu0 }
 0x283   : > { %v3992_v49 = vpop.f32.mrb[1].mxu0 }
 0x284   : > { %v3993_v47 = vadd.f32 %v3992_v49, %v3991_v3  ;;  %v3994_v63 = vpop.f32.mrb[2].mxu0 }
 0x285   : > { %v3995_v14 = vpop.f32.mrb[3].mxu0 }
 0x286   : > { %v5141_v12 = vadd.f32 %v3993_v47, %v1786_v33  ;;  %v3996_v22 = vadd.f32 %v3995_v14, %v3994_v63  ;;  %v5197_v33 = vld [vmem:[#allocation6 + $0x68] sm:$0xff] }
 0x287   : > { %6069 = vst [vmem:[#allocation21_spill] sm:$0xff] %v5197_v33 }
 0x288   : > { %6060 = vst [vmem:[#allocation12_spill] sm:$0xff] %v5141_v12  ;;  %v5147_v31 = vadd.f32 %v3996_v22, %v1789_v25  ;;  %v1857_v36 = vadd.f32 %v1834_v37, %v5141_v12  ;;  %1939 = vst.msk [vmem:[#allocation6 + $0x40] sm:$0xff] %vm420_vm3, %v5141_v12 }
 0x28a   : > { %6062 = vst [vmem:[#allocation14_spill] sm:$0xff] %v5147_v31  ;;  %v1858_v59 = vadd.f32 %v1836_v13, %v5147_v31  ;;  %v5154_v54 = vadd.f32 %v5143_v32, %v1857_v36  ;;  %1940 = vst.msk [vmem:[#allocation6 + $0x48] sm:$0xff] %vm420_vm3, %v5147_v31  ;;  %v1846_v36 = vpop.permute.xlu1 %1845 }
 0x28c   : > { %v1948_v43 = vmul.f32 %v5154_v54, %v5154_v54  ;;  %v5161_v61 = vadd.f32 %v5143_v32, %v1858_v59  ;;  %v5219_v59 = vld [vmem:[#allocation6 + $0x70] sm:$0xff] }
 0x28d   : > { %v3997_v30 = vpop.f32.mrb[4].mxu0  ;;  %6071 = vst [vmem:[#allocation23_spill] sm:$0xff] %v5219_v59 }
 0x28e   : > { %v3998_v44 = vpop.f32.mrb[5].mxu0  ;;  %1964 = vrot.lane.b32.xlu1 %v1948_v43, %s4360_s17  ;;  %v1949_v60 = vmul.f32 %v5161_v61, %v5161_v61 }
 0x28f   : > { %v3999_v26 = vadd.f32 %v3998_v44, %v3997_v30  ;;  %v4000_v62 = vpop.f32.mrb[6].mxu0  ;;  %v5224_v44 = vld [vmem:[#allocation6 + $0x78] sm:$0xff] }
 0x290   : > { %v4001_v52 = vpop.f32.mrb[7].mxu0  ;;  %1966 = vrot.lane.b32.xlu0 %v1949_v60, %s4360_s17  ;;  %6073 = vst [vmem:[#allocation25_spill] sm:$0xff] %v5224_v44  ;;  %v2272_v44 = vld [vmem:[#allocation3 + $0x2c] sm:$0x1] }
 0x291   : > { %v5169_v19 = vadd.f32 %v4073_v53, %v3999_v26  ;;  %v4002_v40 = vadd.f32 %v4001_v52, %v4000_v62  ;;  %v1844_v53 = vpop.permute.xlu0 %1843 }
 0x293   : > { %6064 = vst [vmem:[#allocation16_spill] sm:$0xff] %v5169_v19  ;;  %v5173_v56 = vadd.f32 %v4074_v4, %v4002_v40  ;;  %v1859_v1 = vadd.f32 %v1838_v24, %v5169_v19  ;;  %1941 = vst.msk [vmem:[#allocation6 + $0x50] sm:$0xff] %vm420_vm3, %v5169_v19 }
 0x295   : > { %6066 = vst [vmem:[#allocation18_spill] sm:$0xff] %v5173_v56  ;;  %v5179_v51 = vadd.f32 %v5143_v32, %v1859_v1  ;;  %v1860_v18 = vadd.f32 %v1840_v15, %v5173_v56  ;;  %1942 = vst.msk [vmem:[#allocation6 + $0x58] sm:$0xff] %vm420_vm3, %v5173_v56  ;;  %v1848_v30 = vpop.permute.xlu0 %1847 }
 0x297   : > { %v5185_v48 = vadd.f32 %v5143_v32, %v1860_v18  ;;  %v1950_v55 = vmul.f32 %v5179_v51, %v5179_v51 }
 0x299   : > { %1968 = vrot.lane.b32.xlu1 %v1950_v55, %s4360_s17  ;;  %v1951_v28 = vmul.f32 %v5185_v48, %v5185_v48 }
 0x29a   : > { %v4003_v20 = vpop.f32.mrb[8].mxu0 }
 0x29b   : > { %v4004_v39 = vpop.f32.mrb[9].mxu0  ;;  %1970 = vrot.lane.b32.xlu0 %v1951_v28, %s4360_s17 }
 0x29c   : > { %v4005_v38 = vadd.f32 %v4004_v39, %v4003_v20  ;;  %v4006_v27 = vpop.f32.mrb[10].mxu0 }
 0x29d   : > { %v4007_v17 = vpop.f32.mrb[11].mxu0 }
 0x29e   : > { %v5195_v16 = vadd.f32 %v4005_v38, %v1802_v50  ;;  %v4008_v35 = vadd.f32 %v4007_v17, %v4006_v27 }
 0x2a0   : > { %6068 = vst [vmem:[#allocation20_spill] sm:$0xff] %v5195_v16  ;;  %v5199_v4 = vadd.f32 %v4008_v35, %v1805_v29  ;;  %v1861_v25 = vadd.f32 %v1842_v58, %v5195_v16  ;;  %1943 = vst.msk [vmem:[#allocation6 + $0x60] sm:$0xff] %vm420_vm3, %v5195_v16 }
 0x2a2   : > { %6070 = vst [vmem:[#allocation22_spill] sm:$0xff] %v5199_v4  ;;  %v5205_v13 = vadd.f32 %v5143_v32, %v1861_v25  ;;  %v1862_v3 = vadd.f32 %v1844_v53, %v5199_v4  ;;  %1944 = vst.msk [vmem:[#allocation6 + $0x68] sm:$0xff] %vm420_vm3, %v5199_v4 }
 0x2a4   : > { %v5211_v50 = vadd.f32 %v5143_v32, %v1862_v3  ;;  %v1952_v29 = vmul.f32 %v5205_v13, %v5205_v13 }
 0x2a6   : > { %1972 = vrot.lane.b32.xlu1 %v1952_v29, %s4360_s17  ;;  %v1953_v49 = vmul.f32 %v5211_v50, %v5211_v50  ;;  %v3830_v29 = vld [vmem:[%s6025_s4] ss:$0 sm:$0xff] }
 0x2a8   : > { %1974 = vrot.lane.b32.xlu0 %v1953_v49, %s4360_s17 }
 0x2aa   : > { %v4009_v47 = vpop.f32.mrb[12].mxu0 }
 0x2ab   : > { %v4010_v63 = vpop.f32.mrb[13].mxu0 }
 0x2ac   : > { %v4011_v14 = vadd.f32 %v4010_v63, %v4009_v47  ;;  %v4012_v37 = vpop.f32.mrb[14].mxu0 }
 0x2ad   : > { %v4013_v22 = vpop.f32.mrb[15].mxu0 }
 0x2ae   : > { %v5222_v24 = vadd.f32 %v5135_v34, %v4011_v14  ;;  %v4014_v43 = vadd.f32 %v4013_v22, %v4012_v37 }
 0x2b0   : > { %6072 = vst [vmem:[#allocation24_spill] sm:$0xff] %v5222_v24  ;;  %v5227_v60 = vadd.f32 %v5137_v42, %v4014_v43  ;;  %v1863_v26 = vadd.f32 %v1846_v36, %v5222_v24  ;;  %1945 = vst.msk [vmem:[#allocation6 + $0x70] sm:$0xff] %vm420_vm3, %v5222_v24 }
 0x2b2   : > { %6074 = vst [vmem:[#allocation26_spill] sm:$0xff] %v5227_v60  ;;  %v5233_v62 = vadd.f32 %v5143_v32, %v1863_v26  ;;  %v1864_v52 = vadd.f32 %v1848_v30, %v5227_v60  ;;  %1946 = vst.msk [vmem:[#allocation6 + $0x78] sm:$0xff] %vm420_vm3, %v5227_v60 }
 0x2b4   : > { %v5239_v34 = vadd.f32 %v5143_v32, %v1864_v52  ;;  %v1954_v42 = vmul.f32 %v5233_v62, %v5233_v62 }
 0x2b6   : > { %1976 = vrot.lane.b32.xlu1 %v1954_v42, %s4360_s17  ;;  %v1955_v40 = vmul.f32 %v5239_v34, %v5239_v34 }
 0x2b8   : > { %1978 = vrot.lane.b32.xlu0 %v1955_v40, %s4360_s17 }
 0x300   : > { %v1965_v15 = vpop.permute.xlu1 %1964 }
 0x301   : > { %v1988_v1 = vsel %vm420_vm3, %v1965_v15, 0.0 }
 0x302   : > { %1989 = vadd.xlane.f32.xlu1 %v1988_v1  ;;  %v1967_v18 = vpop.permute.xlu0 %1966 }
 0x303   : > { %v1991_v55 = vsel %vm420_vm3, %v1967_v18, 0.0 }
 0x304   : > { %1992 = vadd.xlane.f32.xlu0 %v1991_v55 }
 0x30b   : > { %v1969_v32 = vpop.permute.xlu1 %1968 }
 0x30c   : > { %v1994_v28 = vsel %vm420_vm3, %v1969_v32, 0.0 }
 0x30d   : > { %1995 = vadd.xlane.f32.xlu0 %v1994_v28  ;;  %v1971_v20 = vpop.permute.xlu0 %1970 }
 0x30e   : > { %v1997_v39 = vsel %vm420_vm3, %v1971_v20, 0.0 }
 0x311   : > { %1998 = vadd.xlane.f32.xlu0 %v1997_v39 }
 0x318   : > { %v1973_v38 = vpop.permute.xlu1 %1972 }
 0x319   : > { %v2000_v27 = vsel %vm420_vm3, %v1973_v38, 0.0 }
 0x31a   : > { %2001 = vadd.xlane.f32.xlu1 %v2000_v27  ;;  %v1975_v17 = vpop.permute.xlu0 %1974 }
 0x31b   : > { %v2003_v58 = vsel %vm420_vm3, %v1975_v17, 0.0 }
 0x31c   : > { %2004 = vadd.xlane.f32.xlu0 %v2003_v58 }
 0x328   : > { %v1977_v35 = vpop.permute.xlu1 %1976 }
 0x329   : > { %v2006_v53 = vsel %vm420_vm3, %v1977_v35, 0.0 }
 0x32a   : > { %2007 = vadd.xlane.f32.xlu1 %v2006_v53  ;;  %v1979_v25 = vpop.permute.xlu0 %1978 }
 0x32b   : > { %v2009_v3 = vsel %vm420_vm3, %v1979_v25, 0.0 }
 0x32c   : > { %2010 = vadd.xlane.f32.xlu0 %v2009_v3 }
 0x33b   : > { %2049 = vrot.lane.b32.xlu1 %v3830_v29, %s4360_s17 }
 0x38f   : > { %v1990_v63 = vpop.xlane.xlu1 %1989 }
 0x390   : > { %v2012_v37 = vmax.f32 %v1990_v63, 1e-24 }
 0x391   : > { %v1993_v49 = vpop.xlane.xlu0 %1992 }
 0x392   : > { %v2013_v22 = vmax.f32 %v1993_v49, 1e-24  ;;  %4260 = vrsqrt.f32 %v2012_v37 }
 0x394   : > { %4262 = vrsqrt.f32 %v2013_v22 }
 0x39a   : > { %v1996_v47 = vpop.xlane.xlu0 %1995 }
 0x39b   : > { %v2014_v43 = vmax.f32 %v1996_v47, 1e-24 }
 0x39c   : > { %v4261_v40 = vpop.eup %4260 }
 0x39d   : > { %v2028_v32 = vmul.f32 5.656854, %v4261_v40 }
 0x39e   : > { %v1999_v14 = vpop.xlane.xlu0 %1998  ;;  %v4263_v15 = vpop.eup %4262 }
 0x39f   : > { %v2015_v36 = vmax.f32 %v1999_v14, 1e-24  ;;  %v2029_v28 = vmul.f32 5.656854, %v4263_v15  ;;  %v2036_v53 = vmul.f32 %v2028_v32, %v5154_v54 }
 0x3a1   : > { %4264 = vrsqrt.f32 %v2015_v36  ;;  %v2037_v25 = vmul.f32 %v2029_v28, %v5161_v61 }
 0x3a2   : > { %4266 = vrsqrt.f32 %v2014_v43 }
 0x3a7   : > { %v2002_v30 = vpop.xlane.xlu1 %2001 }
 0x3a8   : > { %v2016_v26 = vmax.f32 %v2002_v30, 1e-24 }
 0x3a9   : > { %v2005_v52 = vpop.xlane.xlu0 %2004 }
 0x3aa   : > { %4268 = vrsqrt.f32 %v2016_v26  ;;  %v2017_v42 = vmax.f32 %v2005_v52, 1e-24 }
 0x3ab   : > { %v4265_v1 = vpop.eup %4264 }
 0x3ac   : > { %4270 = vrsqrt.f32 %v2017_v42  ;;  %v4267_v18 = vpop.eup %4266  ;;  %v2031_v20 = vmul.f32 5.656854, %v4265_v1 }
 0x3ad   : > { %v2030_v39 = vmul.f32 5.656854, %v4267_v18 }
 0x3ae   : > { %v2039_v3 = vmul.f32 %v2031_v20, %v5185_v48 }
 0x3af   : > { %v2038_v47 = vmul.f32 %v2030_v39, %v5179_v51 }
 0x3b4   : > { %v4269_v55 = vpop.eup %4268 }
 0x3b5   : > { %v2032_v38 = vmul.f32 5.656854, %v4269_v55 }
 0x3b6   : > { %v4271_v27 = vpop.eup %4270 }
 0x3b7   : > { %v2008_v17 = vpop.xlane.xlu1 %2007  ;;  %v2033_v58 = vmul.f32 5.656854, %v4271_v27  ;;  %v2040_v29 = vmul.f32 %v2032_v38, %v5205_v13 }
 0x3b8   : > { %v2018_v35 = vmax.f32 %v2008_v17, 1e-24 }
 0x3b9   : > { %v2011_v49 = vpop.xlane.xlu0 %2010  ;;  %v2041_v63 = vmul.f32 %v2033_v58, %v5211_v50 }
 0x3ba   : > { %4272 = vrsqrt.f32 %v2018_v35  ;;  %v2019_v14 = vmax.f32 %v2011_v49, 1e-24 }
 0x3bb   : > { %v2050_v37 = vpop.permute.xlu1 %2049 }
 0x3bc   : > { %4274 = vrsqrt.f32 %v2019_v14  ;;  %v2052_v22 = vmul.f32 %v2050_v37, %v2036_v53  ;;  %v2053_v36 = vmul.f32 %v2050_v37, %v2037_v25  ;;  %v2054_v43 = vmul.f32 %v2050_v37, %v2038_v47 }
 0x3bd   : > { %v5265_v30 = vmul.f32 %v2050_v37, %v2039_v3  ;;  %v5267_v54 = vmul.f32 %v2050_v37, %v2040_v29  ;;  %v5269_v61 = vmul.f32 %v2050_v37, %v2041_v63 }
 0x3be   : > { %v2060_v48 = vsub.f32 0.0, %v2052_v22  ;;  %v2061_v13 = vsub.f32 0.0, %v2053_v36  ;;  %v2062_v26 = vsub.f32 0.0, %v2054_v43 }
 0x3bf   : > { %v2063_v51 = vsub.f32 0.0, %v5265_v30  ;;  %v2064_v50 = vsub.f32 0.0, %v5267_v54  ;;  %v2065_v52 = vsub.f32 0.0, %v5269_v61 }
 0x3c0   : > { %v2068_v42 = vmul.f32 1.442695, %v2060_v48  ;;  %v2070_v40 = vmul.f32 1.442695, %v2061_v13  ;;  %v2072_v15 = vmul.f32 1.442695, %v2062_v26 }
 0x3c1   : > { %v2074_v1 = vmul.f32 1.442695, %v2063_v51  ;;  %v2076_v18 = vmul.f32 1.442695, %v2064_v50  ;;  %v2078_v55 = vmul.f32 1.442695, %v2065_v52 }
 0x3c2   : > { %4276 = vpow2.f32 %v2068_v42 }
 0x3c3   : > { %4278 = vpow2.f32 %v2070_v40 }
 0x3c4   : > { %v4273_v32 = vpop.eup %4272  ;;  %4280 = vpow2.f32 %v2072_v15 }
 0x3c5   : > { %v2034_v28 = vmul.f32 5.656854, %v4273_v32  ;;  %4282 = vpow2.f32 %v2074_v1 }
 0x3c6   : > { %v4275_v20 = vpop.eup %4274  ;;  %4284 = vpow2.f32 %v2076_v18 }
 0x3c7   : > { %v2035_v39 = vmul.f32 5.656854, %v4275_v20  ;;  %4286 = vpow2.f32 %v2078_v55  ;;  %v2042_v38 = vmul.f32 %v2034_v28, %v5233_v62 }
 0x3c9   : > { %v2043_v27 = vmul.f32 %v2035_v39, %v5239_v34  ;;  %v5276_v58 = vmul.f32 %v2050_v37, %v2042_v38 }
 0x3cb   : > { %v5278_v25 = vmul.f32 %v2050_v37, %v2043_v27  ;;  %v2066_v48 = vsub.f32 0.0, %v5276_v58 }
 0x3cc   : > { %v4277_v17 = vpop.eup %4276 }
 0x3cd   : > { %v4279_v35 = vpop.eup %4278  ;;  %v2084_v53 = vadd.f32 1.0, %v4277_v17  ;;  %v2067_v13 = vsub.f32 0.0, %v5278_v25  ;;  %v2080_v37 = vmul.f32 1.442695, %v2066_v48 }
 0x3ce   : > { %v4281_v3 = vpop.eup %4280  ;;  %v2085_v29 = vadd.f32 1.0, %v4279_v35 }
 0x3cf   : > { %v4283_v49 = vpop.eup %4282  ;;  %4288 = vrcp.f32 %v2084_v53  ;;  %v2086_v47 = vadd.f32 1.0, %v4281_v3  ;;  %v2082_v51 = vmul.f32 1.442695, %v2067_v13 }
 0x3d0   : > { %v4285_v63 = vpop.eup %4284  ;;  %4290 = vrcp.f32 %v2085_v29  ;;  %v2087_v14 = vadd.f32 1.0, %v4283_v49 }
 0x3d1   : > { %v4287_v62 = vpop.eup %4286  ;;  %4292 = vrcp.f32 %v2086_v47  ;;  %v2088_v34 = vadd.f32 1.0, %v4285_v63 }
 0x3d2   : > { %4294 = vrcp.f32 %v2087_v14  ;;  %v2089_v26 = vadd.f32 1.0, %v4287_v62 }
 0x3d3   : > { %4296 = vrcp.f32 %v2088_v34 }
 0x3d4   : > { %4298 = vrcp.f32 %v2089_v26 }
 0x3d5   : > { %4300 = vpow2.f32 %v2080_v37 }
 0x3d6   : > { %4302 = vpow2.f32 %v2082_v51 }
 0x3d9   : > { %v4289_v50 = vpop.eup %4288 }
 0x3da   : > { %v4291_v52 = vpop.eup %4290  ;;  %v2100_v42 = vmul.f32 %v4289_v50, %v2052_v22 }
 0x3db   : > { %v4293_v40 = vpop.eup %4292  ;;  %v2101_v15 = vmul.f32 %v4291_v52, %v2053_v36 }
 0x3dc   : > { %v4295_v1 = vpop.eup %4294  ;;  %v3940_v18 = vpack.c.bf16 %v2100_v42, %v2100_v42  ;;  %v2102_v55 = vmul.f32 %v4293_v40, %v2054_v43 }
 0x3dd   : > { %v4297_v32 = vpop.eup %4296  ;;  %v3941_v28 = vpack.c.bf16 %v2101_v15, %v2101_v15  ;;  %v2103_v20 = vmul.f32 %v4295_v1, %v5265_v30 }
 0x3de   : > { %v4299_v39 = vpop.eup %4298  ;;  %v2133_v38 = vshrl.u32 %v3940_v18, 16  ;;  %v3942_v27 = vpack.c.bf16 %v2102_v55, %v2102_v55  ;;  %v2136_v3 = vshll.u32 %v3940_v18, 16  ;;  %v2104_v49 = vmul.f32 %v4297_v32, %v5267_v54 }
 0x3df   : > { %v2141_v17 = vshrl.u32 %v3941_v28, 16  ;;  %v3943_v35 = vpack.c.bf16 %v2103_v20, %v2103_v20  ;;  %v2105_v22 = vmul.f32 %v4299_v39, %v5269_v61  ;;  %v4301_v36 = vpop.eup %4300  ;;  %v2144_v30 = vshll.u32 %v3941_v28, 16 }
 0x3e0   : > { %v2135_v53 = vrot.slane %v2133_v38, 7  ;;  %v2149_v29 = vshrl.u32 %v3942_v27, 16  ;;  %v4303_v48 = vpop.eup %4302  ;;  %v3944_v34 = vpack.c.bf16 %v2104_v49, %v2104_v49  ;;  %v2090_v26 = vadd.f32 1.0, %v4301_v36 }
 0x3e1   : > { %v2143_v43 = vrot.slane %v2141_v17, 7  ;;  %v2157_v14 = vshrl.u32 %v3943_v35, 16  ;;  %v3945_v13 = vpack.c.bf16 %v2105_v22, %v2105_v22  ;;  %v2091_v50 = vadd.f32 1.0, %v4303_v48 }
 0x3e2   : > { %v2139_v47 = vrot.slane %v2135_v53, 4  ;;  %v2138_v63 = vor.u32 %v2136_v3, %v2135_v53  ;;  %v2151_v62 = vrot.slane %v2149_v29, 7  ;;  %4304 = vrcp.f32 %v2090_v26  ;;  %v4190_v26 = vld [vmem:[%s6026_s5 + $0x88] sm:$0xff]  }
 0x3e3   : > { %v2147_v37 = vrot.slane %v2143_v43, 4  ;;  %v2146_v51 = vor.u32 %v2144_v30, %v2143_v43  ;;  %v2159_v54 = vrot.slane %v2157_v14, 7  ;;  %v2152_v61 = vshll.u32 %v3942_v27, 16 }
 0x3e4   : > { %2198 = vrot.lane.b32.xlu1 %v2139_v47, %s4360_s17  ;;  %2196 = vrot.lane.b32.xlu0 %v2138_v63, %s4360_s17  ;;  %v2160_v52 = vshll.u32 %v3943_v35, 16  ;;  %4306 = vrcp.f32 %v2091_v50  ;;  %v2165_v15 = vshrl.u32 %v3944_v34, 16  ;;  %v2173_v1 = vshrl.u32 %v3945_v13, 16  ;;  %v5309_v50 = vld [vmem:[#allocation3 + $0x48] sm:$0xf] }
 0x3e5   : > { %v2154_v42 = vor.u32 %v2152_v61, %v2151_v62  ;;  %v2155_v18 = vrot.slane %v2151_v62, 4  ;;  %v2163_v55 = vrot.slane %v2159_v54, 4  ;;  %v2168_v20 = vshll.u32 %v3944_v34, 16 }
 0x3e6   : > { %v2162_v40 = vor.u32 %v2160_v52, %v2159_v54  ;;  %v2167_v32 = vrot.slane %v2165_v15, 7  ;;  %v2175_v28 = vrot.slane %v2173_v1, 7  ;;  %v2176_v39 = vshll.u32 %v3945_v13, 16  ;;  %v4189_v13 = vld [vmem:[%s6026_s5 + $0x80] sm:$0xff]  }
 0x3e7   : > { %4079 = vmatprep.subr.bf16.mxu0 %v4189_v13  ;;  %v2777_v61 = vshrl.u32 %v5309_v50, 16  ;;  %v2780_v52 = vshll.u32 %v5309_v50, 16 }
 0x3e8   : > { %2202 = vrot.lane.b32.xlu0 %v2147_v37, %s4360_s17  ;;  %2200 = vrot.lane.b32.xlu1 %v2146_v51, %s4360_s17  ;;  %v2170_v17 = vor.u32 %v2168_v20, %v2167_v32  ;;  %v2178_v35 = vor.u32 %v2176_v39, %v2175_v28  ;;  %v2171_v22 = vrot.slane %v2167_v32, 4  ;;  %v2179_v36 = vrot.slane %v2175_v28, 4  ;;  %v2293_v37 = vld [vmem:[#allocation3] sm:$0xf]  ;;  %v2251_v32 = vld [vmem:[#allocation3 + $0x10] sm:$0xf] }
 0x3e9   : > { %4080 = vmatpush3.bf16.msra.mxu0 %v4189_v13  ;;  %v2310_v51 = vshrl.u32 %v2293_v37, 16  ;;  %v2313_v54 = vshll.u32 %v2293_v37, 16  ;;  %v2779_v28 = vrot.slane %v2777_v61, 4  ;;  %v2782_v20 = vrot.slane %v2780_v52, 5  ;;  %v2257_v13 = vld [vmem:[#allocation3 + $0x18] sm:$0xf] }
 0x3ea   : > { %4081 = vmatprep.subr.bf16.mxu0 %v4190_v26 }
 0x3eb   : > { %v2312_v15 = vrot.slane %v2310_v51, 4  ;;  %v2315_v1 = vrot.slane %v2313_v54, 5 }
 0x3ec   : > { %2204 = vrot.lane.b32.xlu1 %v2154_v42, %s4360_s17  ;;  %2208 = vrot.lane.b32.xlu0 %v2162_v40, %s4360_s17  ;;  %v4305_v38 = vpop.eup %4304  ;;  %v2248_v42 = vld [vmem:[#allocation3 + $0xc] sm:$0x1]  ;;  %v2245_v40 = vld [vmem:[#allocation3 + $0x8] sm:$0xf] }
 0x3ed   : > { %v2106_v53 = vmul.f32 %v4305_v38, %v5276_v58  ;;  %4082 = vmatpush3.bf16.msra.mxu0 %v4190_v26  ;;  %v2263_v26 = vld [vmem:[#allocation3 + $0x20] sm:$0xf] }
 0x3ee   : > { %v4307_v27 = vpop.eup %4306 }
 0x3ef   : > { %v2107_v3 = vmul.f32 %v4307_v27, %v5278_v25  ;;  %v3946_v29 = vpack.c.bf16 %v2106_v53, %v2106_v53  ;;  %v2254_v27 = vld [vmem:[#allocation3 + $0x14] sm:$0x1]  ;;  %v2421_v53 = vld [vmem:[#allocation3] sm:$0xe] }
 0x3f0   : > { %2206 = vrot.lane.b32.xlu1 %v2155_v18, %s4360_s17  ;;  %2210 = vrot.lane.b32.xlu0 %v2163_v55, %s4360_s17 }
 0x3f1   : > { %v3947_v49 = vpack.c.bf16 %v2107_v3, %v2107_v3  ;;  %v2181_v47 = vshrl.u32 %v3946_v29, 16  ;;  %v2184_v14 = vshll.u32 %v3946_v29, 16  ;;  %v4195_v3 = vld [vmem:[%s6026_s5 + $0x40] sm:$0xff]  }
 0x3f2   : > { %v4196_v29 = vld [vmem:[%s6026_s5] sm:$0xff]   ;;  %4021 = vmatprep.subr.bf16.mxu1 %v4195_v3 }
 0x3f3   : > { %v2189_v63 = vshrl.u32 %v3947_v49, 16  ;;  %v2183_v43 = vrot.slane %v2181_v47, 7  ;;  %v2192_v58 = vshll.u32 %v3947_v49, 16  ;;  %v2316_v49 = vor.u32 %v2315_v1, %v2312_v15  ;;  %4022 = vmatpush3.bf16.msra.mxu1 %v4196_v29  ;;  %v2266_v15 = vld [vmem:[#allocation3 + $0x24] sm:$0x1] }
 0x3f4   : > { %2212 = vrot.lane.b32.xlu1 %v2170_v17, %s4360_s17  ;;  %2216 = vrot.lane.b32.xlu0 %v2178_v35, %s4360_s17  ;;  %v2301_v17 = vld [vmem:[#allocation3 + $0x4] sm:$0x1]  ;;  %v2677_v35 = vld [vmem:[#allocation3 + $0x4c] sm:$0x1] }
 0x3f5   : > { %v2191_v48 = vrot.slane %v2189_v63, 7  ;;  %v2186_v30 = vor.u32 %v2184_v14, %v2183_v43  ;;  %v2187_v62 = vrot.slane %v2183_v43, 4  ;;  %v2797_v43 = vld [vmem:[#allocation3 + $0x48] sm:$0xe]  ;;  %v2783_v14 = vor.u32 %v2782_v20, %v2779_v28 }
 0x3f6   : > { %v5333_v37 = vrot.slane %v2316_v49, 4  ;;  %v3862_v54 = vrot.slane %v2797_v43, 9  ;;  %v2844_v61 = vrot.slane %v2677_v35, 5 }
 0x3f7   : > { %v2194_v25 = vor.u32 %v2192_v58, %v2191_v48  ;;  %v2195_v34 = vrot.slane %v2191_v48, 4  ;;  %v2786_v48 = vshll.u32 %v2677_v35, 16  ;;  %v5337_v1 = vrot.slane %v2783_v14, 4 }
 0x3f8   : > { %2214 = vrot.lane.b32.xlu1 %v2171_v22, %s4360_s17  ;;  %2218 = vrot.lane.b32.xlu0 %v2179_v36, %s4360_s17  ;;  %v2319_v22 = vshll.u32 %v2301_v17, 16  ;;  %v4197_v36 = vld [vmem:[%s6026_s5 + $0x48] sm:$0xff]   ;;  %v5370_v14 = vsel %vm4607_vm8, %v3862_v54, %v2844_v61 }
 0x3f9   : > { %4023 = vmatprep.subr.bf16.mxu1 %v4197_v36 }
 0x3fa   : > { %v5335_v51 = vrot.slane %v2319_v22, 5 }
 0x3fc   : > { %2220 = vrot.lane.b32.xlu1 %v2186_v30, %s4360_s17  ;;  %2224 = vrot.lane.b32.xlu0 %v2194_v25, %s4360_s17  ;;  %v3839_v25 = vrot.slane %v2421_v53, 9 }
 0x400   : > { %2222 = vrot.lane.b32.xlu1 %v2187_v62, %s4360_s17  ;;  %v2447_v62 = vrot.slane %v2301_v17, 5 }
 0x402   : > { %v5355_v17 = vsel %vm4607_vm8, %v3839_v25, %v2447_v62 }
 0x404   : > { %2226 = vrot.lane.b32.xlu1 %v2195_v34, %s4360_s17  ;;  %v4198_v34 = vld [vmem:[%s6026_s5 + $0x8] sm:$0xff]  }
 0x405   : > { %4024 = vmatpush3.bf16.msra.mxu1 %v4198_v34  ;;  %v2275_v34 = vld [vmem:[#allocation3 + $0x30] sm:$0xf] }
 0x456   : > { %v2199_v18 = vpop.permute.xlu1 %2198  ;;  %v2197_v55 = vpop.permute.xlu0 %2196 }
 0x457   : > { %v2249_v39 = vsel %vm4642_vm15, %v2199_v18, %v2248_v42  ;;  %v2246_v38 = vsel %vm4634_vm14, %v2197_v55, %v2245_v40  ;;  %v2260_v40 = vld [vmem:[#allocation3 + $0x1c] sm:$0x1]  ;;  %v5339_v18 = vrot.slane %v2786_v48, 5  ;;  %v4199_v55 = vld [vmem:[%s6026_s5 + $0x50] sm:$0xff]  }
 0x458   : > { %2250 = vst [vmem:[#allocation3 + $0xc] sm:$0x1] %v2249_v39  ;;  %2247 = vst [vmem:[#allocation3 + $0x8] sm:$0xf] %v2246_v38  ;;  %4025 = vmatprep.subr.bf16.mxu1 %v4199_v55 }
 0x45a   : > { %v2201_v47 = vpop.permute.xlu1 %2200  ;;  %v2203_v63 = vpop.permute.xlu0 %2202 }
 0x45b   : > { %v2252_v58 = vsel %vm4634_vm14, %v2201_v47, %v2251_v32  ;;  %v2255_v30 = vsel %vm4642_vm15, %v2203_v63, %v2254_v27  ;;  %v4200_v32 = vld [vmem:[%s6026_s5 + $0x10] sm:$0xff]  }
 0x45c   : > { %2253 = vst [vmem:[#allocation3 + $0x10] sm:$0xf] %v2252_v58  ;;  %2256 = vst [vmem:[#allocation3 + $0x14] sm:$0x1] %v2255_v30  ;;  %v2269_v30 = vld [vmem:[#allocation3 + $0x28] sm:$0xf]  ;;  %4026 = vmatpush3.bf16.msra.mxu1 %v4200_v32 }
 0x45e   : > { %v2205_v52 = vpop.permute.xlu1 %2204  ;;  %v2209_v42 = vpop.permute.xlu0 %2208 }
 0x45f   : > { %v2258_v28 = vsel %vm4634_vm14, %v2205_v52, %v2257_v13  ;;  %v2264_v20 = vsel %vm4634_vm14, %v2209_v42, %v2263_v26  ;;  %v2477_v39 = vld [vmem:[#allocation3 + $0x8] sm:$0xf]  ;;  %v5351_v38 = vld [vmem:[#allocation3 + $0xc] sm:$0x1] }
 0x460   : > { %v2605_v27 = vld [vmem:[#allocation3 + $0x8] sm:$0xe]  ;;  %2259 = vst [vmem:[#allocation3 + $0x18] sm:$0xf] %v2258_v28  ;;  %2265 = vst [vmem:[#allocation3 + $0x20] sm:$0xf] %v2264_v20 }
 0x461   : > { %v2494_v35 = vshrl.u32 %v2477_v39, 16  ;;  %v2497_v53 = vshll.u32 %v2477_v39, 16  ;;  %v3847_v29 = vrot.slane %v2605_v27, 9  ;;  %v5358_v49 = vld [vmem:[#allocation3 + $0xc] sm:$0x1]  ;;  %v2631_v22 = vrot.slane %v5351_v38, 5 }
 0x462   : > { %v2422_v36 = vld [vmem:[#allocation3 + $0x8] sm:$0xe]  ;;  %v2451_v47 = vrot.slane %v5358_v49, 5  ;;  %v2207_v48 = vpop.permute.xlu1 %2206  ;;  %v2211_v58 = vpop.permute.xlu0 %2210 }
 0x463   : > { %v5362_v63 = vld [vmem:[#allocation3 + $0x8] sm:$0xf]  ;;  %v2496_v25 = vrot.slane %v2494_v35, 4  ;;  %v2499_v62 = vrot.slane %v2497_v53, 5  ;;  %v3840_v13 = vrot.slane %v2422_v36, 9  ;;  %v2261_v55 = vsel %vm4642_vm15, %v2207_v48, %v2260_v40 }
 0x464   : > { %6075 = vst [vmem:[#allocation27_spill] sm:$0xff] %v5362_v63  ;;  %v2324_v26 = vshrl.u32 %v5362_v63, 16  ;;  %v5373_v52 = vld [vmem:[#allocation3 + $0x10] sm:$0xe]  ;;  %v5375_v42 = vld [vmem:[#allocation3 + $0x14] sm:$0x1]  ;;  %v2267_v54 = vsel %vm4642_vm15, %v2211_v58, %v2266_v15  ;;  %v2632_v28 = vsel %vm4607_vm8, %v3847_v29, %v2631_v22 }
 0x465   : > { %v2478_v61 = vld [vmem:[#allocation3 + $0x10] sm:$0xf]  ;;  %2262 = vst [vmem:[#allocation3 + $0x1c] sm:$0x1] %v2261_v55  ;;  %2268 = vst [vmem:[#allocation3 + $0x24] sm:$0x1] %v2267_v54  ;;  %v2500_v48 = vor.u32 %v2499_v62, %v2496_v25  ;;  %v2452_v55 = vsel %vm4607_vm8, %v3840_v13, %v2451_v47 }
 0x466   : > { %v2508_v40 = vshrl.u32 %v2478_v61, 16  ;;  %v2511_v53 = vshll.u32 %v2478_v61, 16  ;;  %v5389_v36 = vld [vmem:[#allocation3 + $0x14] sm:$0x1]  ;;  %v3875_v15 = vcombine.low %v2477_v39, %v2478_v61  ;;  %v2606_v58 = vld [vmem:[#allocation3 + $0x10] sm:$0xe]  ;;  %v2213_v3 = vpop.permute.xlu1 %2212  ;;  %v2217_v43 = vpop.permute.xlu0 %2216 }
 0x467   : > { %v2635_v29 = vrot.slane %v5389_v36, 5  ;;  %v3848_v27 = vrot.slane %v2606_v58, 9  ;;  %v2278_v54 = vld [vmem:[#allocation3 + $0x34] sm:$0x1]  ;;  %v2662_v35 = vld [vmem:[#allocation3 + $0x10] sm:$0xf]  ;;  %v2270_v25 = vsel %vm4634_vm14, %v2213_v3, %v2269_v30  ;;  %v2276_v61 = vsel %vm4634_vm14, %v2217_v43, %v2275_v34 }
 0x468   : > { %v2510_v20 = vrot.slane %v2508_v40, 4  ;;  %v2513_v32 = vrot.slane %v2511_v53, 5  ;;  %v5395_v59 = vld [vmem:[#allocation3 + $0x18] sm:$0xe]  ;;  %v2792_v39 = vld [vmem:[#allocation3 + $0x20] sm:$0xe]  ;;  %2926 = vrot.lane.b32.xlu1 %v3875_v15, %s4361_s19  ;;  %v3871_v40 = vcombine.low %v5355_v17, %v2452_v55 }
 0x469   : > { %v5400_v62 = vrot.slane %v2500_v48, 4  ;;  %v3857_v47 = vrot.slane %v2792_v39, 9  ;;  %2271 = vst [vmem:[#allocation3 + $0x28] sm:$0xf] %v2270_v25  ;;  %2277 = vst [vmem:[#allocation3 + $0x30] sm:$0xf] %v2276_v61  ;;  %v2636_v58 = vsel %vm4607_vm8, %v3848_v27, %v2635_v29 }
 0x46a   : > { %v2514_v13 = vor.u32 %v2513_v32, %v2510_v20  ;;  %v2663_v22 = vld [vmem:[#allocation3 + $0x18] sm:$0xf]  ;;  %v3883_v30 = vcombine.low %v2632_v28, %v2636_v58  ;;  %v2679_v15 = vshrl.u32 %v2662_v35, 16  ;;  %v2682_v48 = vshll.u32 %v2662_v35, 16  ;;  %v2608_v45 = vld [vmem:[#allocation3 + $0x20] sm:$0xe]  ;;  %v2215_v43 = vpop.permute.xlu1 %2214  ;;  %v2219_v17 = vpop.permute.xlu0 %2218 }
 0x46b   : > { %v2607_v3 = vld [vmem:[#allocation3 + $0x18] sm:$0xe]  ;;  %v2693_v33 = vshrl.u32 %v2663_v22, 16  ;;  %v2696_v34 = vshll.u32 %v2663_v22, 16  ;;  %v3887_v55 = vcombine.low %v2662_v35, %v2663_v22  ;;  %v2326_v25 = vrot.slane %v2324_v26, 4 }
 0x46c   : > { %v5408_v9 = vrot.slane %v2514_v13, 4  ;;  %v2281_v39 = vld [vmem:[#allocation3 + $0x38] sm:$0xf]  ;;  %v5412_v32 = vld [vmem:[#allocation3 + $0x1c] sm:$0x1]  ;;  %2994 = vrot.lane.b32.xlu0 %v3883_v30, %s4362_s12  ;;  %v2273_v28 = vsel %vm4642_vm15, %v2215_v43, %v2272_v44  ;;  %2898 = vrot.lane.b32.xlu1 %v3871_v40, %s4360_s17  ;;  %v2279_v29 = vsel %vm4642_vm15, %v2219_v17, %v2278_v54  ;;  %v5422_v61 = vrot.slane %v2679_v15, 4 }
 0x46d   : > { %v5410_v20 = vld [vmem:[#allocation3 + $0x18] sm:$0xf]  ;;  %v5414_v27 = vld [vmem:[#allocation3 + $0x24] sm:$0x1]  ;;  %v5424_v35 = vrot.slane %v2682_v48, 5  ;;  %v5428_v58 = vrot.slane %v2693_v33, 4 }
 0x46e   : > { %v2287_v26 = vld [vmem:[#allocation3 + $0x40] sm:$0xf]  ;;  %v2824_v13 = vrot.slane %v5414_v27, 5  ;;  %2274 = vst [vmem:[#allocation3 + $0x2c] sm:$0x1] %v2273_v28  ;;  %v5430_v30 = vrot.slane %v2696_v34, 5  ;;  %v2221_v28 = vpop.permute.xlu1 %2220  ;;  %v2225_v48 = vpop.permute.xlu0 %2224 }
 0x46f   : > { %2280 = vst [vmem:[#allocation3 + $0x34] sm:$0x1] %v2279_v29  ;;  %v5432_v44 = vld [vmem:[#allocation3 + $0x1c] sm:$0x1]  ;;  %v2327_v40 = vshll.u32 %v5362_v63, 16  ;;  %v2333_v54 = vshll.u32 %v5358_v49, 16  ;;  %v2288_v63 = vsel %vm4634_vm14, %v2225_v48, %v2287_v26 }
 0x470   : > { %v5436_v15 = vld [vmem:[#allocation3 + $0x24] sm:$0x1]  ;;  %v3849_v43 = vrot.slane %v2607_v3, 9  ;;  %v5441_v17 = vsel %vm4607_vm8, %v3857_v47, %v2824_v13  ;;  %v2639_v33 = vrot.slane %v5432_v44, 5  ;;  %v3850_v34 = vrot.slane %v2608_v45, 9  ;;  %v4201_v49 = vld [vmem:[%s6026_s5 + $0x58] sm:$0xff]   ;;  %3022 = vrot.lane.b32.xlu0 %v3887_v55, %s4360_s17 }
 0x471   : > { %v2643_v29 = vrot.slane %v5436_v15, 5  ;;  %v5445_v53 = vld [vmem:[#allocation3 + $0x20] sm:$0xf]  ;;  %v2793_v22 = vld [vmem:[#allocation3 + $0x28] sm:$0xe]  ;;  %v2282_v47 = vsel %vm4634_vm14, %v2221_v28, %v2281_v39  ;;  %v2329_v3 = vrot.slane %v2327_v40, 5  ;;  %4027 = vmatprep.subr.bf16.mxu1 %v4201_v49 }
 0x472   : > { %v5450_v2 = vld [vmem:[#allocation3 + $0x30] sm:$0xe]  ;;  %v2335_v13 = vrot.slane %v2333_v54, 5  ;;  %v3858_v23 = vrot.slane %v2793_v22, 9  ;;  %2283 = vst [vmem:[#allocation3 + $0x38] sm:$0xf] %v2282_v47  ;;  %v2640_v60 = vsel %vm4607_vm8, %v3849_v43, %v2639_v33  ;;  %v2223_v47 = vpop.permute.xlu1 %2222 }
 0x473   : > { %v2284_v55 = vld [vmem:[#allocation3 + $0x3c] sm:$0x1]  ;;  %v5462_v24 = vld [vmem:[#allocation3 + $0x28] sm:$0xf]  ;;  %v2330_v39 = vor.u32 %v2329_v3, %v2326_v25  ;;  %2289 = vst [vmem:[#allocation3 + $0x40] sm:$0xf] %v2288_v63  ;;  %v2644_v40 = vsel %vm4607_vm8, %v3850_v34, %v2643_v29 }
 0x474   : > { %v2522_v54 = vshrl.u32 %v5410_v20, 16  ;;  %v3884_v28 = vcombine.low %v2640_v60, %v2644_v40  ;;  %v2525_v41 = vshll.u32 %v5410_v20, 16  ;;  %v2536_v26 = vshrl.u32 %v5445_v53, 16  ;;  %v2664_v43 = vld [vmem:[#allocation3 + $0x20] sm:$0xf]  ;;  %v4202_v63 = vld [vmem:[%s6026_s5 + $0x18] sm:$0xff]  }
 0x475   : > { %v2539_v48 = vshll.u32 %v5445_v53, 16  ;;  %v5474_v25 = vld [vmem:[#allocation3 + $0x2c] sm:$0x1]  ;;  %v2331_v34 = vrot.slane %v2330_v39, 4  ;;  %v2285_v60 = vsel %vm4642_vm15, %v2223_v47, %v2284_v55  ;;  %v3888_v49 = vcombine.low %v2664_v43, %v5462_v24  ;;  %v2290_v45 = vld [vmem:[#allocation3 + $0x44] sm:$0x1]  ;;  %4028 = vmatpush3.bf16.msra.mxu1 %v4202_v63 }
 0x476   : > { %v5476_v33 = vld [vmem:[#allocation3 + $0x34] sm:$0x1]  ;;  %v2524_v29 = vrot.slane %v2522_v54, 4  ;;  %v2828_v3 = vrot.slane %v5474_v25, 5  ;;  %2996 = vrot.lane.b32.xlu0 %v3884_v28, %s4362_s12  ;;  %2286 = vst [vmem:[#allocation3 + $0x3c] sm:$0x1] %v2285_v60 }
 0x477   : > { %v2527_v22 = vrot.slane %v2525_v41, 5  ;;  %v2538_v0 = vrot.slane %v2536_v26, 4  ;;  %v2336_v39 = vsel %vm4617_vm10, %v2331_v34, %v2335_v13  ;;  %v2541_v4 = vrot.slane %v2539_v48, 5  ;;  %v5486_v54 = vld [vmem:[#allocation3 + $0x14] sm:$0x1]  ;;  %v2227_v48 = vpop.permute.xlu1 %2226 }
 0x478   : > { %v2707_v16 = vshrl.u32 %v2664_v43, 16  ;;  %v2710_v55 = vshll.u32 %v2664_v43, 16  ;;  %v4203_v47 = vld [vmem:[%s6026_s5 + $0x60] sm:$0xff]   ;;  %v2829_v28 = vsel %vm4607_vm8, %v3858_v23, %v2828_v3  ;;  %v6076_v41 = vsel %vm4617_vm10, %v5333_v37, %v5335_v51  ;;  %v5499_v43 = vld [vmem:[#allocation3 + $0x1c] sm:$0x1] }
 0x479   : > { %v3867_v26 = vcombine.low %v6076_v41, %v2336_v39  ;;  %v2528_v63 = vor.u32 %v2527_v22, %v2524_v29  ;;  %v2721_v13 = vshrl.u32 %v5462_v24, 16  ;;  %v2423_v34 = vld [vmem:[#allocation3 + $0x10] sm:$0xe]  ;;  %v3896_v40 = vcombine.low %v5441_v17, %v2829_v28  ;;  %v5505_v23 = vld [vmem:[#allocation3 + $0x38] sm:$0xe]  ;;  %4029 = vmatprep.subr.bf16.mxu1 %v4203_v47 }
 0x47a   : > { %v4204_v60 = vld [vmem:[%s6026_s5 + $0x20] sm:$0xff]   ;;  %v2542_v3 = vor.u32 %v2541_v4, %v2538_v0  ;;  %v5507_v56 = vrot.slane %v2707_v16, 4  ;;  %v5509_v37 = vrot.slane %v2710_v55, 5  ;;  %v2424_v51 = vld [vmem:[#allocation3 + $0x18] sm:$0xe]  ;;  %v2724_v17 = vshll.u32 %v5462_v24, 16  ;;  %3024 = vrot.lane.b32.xlu0 %v3888_v49, %s4360_s17 }
 0x47b   : > { %2878 = vrot.lane.b32.xlu1 %v3867_v26, %s4362_s12  ;;  %v5513_v29 = vld [vmem:[#allocation3 + $0x40] sm:$0xe]  ;;  %v5515_v39 = vrot.slane %v2528_v63, 4  ;;  %v5517_v41 = vrot.slane %v2721_v13, 4  ;;  %3103 = vst.msk [vmem:[#allocation5 + $0x28] sm:$0xff] %vm420_vm3, %v3896_v40  ;;  %v2291_v4 = vsel %vm4642_vm15, %v2227_v48, %v2290_v45  ;;  %v3841_v55 = vrot.slane %v2423_v34, 9  ;;  %4030 = vmatpush3.bf16.msra.mxu1 %v4204_v60 }
 0x47c   : > { %v5523_v16 = vrot.slane %v2542_v3, 4  ;;  %v4205_v47 = vld [vmem:[%s6026_s5 + $0x68] sm:$0xff]   ;;  %v5530_v28 = vrot.slane %v2724_v17, 5  ;;  %2292 = vst [vmem:[#allocation3 + $0x44] sm:$0x1] %v2291_v4  ;;  %v2455_v24 = vrot.slane %v5486_v54, 5  ;;  %v2685_v60 = vor.u32 %v5424_v35, %v5422_v61 }
 0x47d   : > { %v3842_v49 = vrot.slane %v2424_v51, 9  ;;  %v2459_v40 = vrot.slane %v5499_v43, 5  ;;  %v5534_v26 = vld [vmem:[#allocation3 + $0x3c] sm:$0x1]  ;;  %v6077_v63 = vrot.slane %v5375_v42, 5  ;;  %v6078_v46 = vrot.slane %v5373_v52, 9  ;;  %4031 = vmatprep.subr.bf16.mxu1 %v4205_v47 }
 0x47e   : > { %v6079_v13 = vrot.slane %v5412_v32, 5  ;;  %v6080_v48 = vrot.slane %v5395_v59, 9  ;;  %v2688_v3 = vshll.u32 %v5375_v42, 16  ;;  %v5551_v51 = vld [vmem:[#allocation3 + $0x10] sm:$0xf]  ;;  %v4206_v52 = vld [vmem:[%s6026_s5 + $0x28] sm:$0xff]   ;;  %v6081_v59 = vcombine.low %v5410_v20, %v5445_v53 }
 0x47f   : > { %v2817_v45 = vsel %vm4607_vm8, %v6078_v46, %v6077_v63  ;;  %v2456_v4 = vsel %vm4607_vm8, %v3841_v55, %v2455_v24  ;;  %v2460_v42 = vsel %vm4607_vm8, %v3842_v49, %v2459_v40  ;;  %v5565_v35 = vld [vmem:[#allocation3 + $0x18] sm:$0xf]  ;;  %v2686_v63 = vrot.slane %v2685_v60, 4  ;;  %4032 = vmatpush3.bf16.msra.mxu1 %v4206_v52  ;;  %v2609_v49 = vld [vmem:[#allocation3 + $0x28] sm:$0xe] }
 0x480   : > { %v2821_v34 = vsel %vm4607_vm8, %v6080_v48, %v6079_v13  ;;  %2928 = vrot.lane.b32.xlu1 %v6081_v59, %s4361_s19  ;;  %v3872_v47 = vcombine.low %v2456_v4, %v2460_v42  ;;  %v2690_v46 = vrot.slane %v2688_v3, 5  ;;  %v2699_v13 = vor.u32 %v5430_v30, %v5428_v58  ;;  %v5569_v48 = vld [vmem:[#allocation3 + $0x2c] sm:$0x1]  ;;  %v2610_v60 = vld [vmem:[#allocation3 + $0x30] sm:$0xe] }
 0x481   : > { %v3895_v61 = vcombine.low %v2817_v45, %v2821_v34  ;;  %v2702_v53 = vshll.u32 %v5412_v32, 16  ;;  %v2338_v20 = vshrl.u32 %v5551_v51, 16  ;;  %v2341_v55 = vshll.u32 %v5551_v51, 16  ;;  %v5580_v34 = vld [vmem:[#allocation3 + $0x34] sm:$0x1] }
 0x482   : > { %v2347_v24 = vshll.u32 %v5486_v54, 16  ;;  %v2691_v40 = vsel %vm4617_vm10, %v2686_v63, %v2690_v46  ;;  %v2700_v45 = vrot.slane %v2699_v13, 4  ;;  %v2352_v58 = vshrl.u32 %v5565_v35, 16  ;;  %v4207_v54 = vld [vmem:[%s6026_s5 + $0x70] sm:$0xff]   ;;  %v3111_v19 = vld [vmem:[#allocation5 + $0x28] sm:$0xff] }
 0x483   : > { %3102 = vst.msk [vmem:[#allocation5 + $0x10] sm:$0xff] %vm420_vm3, %v3895_v61  ;;  %v2355_v30 = vshll.u32 %v5565_v35, 16  ;;  %v2704_v32 = vrot.slane %v2702_v53, 5  ;;  %v2340_v3 = vrot.slane %v2338_v20, 4  ;;  %v2343_v52 = vrot.slane %v2341_v55, 5  ;;  %4033 = vmatprep.subr.bf16.mxu1 %v4207_v54 }
 0x484   : > { %2900 = vrot.lane.b32.xlu1 %v3872_v47, %s4360_s17  ;;  %v2349_v59 = vrot.slane %v2347_v24, 5  ;;  %v5586_v4 = vld [vmem:[#allocation3 + $0x44] sm:$0x1]  ;;  %v2354_v42 = vrot.slane %v2352_v58, 4  ;;  %v2361_v63 = vshll.u32 %v5499_v43, 16  ;;  %v3851_v20 = vrot.slane %v2609_v49, 9 }
 0x485   : > { %v2357_v61 = vrot.slane %v2355_v30, 5  ;;  %v2705_v47 = vsel %vm4617_vm10, %v2700_v45, %v2704_v32  ;;  %v2344_v53 = vor.u32 %v2343_v52, %v2340_v3  ;;  %v5593_v55 = vld [vmem:[#allocation3 + $0x28] sm:$0xf]  ;;  %v2647_v58 = vrot.slane %v5569_v48, 5  ;;  %v2482_v30 = vld [vmem:[#allocation3 + $0x30] sm:$0xf] }
 0x486   : > { %v3891_v24 = vcombine.low %v2691_v40, %v2705_v47  ;;  %v2363_v22 = vrot.slane %v2361_v63, 5  ;;  %v3852_v43 = vrot.slane %v2610_v60, 9  ;;  %v2651_v46 = vrot.slane %v5580_v34, 5  ;;  %v2666_v3 = vld [vmem:[#allocation3 + $0x30] sm:$0xf] }
 0x487   : > { %v2358_v0 = vor.u32 %v2357_v61, %v2354_v42  ;;  %v2345_v17 = vrot.slane %v2344_v53, 4  ;;  %v2648_v45 = vsel %vm4607_vm8, %v3851_v20, %v2647_v58  ;;  %v2550_v40 = vshrl.u32 %v5593_v55, 16  ;;  %v4208_v61 = vld [vmem:[%s6026_s5 + $0x30] sm:$0xff]   ;;  %v2306_v58 = vld [vmem:[#allocation3 + $0x2c] sm:$0x1] }
 0x488   : > { %3042 = vrot.lane.b32.xlu0 %v3891_v24, %s4361_s19  ;;  %v2553_v32 = vshll.u32 %v5593_v55, 16  ;;  %v2652_v52 = vsel %vm4607_vm8, %v3852_v43, %v2651_v46  ;;  %v3877_v54 = vcombine.low %v5593_v55, %v2482_v30  ;;  %v2564_v42 = vshrl.u32 %v2482_v30, 16  ;;  %4034 = vmatpush3.bf16.msra.mxu1 %v4208_v61  ;;  %v4209_v43 = vld [vmem:[%s6026_s5 + $0x78] sm:$0xff]  }
 0x489   : > { %v2359_v49 = vrot.slane %v2358_v0, 4  ;;  %v2350_v60 = vsel %vm4617_vm10, %v2345_v17, %v2349_v59  ;;  %v2667_v0 = vld [vmem:[#allocation3 + $0x38] sm:$0xf]  ;;  %v3885_v47 = vcombine.low %v2648_v45, %v2652_v52  ;;  %v2552_v53 = vrot.slane %v2550_v40, 4  ;;  %v2305_v17 = vld [vmem:[#allocation3 + $0x24] sm:$0x1]  ;;  %4035 = vmatprep.subr.bf16.mxu1 %v4209_v43 }
 0x48a   : > { %v3108_v31 = vld [vmem:[#allocation5 + $0x10] sm:$0xff]  ;;  %v2566_v46 = vrot.slane %v2564_v42, 4  ;;  %v2567_v24 = vshll.u32 %v2482_v30, 16  ;;  %v2735_v55 = vshrl.u32 %v2666_v3, 16  ;;  %v2749_v45 = vshrl.u32 %v2667_v0, 16 }
 0x48b   : > { %4083 = vmatprep.mubr.msk.bf16.mxu0 %vm420_vm3, %v3108_v31  ;;  %v2364_v63 = vsel %vm4617_vm10, %v2359_v49, %v2363_v22  ;;  %v2555_v31 = vrot.slane %v2553_v32, 5  ;;  %v2425_v59 = vld [vmem:[#allocation3 + $0x20] sm:$0xe]  ;;  %v2738_v49 = vshll.u32 %v2666_v3, 16  ;;  %v2752_v40 = vshll.u32 %v2667_v0, 16 }
 0x48c   : > { %4084 = vmatmul.mubr.msk.bf16.vlgmr.msra.gmra.mrb[16].mxu0 %vm420_vm3, %v3111_v19  ;;  %v3868_v20 = vcombine.low %v2350_v60, %v2364_v63  ;;  %2998 = vrot.lane.b32.xlu0 %v3885_v47, %s4362_s12  ;;  %v2426_v32 = vld [vmem:[#allocation3 + $0x28] sm:$0xe]  ;;  %v2569_v30 = vrot.slane %v2567_v24, 5  ;;  %v5623_v60 = vrot.slane %v2735_v55, 4  ;;  %v3889_v52 = vcombine.low %v2666_v3, %v2667_v0 }
 0x48d   : > { %v2556_v22 = vor.u32 %v2555_v31, %v2552_v53  ;;  %v4210_v19 = vld [vmem:[%s6026_s5 + $0x38] sm:$0xff]   ;;  %v3843_v42 = vrot.slane %v2425_v59, 9  ;;  %v5627_v63 = vrot.slane %v2738_v49, 5  ;;  %v5629_v47 = vrot.slane %v2749_v45, 4  ;;  %v5633_v31 = vld [vmem:[#allocation3 + $0x20] sm:$0xf] }
 0x48e   : > { %2880 = vrot.lane.b32.xlu1 %v3868_v20, %s4362_s12  ;;  %v5631_v53 = vrot.slane %v2752_v40, 5  ;;  %v2570_v13 = vor.u32 %v2569_v30, %v2566_v46  ;;  %v2463_v12 = vrot.slane %v2305_v17, 5  ;;  %v3844_v10 = vrot.slane %v2426_v32, 9  ;;  %4036 = vmatpush3.bf16.msra.mxu1 %v4210_v19  ;;  %v5653_v45 = vld [vmem:[#allocation3 + $0x3c] sm:$0x1] }
 0x48f   : > { %v5625_v61 = vrot.slane %v2556_v22, 4  ;;  %v2467_v20 = vrot.slane %v2306_v58, 5  ;;  %v2713_v3 = vor.u32 %v5509_v37, %v5507_v56  ;;  %v2716_v0 = vshll.u32 %v5414_v27, 16  ;;  %v5649_v22 = vld [vmem:[#allocation3 + $0x28] sm:$0xf] }
 0x490   : > { %3026 = vrot.lane.b32.xlu0 %v3889_v52, %s4360_s17  ;;  %v2727_v59 = vor.u32 %v5530_v28, %v5517_v41  ;;  %v2730_v24 = vshll.u32 %v5474_v25, 16  ;;  %v5643_v55 = vrot.slane %v2570_v13, 4  ;;  %v2464_v46 = vsel %vm4607_vm8, %v3843_v42, %v2463_v12  ;;  %v5659_v19 = vld [vmem:[#allocation3 + $0x44] sm:$0x1] }
 0x491   : > { %v2468_v43 = vsel %vm4607_vm8, %v3844_v10, %v2467_v20  ;;  %v2366_v56 = vshrl.u32 %v5633_v31, 16  ;;  %v2714_v37 = vrot.slane %v2713_v3, 4  ;;  %v2718_v49 = vrot.slane %v2716_v0, 5  ;;  %v2611_v0 = vld [vmem:[#allocation3 + $0x38] sm:$0xe] }
 0x492   : > { %2930 = vrot.lane.b32.xlu1 %v3877_v54, %s4361_s19  ;;  %v3873_v27 = vcombine.low %v2464_v46, %v2468_v43  ;;  %v2728_v41 = vrot.slane %v2727_v59, 4  ;;  %v2732_v28 = vrot.slane %v2730_v24, 5  ;;  %v2369_v54 = vshll.u32 %v5633_v31, 16  ;;  %v2612_v59 = vld [vmem:[#allocation3 + $0x40] sm:$0xe] }
 0x493   : > { %v2368_v25 = vrot.slane %v2366_v56, 4  ;;  %v2375_v13 = vshll.u32 %v2305_v17, 16  ;;  %v2719_v12 = vsel %vm4617_vm10, %v2714_v37, %v2718_v49  ;;  %v2380_v10 = vshrl.u32 %v5649_v22, 16  ;;  %v2427_v56 = vld [vmem:[#allocation3 + $0x30] sm:$0xe] }
 0x494   : > { %v2383_v40 = vshll.u32 %v5649_v22, 16  ;;  %v2389_v32 = vshll.u32 %v2306_v58, 16  ;;  %v2733_v30 = vsel %vm4617_vm10, %v2728_v41, %v2732_v28  ;;  %v2371_v52 = vrot.slane %v2369_v54, 5  ;;  %v2307_v54 = vld [vmem:[#allocation3 + $0x34] sm:$0x1] }
 0x495   : > { %v2377_v42 = vrot.slane %v2375_v13, 5  ;;  %v6082_v17 = vrot.slane %v5476_v33, 5  ;;  %v6083_v20 = vrot.slane %v5450_v2, 9  ;;  %v3892_v24 = vcombine.low %v2719_v12, %v2733_v30  ;;  %v2428_v13 = vld [vmem:[#allocation3 + $0x38] sm:$0xe] }
 0x496   : > { %2902 = vrot.lane.b32.xlu1 %v3873_v27, %s4360_s17  ;;  %v2382_v58 = vrot.slane %v2380_v10, 4  ;;  %v2385_v46 = vrot.slane %v2383_v40, 5  ;;  %v2391_v43 = vrot.slane %v2389_v32, 5  ;;  %v2372_v27 = vor.u32 %v2371_v52, %v2368_v25  ;;  %v2308_v32 = vld [vmem:[#allocation3 + $0x3c] sm:$0x1] }
 0x497   : > { %v2833_v3 = vsel %vm4607_vm8, %v6083_v20, %v6082_v17  ;;  %v6084_v37 = vrot.slane %v5534_v26, 5  ;;  %v6085_v49 = vrot.slane %v5505_v23, 9  ;;  %v2587_v2 = vshll.u32 %v5653_v45, 16  ;;  %3044 = vrot.lane.b32.xlu0 %v3892_v24, %s4361_s19 }
 0x498   : > { %v2386_v12 = vor.u32 %v2385_v46, %v2382_v58  ;;  %v3853_v40 = vrot.slane %v2611_v0, 9  ;;  %v2655_v25 = vrot.slane %v5653_v45, 5  ;;  %v2373_v30 = vrot.slane %v2372_v27, 4 }
 0x499   : > { %v2837_v41 = vsel %vm4607_vm8, %v6085_v49, %v6084_v37  ;;  %v3854_v52 = vrot.slane %v2612_v59, 9  ;;  %v2659_v23 = vrot.slane %v5659_v19, 5  ;;  %v3845_v17 = vrot.slane %v2427_v56, 9  ;;  %v5694_v56 = vld [vmem:[#allocation3 + $0x30] sm:$0xf] }
 0x49a   : > { %v3897_v10 = vcombine.low %v2833_v3, %v2837_v41  ;;  %v2387_v20 = vrot.slane %v2386_v12, 4  ;;  %v2656_v37 = vsel %vm4607_vm8, %v3853_v40, %v2655_v25  ;;  %v2471_v49 = vrot.slane %v2307_v54, 5  ;;  %v5706_v25 = vld [vmem:[#allocation3 + $0x38] sm:$0xf] }
 0x49b   : > { %v3846_v28 = vrot.slane %v2428_v13, 9  ;;  %v2378_v3 = vsel %vm4617_vm10, %v2373_v30, %v2377_v42  ;;  %v2660_v0 = vsel %vm4607_vm8, %v3854_v52, %v2659_v23  ;;  %v2475_v24 = vrot.slane %v2308_v32, 5  ;;  %v2668_v52 = vld [vmem:[#allocation3 + $0x40] sm:$0xf] }
 0x49c   : > { %3104 = vst.msk [vmem:[#allocation5 + $0x40] sm:$0xff] %vm420_vm3, %v3897_v10  ;;  %v6086_v59 = vrot.slane %v5586_v4, 5  ;;  %v6087_v58 = vrot.slane %v5513_v29, 9  ;;  %v2392_v27 = vsel %vm4617_vm10, %v2387_v20, %v2391_v43  ;;  %v3886_v41 = vcombine.low %v2656_v37, %v2660_v0  ;;  %v5720_v0 = vld [vmem:[#allocation3 + $0x38] sm:$0xf] }
 0x49d   : > { %v2472_v42 = vsel %vm4607_vm8, %v3845_v17, %v2471_v49  ;;  %v3869_v12 = vcombine.low %v2378_v3, %v2392_v27  ;;  %v2476_v10 = vsel %vm4607_vm8, %v3846_v28, %v2475_v24  ;;  %v2741_v29 = vor.u32 %v5627_v63, %v5623_v60 }
 0x49e   : > { %v2841_v46 = vsel %vm4607_vm8, %v6087_v58, %v6086_v59  ;;  %v2744_v40 = vshll.u32 %v5476_v33, 16  ;;  %3000 = vrot.lane.b32.xlu0 %v3886_v41, %s4362_s12  ;;  %v3874_v43 = vcombine.low %v2472_v42, %v2476_v10  ;;  %v2755_v30 = vor.u32 %v5631_v53, %v5629_v47 }
 0x49f   : > { %v3898_v13 = vcombine.low %v2841_v46, %v5370_v14  ;;  %v2758_v14 = vshll.u32 %v5534_v26, 16  ;;  %v2394_v21 = vshrl.u32 %v5694_v56, 16  ;;  %2882 = vrot.lane.b32.xlu1 %v3869_v12, %s4362_s12  ;;  %v2742_v28 = vrot.slane %v2741_v29, 4 }
 0x4a0   : > { %v2746_v60 = vrot.slane %v2744_v40, 5  ;;  %v2397_v33 = vshll.u32 %v5694_v56, 16  ;;  %v2403_v63 = vshll.u32 %v2307_v54, 16  ;;  %v2756_v23 = vrot.slane %v2755_v30, 4 }
 0x4a1   : > { %3105 = vst.msk [vmem:[#allocation5 + $0x58] sm:$0xff] %vm420_vm3, %v3898_v13  ;;  %v2760_v17 = vrot.slane %v2758_v14, 5  ;;  %v2396_v20 = vrot.slane %v2394_v21, 4  ;;  %v2408_v37 = vshrl.u32 %v5706_v25, 16  ;;  %v2411_v3 = vshll.u32 %v5706_v25, 16 }
 0x4a2   : > { %v2747_v47 = vsel %vm4617_vm10, %v2742_v28, %v2746_v60  ;;  %v2399_v26 = vrot.slane %v2397_v33, 5  ;;  %v2405_v53 = vrot.slane %v2403_v63, 5  ;;  %v2417_v59 = vshll.u32 %v2308_v32, 16  ;;  %v2484_v13 = vld [vmem:[#allocation3 + $0x40] sm:$0xf] }
 0x4a3   : > { %v3114_v49 = vld [vmem:[#allocation5 + $0x40] sm:$0xff]  ;;  %v2761_v54 = vsel %vm4617_vm10, %v2756_v23, %v2760_v17  ;;  %v2410_v24 = vrot.slane %v2408_v37, 4  ;;  %v2763_v58 = vshrl.u32 %v2668_v52, 16  ;;  %2904 = vrot.lane.b32.xlu1 %v3874_v43, %s4360_s17  ;;  %v2413_v41 = vrot.slane %v2411_v3, 5 }
 0x4a4   : > { %4087 = vmatprep.mubr.msk.bf16.mxu0 %vm420_vm3, %v3114_v49  ;;  %v3893_v46 = vcombine.low %v2747_v47, %v2761_v54  ;;  %v2400_v27 = vor.u32 %v2399_v26, %v2396_v20  ;;  %v2766_v42 = vshll.u32 %v2668_v52, 16  ;;  %v2419_v12 = vrot.slane %v2417_v59, 5 }
 0x4a5   : > { %v2765_v10 = vrot.slane %v2763_v58, 4  ;;  %v3890_v29 = vcombine.low %v2668_v52, %v5309_v50  ;;  %v2578_v40 = vshrl.u32 %v5720_v0, 16  ;;  %v2414_v21 = vor.u32 %v2413_v41, %v2410_v24 }
 0x4a6   : > { %3046 = vrot.lane.b32.xlu0 %v3893_v46, %s4361_s19  ;;  %v2401_v14 = vrot.slane %v2400_v27, 4  ;;  %v2768_v32 = vrot.slane %v2766_v42, 5  ;;  %v2581_v28 = vshll.u32 %v5720_v0, 16  ;;  %v3878_v60 = vcombine.low %v5720_v0, %v2484_v13 }
 0x4a7   : > { %v2580_v43 = vrot.slane %v2578_v40, 4  ;;  %v2592_v33 = vshrl.u32 %v2484_v13, 16  ;;  %v2595_v63 = vshll.u32 %v2484_v13, 16  ;;  %v2415_v52 = vrot.slane %v2414_v21, 4 }
 0x4a8   : > { %v3117_v30 = vld [vmem:[#allocation5 + $0x58] sm:$0xff]  ;;  %v2406_v50 = vsel %vm4617_vm10, %v2401_v14, %v2405_v53  ;;  %v2583_v23 = vrot.slane %v2581_v28, 5  ;;  %v2769_v17 = vor.u32 %v2768_v32, %v2765_v10  ;;  %v2772_v49 = vshll.u32 %v5586_v4, 16  ;;  %v3404_v28 = vld [vmem:[#allocation7] sm:$0xff] }
 0x4a9   : > { %4088 = vmatmul.mubr.msk.bf16.gmra.mrb[20].mxu0 %vm420_vm3, %v3117_v30  ;;  %v2594_v20 = vrot.slane %v2592_v33, 4  ;;  %v2597_v37 = vrot.slane %v2595_v63, 5  ;;  %v6088_v47 = vshll.u32 %v5351_v38, 16  ;;  %v2420_v3 = vsel %vm4617_vm10, %v2415_v52, %v2419_v12  ;;  %v3409_v52 = vld [vmem:[#allocation7 + $0x28] sm:$0xff] }
 0x4aa   : > { %3028 = vrot.lane.b32.xlu0 %v3890_v29, %s4360_s17  ;;  %v2770_v0 = vrot.slane %v2769_v17, 4  ;;  %v6089_v54 = vshll.u32 %v5389_v36, 16  ;;  %v6090_v53 = vshll.u32 %v5432_v44, 16  ;;  %v3870_v58 = vcombine.low %v2406_v50, %v2420_v3  ;;  %v3407_v50 = vld [vmem:[#allocation7 + $0x18] sm:$0xff]  ;;  %v6098_v3 = vld [vmem:[#allocation9_spill] sm:$0xff] }
 0x4ab   : > { %v2505_v26 = vrot.slane %v6088_v47, 5  ;;  %v2774_v46 = vrot.slane %v2772_v49, 5  ;;  %v6091_v38 = vshll.u32 %v5436_v15, 16  ;;  %v3864_v44 = vcombine.low %v5551_v51, %v5565_v35  ;;  %v6096_v49 = vld [vmem:[#allocation8_spill] sm:$0xff] }
 0x4ac   : > { %v2519_v24 = vrot.slane %v6089_v54, 5  ;;  %v2533_v59 = vrot.slane %v6090_v53, 5  ;;  %v6092_v42 = vshll.u32 %v5569_v48, 16  ;;  %2884 = vrot.lane.b32.xlu1 %v3870_v58, %s4362_s12  ;;  %v6093_v12 = vshll.u32 %v5580_v34, 16  ;;  %v6104_v54 = vld [vmem:[#allocation22_spill] sm:$0xff] }
 0x4ad   : > { %v2506_v4 = vsel %vm4617_vm10, %v5400_v62, %v2505_v26  ;;  %v2547_v27 = vrot.slane %v6091_v38, 5  ;;  %v2775_v62 = vsel %vm4617_vm10, %v2770_v0, %v2774_v46  ;;  %v6094_v48 = vsel %vm4617_vm10, %v5337_v1, %v5339_v18  ;;  %v6097_v26 = vld [vmem:[#allocation10_spill] sm:$0xff] }
 0x4ae   : > { %v2520_v41 = vsel %vm4617_vm10, %v5408_v9, %v2519_v24  ;;  %v2534_v36 = vsel %vm4617_vm10, %v5515_v39, %v2533_v59  ;;  %v2561_v13 = vrot.slane %v6092_v42, 5  ;;  %v2575_v39 = vrot.slane %v6093_v12, 5  ;;  %v6105_v24 = vld [vmem:[#allocation24_spill] sm:$0xff]  ;;  %v6106_v53 = vld [vmem:[#allocation26_spill] sm:$0xff] }
 0x4af   : > { %v5762_v15 = vcombine.low %v2506_v4, %v2520_v41  ;;  %v2548_v9 = vsel %vm4617_vm10, %v5523_v16, %v2547_v27  ;;  %v3894_v10 = vcombine.low %v2775_v62, %v6094_v48  ;;  %v3865_v30 = vcombine.low %v5633_v31, %v5649_v22  ;;  %v4309_v38 = vld [vmem:[#allocation3] sm:$0xf]  ;;  %v6107_v27 = vld [vmem:[#allocation27_spill] sm:$0xff] }
 0x4b0   : > { %v5774_v29 = vcombine.low %v2534_v36, %v2548_v9  ;;  %v2562_v40 = vsel %vm4617_vm10, %v5625_v61, %v2561_v13  ;;  %v2576_v16 = vsel %vm4617_vm10, %v5643_v55, %v2575_v39  ;;  %v2584_v34 = vor.u32 %v2583_v23, %v2580_v43  ;;  %2932 = vrot.lane.b32.xlu1 %v3878_v60, %s4361_s19  ;;  %v3405_v43 = vld [vmem:[#allocation7 + $0x8] sm:$0xff]  ;;  %v3408_v60 = vld [vmem:[#allocation7 + $0x20] sm:$0xff]  ;;  %v3411_v23 = vld [vmem:[#allocation7 + $0x38] sm:$0xff] }
 0x4b1   : > { %v2589_v14 = vrot.slane %v2587_v2, 5  ;;  %v2598_v21 = vor.u32 %v2597_v37, %v2594_v20  ;;  %3048 = vrot.lane.b32.xlu0 %v3894_v10, %s4361_s19  ;;  %v5787_v1 = vcombine.low %v2562_v40, %v2576_v16  ;;  %v6095_v18 = vshll.u32 %v5659_v19, 16  ;;  %v3406_v19 = vld [vmem:[#allocation7 + $0x10] sm:$0xff]  ;;  %v3921_v20 = vld [vmem:[%s6027_s6] ss:$0 sm:$0xff] }
 0x4b2   : > { %v3866_v61 = vcombine.low %v5694_v56, %v5706_v25  ;;  %v2585_v33 = vrot.slane %v2584_v34, 4  ;;  %v4136_v17 = vpack.i.bf16 %v4524_v8, %v4520_v6  ;;  %v4141_v37 = vpack.i.bf16 %v4522_v7, %v4518_v5  ;;  %v6099_v6 = vld [vmem:[#allocation12_spill] sm:$0xff]  ;;  %v6100_v8 = vld [vmem:[#allocation14_spill] sm:$0xff] }
 0x4b3   : > { %v2603_v32 = vrot.slane %v6095_v18, 5  ;;  %v2599_v55 = vrot.slane %v2598_v21, 4  ;;  %v4146_v47 = vpack.i.bf16 %v6096_v49, %v4529_v11  ;;  %v4151_v0 = vpack.i.bf16 %v6098_v3, %v6097_v26  ;;  %v6101_v5 = vld [vmem:[#allocation16_spill] sm:$0xff]  ;;  %v6102_v7 = vld [vmem:[#allocation18_spill] sm:$0xff] }
 0x4b4   : > { %v2590_v45 = vsel %vm4617_vm10, %v2585_v33, %v2589_v14  ;;  %3422 = vrot.lane.b32.xlu1 %v3405_v43, %s4360_s17  ;;  %v6103_v11 = vld [vmem:[#allocation20_spill] sm:$0xff]  ;;  %v3863_v41 = vcombine.low %v4309_v38, %v6107_v27  ;;  %v6109_v27 = vld [vmem:[#allocation13_spill] sm:$0xff] }
 0x4b5   : > { %v2604_v2 = vsel %vm4617_vm10, %v2599_v55, %v2603_v32  ;;  %3420 = vrot.lane.b32.xlu0 %v3404_v28, %s4360_s17 }
 0x4b6   : > { %v5799_v63 = vcombine.low %v2590_v45, %v2604_v2 }
 0x4b8   : > { %3426 = vrot.lane.b32.xlu1 %v3407_v50, %s4360_s17 }
 0x4b9   : > { %3424 = vrot.lane.b32.xlu0 %v3406_v19, %s4360_s17 }
 0x4bc   : > { %3430 = vrot.lane.b32.xlu1 %v3409_v52, %s4360_s17 }
 0x4bd   : > { %3428 = vrot.lane.b32.xlu0 %v3408_v60, %s4360_s17 }
 0x4c0   : > { %3434 = vrot.lane.b32.xlu1 %v3411_v23, %s4360_s17 }
 0x4c1   : > { %3432 = vrot.lane.b32.xlu0 %v3410_v57, %s4360_s17 }
 0x4c4   : > { %4137 = vrot.lane.b32.xlu1 %v4136_v17, %s4360_s17 }
 0x4c5   : > { %3458 = vrot.lane.b32.xlu0 %v3921_v20, %s4360_s17 }
 0x4c8   : > { %4147 = vrot.lane.b32.xlu1 %v4146_v47, %s4360_s17 }
 0x4c9   : > { %4142 = vrot.lane.b32.xlu0 %v4141_v37, %s4360_s17 }
 0x4cc   : > { %1899 = vrot.lane.b32.xlu1 %v6099_v6, %s4361_s19 }
 0x4cd   : > { %4152 = vrot.lane.b32.xlu0 %v4151_v0, %s4360_s17 }
 0x4d0   : > { %1903 = vrot.lane.b32.xlu1 %v6101_v5, %s4361_s19 }
 0x4d1   : > { %1901 = vrot.lane.b32.xlu0 %v6100_v8, %s4361_s19 }
 0x4d4   : > { %1907 = vrot.lane.b32.xlu1 %v6103_v11, %s4361_s19 }
 0x4d5   : > { %1905 = vrot.lane.b32.xlu0 %v6102_v7, %s4361_s19 }
 0x4d8   : > { %1911 = vrot.lane.b32.xlu1 %v6105_v24, %s4361_s19 }
 0x4d9   : > { %1909 = vrot.lane.b32.xlu0 %v6104_v54, %s4361_s19 }
 0x4da   : > { %v2927_v59 = vpop.permute.xlu1 %2926 }
 0x4dd   : > { %1913 = vrot.lane.b32.xlu0 %v6106_v53, %s4361_s19 }
 0x4de   : > { %v2995_v58 = vpop.permute.xlu0 %2994  ;;  %v2899_v46 = vpop.permute.xlu1 %2898 }
 0x4df   : > { %v3052_v48 = vsel %vm420_vm3, %v5762_v15, %v2995_v58  ;;  %v6108_v58 = vld [vmem:[#allocation11_spill] sm:$0xff] }
 0x4e2   : > { %v3023_v4 = vpop.permute.xlu0 %3022 }
 0x4e3   : > { %v3063_v40 = vsel %vm1357_vm0, %v3052_v48, %v3023_v4 }
 0x4e8   : > { %v2997_v13 = vpop.permute.xlu0 %2996 }
 0x4e9   : > { %v3055_v55 = vsel %vm420_vm3, %v5774_v29, %v2997_v13 }
 0x4ec   : > { %v3025_v39 = vpop.permute.xlu0 %3024 }
 0x4ed   : > { %v2879_v36 = vpop.permute.xlu1 %2878  ;;  %v3065_v43 = vsel %vm1357_vm0, %v3055_v55, %v3025_v39  ;;  %v6112_v39 = vld [vmem:[#allocation19_spill] sm:$0xff] }
 0x4ee   : > { %v2936_v42 = vsel %vm420_vm3, %v3863_v41, %v2879_v36  ;;  %v6110_v36 = vld [vmem:[#allocation15_spill] sm:$0xff] }
 0x4ef   : > { %v2947_v62 = vsel %vm1357_vm0, %v2936_v42, %v2899_v46 }
 0x4f0   : > { %v2955_v9 = vsel %vm1366_vm1, %v2947_v62, %v2927_v59 }
 0x4f2   : > { %v2929_v12 = vpop.permute.xlu1 %2928 }
 0x4f6   : > { %v2901_v10 = vpop.permute.xlu1 %2900 }
 0x4fa   : > { %v3043_v16 = vpop.permute.xlu0 %3042 }
 0x4fb   : > { %v3071_v34 = vsel %vm1366_vm1, %v3063_v40, %v3043_v16  ;;  %v6113_v16 = vld [vmem:[#allocation21_spill] sm:$0xff] }
 0x4fc   : > { %3306 = vmatprep.mubr.bf16.mxu1 %v3071_v34 }
 0x4fd   : > { %3307 = vmatmul.mubr.bf16.vlgmr.msra.gmra.mrb[8].mxu1 %v2955_v9  ;;  %v6111_v9 = vld [vmem:[#allocation17_spill] sm:$0xff] }
 0x4fe   : > { %v2999_v14 = vpop.permute.xlu0 %2998 }
 0x4ff   : > { %v3058_v29 = vsel %vm420_vm3, %v5787_v1, %v2999_v14  ;;  %v6114_v14 = vld [vmem:[#allocation23_spill] sm:$0xff] }
 0x500   : > { %v2881_v21 = vpop.permute.xlu1 %2880 }
 0x501   : > { %v2939_v18 = vsel %vm420_vm3, %v3864_v44, %v2881_v21 }
 0x502   : > { %v2949_v32 = vsel %vm1357_vm0, %v2939_v18, %v2901_v10  ;;  %v3027_v15 = vpop.permute.xlu0 %3026 }
 0x503   : > { %v2958_v28 = vsel %vm1366_vm1, %v2949_v32, %v2929_v12  ;;  %v3067_v52 = vsel %vm1357_vm0, %v3058_v29, %v3027_v15  ;;  %v6115_v32 = vld [vmem:[#allocation25_spill] sm:$0xff] }
 0x504   : > { %v2931_v33 = vpop.permute.xlu1 %2930 }
 0x508   : > { %v2903_v2 = vpop.permute.xlu1 %2902 }
 0x509   : > { %v3045_v45 = vpop.permute.xlu0 %3044 }
 0x50a   : > { %v3074_v19 = vsel %vm1366_vm1, %v3065_v43, %v3045_v45 }
 0x50b   : > { %3314 = vmatprep.mubr.bf16.mxu1 %v3074_v19 }
 0x50c   : > { %3315 = vmatmul.mubr.bf16.gmra.mrb[12].mxu1 %v2958_v28 }
 0x510   : > { %v3001_v35 = vpop.permute.xlu0 %3000 }
 0x511   : > { %v2883_v51 = vpop.permute.xlu1 %2882  ;;  %v3061_v22 = vsel %vm420_vm3, %v5799_v63, %v3001_v35 }
 0x512   : > { %v2942_v44 = vsel %vm420_vm3, %v3865_v30, %v2883_v51 }
 0x513   : > { %v2951_v50 = vsel %vm1357_vm0, %v2942_v44, %v2903_v2 }
 0x514   : > { %v2961_v60 = vsel %vm1366_vm1, %v2951_v50, %v2931_v33 }
 0x515   : > { %v2905_v23 = vpop.permute.xlu1 %2904 }
 0x518   : > { %v3047_v57 = vpop.permute.xlu0 %3046 }
 0x519   : > { %v3077_v17 = vsel %vm1366_vm1, %v3067_v52, %v3047_v57  ;;  %v5918_v52 = vld [vmem:[#allocation7 + $0x40] sm:$0xff] }
 0x51a   : > { %3322 = vmatprep.mubr.bf16.mxu1 %v3077_v17  ;;  %v5920_v17 = vld [vmem:[#allocation7 + $0x48] sm:$0xff] }
 0x51b   : > { %3323 = vmatmul.mubr.bf16.gmra.mrb[16].mxu1 %v2961_v60 }
 0x51c   : > { %v3029_v20 = vpop.permute.xlu0 %3028 }
 0x51d   : > { %v3069_v30 = vsel %vm1357_vm0, %v3061_v22, %v3029_v20 }
 0x51e   : > { %v2885_v37 = vpop.permute.xlu1 %2884 }
 0x51f   : > { %v2945_v31 = vsel %vm420_vm3, %v3866_v61, %v2885_v37 }
 0x520   : > { %v2953_v49 = vsel %vm1357_vm0, %v2945_v31, %v2905_v23 }
 0x522   : > { %v2933_v47 = vpop.permute.xlu1 %2932 }
 0x523   : > { %v3049_v1 = vpop.permute.xlu0 %3048  ;;  %v2964_v3 = vsel %vm1366_vm1, %v2953_v49, %v2933_v47 }
 0x524   : > { %v3080_v26 = vsel %vm1366_vm1, %v3069_v30, %v3049_v1 }
 0x525   : > { %3330 = vmatprep.mubr.bf16.mxu1 %v3080_v26 }
 0x526   : > { %3331 = vmatmul.mubr.bf16.gmra.mrb[20].mxu1 %v2964_v3  ;;  %v3423_v6 = vpop.permute.xlu1 %3422 }
 0x527   : > { %v3421_v0 = vpop.permute.xlu0 %3420 }
 0x52a   : > { %v5880_v25 = vpop.permute.xlu1 %3426 }
 0x52b   : > { %v5878_v56 = vpop.permute.xlu0 %3424 }
 0x52e   : > { %v5884_v63 = vpop.permute.xlu1 %3430 }
 0x52f   : > { %v5882_v61 = vpop.permute.xlu0 %3428 }
 0x532   : > { %v5888_v5 = vpop.permute.xlu1 %3434 }
 0x533   : > { %v5886_v8 = vpop.permute.xlu0 %3432 }
 0x536   : > { %v4138_v11 = vpop.permute.xlu1 %4137 }
 0x537   : > { %v5890_v7 = vpop.permute.xlu0 %3458 }
 0x53a   : > { %v5894_v24 = vpop.permute.xlu1 %4147 }
 0x53b   : > { %v5892_v54 = vpop.permute.xlu0 %4142 }
 0x53e   : > { %v1900_v59 = vpop.permute.xlu1 %1899 }
 0x53f   : > { %v5896_v53 = vpop.permute.xlu0 %4152  ;;  %v1923_v46 = vadd.f32 %v1900_v59, %v6108_v58  ;;  %v5928_v58 = vld [vmem:[#allocation7 + $0x50] sm:$0xff] }
 0x541   : > { %1931 = vst.msk [vmem:[#allocation6] sm:$0xff] %vm420_vm3, %v1923_v46 }
 0x542   : > { %v1904_v38 = vpop.permute.xlu1 %1903 }
 0x543   : > { %v1902_v4 = vpop.permute.xlu0 %1901  ;;  %v1925_v42 = vadd.f32 %v1904_v38, %v6110_v36  ;;  %v5930_v38 = vld [vmem:[#allocation7 + $0x58] sm:$0xff] }
 0x544   : > { %v1924_v41 = vadd.f32 %v1902_v4, %v6109_v27 }
 0x545   : > { %1933 = vst.msk [vmem:[#allocation6 + $0x10] sm:$0xff] %vm420_vm3, %v1925_v42 }
 0x546   : > { %1932 = vst.msk [vmem:[#allocation6 + $0x8] sm:$0xff] %vm420_vm3, %v1924_v41  ;;  %v1908_v62 = vpop.permute.xlu1 %1907 }
 0x547   : > { %v1906_v13 = vpop.permute.xlu0 %1905  ;;  %v1927_v48 = vadd.f32 %v1908_v62, %v6112_v39 }
 0x548   : > { %v1926_v12 = vadd.f32 %v1906_v13, %v6111_v9 }
 0x549   : > { %1935 = vst.msk [vmem:[#allocation6 + $0x20] sm:$0xff] %vm420_vm3, %v1927_v48 }
 0x54a   : > { %1934 = vst.msk [vmem:[#allocation6 + $0x18] sm:$0xff] %vm420_vm3, %v1926_v12  ;;  %v1912_v40 = vpop.permute.xlu1 %1911 }
 0x54b   : > { %v1910_v10 = vpop.permute.xlu0 %1909  ;;  %v1929_v21 = vadd.f32 %v1912_v40, %v6114_v14 }
 0x54c   : > { %v1928_v34 = vadd.f32 %v1910_v10, %v6113_v16  ;;  %v5944_v10 = vld [vmem:[#allocation7 + $0x60] sm:$0xff] }
 0x54d   : > { %1937 = vst.msk [vmem:[#allocation6 + $0x30] sm:$0xff] %vm420_vm3, %v1929_v21 }
 0x54e   : > { %1936 = vst.msk [vmem:[#allocation6 + $0x28] sm:$0xff] %vm420_vm3, %v1928_v34  ;;  %v5946_v34 = vld [vmem:[#allocation7 + $0x68] sm:$0xff] }
 0x54f   : > { %v1914_v18 = vpop.permute.xlu0 %1913 }
 0x550   : > { %v1930_v28 = vadd.f32 %v1914_v18, %v6115_v32 }
 0x552   : > { %1938 = vst.msk [vmem:[#allocation6 + $0x38] sm:$0xff] %vm420_vm3, %v1930_v28 }
 0x55f   : > { %v4085_v15 = vpop.f32.mrb[16].mxu0 }
 0x560   : > { %v3373_v33 = vpop.f32.mrb[17].mxu0 }
 0x561   : > { %v4086_v55 = vpop.f32.mrb[18].mxu0 }
 0x562   : > { %v3376_v43 = vpop.f32.mrb[19].mxu0 }
 0x57c   : > { %v5914_v45 = vpop.f32.mrb[20].mxu0 }
 0x57d   : > { %v3389_v2 = vpop.f32.mrb[21].mxu0 }
 0x57e   : > { %v5916_v19 = vpop.f32.mrb[22].mxu0 }
 0x57f   : > { %v3392_v51 = vpop.f32.mrb[23].mxu0 }
 0x5d0   : > { %v4037_v35 = vpop.f32.mrb[8].mxu1 }
 0x5d1   : > { %v4038_v44 = vpop.f32.mrb[9].mxu1 }
 0x5d2   : > { %v4039_v50 = vadd.f32 %v4038_v44, %v4037_v35  ;;  %v4040_v60 = vpop.f32.mrb[10].mxu1  ;;  %v3476_v35 = vld [vmem:[#allocation7 + $0x70] sm:$0xff] }
 0x5d3   : > { %v4041_v29 = vpop.f32.mrb[11].mxu1 }
 0x5d4   : > { %v3374_v57 = vadd.f32 %v4039_v50, %v3373_v33  ;;  %v4042_v23 = vadd.f32 %v4041_v29, %v4040_v60  ;;  %v3477_v60 = vld [vmem:[#allocation7 + $0x78] sm:$0xff] }
 0x5d6   : > { %v3444_v20 = vadd.f32 %v3421_v0, %v3374_v57  ;;  %v3377_v37 = vadd.f32 %v4042_v23, %v3376_v43  ;;  %3486 = vrot.lane.b32.xlu1 %v3374_v57, %s4361_s19  ;;  %3526 = vst.msk [vmem:[#allocation7 + $0x40] sm:$0xff] %vm420_vm3, %v3374_v57 }
 0x5d8   : > { %v3461_v31 = vadd.f32 %v5890_v7, %v3444_v20  ;;  %v3445_v22 = vadd.f32 %v3423_v6, %v3377_v37  ;;  %3488 = vrot.lane.b32.xlu0 %v3377_v37, %s4361_s19  ;;  %3527 = vst.msk [vmem:[#allocation7 + $0x48] sm:$0xff] %vm420_vm3, %v3377_v37 }
 0x5da   : > { %v3462_v30 = vadd.f32 %v5890_v7, %v3445_v22  ;;  %v4310_v1 = vadd.low.f32.bf16 %v3461_v31, %v4138_v11 }
 0x5dc   : > { %v4311_v49 = vadd.high.f32.bf16 %v3462_v30, %v4138_v11  ;;  %v3948_v36 = vpack.c.bf16 %v4310_v1, %v4310_v1 }
 0x5de   : > { %v3949_v13 = vpack.c.bf16 %v4311_v49, %v4311_v49 }
 0x5df   : > { %v4043_v47 = vpop.f32.mrb[12].mxu1 }
 0x5e0   : > { %v4044_v26 = vpop.f32.mrb[13].mxu1 }
 0x5e1   : > { %v4045_v3 = vadd.f32 %v4044_v26, %v4043_v47  ;;  %v4046_v0 = vpop.f32.mrb[14].mxu1 }
 0x5e2   : > { %v4047_v59 = vpop.f32.mrb[15].mxu1 }
 0x5e3   : > { %v3382_v46 = vadd.f32 %v4085_v15, %v4045_v3  ;;  %v4048_v4 = vadd.f32 %v4047_v59, %v4046_v0 }
 0x5e5   : > { %v3446_v6 = vadd.f32 %v5878_v56, %v3382_v46  ;;  %v3385_v27 = vadd.f32 %v4086_v55, %v4048_v4  ;;  %3490 = vrot.lane.b32.xlu1 %v3382_v46, %s4361_s19  ;;  %3528 = vst.msk [vmem:[#allocation7 + $0x50] sm:$0xff] %vm420_vm3, %v3382_v46 }
 0x5e7   : > { %v3463_v11 = vadd.f32 %v5890_v7, %v3446_v6  ;;  %v3447_v41 = vadd.f32 %v5880_v25, %v3385_v27  ;;  %3492 = vrot.lane.b32.xlu0 %v3385_v27, %s4361_s19  ;;  %3529 = vst.msk [vmem:[#allocation7 + $0x58] sm:$0xff] %vm420_vm3, %v3385_v27 }
 0x5e9   : > { %v3464_v42 = vadd.f32 %v5890_v7, %v3447_v41  ;;  %3598 = vrot.lane.b32.xlu1 %v3948_v36, %s4360_s17  ;;  %v4312_v56 = vadd.low.f32.bf16 %v3463_v11, %v5892_v54 }
 0x5eb   : > { %3600 = vrot.lane.b32.xlu0 %v3949_v13, %s4360_s17  ;;  %v4313_v62 = vadd.high.f32.bf16 %v3464_v42, %v5892_v54  ;;  %v3950_v32 = vpack.c.bf16 %v4312_v56, %v4312_v56 }
 0x5ee   : > { %v4049_v9 = vpop.f32.mrb[16].mxu1 }
 0x5ef   : > { %v4050_v12 = vpop.f32.mrb[17].mxu1 }
 0x5f0   : > { %v4051_v39 = vadd.f32 %v4050_v12, %v4049_v9  ;;  %v4052_v25 = vpop.f32.mrb[18].mxu1 }
 0x5f1   : > { %v4053_v48 = vpop.f32.mrb[19].mxu1 }
 0x5f2   : > { %v3390_v40 = vadd.f32 %v4051_v39, %v3389_v2  ;;  %v4054_v16 = vadd.f32 %v4053_v48, %v4052_v25 }
 0x5f4   : > { %v3448_v14 = vadd.f32 %v5882_v61, %v3390_v40  ;;  %v3393_v21 = vadd.f32 %v4054_v16, %v3392_v51  ;;  %3494 = vrot.lane.b32.xlu1 %v3390_v40, %s4361_s19  ;;  %3530 = vst.msk [vmem:[#allocation7 + $0x60] sm:$0xff] %vm420_vm3, %v3390_v40  ;;  %v3951_v61 = vpack.c.bf16 %v4313_v62, %v4313_v62 }
 0x5f6   : > { %v3465_v54 = vadd.f32 %v5890_v7, %v3448_v14  ;;  %v3449_v18 = vadd.f32 %v5884_v63, %v3393_v21  ;;  %3496 = vrot.lane.b32.xlu0 %v3393_v21, %s4361_s19  ;;  %3531 = vst.msk [vmem:[#allocation7 + $0x68] sm:$0xff] %vm420_vm3, %v3393_v21 }
 0x5f8   : > { %v3466_v28 = vadd.f32 %v5890_v7, %v3449_v18  ;;  %3602 = vrot.lane.b32.xlu1 %v3950_v32, %s4360_s17  ;;  %v4314_v33 = vadd.low.f32.bf16 %v3465_v54, %v5894_v24 }
 0x5f9   : > { %v4055_v15 = vpop.f32.mrb[20].mxu1 }
 0x5fa   : > { %v4056_v55 = vpop.f32.mrb[21].mxu1  ;;  %3604 = vrot.lane.b32.xlu0 %v3951_v61, %s4360_s17  ;;  %v4315_v63 = vadd.high.f32.bf16 %v3466_v28, %v5894_v24  ;;  %v3952_v24 = vpack.c.bf16 %v4314_v33, %v4314_v33 }
 0x5fb   : > { %v4057_v43 = vadd.f32 %v4056_v55, %v4055_v15  ;;  %v4058_v2 = vpop.f32.mrb[22].mxu1 }
 0x5fc   : > { %v4059_v51 = vpop.f32.mrb[23].mxu1 }
 0x5fd   : > { %v3398_v44 = vadd.f32 %v5914_v45, %v4057_v43  ;;  %v4060_v50 = vadd.f32 %v4059_v51, %v4058_v2 }
 0x5ff   : > { %v3450_v29 = vadd.f32 %v5886_v8, %v3398_v44  ;;  %v3401_v57 = vadd.f32 %v5916_v19, %v4060_v50  ;;  %3498 = vrot.lane.b32.xlu1 %v3398_v44, %s4361_s19  ;;  %3532 = vst.msk [vmem:[#allocation7 + $0x70] sm:$0xff] %vm420_vm3, %v3398_v44  ;;  %v3953_v8 = vpack.c.bf16 %v4315_v63, %v4315_v63 }
 0x601   : > { %v3467_v23 = vadd.f32 %v5890_v7, %v3450_v29  ;;  %v3451_v20 = vadd.f32 %v5888_v5, %v3401_v57  ;;  %3500 = vrot.lane.b32.xlu0 %v3401_v57, %s4361_s19  ;;  %3533 = vst.msk [vmem:[#allocation7 + $0x78] sm:$0xff] %vm420_vm3, %v3401_v57 }
 0x603   : > { %v3468_v45 = vadd.f32 %v5890_v7, %v3451_v20  ;;  %3606 = vrot.lane.b32.xlu1 %v3952_v24, %s4360_s17  ;;  %v4316_v19 = vadd.low.f32.bf16 %v3467_v23, %v5896_v53 }
 0x605   : > { %3608 = vrot.lane.b32.xlu0 %v3953_v8, %s4360_s17  ;;  %v3954_v37 = vpack.c.bf16 %v4316_v19, %v4316_v19  ;;  %v4317_v31 = vadd.high.f32.bf16 %v3468_v45, %v5896_v53 }
 0x607   : > { %3610 = vrot.lane.b32.xlu1 %v3954_v37, %s4360_s17  ;;  %v3955_v5 = vpack.c.bf16 %v4317_v31, %v4317_v31 }
 0x609   : > { %3612 = vrot.lane.b32.xlu0 %v3955_v5, %s4360_s17 }
 0x648   : > { %v3487_v22 = vpop.permute.xlu1 %3486 }
 0x649   : > { %v3510_v7 = vadd.f32 %v3487_v22, %v5918_v52 }
 0x64a   : > { %v3489_v30 = vpop.permute.xlu0 %3488 }
 0x64b   : > { %3518 = vst.msk [vmem:[#allocation7] sm:$0xff] %vm420_vm3, %v3510_v7  ;;  %v3511_v1 = vadd.f32 %v3489_v30, %v5920_v17 }
 0x64d   : > { %3519 = vst.msk [vmem:[#allocation7 + $0x8] sm:$0xff] %vm420_vm3, %v3511_v1 }
 0x657   : > { %v3491_v49 = vpop.permute.xlu1 %3490 }
 0x658   : > { %v3512_v53 = vadd.f32 %v3491_v49, %v5928_v58 }
 0x659   : > { %v3493_v47 = vpop.permute.xlu0 %3492 }
 0x65a   : > { %3520 = vst.msk [vmem:[#allocation7 + $0x10] sm:$0xff] %vm420_vm3, %v3512_v53  ;;  %v3513_v26 = vadd.f32 %v3493_v47, %v5930_v38 }
 0x65b   : > { %v3599_v3 = vpop.permute.xlu1 %3598 }
 0x65c   : > { %3521 = vst.msk [vmem:[#allocation7 + $0x18] sm:$0xff] %vm420_vm3, %v3513_v26 }
 0x65d   : > { %3623 = vst.msk [vmem:[%s4441_s18] sm:$0xf] %vm644_vm9, %v3599_v3  ;;  %v3601_v52 = vpop.permute.xlu0 %3600 }
 0x65e   : > { %3624 = vst.msk [vmem:[%s4441_s18 + $0x4] sm:$0xf] %vm644_vm9, %v3601_v52 }
 0x666   : > { %v3495_v17 = vpop.permute.xlu1 %3494 }
 0x667   : > { %v3514_v0 = vadd.f32 %v3495_v17, %v5944_v10 }
 0x668   : > { %v3497_v59 = vpop.permute.xlu0 %3496 }
 0x669   : > { %3522 = vst.msk [vmem:[#allocation7 + $0x20] sm:$0xff] %vm420_vm3, %v3514_v0  ;;  %v3515_v58 = vadd.f32 %v3497_v59, %v5946_v34 }
 0x66a   : > { %v3603_v46 = vpop.permute.xlu1 %3602 }
 0x66b   : > { %3523 = vst.msk [vmem:[#allocation7 + $0x28] sm:$0xff] %vm420_vm3, %v3515_v58 }
 0x66c   : > { %3625 = vst.msk [vmem:[%s4441_s18 + $0x8] sm:$0xf] %vm644_vm9, %v3603_v46  ;;  %v3605_v4 = vpop.permute.xlu0 %3604 }
 0x66d   : > { %3626 = vst.msk [vmem:[%s4441_s18 + $0xc] sm:$0xf] %vm644_vm9, %v3605_v4 }
 0x671   : > { %v3499_v38 = vpop.permute.xlu1 %3498 }
 0x672   : > { %v3516_v6 = vadd.f32 %v3499_v38, %v3476_v35 }
 0x673   : > { %v3501_v27 = vpop.permute.xlu0 %3500 }
 0x674   : > { %3524 = vst.msk [vmem:[#allocation7 + $0x30] sm:$0xff] %vm420_vm3, %v3516_v6  ;;  %v3517_v11 = vadd.f32 %v3501_v27, %v3477_v60 }
 0x675   : > { %v3607_v41 = vpop.permute.xlu1 %3606 }
 0x676   : > { %3525 = vst.msk [vmem:[#allocation7 + $0x38] sm:$0xff] %vm420_vm3, %v3517_v11 }
 0x677   : > { %3627 = vst.msk [vmem:[%s4441_s18 + $0x10] sm:$0xf] %vm644_vm9, %v3607_v41  ;;  %v3609_v36 = vpop.permute.xlu0 %3608 }
 0x678   : > { %3628 = vst.msk [vmem:[%s4441_s18 + $0x14] sm:$0xf] %vm644_vm9, %v3609_v36 }
 0x679   : > { %v3611_v42 = vpop.permute.xlu1 %3610 }
 0x67a   : > { %3629 = vst.msk [vmem:[%s4441_s18 + $0x18] sm:$0xf] %vm644_vm9, %v3611_v42 }
 0x67b   : > { %v3613_v13 = vpop.permute.xlu0 %3612 }
 0x67c   : > { %3630 = vst.msk [vmem:[%s4441_s18 + $0x1c] sm:$0xf] %vm644_vm9, %v3613_v13 }
 0x67d PF: > { %s17_s28 = sadd.s32 1, %s4356_s28   ;;  %s6116_s24 = smov %s4348_s26 }
 0x67e   : > { %p14_p8 = scmp.ge.s32.totalorder %s17_s28, 10   ;;  %s6117_s25 = smov %s4352_s27 }
 0x67f   : > { %s6118_s26 = smov %s6121_s29  ;;  %s6119_s27 = smov %s6125_s30 }
 0x680   :  { %16 = sbr.rel (!%p14_p8) target bundleno = 3 (0x3), region = 88 }

</bundles_post_ra>
